<compile_context>
chip_gen: v6e
topology: v6e:2x2x1
jax: 0.10.0
libtpu: 0.0.40
codegen_flags: <defaults>
</compile_context>

<pallas_src>
import jax
import jax.numpy as jnp
from jax.experimental import pallas as pl
from jax.experimental.pallas import tpu as pltpu

LATENT_DIM = 64
IMG_SIZE = 64
IMG_SHAPE = (3, IMG_SIZE, IMG_SIZE)
OUT_FEATURES = 3 * IMG_SIZE * IMG_SIZE  # 12288
HIDDEN = 1024
BN_EPS = 0.8
LRELU_SLOPE = 0.2
TN = 3072                               # output-column tile (int8 tile = 3 MiB)
GRID_N = OUT_FEATURES // TN             # 4 (even -> clean 2-TC split on v7x)


# ----------------------------------------------------------------------------
# Fused kernel: hidden MLP (recomputed per grid step, weights VMEM-resident)
# followed by one column tile of the final Linear(1024 -> 12288) + Tanh.
# ----------------------------------------------------------------------------
def _generator_kernel(z_ref,
                      w1_ref, b1_ref,
                      w2_ref, b2_ref, g2_ref, be2_ref,
                      w3_ref, b3_ref, g3_ref, be3_ref,
                      w4_ref, b4_ref, g4_ref, be4_ref,
                      w5_ref, s5_ref, b5_ref,
                      o_ref):
    x = z_ref[...]

    def lin(h, w_ref, b_ref):
        # Hidden weights are stored bf16; upcast to f32 so the hidden stack
        # keeps full-precision activations (f32 accumulation on the MXU).
        w = w_ref[...].astype(jnp.float32)
        return jnp.dot(h, w, preferred_element_type=jnp.float32) + b_ref[...]

    def lrelu(h):
        return jnp.where(h >= 0, h, LRELU_SLOPE * h)

    # Block 1: Linear + LeakyReLU (normalize=False)
    h = lrelu(lin(x, w1_ref, b1_ref))

    def bn_block(h, w_ref, b_ref, g_ref, be_ref):
        h = lin(h, w_ref, b_ref)
        # BatchNorm1d in training mode: batch mean / biased variance, eps=0.8.
        # (Each block carries the FULL batch, so batch stats are exact; do not
        #  tile the batch dimension without revisiting this.)
        mean = jnp.mean(h, axis=0, keepdims=True)
        diff = h - mean
        var = jnp.mean(diff * diff, axis=0, keepdims=True)
        h = g_ref[...] * diff * jax.lax.rsqrt(var + BN_EPS) + be_ref[...]
        return lrelu(h)

    h = bn_block(h, w2_ref, b2_ref, g2_ref, be2_ref)
    h = bn_block(h, w3_ref, b3_ref, g3_ref, be3_ref)
    h = bn_block(h, w4_ref, b4_ref, g4_ref, be4_ref)

    # Final-layer column tile: int8 weight tile dequantized on the VPU in f32
    # (v5e-safe), f32 MXU accumulate, per-column scale applied post-matmul
    # (exact for column-wise quantization), then bias + tanh.
    w5 = w5_ref[0].astype(jnp.float32)                      # (K, tn)
    y = jnp.dot(h, w5, preferred_element_type=jnp.float32)  # (B, tn)
    y = y * s5_ref[...] + b5_ref[...]
    o_ref[...] = jnp.tanh(y)


def generator_flat(z, params, *, tn=TN):
    B = z.shape[0]
    K = HIDDEN
    N = OUT_FEATURES
    assert N % tn == 0
    grid_n = N // tn
    assert params["w5q"].shape == (grid_n, K, tn), params["w5q"].shape

    # Advisory cost estimate (final matmul + recomputed hidden stack + tanh).
    # Note: does not count the per-TensorCore refetch of constant blocks on
    # v7x when the "parallel" grid axis is split across cores.
    hidden_flops = 2 * B * (LATENT_DIM * 128 + 128 * 256 + 256 * 512 + 512 * 1024)
    flops = 2 * B * K * N + hidden_flops * grid_n
    bytes_accessed = (
        z.size * 4
        + sum(int(v.size) * v.dtype.itemsize for v in params.values())
        + B * N * 4)
    cost = pl.CostEstimate(flops=int(flops),
                           transcendentals=int(B * N),
                           bytes_accessed=int(bytes_accessed))

    const = lambda j: (0, 0)
    in_specs = [
        pl.BlockSpec((B, LATENT_DIM), const),            # z
        pl.BlockSpec((LATENT_DIM, 128), const),          # w1 (bf16)
        pl.BlockSpec((1, 128), const),                   # b1
        pl.BlockSpec((128, 256), const),                 # w2 (bf16)
        pl.BlockSpec((1, 256), const),                   # b2
        pl.BlockSpec((1, 256), const),                   # g2
        pl.BlockSpec((1, 256), const),                   # be2
        pl.BlockSpec((256, 512), const),                 # w3 (bf16)
        pl.BlockSpec((1, 512), const),                   # b3
        pl.BlockSpec((1, 512), const),                   # g3
        pl.BlockSpec((1, 512), const),                   # be3
        pl.BlockSpec((512, 1024), const),                # w4 (bf16)
        pl.BlockSpec((1, 1024), const),                  # b4
        pl.BlockSpec((1, 1024), const),                  # g4
        pl.BlockSpec((1, 1024), const),                  # be4
        pl.BlockSpec((1, K, tn), lambda j: (j, 0, 0)),   # w5q (int8, contiguous tiles)
        pl.BlockSpec((1, tn), lambda j: (0, j)),         # s5 (per-column scales)
        pl.BlockSpec((1, tn), lambda j: (0, j)),         # b5
    ]
    out_specs = pl.BlockSpec((B, tn), lambda j: (0, j))

    return pl.pallas_call(
        _generator_kernel,
        out_shape=jax.ShapeDtypeStruct((B, N), jnp.float32),
        grid=(grid_n,),
        in_specs=in_specs,
        out_specs=out_specs,
        compiler_params=pltpu.CompilerParams(
            dimension_semantics=("parallel",),
            vmem_limit_bytes=40 * 1024 * 1024),
        cost_estimate=cost,
    )(z,
      params["w1"], params["b1"],
      params["w2"], params["b2"], params["g2"], params["be2"],
      params["w3"], params["b3"], params["g3"], params["be3"],
      params["w4"], params["b4"], params["g4"], params["be4"],
      params["w5q"], params["s5"], params["b5"])


# ----------------------------------------------------------------------------
# Parameter construction (PyTorch-default-style Linear init:
# U(-1/sqrt(fan_in), 1/sqrt(fan_in)); BN gamma=1, beta=0).
# Weights are stored transposed relative to PyTorch, i.e. (in, out), so the
# kernel computes x @ W.  Hidden weights w1..w4 are stored bf16; the final
# layer is quantized once to int8 with per-output-column scales and pre-packed
# into contiguous (GRID_N, 1024, TN) tiles.
# ----------------------------------------------------------------------------
def init_params(key, *, tn=TN):
    dims = [(LATENT_DIM, 128), (128, 256), (256, 512), (512, 1024),
            (1024, OUT_FEATURES)]
    names = ["1", "2", "3", "4", "5"]
    params = {}
    keys = jax.random.split(key, 2 * len(dims))
    for idx, ((fan_in, fan_out), name) in enumerate(zip(dims, names)):
        bound = 1.0 / (fan_in ** 0.5)
        w = jax.random.uniform(keys[2 * idx], (fan_in, fan_out),
                               minval=-bound, maxval=bound, dtype=jnp.float32)
        b = jax.random.uniform(keys[2 * idx + 1], (1, fan_out),
                               minval=-bound, maxval=bound, dtype=jnp.float32)
        params["w" + name] = w
        params["b" + name] = b

    # Hidden-stack weights in bf16 (halves the constant-block HBM fetch).
    for name in ["1", "2", "3", "4"]:
        params["w" + name] = params["w" + name].astype(jnp.bfloat16)

    # Final-layer weight: symmetric int8 per-output-column quantization,
    # repacked so each (1024, tn) column tile is one contiguous DMA.
    w5 = params.pop("w5")                                     # (1024, 12288) f32
    amax = jnp.max(jnp.abs(w5), axis=0, keepdims=True)        # (1, 12288)
    s5 = jnp.where(amax > 0, amax / 127.0, 1.0).astype(jnp.float32)
    q5 = jnp.clip(jnp.round(w5 / s5), -127.0, 127.0).astype(jnp.int8)
    grid_n = OUT_FEATURES // tn
    q5 = q5.reshape(HIDDEN, grid_n, tn).transpose(1, 0, 2)    # (grid_n, K, tn)
    params["w5q"] = q5
    params["s5"] = s5

    # BatchNorm affine params for layers 2..4 (f32; v5e VPU has no bf16 VALU).
    for name, n in [("2", 256), ("3", 512), ("4", 1024)]:
        params["g" + name] = jnp.ones((1, n), jnp.float32)
        params["be" + name] = jnp.zeros((1, n), jnp.float32)
    return params


@jax.jit
def generator_forward(z, params):
    flat = generator_flat(z, params)          # (B, 12288) f32
    B = z.shape[0]
    # For large batches with bf16 consumers, emit bf16 from the kernel instead
    # to halve output writeback; kept f32 here to match the PyTorch module.
    return flat.reshape(B, *IMG_SHAPE)        # NCHW (B, 3, 64, 64)


if __name__ == "__main__":
    key = jax.random.PRNGKey(0)
    pkey, zkey = jax.random.split(key)
    params = init_params(pkey)

    batch = 8
    z = jax.random.normal(zkey, (batch, LATENT_DIM), dtype=jnp.float32)

    img = generator_forward(z, params)
    img = jax.block_until_ready(img)

    assert img.shape == (batch, 3, IMG_SIZE, IMG_SIZE), img.shape
    assert img.dtype == jnp.float32
    assert bool(jnp.all(jnp.isfinite(img)))
    # tanh output range sanity check
    assert bool(jnp.max(jnp.abs(img)) <= 1.0 + 1e-6)

    print("KERNEL_OK")
</pallas_src>

<mosaic_0001>
module attributes {stable_mosaic.version = 11 : i64} {
  func.func @_generator_kernel(%arg0: i32, %arg1: memref<8x64xf32, #tpu.memory_space<vmem>>, %arg2: memref<64x128xbf16, #tpu.memory_space<vmem>>, %arg3: memref<1x128xf32, #tpu.memory_space<vmem>>, %arg4: memref<128x256xbf16, #tpu.memory_space<vmem>>, %arg5: memref<1x256xf32, #tpu.memory_space<vmem>>, %arg6: memref<1x256xf32, #tpu.memory_space<vmem>>, %arg7: memref<1x256xf32, #tpu.memory_space<vmem>>, %arg8: memref<256x512xbf16, #tpu.memory_space<vmem>>, %arg9: memref<1x512xf32, #tpu.memory_space<vmem>>, %arg10: memref<1x512xf32, #tpu.memory_space<vmem>>, %arg11: memref<1x512xf32, #tpu.memory_space<vmem>>, %arg12: memref<512x1024xbf16, #tpu.memory_space<vmem>>, %arg13: memref<1x1024xf32, #tpu.memory_space<vmem>>, %arg14: memref<1x1024xf32, #tpu.memory_space<vmem>>, %arg15: memref<1x1024xf32, #tpu.memory_space<vmem>>, %arg16: memref<1x1024x3072xi8, #tpu.memory_space<vmem>>, %arg17: memref<1x3072xf32, #tpu.memory_space<vmem>>, %arg18: memref<1x3072xf32, #tpu.memory_space<vmem>>, %arg19: memref<8x3072xf32, #tpu.memory_space<vmem>>) attributes {dimension_semantics = [#tpu.dimension_semantics<parallel>], iteration_bounds = array<i64: 4>, scalar_prefetch = 0 : i64, scratch_operands = 0 : i64, tpu.core_type = #tpu.core_type<tc>, window_params = [{pipeline_mode = #tpu.pipeline_mode<synchronous>, transform_indices = @transform_0, window_bounds = array<i64: 8, 64>}, {pipeline_mode = #tpu.pipeline_mode<synchronous>, transform_indices = @transform_1, window_bounds = array<i64: 64, 128>}, {pipeline_mode = #tpu.pipeline_mode<synchronous>, transform_indices = @transform_2, window_bounds = array<i64: 1, 128>}, {pipeline_mode = #tpu.pipeline_mode<synchronous>, transform_indices = @transform_3, window_bounds = array<i64: 128, 256>}, {pipeline_mode = #tpu.pipeline_mode<synchronous>, transform_indices = @transform_4, window_bounds = array<i64: 1, 256>}, {pipeline_mode = #tpu.pipeline_mode<synchronous>, transform_indices = @transform_5, window_bounds = array<i64: 1, 256>}, {pipeline_mode = #tpu.pipeline_mode<synchronous>, transform_indices = @transform_6, window_bounds = array<i64: 1, 256>}, {pipeline_mode = #tpu.pipeline_mode<synchronous>, transform_indices = @transform_7, window_bounds = array<i64: 256, 512>}, {pipeline_mode = #tpu.pipeline_mode<synchronous>, transform_indices = @transform_8, window_bounds = array<i64: 1, 512>}, {pipeline_mode = #tpu.pipeline_mode<synchronous>, transform_indices = @transform_9, window_bounds = array<i64: 1, 512>}, {pipeline_mode = #tpu.pipeline_mode<synchronous>, transform_indices = @transform_10, window_bounds = array<i64: 1, 512>}, {pipeline_mode = #tpu.pipeline_mode<synchronous>, transform_indices = @transform_11, window_bounds = array<i64: 512, 1024>}, {pipeline_mode = #tpu.pipeline_mode<synchronous>, transform_indices = @transform_12, window_bounds = array<i64: 1, 1024>}, {pipeline_mode = #tpu.pipeline_mode<synchronous>, transform_indices = @transform_13, window_bounds = array<i64: 1, 1024>}, {pipeline_mode = #tpu.pipeline_mode<synchronous>, transform_indices = @transform_14, window_bounds = array<i64: 1, 1024>}, {transform_indices = @transform_15, window_bounds = array<i64: 1, 1024, 3072>}, {transform_indices = @transform_16, window_bounds = array<i64: 1, 3072>}, {transform_indices = @transform_17, window_bounds = array<i64: 1, 3072>}, {transform_indices = @transform_18, window_bounds = array<i64: 8, 3072>}]} {
    %c0 = arith.constant 0 : index
    %c0_0 = arith.constant 0 : index
    %0 = vector.load %arg1[%c0, %c0_0] : memref<8x64xf32, #tpu.memory_space<vmem>>, vector<8x64xf32>
    %c0_1 = arith.constant 0 : index
    %c0_2 = arith.constant 0 : index
    %1 = vector.load %arg2[%c0_1, %c0_2] : memref<64x128xbf16, #tpu.memory_space<vmem>>, vector<64x128xbf16>
    %2 = arith.extf %1 : vector<64x128xbf16> to vector<64x128xf32>
    %cst = arith.constant dense<0.000000e+00> : vector<8x128xf32>
    %3 = tpu.matmul %0, %2, %cst {dimension_numbers = #tpu.dot_dimension_numbers<[1], [0], [0], [1], [0, 0, 1, 1], [], []>} : vector<8x64xf32>, vector<64x128xf32>, vector<8x128xf32> -> vector<8x128xf32>
    %c0_3 = arith.constant 0 : index
    %c0_4 = arith.constant 0 : index
    %4 = vector.load %arg3[%c0_3, %c0_4] : memref<1x128xf32, #tpu.memory_space<vmem>>, vector<1x128xf32>
    %5 = vector.broadcast %4 : vector<1x128xf32> to vector<8x128xf32>
    %6 = arith.addf %3, %5 : vector<8x128xf32>
    %cst_5 = arith.constant 0.000000e+00 : f32
    %7 = vector.broadcast %cst_5 : f32 to vector<8x128xf32>
    %8 = arith.cmpf oge, %6, %7 : vector<8x128xf32>
    %cst_6 = arith.constant 2.000000e-01 : f32
    %9 = vector.broadcast %cst_6 : f32 to vector<8x128xf32>
    %10 = arith.mulf %9, %6 : vector<8x128xf32>
    %11 = arith.select %8, %6, %10 : vector<8x128xi1>, vector<8x128xf32>
    %c0_7 = arith.constant 0 : index
    %c0_8 = arith.constant 0 : index
    %12 = vector.load %arg4[%c0_7, %c0_8] : memref<128x256xbf16, #tpu.memory_space<vmem>>, vector<128x256xbf16>
    %13 = arith.extf %12 : vector<128x256xbf16> to vector<128x256xf32>
    %cst_9 = arith.constant dense<0.000000e+00> : vector<8x256xf32>
    %14 = tpu.matmul %11, %13, %cst_9 {dimension_numbers = #tpu.dot_dimension_numbers<[1], [0], [0], [1], [0, 0, 1, 1], [], []>} : vector<8x128xf32>, vector<128x256xf32>, vector<8x256xf32> -> vector<8x256xf32>
    %c0_10 = arith.constant 0 : index
    %c0_11 = arith.constant 0 : index
    %15 = vector.load %arg5[%c0_10, %c0_11] : memref<1x256xf32, #tpu.memory_space<vmem>>, vector<1x256xf32>
    %16 = vector.broadcast %15 : vector<1x256xf32> to vector<8x256xf32>
    %17 = arith.addf %14, %16 : vector<8x256xf32>
    %cst_12 = arith.constant dense<0.000000e+00> : vector<256xf32>
    %18 = vector.multi_reduction <add>, %17, %cst_12 [0] : vector<8x256xf32> to vector<256xf32>
    %19 = vector.shape_cast %18 : vector<256xf32> to vector<1x256xf32>
    %cst_13 = arith.constant 8.000000e+00 : f32
    %20 = vector.broadcast %cst_13 : f32 to vector<1x256xf32>
    %21 = arith.divf %19, %20 : vector<1x256xf32>
    %22 = vector.broadcast %21 : vector<1x256xf32> to vector<8x256xf32>
    %23 = arith.subf %17, %22 : vector<8x256xf32>
    %24 = arith.mulf %23, %23 : vector<8x256xf32>
    %cst_14 = arith.constant dense<0.000000e+00> : vector<256xf32>
    %25 = vector.multi_reduction <add>, %24, %cst_14 [0] : vector<8x256xf32> to vector<256xf32>
    %26 = vector.shape_cast %25 : vector<256xf32> to vector<1x256xf32>
    %cst_15 = arith.constant 8.000000e+00 : f32
    %27 = vector.broadcast %cst_15 : f32 to vector<1x256xf32>
    %28 = arith.divf %26, %27 : vector<1x256xf32>
    %c0_16 = arith.constant 0 : index
    %c0_17 = arith.constant 0 : index
    %29 = vector.load %arg6[%c0_16, %c0_17] : memref<1x256xf32, #tpu.memory_space<vmem>>, vector<1x256xf32>
    %30 = vector.broadcast %29 : vector<1x256xf32> to vector<8x256xf32>
    %31 = arith.mulf %30, %23 : vector<8x256xf32>
    %cst_18 = arith.constant 8.000000e-01 : f32
    %32 = vector.broadcast %cst_18 : f32 to vector<1x256xf32>
    %33 = arith.addf %28, %32 : vector<1x256xf32>
    %34 = math.rsqrt %33 : vector<1x256xf32>
    %35 = vector.broadcast %34 : vector<1x256xf32> to vector<8x256xf32>
    %36 = arith.mulf %31, %35 : vector<8x256xf32>
    %c0_19 = arith.constant 0 : index
    %c0_20 = arith.constant 0 : index
    %37 = vector.load %arg7[%c0_19, %c0_20] : memref<1x256xf32, #tpu.memory_space<vmem>>, vector<1x256xf32>
    %38 = vector.broadcast %37 : vector<1x256xf32> to vector<8x256xf32>
    %39 = arith.addf %36, %38 : vector<8x256xf32>
    %cst_21 = arith.constant 0.000000e+00 : f32
    %40 = vector.broadcast %cst_21 : f32 to vector<8x256xf32>
    %41 = arith.cmpf oge, %39, %40 : vector<8x256xf32>
    %cst_22 = arith.constant 2.000000e-01 : f32
    %42 = vector.broadcast %cst_22 : f32 to vector<8x256xf32>
    %43 = arith.mulf %42, %39 : vector<8x256xf32>
    %44 = arith.select %41, %39, %43 : vector<8x256xi1>, vector<8x256xf32>
    %c0_23 = arith.constant 0 : index
    %c0_24 = arith.constant 0 : index
    %45 = vector.load %arg8[%c0_23, %c0_24] : memref<256x512xbf16, #tpu.memory_space<vmem>>, vector<256x512xbf16>
    %46 = arith.extf %45 : vector<256x512xbf16> to vector<256x512xf32>
    %cst_25 = arith.constant dense<0.000000e+00> : vector<8x512xf32>
    %47 = tpu.matmul %44, %46, %cst_25 {dimension_numbers = #tpu.dot_dimension_numbers<[1], [0], [0], [1], [0, 0, 1, 1], [], []>} : vector<8x256xf32>, vector<256x512xf32>, vector<8x512xf32> -> vector<8x512xf32>
    %c0_26 = arith.constant 0 : index
    %c0_27 = arith.constant 0 : index
    %48 = vector.load %arg9[%c0_26, %c0_27] : memref<1x512xf32, #tpu.memory_space<vmem>>, vector<1x512xf32>
    %49 = vector.broadcast %48 : vector<1x512xf32> to vector<8x512xf32>
    %50 = arith.addf %47, %49 : vector<8x512xf32>
    %cst_28 = arith.constant dense<0.000000e+00> : vector<512xf32>
    %51 = vector.multi_reduction <add>, %50, %cst_28 [0] : vector<8x512xf32> to vector<512xf32>
    %52 = vector.shape_cast %51 : vector<512xf32> to vector<1x512xf32>
    %cst_29 = arith.constant 8.000000e+00 : f32
    %53 = vector.broadcast %cst_29 : f32 to vector<1x512xf32>
    %54 = arith.divf %52, %53 : vector<1x512xf32>
    %55 = vector.broadcast %54 : vector<1x512xf32> to vector<8x512xf32>
    %56 = arith.subf %50, %55 : vector<8x512xf32>
    %57 = arith.mulf %56, %56 : vector<8x512xf32>
    %cst_30 = arith.constant dense<0.000000e+00> : vector<512xf32>
    %58 = vector.multi_reduction <add>, %57, %cst_30 [0] : vector<8x512xf32> to vector<512xf32>
    %59 = vector.shape_cast %58 : vector<512xf32> to vector<1x512xf32>
    %cst_31 = arith.constant 8.000000e+00 : f32
    %60 = vector.broadcast %cst_31 : f32 to vector<1x512xf32>
    %61 = arith.divf %59, %60 : vector<1x512xf32>
    %c0_32 = arith.constant 0 : index
    %c0_33 = arith.constant 0 : index
    %62 = vector.load %arg10[%c0_32, %c0_33] : memref<1x512xf32, #tpu.memory_space<vmem>>, vector<1x512xf32>
    %63 = vector.broadcast %62 : vector<1x512xf32> to vector<8x512xf32>
    %64 = arith.mulf %63, %56 : vector<8x512xf32>
    %cst_34 = arith.constant 8.000000e-01 : f32
    %65 = vector.broadcast %cst_34 : f32 to vector<1x512xf32>
    %66 = arith.addf %61, %65 : vector<1x512xf32>
    %67 = math.rsqrt %66 : vector<1x512xf32>
    %68 = vector.broadcast %67 : vector<1x512xf32> to vector<8x512xf32>
    %69 = arith.mulf %64, %68 : vector<8x512xf32>
    %c0_35 = arith.constant 0 : index
    %c0_36 = arith.constant 0 : index
    %70 = vector.load %arg11[%c0_35, %c0_36] : memref<1x512xf32, #tpu.memory_space<vmem>>, vector<1x512xf32>
    %71 = vector.broadcast %70 : vector<1x512xf32> to vector<8x512xf32>
    %72 = arith.addf %69, %71 : vector<8x512xf32>
    %cst_37 = arith.constant 0.000000e+00 : f32
    %73 = vector.broadcast %cst_37 : f32 to vector<8x512xf32>
    %74 = arith.cmpf oge, %72, %73 : vector<8x512xf32>
    %cst_38 = arith.constant 2.000000e-01 : f32
    %75 = vector.broadcast %cst_38 : f32 to vector<8x512xf32>
    %76 = arith.mulf %75, %72 : vector<8x512xf32>
    %77 = arith.select %74, %72, %76 : vector<8x512xi1>, vector<8x512xf32>
    %c0_39 = arith.constant 0 : index
    %c0_40 = arith.constant 0 : index
    %78 = vector.load %arg12[%c0_39, %c0_40] : memref<512x1024xbf16, #tpu.memory_space<vmem>>, vector<512x1024xbf16>
    %79 = arith.extf %78 : vector<512x1024xbf16> to vector<512x1024xf32>
    %cst_41 = arith.constant dense<0.000000e+00> : vector<8x1024xf32>
    %80 = tpu.matmul %77, %79, %cst_41 {dimension_numbers = #tpu.dot_dimension_numbers<[1], [0], [0], [1], [0, 0, 1, 1], [], []>} : vector<8x512xf32>, vector<512x1024xf32>, vector<8x1024xf32> -> vector<8x1024xf32>
    %c0_42 = arith.constant 0 : index
    %c0_43 = arith.constant 0 : index
    %81 = vector.load %arg13[%c0_42, %c0_43] : memref<1x1024xf32, #tpu.memory_space<vmem>>, vector<1x1024xf32>
    %82 = vector.broadcast %81 : vector<1x1024xf32> to vector<8x1024xf32>
    %83 = arith.addf %80, %82 : vector<8x1024xf32>
    %cst_44 = arith.constant dense<0.000000e+00> : vector<1024xf32>
    %84 = vector.multi_reduction <add>, %83, %cst_44 [0] : vector<8x1024xf32> to vector<1024xf32>
    %85 = vector.shape_cast %84 : vector<1024xf32> to vector<1x1024xf32>
    %cst_45 = arith.constant 8.000000e+00 : f32
    %86 = vector.broadcast %cst_45 : f32 to vector<1x1024xf32>
    %87 = arith.divf %85, %86 : vector<1x1024xf32>
    %88 = vector.broadcast %87 : vector<1x1024xf32> to vector<8x1024xf32>
    %89 = arith.subf %83, %88 : vector<8x1024xf32>
    %90 = arith.mulf %89, %89 : vector<8x1024xf32>
    %cst_46 = arith.constant dense<0.000000e+00> : vector<1024xf32>
    %91 = vector.multi_reduction <add>, %90, %cst_46 [0] : vector<8x1024xf32> to vector<1024xf32>
    %92 = vector.shape_cast %91 : vector<1024xf32> to vector<1x1024xf32>
    %cst_47 = arith.constant 8.000000e+00 : f32
    %93 = vector.broadcast %cst_47 : f32 to vector<1x1024xf32>
    %94 = arith.divf %92, %93 : vector<1x1024xf32>
    %c0_48 = arith.constant 0 : index
    %c0_49 = arith.constant 0 : index
    %95 = vector.load %arg14[%c0_48, %c0_49] : memref<1x1024xf32, #tpu.memory_space<vmem>>, vector<1x1024xf32>
    %96 = vector.broadcast %95 : vector<1x1024xf32> to vector<8x1024xf32>
    %97 = arith.mulf %96, %89 : vector<8x1024xf32>
    %cst_50 = arith.constant 8.000000e-01 : f32
    %98 = vector.broadcast %cst_50 : f32 to vector<1x1024xf32>
    %99 = arith.addf %94, %98 : vector<1x1024xf32>
    %100 = math.rsqrt %99 : vector<1x1024xf32>
    %101 = vector.broadcast %100 : vector<1x1024xf32> to vector<8x1024xf32>
    %102 = arith.mulf %97, %101 : vector<8x1024xf32>
    %c0_51 = arith.constant 0 : index
    %c0_52 = arith.constant 0 : index
    %103 = vector.load %arg15[%c0_51, %c0_52] : memref<1x1024xf32, #tpu.memory_space<vmem>>, vector<1x1024xf32>
    %104 = vector.broadcast %103 : vector<1x1024xf32> to vector<8x1024xf32>
    %105 = arith.addf %102, %104 : vector<8x1024xf32>
    %cst_53 = arith.constant 0.000000e+00 : f32
    %106 = vector.broadcast %cst_53 : f32 to vector<8x1024xf32>
    %107 = arith.cmpf oge, %105, %106 : vector<8x1024xf32>
    %cst_54 = arith.constant 2.000000e-01 : f32
    %108 = vector.broadcast %cst_54 : f32 to vector<8x1024xf32>
    %109 = arith.mulf %108, %105 : vector<8x1024xf32>
    %110 = arith.select %107, %105, %109 : vector<8x1024xi1>, vector<8x1024xf32>
    %c0_55 = arith.constant 0 : index
    %c0_56 = arith.constant 0 : index
    %c0_57 = arith.constant 0 : index
    %111 = vector.load %arg16[%c0_55, %c0_56, %c0_57] : memref<1x1024x3072xi8, #tpu.memory_space<vmem>>, vector<1x1024x3072xi8>
    %112 = vector.shape_cast %111 : vector<1x1024x3072xi8> to vector<1024x3072xi8>
    %113 = arith.sitofp %112 : vector<1024x3072xi8> to vector<1024x3072xf32>
    %cst_58 = arith.constant dense<0.000000e+00> : vector<8x3072xf32>
    %114 = tpu.matmul %110, %113, %cst_58 {dimension_numbers = #tpu.dot_dimension_numbers<[1], [0], [0], [1], [0, 0, 1, 1], [], []>} : vector<8x1024xf32>, vector<1024x3072xf32>, vector<8x3072xf32> -> vector<8x3072xf32>
    %c0_59 = arith.constant 0 : index
    %c0_60 = arith.constant 0 : index
    %115 = vector.load %arg17[%c0_59, %c0_60] : memref<1x3072xf32, #tpu.memory_space<vmem>>, vector<1x3072xf32>
    %116 = vector.broadcast %115 : vector<1x3072xf32> to vector<8x3072xf32>
    %117 = arith.mulf %114, %116 : vector<8x3072xf32>
    %c0_61 = arith.constant 0 : index
    %c0_62 = arith.constant 0 : index
    %118 = vector.load %arg18[%c0_61, %c0_62] : memref<1x3072xf32, #tpu.memory_space<vmem>>, vector<1x3072xf32>
    %119 = vector.broadcast %118 : vector<1x3072xf32> to vector<8x3072xf32>
    %120 = arith.addf %117, %119 : vector<8x3072xf32>
    %121 = math.tanh %120 : vector<8x3072xf32>
    %c0_63 = arith.constant 0 : index
    %c0_64 = arith.constant 0 : index
    %122 = vector.load %arg19[%c0_63, %c0_64] : memref<8x3072xf32, #tpu.memory_space<vmem>>, vector<8x3072xf32>
    tpu.vector_store %arg19[%c0_63, %c0_64], %121 {strides = array<i32>} : memref<8x3072xf32, #tpu.memory_space<vmem>>, vector<8x3072xf32>,
    return
  }
  func.func @transform_0(%arg0: i32) -> (i32, i32) {
    %c0_i32 = arith.constant 0 : i32
    %c0_i32_0 = arith.constant 0 : i32
    %c0_i32_1 = arith.constant 0 : i32
    return %c0_i32, %c0_i32_0 : i32, i32
  }
  func.func @transform_1(%arg0: i32) -> (i32, i32) {
    %c0_i32 = arith.constant 0 : i32
    %c0_i32_0 = arith.constant 0 : i32
    %c0_i32_1 = arith.constant 0 : i32
    return %c0_i32, %c0_i32_0 : i32, i32
  }
  func.func @transform_2(%arg0: i32) -> (i32, i32) {
    %c0_i32 = arith.constant 0 : i32
    %c0_i32_0 = arith.constant 0 : i32
    %c0_i32_1 = arith.constant 0 : i32
    return %c0_i32, %c0_i32_0 : i32, i32
  }
  func.func @transform_3(%arg0: i32) -> (i32, i32) {
    %c0_i32 = arith.constant 0 : i32
    %c0_i32_0 = arith.constant 0 : i32
    %c0_i32_1 = arith.constant 0 : i32
    return %c0_i32, %c0_i32_0 : i32, i32
  }
  func.func @transform_4(%arg0: i32) -> (i32, i32) {
    %c0_i32 = arith.constant 0 : i32
    %c0_i32_0 = arith.constant 0 : i32
    %c0_i32_1 = arith.constant 0 : i32
    return %c0_i32, %c0_i32_0 : i32, i32
  }
  func.func @transform_5(%arg0: i32) -> (i32, i32) {
    %c0_i32 = arith.constant 0 : i32
    %c0_i32_0 = arith.constant 0 : i32
    %c0_i32_1 = arith.constant 0 : i32
    return %c0_i32, %c0_i32_0 : i32, i32
  }
  func.func @transform_6(%arg0: i32) -> (i32, i32) {
    %c0_i32 = arith.constant 0 : i32
    %c0_i32_0 = arith.constant 0 : i32
    %c0_i32_1 = arith.constant 0 : i32
    return %c0_i32, %c0_i32_0 : i32, i32
  }
  func.func @transform_7(%arg0: i32) -> (i32, i32) {
    %c0_i32 = arith.constant 0 : i32
    %c0_i32_0 = arith.constant 0 : i32
    %c0_i32_1 = arith.constant 0 : i32
    return %c0_i32, %c0_i32_0 : i32, i32
  }
  func.func @transform_8(%arg0: i32) -> (i32, i32) {
    %c0_i32 = arith.constant 0 : i32
    %c0_i32_0 = arith.constant 0 : i32
    %c0_i32_1 = arith.constant 0 : i32
    return %c0_i32, %c0_i32_0 : i32, i32
  }
  func.func @transform_9(%arg0: i32) -> (i32, i32) {
    %c0_i32 = arith.constant 0 : i32
    %c0_i32_0 = arith.constant 0 : i32
    %c0_i32_1 = arith.constant 0 : i32
    return %c0_i32, %c0_i32_0 : i32, i32
  }
  func.func @transform_10(%arg0: i32) -> (i32, i32) {
    %c0_i32 = arith.constant 0 : i32
    %c0_i32_0 = arith.constant 0 : i32
    %c0_i32_1 = arith.constant 0 : i32
    return %c0_i32, %c0_i32_0 : i32, i32
  }
  func.func @transform_11(%arg0: i32) -> (i32, i32) {
    %c0_i32 = arith.constant 0 : i32
    %c0_i32_0 = arith.constant 0 : i32
    %c0_i32_1 = arith.constant 0 : i32
    return %c0_i32, %c0_i32_0 : i32, i32
  }
  func.func @transform_12(%arg0: i32) -> (i32, i32) {
    %c0_i32 = arith.constant 0 : i32
    %c0_i32_0 = arith.constant 0 : i32
    %c0_i32_1 = arith.constant 0 : i32
    return %c0_i32, %c0_i32_0 : i32, i32
  }
  func.func @transform_13(%arg0: i32) -> (i32, i32) {
    %c0_i32 = arith.constant 0 : i32
    %c0_i32_0 = arith.constant 0 : i32
    %c0_i32_1 = arith.constant 0 : i32
    return %c0_i32, %c0_i32_0 : i32, i32
  }
  func.func @transform_14(%arg0: i32) -> (i32, i32) {
    %c0_i32 = arith.constant 0 : i32
    %c0_i32_0 = arith.constant 0 : i32
    %c0_i32_1 = arith.constant 0 : i32
    return %c0_i32, %c0_i32_0 : i32, i32
  }
  func.func @transform_15(%arg0: i32) -> (i32, i32, i32) {
    %c0_i32 = arith.constant 0 : i32
    %c0_i32_0 = arith.constant 0 : i32
    %c0_i32_1 = arith.constant 0 : i32
    return %arg0, %c0_i32, %c0_i32_0 : i32, i32, i32
  }
  func.func @transform_16(%arg0: i32) -> (i32, i32) {
    %c0_i32 = arith.constant 0 : i32
    %c0_i32_0 = arith.constant 0 : i32
    return %c0_i32, %arg0 : i32, i32
  }
  func.func @transform_17(%arg0: i32) -> (i32, i32) {
    %c0_i32 = arith.constant 0 : i32
    %c0_i32_0 = arith.constant 0 : i32
    return %c0_i32, %arg0 : i32, i32
  }
  func.func @transform_18(%arg0: i32) -> (i32, i32) {
    %c0_i32 = arith.constant 0 : i32
    %c0_i32_0 = arith.constant 0 : i32
    return %c0_i32, %arg0 : i32, i32
  }
}

</mosaic_0001>

<bundles_post_ra>
// kernel: generator_forward.1
= control target key start
LH: loop header
LB: loop body
LE: loop exit
PB: predicated region body
PF: predicated region fallthrough
CT: control target
= control target key end

     0   :  { %s19963_s0 = inlined_call_operand.hbm [shape: f32[8,64], index: 0, kind: input, shape index: {}]   ;;  %s19964_s1 = inlined_call_operand.hbm [shape: bf16[64,128], index: 1, kind: input, shape index: {}]   ;;  %s19965_s2 = inlined_call_operand.hbm [shape: f32[1,128], index: 2, kind: input, shape index: {}]   ;;  %s19966_s3 = inlined_call_operand.hbm [shape: bf16[128,256], index: 3, kind: input, shape index: {}]   ;;  %s19967_s4 = inlined_call_operand.hbm [shape: f32[1,256], index: 4, kind: input, shape index: {}]   ;;  %s19968_s5 = inlined_call_operand.hbm [shape: f32[1,256], index: 5, kind: input, shape index: {}]   ;;  %s19969_s6 = inlined_call_operand.hbm [shape: f32[1,256], index: 6, kind: input, shape index: {}]   ;;  %s19970_s7 = inlined_call_operand.hbm [shape: bf16[256,512], index: 7, kind: input, shape index: {}]   ;;  %s19971_s8 = inlined_call_operand.hbm [shape: f32[1,512], index: 8, kind: input, shape index: {}]   ;;  %s19972_s9 = inlined_call_operand.hbm [shape: f32[1,512], index: 9, kind: input, shape index: {}]   ;;  %s19973_s10 = inlined_call_operand.hbm [shape: f32[1,512], index: 10, kind: input, shape index: {}]   ;;  %s19974_s11 = inlined_call_operand.hbm [shape: bf16[512,1024], index: 11, kind: input, shape index: {}]   ;;  %s19975_s12 = inlined_call_operand.hbm [shape: f32[1,1024], index: 12, kind: input, shape index: {}]   ;;  %s19976_s13 = inlined_call_operand.hbm [shape: f32[1,1024], index: 13, kind: input, shape index: {}]   ;;  %s19977_s14 = inlined_call_operand.hbm [shape: f32[1,1024], index: 14, kind: input, shape index: {}]   ;;  %s19978_s15 = inlined_call_operand.hbm [shape: s8[4,1024,3072], index: 15, kind: input, shape index: {}]   ;;  %s19979_s16 = inlined_call_operand.hbm [shape: f32[1,12288], index: 16, kind: input, shape index: {}]   ;;  %s19980_s17 = inlined_call_operand.hbm [shape: f32[1,12288], index: 17, kind: input, shape index: {}]   ;;  %s19981_s18 = inlined_call_operand.vmem [shape: f32[8,12288], index: 18, kind: output, shape index: {}]  }
   0x1   :  { %19996 = sst [smem:[#allocation41_spill]] %s19963_s0 }
   0x2   :  { %19997 = sst [smem:[#allocation42_spill]] %s19964_s1 }
   0x3   :  { %19998 = sst [smem:[#allocation43_spill]] %s19965_s2 }
   0x4   :  { %19999 = sst [smem:[#allocation44_spill]] %s19966_s3 }
   0x5   :  { %20000 = sst [smem:[#allocation45_spill]] %s19967_s4 }
   0x6   :  { %20001 = sst [smem:[#allocation46_spill]] %s19968_s5 }
   0x7   :  { %20002 = sst [smem:[#allocation47_spill]] %s19969_s6 }
   0x8   :  { %20003 = sst [smem:[#allocation48_spill]] %s19970_s7 }
   0x9   :  { %20004 = sst [smem:[#allocation49_spill]] %s19972_s9 }
   0xa   :  { %20005 = sst [smem:[#allocation50_spill]] %s19974_s11 }
   0xb   :  { %20006 = sst [smem:[#allocation51_spill]] %s19976_s13 }
   0xc   :  { %20007 = sst [smem:[#allocation52_spill]] %s19979_s16 }
   0xd   :  { %20008 = sst [smem:[#allocation53_spill]] %s19980_s17 }
   0xe   :  { %20009 = sst [smem:[#allocation54_spill]] %s19981_s18 }
   0xf   :  { %23 = vsyncpa [#allocation3], 0 }
  0x10   :  { %24 = vsyncpa [#allocation5], 0 }
  0x11   :  { %25 = vsyncpa [#allocation8], 0 }
  0x12   :  { %26 = vsyncpa [#allocation11], 0 }
  0x13   :  { %27 = vsyncpa [#allocation14], 0 }
  0x14   :  { %28 = vsyncpa [#allocation17], 0 }
  0x15   :  { %29 = vsyncpa [#allocation20], 0 }
  0x16   :  { %30 = vsyncpa [#allocation23], 0 }
  0x17   :  { %31 = vsyncpa [#allocation26], 0 }
  0x18   :  { %33 = vsyncpa [#allocation26 + $0x1], 0 }
  0x19   :  { %34 = vsyncpa [#allocation29], 0 }
  0x1a   :  { %36 = vsyncpa [#allocation29 + $0x1], 0  ;;  %s18380_s27 = smov 0   ;;  %s18382_s28 = smov 0  }
  0x1b   :  { %s18384_s29 = smov 0   ;;  %s18386_s30 = smov 0  }
  0x1c LB: > { %s18255_s0 = smov [#allocation4]   ;;  %s18401_s1 = sadd.s32 4294967295, %s18253_s30   ;;  %s18253_s30 = sphi %s18386_s30, %s20060_s30   ;;  %s18249_s29 = sphi %s18384_s29, %s20059_s29   ;;  %s18245_s28 = sphi %s18382_s28, %s20058_s28   ;;  %s18241_s27 = sphi %s18380_s27, %s20057_s27  }
  0x1d   : > { %s489_s19 = sshll.u32 %s18255_s0, 4  ;;  %p14248_p0 = scmp.ge.s32.totalorder %s18253_s30, 1  ;;  %s490_s19 = int_to_ptr.vmem [resolvable:$true] %s489_s19 }
  0x1e   : > { %p19985_p1 = scmp.eq.s32.totalorder %s18401_s1, 0  ;;  %p466_p2 = scmp.lt.s32.totalorder %s18253_s30, 5 }
  0x1f   : > { %s18256_s21 = smov [#allocation7]   ;;  %s18257_s23 = smov [#allocation10]  }
  0x20   : > { %p18406_p3 = pnand %p14248_p0, %p466_p2  ;;  %s513_s22 = sshll.u32 %s18256_s21, 4  ;;  %s18418_s22 = int_to_ptr.vmem [resolvable:$true] %s513_s22 }
  0x21   : > { %s18420_s24 = sshll.u32 %s18257_s23, 4  ;;  %s17720_s26 = scalar_lea.vmem %s490_s19, 512  ;;  %s539_s24 = int_to_ptr.vmem [resolvable:$true] %s18420_s24 }
  0x22   : > { %s20010_s20 = scalar_select %p18406_p3, 1, 0 }
  0x23   : > { %p17482_p4 = pneg %p18406_p3  ;;  %p17721_p7 = scmp.ne.s32.totalorder %s490_s19, %s17720_s26 }
  0x24   : > { %20011 = sst [smem:[#allocation40_spill]] %s20010_s20  ;;  %p17728_p10 = scmp.lt.s32.totalorder %s490_s19, %s490_s19 }
  0x25   : > { %p18414_p5 = pnand %p17482_p4, %p19985_p1  ;;  %p17729_p11 = scmp.lt.s32.totalorder %s17720_s26, %s17720_s26 }
  0x27   : > { %s20012_s2 = scalar_select %p18414_p5, 1, 0 }
  0x28   : > { %p18424_p6 = pneg %p18414_p5  ;;  %p17730_p12 = por %p17729_p11, %p17728_p10 }
  0x2a   : > { %s20013_s25 = scalar_select %p18424_p6, 1, 0 }
  0x2b   : > { %p17723_p8 = pnand %p17721_p7, %p18424_p6 }
  0x2d   : > { %p17724_p9 = pneg %p17723_p8 }
  0x2f   : > { %p17731_p13 = pnand %p17730_p12, %p17724_p9 }
  0x31   : > { %17734 = shalt.err (!%p17731_p13)
}
  0x32   : > { %s18258_s0 = smov 64   ;;  %s18259_s21 = smov 4  }
  0x33   : > { %s20014_s20 = sld [smem:[#allocation42_spill]]  ;;  %s17746_s17 = scalar_lea.vmem %s18418_s22, 2048 }
  0x34   : > { %p17747_p0 = scmp.ne.s32.totalorder %s18418_s22, %s17746_s17  ;;  %p17754_p7 = scmp.lt.s32.totalorder %s18418_s22, %s18418_s22 }
  0x35   : > { %p17755_p8 = scmp.lt.s32.totalorder %s17746_s17, %s17746_s17 }
  0x36   : > { %p17749_p2 = pnand %p17747_p0, %p18424_p6 }
  0x37   : > { %p17756_p9 = por %p17755_p8, %p17754_p7 }
  0x38   : > { %p17750_p4 = pneg %p17749_p2 }
  0x39   : > { %17488 = dma.hbm_to_vmem [thread:$0]  (!%p18414_p5), %s20014_s20, 512, %s490_s19, [#allocation5], %s18258_s0, %s18258_s0, %s18259_s21  }
  0x3a   : > { %p17757_p10 = pnand %p17756_p9, %p17750_p4 }
  0x3c   : > { %17760 = shalt.err (!%p17757_p10)
}
  0x3d   : > { %s18260_s26 = smov 128   ;;  %s18261_s16 = smov 8  }
  0x3e   : > { %s20015_s3 = sld [smem:[#allocation44_spill]]  ;;  %s17772_s20 = scalar_lea.vmem %s539_s24, 32 }
  0x3f   : > { %p17773_p11 = scmp.ne.s32.totalorder %s539_s24, %s17772_s20  ;;  %p17780_p0 = scmp.lt.s32.totalorder %s539_s24, %s539_s24 }
  0x40   : > { %p17781_p2 = scmp.lt.s32.totalorder %s17772_s20, %s17772_s20 }
  0x41   : > { %p17775_p12 = pnand %p17773_p11, %p18424_p6 }
  0x42   : > { %p17782_p4 = por %p17781_p2, %p17780_p0 }
  0x43   : > { %p17776_p13 = pneg %p17775_p12 }
  0x44   : > { %17494 = dma.hbm_to_vmem [thread:$0]  (!%p18414_p5), %s20015_s3, 2048, %s18418_s22, [#allocation8], %s18260_s26, %s18260_s26, %s18261_s16  }
  0x45   : > { %p17783_p7 = pnand %p17782_p4, %p17776_p13 }
  0x47   : > { %17786 = shalt.err (!%p17783_p7)
}
  0x48   : > { %s20016_s5 = sld [smem:[#allocation46_spill]]  ;;  %s18262_s21 = smov [#allocation13]  }
  0x49   : > { %s559_s16 = sshll.u32 %s18262_s21, 4  ;;  %s560_s16 = int_to_ptr.vmem [resolvable:$true] %s559_s16 }
  0x4a   : > { %s17798_s22 = scalar_lea.vmem %s560_s16, 8192  ;;  %p17806_p11 = scmp.lt.s32.totalorder %s560_s16, %s560_s16 }
  0x4b   : > { %p17799_p8 = scmp.ne.s32.totalorder %s560_s16, %s17798_s22  ;;  %p17807_p12 = scmp.lt.s32.totalorder %s17798_s22, %s17798_s22 }
  0x4d   : > { %p17801_p9 = pnand %p17799_p8, %p18424_p6  ;;  %p17808_p0 = por %p17807_p12, %p17806_p11 }
  0x4e   : > { %17500 = dma.hbm_to_vmem [thread:$0]  (!%p18414_p5), %s20016_s5, 32, %s539_s24, [#allocation11]  }
  0x4f   : > { %p17802_p10 = pneg %p17801_p9 }
  0x51   : > { %p17809_p13 = pnand %p17808_p0, %p17802_p10 }
  0x53   : > { %17812 = shalt.err (!%p17809_p13)
}
  0x54   : > { %s18263_s23 = smov 256   ;;  %s18264_s26 = smov 16  }
  0x55   : > { %s20017_s7 = sld [smem:[#allocation48_spill]]  ;;  %s18265_s19 = smov [#allocation16]  }
  0x56   : > { %s584_s20 = sshll.u32 %s18265_s19, 4  ;;  %s18266_s17 = smov [#allocation19]   ;;  %s585_s20 = int_to_ptr.vmem [resolvable:$true] %s584_s20 }
  0x57   : > { %s605_s0 = sshll.u32 %s18266_s17, 4  ;;  %s17824_s21 = scalar_lea.vmem %s585_s20, 64  ;;  %s606_s0 = int_to_ptr.vmem [resolvable:$true] %s605_s0 }
  0x58   : > { %p17825_p2 = scmp.ne.s32.totalorder %s585_s20, %s17824_s21  ;;  %p17832_p8 = scmp.lt.s32.totalorder %s585_s20, %s585_s20 }
  0x59   : > { %p17833_p9 = scmp.lt.s32.totalorder %s17824_s21, %s17824_s21 }
  0x5a   : > { %p17827_p4 = pnand %p17825_p2, %p18424_p6 }
  0x5b   : > { %17506 = dma.hbm_to_vmem [thread:$0]  (!%p18414_p5), %s20017_s7, 8192, %s560_s16, [#allocation14], %s18263_s23, %s18263_s23, %s18264_s26  }
  0x5c   : > { %p17828_p7 = pneg %p17827_p4  ;;  %p17834_p10 = por %p17833_p9, %p17832_p8 }
  0x5e   : > { %p17835_p11 = pnand %p17834_p10, %p17828_p7 }
  0x60   : > { %17838 = shalt.err (!%p17835_p11)
}
  0x61   : > { %s20018_s9 = sld [smem:[#allocation49_spill]]  ;;  %s17850_s23 = scalar_lea.vmem %s606_s0, 32768 }
  0x62   : > { %p17851_p12 = scmp.ne.s32.totalorder %s606_s0, %s17850_s23  ;;  %p17858_p1 = scmp.lt.s32.totalorder %s606_s0, %s606_s0 }
  0x63   : > { %p17859_p2 = scmp.lt.s32.totalorder %s17850_s23, %s17850_s23 }
  0x64   : > { %p17853_p0 = pnand %p17851_p12, %p18424_p6 }
  0x65   : > { %p17860_p4 = por %p17859_p2, %p17858_p1 }
  0x66   : > { %p17854_p13 = pneg %p17853_p0 }
  0x67   : > { %17512 = dma.hbm_to_vmem [thread:$0]  (!%p18414_p5), %s20018_s9, 64, %s585_s20, [#allocation17]  }
  0x68   : > { %p17861_p3 = pnand %p17860_p4, %p17854_p13 }
  0x6a   : > { %17864 = shalt.err (!%p17861_p3)
}
  0x6b   : > { %s18267_s26 = smov 512   ;;  %s18268_s18 = smov 32  }
  0x6c   : > { %s20019_s11 = sld [smem:[#allocation50_spill]]  ;;  %s18269_s20 = smov [#allocation22]  }
  0x6d   : > { %s630_s17 = sshll.u32 %s18269_s20, 4  ;;  %s631_s17 = int_to_ptr.vmem [resolvable:$true] %s630_s17 }
  0x6e   : > { %s17876_s21 = scalar_lea.vmem %s631_s17, 128  ;;  %p17884_p1 = scmp.lt.s32.totalorder %s631_s17, %s631_s17 }
  0x6f   : > { %p17877_p7 = scmp.ne.s32.totalorder %s631_s17, %s17876_s21  ;;  %p17885_p10 = scmp.lt.s32.totalorder %s17876_s21, %s17876_s21 }
  0x71   : > { %p17879_p8 = pnand %p17877_p7, %p18424_p6  ;;  %p17886_p3 = por %p17885_p10, %p17884_p1 }
  0x72   : > { %17518 = dma.hbm_to_vmem [thread:$0]  (!%p18414_p5), %s20019_s11, 32768, %s606_s0, [#allocation20], %s18267_s26, %s18267_s26, %s18268_s18  }
  0x73   : > { %p17880_p9 = pneg %p17879_p8 }
  0x75   : > { %p17887_p11 = pnand %p17886_p3, %p17880_p9 }
  0x77   : > { %17890 = shalt.err (!%p17887_p11)
}
  0x78   : > { %s20020_s13 = sld [smem:[#allocation51_spill]]  ;;  %s18484_s0 = sadd.s32 1, %s18253_s30  }
  0x79   : > { %s361_s23 = ssub.s32 %s18253_s30, %s18484_s0  ;;  %s364_s26 = sadd.s32 1, %s18249_s29 }
  0x7a   : > { %p362_p12 = scmp.eq.s32.totalorder %s361_s23, 0  ;;  %p371_p0 = scmp.ne.s32.totalorder %s18249_s29, %s18245_s28 }
  0x7b   : > { %p372_p13 = scmp.eq.s32.totalorder %s18253_s30, 0  ;;  %p377_p2 = scmp.ne.s32.totalorder %s18245_s28, %s18241_s27 }
  0x7c   : > { %s18495_s18 = scalar_select %p362_p12, %s18249_s29, %s364_s26  }
  0x7d   : > { %p373_p4 = por %p372_p13, %p371_p0  ;;  %p20021_p7 = scmp.eq.s32.totalorder %s18401_s1, 0 }
  0x7e   : > { %17524 = dma.hbm_to_vmem [thread:$0]  (!%p18414_p5), %s20020_s13, 128, %s631_s17, [#allocation23]  }
  0x7f   : > { %p18499_p8 = por %p20021_p7, %p377_p2  ;;  %p17553_p9 = scmp.lt.s32.totalorder %s18253_s30, 4 }
  0x80   : > { %s652_s19 = sand.u32 1, %s18253_s30   ;;  %s18506_s20 = sand.u32 1, %s18249_s29  }
  0x81   : > { %s20022_s24 = scalar_select %p18499_p8, 1, 0 }
  0x82   : > { %s17410_s17 = smul.u32 6144, %s18506_s20  ;;  %p18509_p1 = pnand %p17553_p9, %p373_p4 }
  0x83   : > { %s17411_s27 = smul.u32 98304, %s18253_s30  ;;  %s18521_s5 = scalar_lea.sflag [#allocation26], %s652_s19 }
  0x84   : > { %s20023_s21 = scalar_select %p18509_p1, 1, 0 }
  0x85   : > { %s18517_s23 = scalar_lea.hbm %s19978_s15, %s17411_s27  ;;  %s656_s26 = scalar_lea.vmem [#allocation25], %s17410_s17 }
  0x86   : > { %s663_s3 = sshll.u32 %s656_s26, 4  ;;  %s17891_s7 = scalar_lea.hbm %s18517_s23, 98304  ;;  %s18519_s3 = int_to_ptr.vmem [resolvable:$true] %s663_s3 }
  0x87   : > { %p17892_p10 = scmp.ne.s32.totalorder %s18517_s23, %s17891_s7  ;;  %p18527_p3 = pneg %p18509_p1 }
  0x88   : > { %s17896_s17 = scalar_lea.hbm %s19978_s15, 393216  ;;  %p17897_p0 = scmp.lt.s32.totalorder %s18517_s23, %s19978_s15 }
  0x89   : > { %s20024_s9 = scalar_select %p18527_p3, 1, 0 }
  0x8a   : > { %p17894_p11 = pnand %p18527_p3, %p17892_p10  ;;  %p17898_p13 = scmp.lt.s32.totalorder %s17896_s17, %s17891_s7 }
  0x8c   : > { %p17895_p12 = pneg %p17894_p11  ;;  %p17899_p2 = por %p17898_p13, %p17897_p0 }
  0x8e   : > { %p17900_p4 = pnand %p17899_p2, %p17895_p12 }
  0x90   : > { %17903 = shalt.err (!%p17900_p4)
}
  0x91   : > { %s17904_s19 = scalar_lea.vmem %s18519_s3, 98304  ;;  %s18270_s11 = smov [#allocation25]  }
  0x92   : > { %p17905_p7 = scmp.ne.s32.totalorder %s18519_s3, %s17904_s19  ;;  %s17909_s27 = sshll.u32 %s18270_s11, 4  ;;  %s17910_s27 = int_to_ptr.vmem [resolvable:$false] %s17909_s27 }
  0x93   : > { %s17911_s22 = scalar_lea.vmem %s17910_s27, 196608  ;;  %p17912_p11 = scmp.lt.s32.totalorder %s18519_s3, %s17910_s27 }
  0x94   : > { %p17907_p9 = pnand %p17905_p7, %p18527_p3  ;;  %p17913_p8 = scmp.lt.s32.totalorder %s17911_s22, %s17904_s19 }
  0x96   : > { %p17908_p10 = pneg %p17907_p9  ;;  %p17914_p5 = por %p17913_p8, %p17912_p11 }
  0x98   : > { %p17915_p6 = pnand %p17914_p5, %p17908_p10 }
  0x9a   : > { %17918 = shalt.err (!%p17915_p6)
}
  0x9b   : > { %s18271_s7 = smov 3072   ;;  %s18272_s17 = smov 192  }
  0x9c   : > { %17531 = dma.hbm_to_vmem [thread:$0]  (!%p18509_p1), %s18517_s23, 98304, %s18519_s3, %s18521_s5, %s18271_s7, %s18271_s7, %s18272_s17  }
  0x9d   : > { %s18273_s16 = smov [#allocation2]   ;;  %s18274_s13 = smov [#allocation6]  }
  0x9e   : > { %s479_s26 = sshll.u32 %s18273_s16, 4  ;;  %s503_s11 = sshll.u32 %s18274_s13, 4  ;;  %s480_s26 = int_to_ptr.vmem [resolvable:$true] %s479_s26  ;;  %s504_s11 = int_to_ptr.vmem [resolvable:$true] %s503_s11 }
  0x9f   : > { %s17930_s27 = scalar_lea.vmem %s480_s26, 128  ;;  %p20025_p8 = scmp.ne.s32.totalorder %s20013_s25, 0 }
  0xa0   : > { %p17931_p12 = scmp.ne.s32.totalorder %s480_s26, %s17930_s27  ;;  %p17938_p0 = scmp.lt.s32.totalorder %s480_s26, %s480_s26 }
  0xa1   : > { %p17939_p13 = scmp.lt.s32.totalorder %s17930_s27, %s17930_s27 }
  0xa2   : > { %p17933_p5 = pnand %p17931_p12, %p20025_p8 }
  0xa3   : > { %p17940_p2 = por %p17939_p13, %p17938_p0 }
  0xa4   : > { %p17934_p6 = pneg %p17933_p5 }
  0xa6   : > { %p17941_p4 = pnand %p17940_p2, %p17934_p6 }
  0xa8   : > { %17944 = shalt.err (!%p17941_p4)
}
  0xa9   : > { %p20026_p7 = scmp.ne.s32.totalorder %s20012_s2, 0  ;;  %s20027_s23 = sld [smem:[#allocation41_spill]] }
  0xaa   : > { %s17956_s13 = scalar_lea.vmem %s504_s11, 16  ;;  %s17963_s22 = scalar_lea.vmem %s504_s11, 32 }
  0xab   : > { %p17957_p9 = scmp.ne.s32.totalorder %s504_s11, %s17956_s13  ;;  %p17964_p12 = scmp.lt.s32.totalorder %s504_s11, %s504_s11 }
  0xac   : > { %p17965_p5 = scmp.lt.s32.totalorder %s17963_s22, %s17956_s13 }
  0xad   : > { %p17959_p10 = pnand %p17957_p9, %p20025_p8 }
  0xae   : > { %p17966_p1 = por %p17965_p5, %p17964_p12 }
  0xaf   : > { %17485 = dma.hbm_to_vmem [thread:$0]  (!%p20026_p7), %s20027_s23, 128, %s480_s26, [#allocation3]  }
  0xb0   : > { %p17960_p11 = pneg %p17959_p10 }
  0xb2   : > { %p17967_p3 = pnand %p17966_p1, %p17960_p11 }
  0xb4   : > { %17970 = shalt.err (!%p17967_p3)
}
  0xb5   : > { %s20028_s16 = sld [smem:[#allocation43_spill]]  ;;  %s18275_s27 = smov [#allocation9]  }
  0xb6   : > { %s527_s26 = sshll.u32 %s18275_s27, 4  ;;  %s18276_s19 = smov [#allocation12]   ;;  %s528_s26 = int_to_ptr.vmem [resolvable:$true] %s527_s26 }
  0xb7   : > { %s549_s3 = sshll.u32 %s18276_s19, 4  ;;  %s17982_s23 = scalar_lea.vmem %s528_s26, 32  ;;  %s550_s3 = int_to_ptr.vmem [resolvable:$true] %s549_s3 }
  0xb8   : > { %p17983_p6 = scmp.ne.s32.totalorder %s528_s26, %s17982_s23  ;;  %p17990_p1 = scmp.lt.s32.totalorder %s528_s26, %s528_s26 }
  0xb9   : > { %p17991_p3 = scmp.lt.s32.totalorder %s17982_s23, %s17982_s23 }
  0xba   : > { %p17985_p0 = pnand %p17983_p6, %p20025_p8 }
  0xbb   : > { %17491 = dma.hbm_to_vmem [thread:$0]  (!%p20026_p7), %s20028_s16, 16, %s504_s11, [#allocation5]  }
  0xbc   : > { %p17986_p13 = pneg %p17985_p0  ;;  %p17992_p2 = por %p17991_p3, %p17990_p1 }
  0xbe   : > { %p17993_p4 = pnand %p17992_p2, %p17986_p13 }
  0xc0   : > { %17996 = shalt.err (!%p17993_p4)
}
  0xc1   : > { %s20029_s4 = sld [smem:[#allocation45_spill]]  ;;  %s18008_s22 = scalar_lea.vmem %s550_s3, 32 }
  0xc2   : > { %p18009_p9 = scmp.ne.s32.totalorder %s550_s3, %s18008_s22  ;;  %p18016_p12 = scmp.lt.s32.totalorder %s550_s3, %s550_s3 }
  0xc3   : > { %p18017_p5 = scmp.lt.s32.totalorder %s18008_s22, %s18008_s22 }
  0xc4   : > { %p18011_p10 = pnand %p18009_p9, %p20025_p8 }
  0xc5   : > { %p18018_p6 = por %p18017_p5, %p18016_p12 }
  0xc6   : > { %p18012_p11 = pneg %p18011_p10 }
  0xc7   : > { %17497 = dma.hbm_to_vmem [thread:$0]  (!%p20026_p7), %s20029_s4, 32, %s528_s26, [#allocation8]  }
  0xc8   : > { %p18019_p0 = pnand %p18018_p6, %p18012_p11 }
  0xca   : > { %18022 = shalt.err (!%p18019_p0)
}
  0xcb   : > { %s20030_s6 = sld [smem:[#allocation47_spill]]  ;;  %s18277_s16 = smov [#allocation15]  }
  0xcc   : > { %s573_s27 = sshll.u32 %s18277_s16, 4  ;;  %s18278_s26 = smov [#allocation18]   ;;  %s574_s27 = int_to_ptr.vmem [resolvable:$true] %s573_s27 }
  0xcd   : > { %s595_s19 = sshll.u32 %s18278_s26, 4  ;;  %s18034_s23 = scalar_lea.vmem %s574_s27, 64  ;;  %s596_s19 = int_to_ptr.vmem [resolvable:$true] %s595_s19 }
  0xce   : > { %p18035_p13 = scmp.ne.s32.totalorder %s574_s27, %s18034_s23  ;;  %p18042_p2 = scmp.lt.s32.totalorder %s574_s27, %s574_s27 }
  0xcf   : > { %p18043_p4 = scmp.lt.s32.totalorder %s18034_s23, %s18034_s23 }
  0xd0   : > { %p18037_p1 = pnand %p18035_p13, %p20025_p8 }
  0xd1   : > { %17503 = dma.hbm_to_vmem [thread:$0]  (!%p20026_p7), %s20030_s6, 32, %s550_s3, [#allocation11]  }
  0xd2   : > { %p18038_p3 = pneg %p18037_p1  ;;  %p18044_p9 = por %p18043_p4, %p18042_p2 }
  0xd4   : > { %p18045_p10 = pnand %p18044_p9, %p18038_p3 }
  0xd6   : > { %18048 = shalt.err (!%p18045_p10)
}
  0xd7   : > { %17509 = dma.hbm_to_vmem [thread:$0]  (!%p20026_p7), %s19971_s8, 64, %s574_s27, [#allocation14]  }
  0xd8   : > { %s18060_s11 = scalar_lea.vmem %s596_s19, 64  ;;  %p18068_p6 = scmp.lt.s32.totalorder %s596_s19, %s596_s19 }
  0xd9   : > { %p18061_p11 = scmp.ne.s32.totalorder %s596_s19, %s18060_s11  ;;  %p18069_p0 = scmp.lt.s32.totalorder %s18060_s11, %s18060_s11 }
  0xdb   : > { %p18063_p12 = pnand %p18061_p11, %p20025_p8  ;;  %p18070_p13 = por %p18069_p0, %p18068_p6 }
  0xdd   : > { %p18064_p5 = pneg %p18063_p12 }
  0xdf   : > { %p18071_p1 = pnand %p18070_p13, %p18064_p5 }
  0xe1   : > { %18074 = shalt.err (!%p18071_p1)
}
  0xe2   : > { %17515 = dma.hbm_to_vmem [thread:$0]  (!%p20026_p7), %s19973_s10, 64, %s596_s19, [#allocation17]  }
  0xe3   : > { %s18279_s17 = smov [#allocation21]   ;;  %s18280_s27 = smov [#allocation24]  }
  0xe4   : > { %s619_s16 = sshll.u32 %s18279_s17, 4  ;;  %s641_s26 = sshll.u32 %s18280_s27, 4  ;;  %s620_s16 = int_to_ptr.vmem [resolvable:$true] %s619_s16  ;;  %s642_s26 = int_to_ptr.vmem [resolvable:$true] %s641_s26 }
  0xe5   : > { %s18086_s23 = scalar_lea.vmem %s620_s16, 128  ;;  %p18094_p9 = scmp.lt.s32.totalorder %s620_s16, %s620_s16 }
  0xe6   : > { %p18087_p3 = scmp.ne.s32.totalorder %s620_s16, %s18086_s23  ;;  %p18095_p10 = scmp.lt.s32.totalorder %s18086_s23, %s18086_s23 }
  0xe8   : > { %p18089_p2 = pnand %p18087_p3, %p20025_p8  ;;  %p18096_p11 = por %p18095_p10, %p18094_p9 }
  0xea   : > { %p18090_p4 = pneg %p18089_p2 }
  0xec   : > { %p18097_p12 = pnand %p18096_p11, %p18090_p4 }
  0xee   : > { %18100 = shalt.err (!%p18097_p12)
}
  0xef   : > { %17521 = dma.hbm_to_vmem [thread:$0]  (!%p20026_p7), %s19975_s12, 128, %s620_s16, [#allocation20]  }
  0xf0   : > { %s18112_s3 = scalar_lea.vmem %s642_s26, 128  ;;  %p18120_p13 = scmp.lt.s32.totalorder %s642_s26, %s642_s26 }
  0xf1   : > { %p18113_p5 = scmp.ne.s32.totalorder %s642_s26, %s18112_s3  ;;  %p18121_p1 = scmp.lt.s32.totalorder %s18112_s3, %s18112_s3 }
  0xf3   : > { %p18115_p6 = pnand %p18113_p5, %p20025_p8  ;;  %p18122_p3 = por %p18121_p1, %p18120_p13 }
  0xf5   : > { %p18116_p0 = pneg %p18115_p6 }
  0xf7   : > { %p18123_p2 = pnand %p18122_p3, %p18116_p0 }
  0xf9   : > { %18126 = shalt.err (!%p18123_p2)
}
  0xfa   : > { %17527 = dma.hbm_to_vmem [thread:$0]  (!%p20026_p7), %s19977_s14, 128, %s642_s26, [#allocation23]  }
  0xfb   : > { %s17412_s7 = smul.u32 24, %s18506_s20  ;;  %s20031_s27 = sld [smem:[#allocation52_spill]] }
  0xfc   : > { %s14289_s17 = smul.u32 384, %s18253_s30  ;;  %s20033_s22 = sld [smem:[#allocation53_spill]] }
  0xfd   : > { %s677_s2 = scalar_lea.vmem [#allocation27], %s17412_s7  ;;  %p20034_p7 = scmp.ne.s32.totalorder %s20024_s9, 0 }
  0xfe   : > { %s685_s19 = sshll.u32 %s677_s2, 4  ;;  %s686_s19 = int_to_ptr.vmem [resolvable:$true] %s685_s19 }
 0x101   : > { %s20032_s23 = smov %s20031_s27  ;;  %s18611_s13 = scalar_lea.hbm %s20031_s27, %s14289_s17 }
 0x102   : > { %s18618_s4 = scalar_lea.hbm %s20033_s22, %s14289_s17  ;;  %s18127_s26 = scalar_lea.hbm %s18611_s13, 384 }
 0x103   : > { %p18128_p8 = scmp.ne.s32.totalorder %s18611_s13, %s18127_s26  ;;  %s18132_s16 = scalar_lea.hbm %s20032_s23, 1536 }
 0x104   : > { %p18133_p10 = scmp.lt.s32.totalorder %s18611_s13, %s20032_s23  ;;  %p18134_p11 = scmp.lt.s32.totalorder %s18132_s16, %s18127_s26 }
 0x105   : > { %p18130_p4 = pnand %p18128_p8, %p20034_p7 }
 0x106   : > { %p18135_p12 = por %p18134_p11, %p18133_p10 }
 0x107   : > { %p18131_p9 = pneg %p18130_p4 }
 0x109   : > { %p18136_p5 = pnand %p18135_p12, %p18131_p9 }
 0x10b   : > { %18139 = shalt.err (!%p18136_p5)
}
 0x10c   : > { %s18140_s2 = scalar_lea.vmem %s686_s19, 384  ;;  %s18281_s17 = smov [#allocation27]  }
 0x10d   : > { %p18141_p6 = scmp.ne.s32.totalorder %s686_s19, %s18140_s2  ;;  %s18145_s3 = sshll.u32 %s18281_s17, 4  ;;  %s18146_s3 = int_to_ptr.vmem [resolvable:$false] %s18145_s3 }
 0x10e   : > { %s18147_s11 = scalar_lea.vmem %s18146_s3, 768  ;;  %p18148_p1 = scmp.lt.s32.totalorder %s686_s19, %s18146_s3 }
 0x10f   : > { %p18143_p0 = pnand %p18141_p6, %p20034_p7  ;;  %p18149_p3 = scmp.lt.s32.totalorder %s18147_s11, %s18140_s2 }
 0x111   : > { %p18144_p13 = pneg %p18143_p0  ;;  %p18150_p2 = por %p18149_p3, %p18148_p1 }
 0x113   : > { %p18151_p8 = pnand %p18150_p2, %p18144_p13 }
 0x115   : > { %18154 = shalt.err (!%p18151_p8)
}
 0x116   : > { %p20035_p4 = scmp.ne.s32.totalorder %s20023_s21, 0  ;;  %s696_s6 = scalar_lea.vmem [#allocation28], %s17412_s7 }
 0x117   : > { %s704_s26 = sshll.u32 %s696_s6, 4  ;;  %s693_s30 = scalar_lea.sflag [#allocation29], %s18506_s20  ;;  %s705_s26 = int_to_ptr.vmem [resolvable:$true] %s704_s26 }
 0x118   : > { %17534 = dma.hbm_to_vmem [thread:$0]  (!%p20035_p4), %s18611_s13, 384, %s686_s19, %s18521_s5  }
 0x119   : > { %s18155_s25 = scalar_lea.hbm %s18618_s4, 384  ;;  %s18160_s2 = scalar_lea.hbm %s20033_s22, 1536 }
 0x11a   : > { %p18156_p9 = scmp.ne.s32.totalorder %s18618_s4, %s18155_s25  ;;  %p18161_p12 = scmp.lt.s32.totalorder %s18618_s4, %s20033_s22 }
 0x11b   : > { %p18162_p5 = scmp.lt.s32.totalorder %s18160_s2, %s18155_s25 }
 0x11c   : > { %p18158_p10 = pnand %p18156_p9, %p20034_p7 }
 0x11d   : > { %p18163_p6 = por %p18162_p5, %p18161_p12 }
 0x11e   : > { %p18159_p11 = pneg %p18158_p10 }
 0x120   : > { %p18164_p0 = pnand %p18163_p6, %p18159_p11 }
 0x122   : > { %18167 = shalt.err (!%p18164_p0)
}
 0x123   : > { %s18168_s5 = scalar_lea.vmem %s705_s26, 384  ;;  %s18282_s20 = smov [#allocation28]  }
 0x124   : > { %p18169_p13 = scmp.ne.s32.totalorder %s705_s26, %s18168_s5  ;;  %s18173_s7 = sshll.u32 %s18282_s20, 4  ;;  %s18174_s7 = int_to_ptr.vmem [resolvable:$false] %s18173_s7 }
 0x125   : > { %s18175_s13 = scalar_lea.vmem %s18174_s7, 768  ;;  %p18176_p2 = scmp.lt.s32.totalorder %s705_s26, %s18174_s7 }
 0x126   : > { %p18171_p1 = pnand %p18169_p13, %p20034_p7  ;;  %p18177_p8 = scmp.lt.s32.totalorder %s18175_s13, %s18168_s5 }
 0x128   : > { %p18172_p3 = pneg %p18171_p1  ;;  %p18178_p9 = por %p18177_p8, %p18176_p2 }
 0x12a   : > { %p18179_p10 = pnand %p18178_p9, %p18172_p3 }
 0x12c   : > { %18182 = shalt.err (!%p18179_p10)
}
 0x12d   : > { %17537 = dma.hbm_to_vmem [thread:$0]  (!%p20035_p4), %s18618_s4, 384, %s705_s26, %s693_s30  }
 0x12e   : > { %s20036_s19 = sld [smem:[#allocation40_spill]] }
 0x134   : > { %p20037_p11 = scmp.ne.s32.totalorder %s20036_s19, 0 }
 0x135   : > { %p20038_p12 = scmp.eq.s32.totalorder (!%p20037_p11), %s18401_s1, 0 }
 0x136   : > { %713 = sbr.rel (%p20037_p11) target bundleno = 3145 (0xc49), region = 92 }
 0x13b   : > { %18200 = dma.done.wait (%p20038_p12), [#allocation3], 128   ;;  %p20039_p7 = pmov %p20038_p12 }
 0x13d   : > { %18202 = vsyncadd (%p20039_p7), [#allocation3], 4294967168  ;;  %p20040_p5 = pmov %p20039_p7 }
 0x13f   : > { %18204 = dma.done.wait (%p20040_p5), [#allocation5], 528   ;;  %p20041_p6 = pmov %p20040_p5 }
 0x140   : > { %p20042_p0 = pmov %p20040_p5 }
 0x141   : > { %18206 = vsyncadd (%p20041_p6), [#allocation5], 4294966768 }
 0x142   : > { %18208 = dma.done.wait (%p20042_p0), [#allocation8], 2080   ;;  %p20043_p4 = pmov %p20042_p0 }
 0x143   : > { %p20044_p13 = pmov %p20042_p0 }
 0x144   : > { %18210 = vsyncadd (%p20043_p4), [#allocation8], 4294965216 }
 0x145   : > { %18212 = dma.done.wait (%p20044_p13), [#allocation11], 64   ;;  %p20045_p1 = pmov %p20042_p0 }
 0x146   : > { %p20046_p3 = pmov %p20042_p0 }
 0x147   : > { %18214 = vsyncadd (%p20045_p1), [#allocation11], 4294967232 }
 0x148   : > { %18216 = dma.done.wait (%p20046_p3), [#allocation14], 8256   ;;  %p20047_p2 = pmov %p20042_p0 }
 0x149   : > { %p20048_p8 = pmov %p20042_p0 }
 0x14a   : > { %18218 = vsyncadd (%p20047_p2), [#allocation14], 4294959040 }
 0x14b   : > { %18220 = dma.done.wait (%p20048_p8), [#allocation17], 128   ;;  %p20049_p9 = pmov %p20042_p0 }
 0x14c   : > { %p20050_p10 = pmov %p20042_p0 }
 0x14d   : > { %18222 = vsyncadd (%p20049_p9), [#allocation17], 4294967168 }
 0x14e   : > { %18224 = dma.done.wait (%p20050_p10), [#allocation20], 32896   ;;  %p20051_p11 = pmov %p20042_p0 }
 0x14f   : > { %p20052_p12 = pmov %p20042_p0 }
 0x150   : > { %18226 = vsyncadd (%p20051_p11), [#allocation20], 4294934400 }
 0x151   : > { %18228 = dma.done.wait (%p20052_p12), [#allocation23], 256   ;;  %p20053_p7 = pmov %p20042_p0 }
 0x152   : > { %s775_s4 = sand.u32 1, %s18401_s1   ;;  %s777_s9 = sand.u32 1, %s18245_s28  }
 0x153   : > { %18230 = vsyncadd (%p20053_p7), [#allocation23], 4294967040  ;;  %s17414_s21 = smul.u32 6144, %s777_s9  ;;  %s776_s11 = scalar_lea.sflag [#allocation26], %s775_s4 }
 0x154   : > { %p20054_p5 = scmp.ne.s32.totalorder %s20022_s24, 0 }
 0x155   : > { %s18692_s6 = scalar_lea.vmem [#allocation25], %s17414_s21 }
 0x156   : > { %18232 = dma.done.wait (%p20054_p5), %s776_s11, 98688  }
 0x157   : > { %18234 = vsyncadd (%p20054_p5), %s776_s11, 4294868608  ;;  %s17415_s26 = smul.u32 24, %s777_s9  ;;  %s794_s25 = scalar_lea.sflag [#allocation29], %s777_s9 }
 0x159   : > { %s18698_s30 = scalar_lea.vmem [#allocation27], %s17415_s26  ;;  %s18700_s16 = scalar_lea.vmem [#allocation28], %s17415_s26 }
 0x15a   : > { %18236 = dma.done.wait (%p20054_p5), %s794_s25, 384  }
 0x15b   : > { %18238 = vsyncadd (%p20054_p5), %s794_s25, 4294966912  ;;  %v18283_v0 = vmov 0.0   ;;  %vm18284_vm0 = vmmov 0   ;;  %v14309_v1 = vld [vmem:[#allocation4 + $0x18] sm:$0xff]   ;;  %v14308_v2 = vld [vmem:[#allocation4 + $0x10] sm:$0xff]   ;;  %vm892_vm1 = vcmask 523264  }
 0x15c   : > { %14319 = vmatprep.subr.mxu0 %v18283_v0  ;;  %14335 = vmatprep.mubr.msk.f32.mxu0 %vm18284_vm0, %v18283_v0  ;;  %v14305_v3 = vunpack.c.l.bf16 %v14309_v1  ;;  %v14306_v4 = vunpack.c.h.bf16 %v14309_v1  ;;  %v984_v5 = vld [vmem:[#allocation7 + $0x78] sm:$0xff]  ;;  %v983_v6 = vld [vmem:[#allocation7 + $0x70] sm:$0xff]  ;;  %v982_v7 = vld [vmem:[#allocation7 + $0x68] sm:$0xff]  ;;  %v14302_v8 = vunpack.c.h.bf16 %v14308_v2  ;;  %v14301_v15 = vunpack.c.l.bf16 %v14308_v2  ;;  %s862_s24 = smul.u32 24, %s18401_s1  ;;  %s20056_s3 = sld [smem:[#allocation54_spill]] }
 0x15d   : > { %1093 = vmatprep.mubr.f32.mxu1 %v18283_v0  ;;  %v1016_v9 = vunpack.c.h.bf16 %v984_v5  ;;  %v1015_v10 = vunpack.c.l.bf16 %v984_v5  ;;  %v1014_v11 = vunpack.c.h.bf16 %v983_v6  ;;  %v14307_v12 = vld [vmem:[#allocation4 + $0x8] sm:$0xff]   ;;  %v1013_v13 = vunpack.c.l.bf16 %v983_v6  ;;  %v980_v18 = vld [vmem:[#allocation7 + $0x58] sm:$0xff]  ;;  %v979_v23 = vld [vmem:[#allocation7 + $0x50] sm:$0xff] }
 0x15e   : > { %14320 = vmatpush3.msra.mxu0 %v14306_v4  ;;  %v981_v14 = vld [vmem:[#allocation7 + $0x60] sm:$0xff]  ;;  %v1012_v16 = vunpack.c.h.bf16 %v982_v7  ;;  %v1011_v17 = vunpack.c.l.bf16 %v982_v7  ;;  %v14298_v19 = vunpack.c.h.bf16 %v14307_v12  ;;  %v14297_v24 = vunpack.c.l.bf16 %v14307_v12  ;;  %v978_v27 = vld [vmem:[#allocation7 + $0x48] sm:$0xff]  ;;  %v976_v35 = vld [vmem:[#allocation7 + $0x38] sm:$0xff]  ;;  %p19146_p6 = scmp.lt.s32.totalorder %s862_s24, 95 }
 0x15f   : > { %14321 = vmatprep.subr.mxu0 %v18283_v0  ;;  %1029 = vmatprep.subr.mxu1 %v1016_v9  ;;  %v1010_v20 = vunpack.c.h.bf16 %v981_v14  ;;  %v14292_v21 = vld [vmem:[#allocation4] sm:$0xff]   ;;  %v1009_v22 = vunpack.c.l.bf16 %v981_v14  ;;  %v1008_v25 = vunpack.c.h.bf16 %v980_v18  ;;  %v1007_v26 = vunpack.c.l.bf16 %v980_v18  ;;  %v868_v36 = vld [vmem:[#allocation2] sm:$0xff]  ;;  %v974_v42 = vld [vmem:[#allocation7 + $0x28] sm:$0xff] }
 0x160   : > { %14322 = vmatpush3.msra.mxu0 %v14305_v3  ;;  %1030 = vmatpush1.msra.mxu1 %v1015_v10  ;;  %v14294_v28 = vunpack.c.h.bf16 %v14292_v21  ;;  %v1006_v29 = vunpack.c.h.bf16 %v979_v23  ;;  %v1005_v30 = vunpack.c.l.bf16 %v979_v23  ;;  %v977_v31 = vld [vmem:[#allocation7 + $0x40] sm:$0xff]  ;;  %v14293_v32 = vunpack.c.l.bf16 %v14292_v21  ;;  %v975_v39 = vld [vmem:[#allocation7 + $0x30] sm:$0xff]  ;;  %v972_v48 = vld [vmem:[#allocation7 + $0x18] sm:$0xff]  ;;  %s20062_s24 = smov (!%p19146_p6, %s862_s24), 95 }
 0x161   : > { %14323 = vmatprep.subr.mxu0 %v18283_v0  ;;  %1031 = vmatprep.subr.mxu1 %v1014_v11  ;;  %v1004_v33 = vunpack.c.h.bf16 %v978_v27  ;;  %v1003_v34 = vunpack.c.l.bf16 %v978_v27  ;;  %v1002_v37 = vunpack.c.h.bf16 %v977_v31  ;;  %v1001_v38 = vunpack.c.l.bf16 %v977_v31  ;;  %v973_v45 = vld [vmem:[#allocation7 + $0x20] sm:$0xff]  ;;  %v971_v53 = vld [vmem:[#allocation7 + $0x10] sm:$0xff]  ;;  %v970_v56 = vld [vmem:[#allocation7 + $0x8] sm:$0xff]  ;;  %s14284_s2 = sshll.u32 %s20062_s24, 3 }
 0x162   : > { %14324 = vmatpush3.msra.mxu0 %v14302_v8  ;;  %1032 = vmatpush1.msra.mxu1 %v1013_v13  ;;  %v1000_v40 = vunpack.c.h.bf16 %v976_v35  ;;  %v999_v41 = vunpack.c.l.bf16 %v976_v35  ;;  %v998_v43 = vunpack.c.h.bf16 %v975_v39  ;;  %v997_v44 = vunpack.c.l.bf16 %v975_v39  ;;  %v969_v59 = vld [vmem:[#allocation7] sm:$0xff]  ;;  %v1203_v62 = vld [vmem:[#allocation13 + $0xf0] sm:$0xff]  ;;  %v14285_v6 = vld [vmem:[#allocation6] ss:$0 sm:$0xff]  ;;  %s19163_s5 = scalar_lea.vmem %s20056_s3, %s14284_s2 }
 0x163   : > { %14325 = vmatprep.subr.mxu0 %v18283_v0  ;;  %1033 = vmatprep.subr.mxu1 %v1012_v16  ;;  %v996_v46 = vunpack.c.h.bf16 %v974_v42  ;;  %v995_v47 = vunpack.c.l.bf16 %v974_v42  ;;  %v994_v49 = vunpack.c.h.bf16 %v973_v45  ;;  %v993_v50 = vunpack.c.l.bf16 %v973_v45  ;;  %v1204_v63 = vld [vmem:[#allocation13 + $0xf8] sm:$0xff]  ;;  %v1201_v3 = vld [vmem:[#allocation13 + $0xe0] sm:$0xff]  ;;  %v1202_v9 = vld [vmem:[#allocation13 + $0xe8] sm:$0xff] }
 0x164   : > { %14326 = vmatpush3.msra.mxu0 %v14301_v15  ;;  %1034 = vmatpush1.msra.mxu1 %v1011_v17  ;;  %v992_v51 = vunpack.c.h.bf16 %v972_v48  ;;  %v991_v52 = vunpack.c.l.bf16 %v972_v48  ;;  %v990_v54 = vunpack.c.h.bf16 %v971_v53  ;;  %v989_v55 = vunpack.c.l.bf16 %v971_v53  ;;  %v1199_v16 = vld [vmem:[#allocation13 + $0xd0] sm:$0xff]  ;;  %v1200_v17 = vld [vmem:[#allocation13 + $0xd8] sm:$0xff]  ;;  %v1198_v23 = vld [vmem:[#allocation13 + $0xc8] sm:$0xff] }
 0x165   : > { %14327 = vmatprep.subr.mxu0 %v18283_v0  ;;  %1035 = vmatprep.subr.mxu1 %v1010_v20  ;;  %v988_v57 = vunpack.c.h.bf16 %v970_v56  ;;  %v987_v58 = vunpack.c.l.bf16 %v970_v56  ;;  %v986_v60 = vunpack.c.h.bf16 %v969_v59  ;;  %v985_v61 = vunpack.c.l.bf16 %v969_v59  ;;  %v1194_v35 = vld [vmem:[#allocation13 + $0xa8] sm:$0xff]  ;;  %v1188_v53 = vld [vmem:[#allocation13 + $0x78] sm:$0xff] }
 0x166   : > { %14328 = vmatpush3.msra.mxu0 %v14298_v19  ;;  %1036 = vmatpush1.msra.mxu1 %v1009_v22  ;;  %v1298_v1 = vunpack.c.h.bf16 %v1203_v62  ;;  %v1300_v2 = vunpack.c.h.bf16 %v1204_v63  ;;  %v1293_v4 = vunpack.c.l.bf16 %v1201_v3  ;;  %v1294_v5 = vunpack.c.h.bf16 %v1201_v3  ;;  %v1197_v22 = vld [vmem:[#allocation13 + $0xc0] sm:$0xff]  ;;  %v1186_v59 = vld [vmem:[#allocation13 + $0x68] sm:$0xff] }
 0x167   : > { %14329 = vmatprep.subr.mxu0 %v18283_v0  ;;  %1037 = vmatprep.subr.mxu1 %v1008_v25  ;;  %v1299_v12 = vunpack.c.l.bf16 %v1204_v63  ;;  %v1296_v13 = vunpack.c.h.bf16 %v1202_v9  ;;  %v1295_v15 = vunpack.c.l.bf16 %v1202_v9  ;;  %v1290_v18 = vunpack.c.h.bf16 %v1199_v16 }
 0x168   : > { %14330 = vmatpush3.msra.mxu0 %v14297_v24  ;;  %1038 = vmatpush1.msra.mxu1 %v1007_v26  ;;  %v1292_v19 = vunpack.c.h.bf16 %v1200_v17  ;;  %v1289_v20 = vunpack.c.l.bf16 %v1199_v16  ;;  %v1291_v21 = vunpack.c.l.bf16 %v1200_v17  ;;  %v1286_v24 = vunpack.c.h.bf16 %v1197_v22 }
 0x169   : > { %14331 = vmatprep.subr.mxu0 %v18283_v0  ;;  %1039 = vmatprep.subr.mxu1 %v1006_v29  ;;  %v1288_v25 = vunpack.c.h.bf16 %v1198_v23  ;;  %v1285_v26 = vunpack.c.l.bf16 %v1197_v22  ;;  %v1287_v27 = vunpack.c.l.bf16 %v1198_v23  ;;  %v1196_v29 = vld [vmem:[#allocation13 + $0xb8] sm:$0xff]  ;;  %v1279_v39 = vunpack.c.l.bf16 %v1194_v35 }
 0x16a   : > { %14332 = vmatpush3.msra.mxu0 %v14294_v28  ;;  %1040 = vmatpush1.msra.mxu1 %v1005_v30  ;;  %v1195_v28 = vld [vmem:[#allocation13 + $0xb0] sm:$0xff]  ;;  %v1284_v31 = vunpack.c.h.bf16 %v1196_v29  ;;  %v1263_v63 = vunpack.c.l.bf16 %v1186_v59 }
 0x16b   : > { %14333 = vmatprep.subr.mxu0 %v18283_v0  ;;  %1041 = vmatprep.subr.mxu1 %v1004_v33  ;;  %v1297_v0 = vunpack.c.l.bf16 %v1203_v62  ;;  %v1282_v30 = vunpack.c.h.bf16 %v1195_v28  ;;  %v1283_v33 = vunpack.c.l.bf16 %v1196_v29 }
 0x16c   : > { %14334 = vmatpush3.msra.mxu0 %v14293_v32  ;;  %1042 = vmatpush1.msra.mxu1 %v1003_v34  ;;  %v1281_v32 = vunpack.c.l.bf16 %v1195_v28  ;;  %v1193_v34 = vld [vmem:[#allocation13 + $0xa0] sm:$0xff] }
 0x16d   : > { %14336 = vmatmul.mubr.msk.f32.vlgmr.msra.gmra.mxu0 %vm892_vm1, %v868_v36  ;;  %1043 = vmatprep.subr.mxu1 %v1002_v37  ;;  %v1278_v36 = vunpack.c.h.bf16 %v1193_v34  ;;  %v1280_v37 = vunpack.c.h.bf16 %v1194_v35 }
 0x16e   : > { %1044 = vmatpush1.msra.mxu1 %v1001_v38  ;;  %1387 = vmatprep.subr.mxu0 %v1298_v1  ;;  %v1277_v38 = vunpack.c.l.bf16 %v1193_v34  ;;  %v1184_v1 = vld [vmem:[#allocation13 + $0x58] sm:$0xff] }
 0x16f   : > { %1045 = vmatprep.subr.mxu1 %v1000_v40  ;;  %1388 = vmatpush1.msra.mxu0 %v1297_v0  ;;  %v1191_v40 = vld [vmem:[#allocation13 + $0x90] sm:$0xff]  ;;  %v1260_v3 = vunpack.c.h.bf16 %v1184_v1 }
 0x170   : > { %1046 = vmatpush1.msra.mxu1 %v999_v41  ;;  %1389 = vmatprep.subr.mxu0 %v1294_v5  ;;  %v1192_v41 = vld [vmem:[#allocation13 + $0x98] sm:$0xff]  ;;  %v1274_v42 = vunpack.c.h.bf16 %v1191_v40  ;;  %v1183_v0 = vld [vmem:[#allocation13 + $0x50] sm:$0xff]  ;;  %v1259_v5 = vunpack.c.l.bf16 %v1184_v1 }
 0x171   : > { %1047 = vmatprep.subr.mxu1 %v998_v43  ;;  %1390 = vmatpush1.msra.mxu0 %v1293_v4  ;;  %v1276_v43 = vunpack.c.h.bf16 %v1192_v41  ;;  %v1275_v45 = vunpack.c.l.bf16 %v1192_v41  ;;  %v1257_v4 = vunpack.c.l.bf16 %v1183_v0 }
 0x172   : > { %1048 = vmatpush1.msra.mxu1 %v997_v44  ;;  %1391 = vmatprep.subr.mxu0 %v1290_v18  ;;  %v1273_v44 = vunpack.c.l.bf16 %v1191_v40  ;;  %v1177_v18 = vld [vmem:[#allocation13 + $0x20] sm:$0xff] }
 0x173   : > { %1049 = vmatprep.subr.mxu1 %v996_v46  ;;  %1392 = vmatpush1.msra.mxu0 %v1289_v20  ;;  %v1189_v46 = vld [vmem:[#allocation13 + $0x80] sm:$0xff]  ;;  %v1246_v20 = vunpack.c.h.bf16 %v1177_v18  ;;  %v1245_v22 = vunpack.c.l.bf16 %v1177_v18 }
 0x174   : > { %1050 = vmatpush1.msra.mxu1 %v995_v47  ;;  %1393 = vmatprep.subr.mxu0 %v1286_v24  ;;  %v1190_v47 = vld [vmem:[#allocation13 + $0x88] sm:$0xff]  ;;  %v1270_v48 = vunpack.c.h.bf16 %v1189_v46  ;;  %v1175_v24 = vld [vmem:[#allocation13 + $0x10] sm:$0xff] }
 0x175   : > { %1051 = vmatprep.subr.mxu1 %v994_v49  ;;  %1394 = vmatpush1.msra.mxu0 %v1285_v26  ;;  %v1272_v49 = vunpack.c.h.bf16 %v1190_v47  ;;  %v1242_v26 = vunpack.c.h.bf16 %v1175_v24  ;;  %v1241_v28 = vunpack.c.l.bf16 %v1175_v24 }
 0x176   : > { %1052 = vmatpush1.msra.mxu1 %v993_v50  ;;  %1395 = vmatprep.subr.mxu0 %v1282_v30  ;;  %v1269_v50 = vunpack.c.l.bf16 %v1189_v46  ;;  %v1173_v30 = vld [vmem:[#allocation13] sm:$0xff] }
 0x177   : > { %1053 = vmatprep.subr.mxu1 %v992_v51  ;;  %1396 = vmatpush1.msra.mxu0 %v1281_v32  ;;  %v1271_v51 = vunpack.c.l.bf16 %v1190_v47  ;;  %v1238_v32 = vunpack.c.h.bf16 %v1173_v30  ;;  %v1237_v34 = vunpack.c.l.bf16 %v1173_v30 }
 0x178   : > { %1054 = vmatpush1.msra.mxu1 %v991_v52  ;;  %1397 = vmatprep.subr.mxu0 %v1278_v36  ;;  %v1187_v52 = vld [vmem:[#allocation13 + $0x70] sm:$0xff] }
 0x179   : > { %1055 = vmatprep.subr.mxu1 %v990_v54  ;;  %1398 = vmatpush1.msra.mxu0 %v1277_v38  ;;  %v1266_v54 = vunpack.c.h.bf16 %v1187_v52  ;;  %v1265_v56 = vunpack.c.l.bf16 %v1187_v52  ;;  %v1235_v36 = vld [vmem:[#allocation13 + $0x1f0] sm:$0xff] }
 0x17a   : > { %1056 = vmatpush1.msra.mxu1 %v989_v55  ;;  %1399 = vmatprep.subr.mxu0 %v1274_v42  ;;  %v1268_v55 = vunpack.c.h.bf16 %v1188_v53  ;;  %v1362_v38 = vunpack.c.h.bf16 %v1235_v36  ;;  %v1361_v40 = vunpack.c.l.bf16 %v1235_v36  ;;  %v1233_v42 = vld [vmem:[#allocation13 + $0x1e0] sm:$0xff] }
 0x17b   : > { %1057 = vmatprep.subr.mxu1 %v988_v57  ;;  %1400 = vmatpush1.msra.mxu0 %v1273_v44  ;;  %v1267_v57 = vunpack.c.l.bf16 %v1188_v53  ;;  %v1358_v44 = vunpack.c.h.bf16 %v1233_v42  ;;  %v1357_v46 = vunpack.c.l.bf16 %v1233_v42 }
 0x17c   : > { %1058 = vmatpush1.msra.mxu1 %v987_v58  ;;  %1401 = vmatprep.subr.mxu0 %v1270_v48  ;;  %v1185_v58 = vld [vmem:[#allocation13 + $0x60] sm:$0xff]  ;;  %v1231_v48 = vld [vmem:[#allocation13 + $0x1d0] sm:$0xff] }
 0x17d   : > { %1059 = vmatprep.subr.mxu1 %v986_v60  ;;  %1402 = vmatpush1.msra.mxu0 %v1269_v50  ;;  %v1262_v60 = vunpack.c.h.bf16 %v1185_v58  ;;  %v1261_v62 = vunpack.c.l.bf16 %v1185_v58  ;;  %v1354_v50 = vunpack.c.h.bf16 %v1231_v48  ;;  %v1353_v52 = vunpack.c.l.bf16 %v1231_v48 }
 0x17e   : > { %1060 = vmatpush1.msra.mxu1 %v985_v61  ;;  %1403 = vmatprep.subr.mxu0 %v1266_v54  ;;  %v1264_v61 = vunpack.c.h.bf16 %v1186_v59  ;;  %v1229_v54 = vld [vmem:[#allocation13 + $0x1c0] sm:$0xff] }
 0x17f   : > { %1458 = vmatprep.subr.mxu1 %v1300_v2  ;;  %1404 = vmatpush1.msra.mxu0 %v1265_v56  ;;  %v1258_v2 = vunpack.c.h.bf16 %v1183_v0  ;;  %v1350_v56 = vunpack.c.h.bf16 %v1229_v54  ;;  %v1349_v58 = vunpack.c.l.bf16 %v1229_v54 }
 0x180   : > { %1405 = vmatprep.subr.mxu0 %v1262_v60  ;;  %v1227_v60 = vld [vmem:[#allocation13 + $0x1b0] sm:$0xff] }
 0x181   : > { %1406 = vmatpush1.msra.mxu0 %v1261_v62  ;;  %v1346_v62 = vunpack.c.h.bf16 %v1227_v60  ;;  %v1345_v0 = vunpack.c.l.bf16 %v1227_v60 }
 0x182   : > { %1407 = vmatprep.subr.mxu0 %v1258_v2  ;;  %v1225_v2 = vld [vmem:[#allocation13 + $0x1a0] sm:$0xff] }
 0x183   : > { %1408 = vmatpush1.msra.mxu0 %v1257_v4  ;;  %v1342_v4 = vunpack.c.h.bf16 %v1225_v2 }
 0x22d   : > { %v962_v7 = vpop.f32.mrf.mxu0 }
 0x22e   : > { %v963_v8 = vadd.f32 %v14285_v6, %v962_v7  ;;  %v1181_v6 = vld [vmem:[#allocation13 + $0x40] sm:$0xff]  ;;  %v1182_v7 = vld [vmem:[#allocation13 + $0x48] sm:$0xff] }
 0x22f   : > { %v14337_v10 = vpop.f32.mrf.mxu0  ;;  %v1256_v9 = vunpack.c.h.bf16 %v1182_v7 }
 0x230   : > { %v967_v11 = vmul.f32 0.2, %v963_v8  ;;  %vm966_vm2 = vcmp.ge.f32.partialorder %v963_v8, 0.0  ;;  %v1253_v10 = vunpack.c.l.bf16 %v1181_v6 }
 0x232   : > { %v968_v14 = vsel %vm966_vm2, %v963_v8, %v967_v11  ;;  %v1254_v8 = vunpack.c.h.bf16 %v1181_v6  ;;  %v1255_v11 = vunpack.c.l.bf16 %v1182_v7  ;;  %v1341_v6 = vunpack.c.l.bf16 %v1225_v2 }
 0x233   : > { %1094 = vmatmul.mubr.f32.vlgmr.msra.gmra.mxu1 %v968_v14 }
 0x234   : > { %1459 = vmatpush1.msra.mxu1 %v1299_v12  ;;  %v1179_v12 = vld [vmem:[#allocation13 + $0x30] sm:$0xff]  ;;  %1409 = vmatprep.subr.mxu0 %v1254_v8 }
 0x235   : > { %1460 = vmatprep.subr.mxu1 %v1296_v13  ;;  %v1180_v13 = vld [vmem:[#allocation13 + $0x38] sm:$0xff]  ;;  %v1250_v14 = vunpack.c.h.bf16 %v1179_v12  ;;  %1410 = vmatpush1.msra.mxu0 %v1253_v10  ;;  %v1249_v16 = vunpack.c.l.bf16 %v1179_v12  ;;  %v1223_v8 = vld [vmem:[#allocation13 + $0x190] sm:$0xff] }
 0x236   : > { %1461 = vmatpush1.msra.mxu1 %v1295_v15  ;;  %v1252_v15 = vunpack.c.h.bf16 %v1180_v13  ;;  %v1251_v17 = vunpack.c.l.bf16 %v1180_v13  ;;  %v1338_v10 = vunpack.c.h.bf16 %v1223_v8  ;;  %v1337_v12 = vunpack.c.l.bf16 %v1223_v8 }
 0x237   : > { %1462 = vmatprep.subr.mxu1 %v1292_v19  ;;  %v1178_v19 = vld [vmem:[#allocation13 + $0x28] sm:$0xff]  ;;  %1411 = vmatprep.subr.mxu0 %v1250_v14  ;;  %v1221_v14 = vld [vmem:[#allocation13 + $0x180] sm:$0xff]  ;;  %v1019_v8 = vlaneseq }
 0x238   : > { %1463 = vmatpush1.msra.mxu1 %v1291_v21  ;;  %v1248_v21 = vunpack.c.h.bf16 %v1178_v19  ;;  %1412 = vmatpush1.msra.mxu0 %v1249_v16  ;;  %v1247_v23 = vunpack.c.l.bf16 %v1178_v19  ;;  %v1334_v16 = vunpack.c.h.bf16 %v1221_v14  ;;  %v1333_v18 = vunpack.c.l.bf16 %v1221_v14 }
 0x239   : > { %1464 = vmatprep.subr.mxu1 %v1288_v25  ;;  %v1176_v25 = vld [vmem:[#allocation13 + $0x18] sm:$0xff]  ;;  %1413 = vmatprep.subr.mxu0 %v1246_v20  ;;  %v1219_v20 = vld [vmem:[#allocation13 + $0x170] sm:$0xff] }
 0x23a   : > { %1465 = vmatpush1.msra.mxu1 %v1287_v27  ;;  %v1244_v27 = vunpack.c.h.bf16 %v1176_v25  ;;  %1414 = vmatpush1.msra.mxu0 %v1245_v22  ;;  %v1243_v29 = vunpack.c.l.bf16 %v1176_v25  ;;  %v1330_v22 = vunpack.c.h.bf16 %v1219_v20  ;;  %v1329_v24 = vunpack.c.l.bf16 %v1219_v20 }
 0x23b   : > { %1466 = vmatprep.subr.mxu1 %v1284_v31  ;;  %v1174_v31 = vld [vmem:[#allocation13 + $0x8] sm:$0xff]  ;;  %1415 = vmatprep.subr.mxu0 %v1242_v26  ;;  %v1217_v26 = vld [vmem:[#allocation13 + $0x160] sm:$0xff] }
 0x23c   : > { %1467 = vmatpush1.msra.mxu1 %v1283_v33  ;;  %v1240_v33 = vunpack.c.h.bf16 %v1174_v31  ;;  %1416 = vmatpush1.msra.mxu0 %v1241_v28  ;;  %v1239_v35 = vunpack.c.l.bf16 %v1174_v31  ;;  %v1326_v28 = vunpack.c.h.bf16 %v1217_v26  ;;  %v1325_v30 = vunpack.c.l.bf16 %v1217_v26 }
 0x23d   : > { %1468 = vmatprep.subr.mxu1 %v1280_v37  ;;  %v1236_v37 = vld [vmem:[#allocation13 + $0x1f8] sm:$0xff]  ;;  %1417 = vmatprep.subr.mxu0 %v1238_v32  ;;  %v1215_v32 = vld [vmem:[#allocation13 + $0x150] sm:$0xff] }
 0x23e   : > { %1469 = vmatpush1.msra.mxu1 %v1279_v39  ;;  %v1364_v39 = vunpack.c.h.bf16 %v1236_v37  ;;  %1418 = vmatpush1.msra.mxu0 %v1237_v34  ;;  %v1363_v41 = vunpack.c.l.bf16 %v1236_v37  ;;  %v1322_v34 = vunpack.c.h.bf16 %v1215_v32  ;;  %v1321_v36 = vunpack.c.l.bf16 %v1215_v32 }
 0x23f   : > { %1470 = vmatprep.subr.mxu1 %v1276_v43  ;;  %v1234_v43 = vld [vmem:[#allocation13 + $0x1e8] sm:$0xff]  ;;  %1419 = vmatprep.subr.mxu0 %v1362_v38  ;;  %v1213_v38 = vld [vmem:[#allocation13 + $0x140] sm:$0xff] }
 0x240   : > { %1471 = vmatpush1.msra.mxu1 %v1275_v45  ;;  %v1360_v45 = vunpack.c.h.bf16 %v1234_v43  ;;  %1420 = vmatpush2.msra.mxu0 %v1361_v40  ;;  %v1359_v47 = vunpack.c.l.bf16 %v1234_v43  ;;  %v1318_v40 = vunpack.c.h.bf16 %v1213_v38  ;;  %v1317_v42 = vunpack.c.l.bf16 %v1213_v38 }
 0x241   : > { %1472 = vmatprep.subr.mxu1 %v1272_v49  ;;  %v1232_v49 = vld [vmem:[#allocation13 + $0x1d8] sm:$0xff]  ;;  %1421 = vmatprep.subr.mxu0 %v1358_v44  ;;  %v1211_v44 = vld [vmem:[#allocation13 + $0x130] sm:$0xff] }
 0x242   : > { %1473 = vmatpush1.msra.mxu1 %v1271_v51  ;;  %v1356_v51 = vunpack.c.h.bf16 %v1232_v49  ;;  %1422 = vmatpush2.msra.mxu0 %v1357_v46  ;;  %v1355_v53 = vunpack.c.l.bf16 %v1232_v49  ;;  %v1313_v46 = vunpack.c.l.bf16 %v1211_v44 }
 0x243   : > { %1474 = vmatprep.subr.mxu1 %v1268_v55  ;;  %v1230_v55 = vld [vmem:[#allocation13 + $0x1c8] sm:$0xff]  ;;  %1423 = vmatprep.subr.mxu0 %v1354_v50  ;;  %v1209_v50 = vld [vmem:[#allocation13 + $0x120] sm:$0xff] }
 0x244   : > { %1475 = vmatpush1.msra.mxu1 %v1267_v57  ;;  %v1352_v57 = vunpack.c.h.bf16 %v1230_v55  ;;  %1424 = vmatpush2.msra.mxu0 %v1353_v52  ;;  %v1351_v59 = vunpack.c.l.bf16 %v1230_v55  ;;  %v1207_v52 = vld [vmem:[#allocation13 + $0x110] sm:$0xff]  ;;  %v1310_v54 = vunpack.c.h.bf16 %v1209_v50 }
 0x245   : > { %1476 = vmatprep.subr.mxu1 %v1264_v61  ;;  %v1228_v61 = vld [vmem:[#allocation13 + $0x1b8] sm:$0xff]  ;;  %1425 = vmatprep.subr.mxu0 %v1350_v56  ;;  %v1306_v60 = vunpack.c.h.bf16 %v1207_v52 }
 0x246   : > { %1477 = vmatpush1.msra.mxu1 %v1263_v63  ;;  %v1348_v63 = vunpack.c.h.bf16 %v1228_v61  ;;  %1426 = vmatpush2.msra.mxu0 %v1349_v58  ;;  %v1347_v1 = vunpack.c.l.bf16 %v1228_v61  ;;  %v1205_v58 = vld [vmem:[#allocation13 + $0x100] sm:$0xff] }
 0x247   : > { %1478 = vmatprep.subr.mxu1 %v1260_v3  ;;  %v1226_v3 = vld [vmem:[#allocation13 + $0x1a8] sm:$0xff]  ;;  %1427 = vmatprep.subr.mxu0 %v1346_v62  ;;  %v1305_v62 = vunpack.c.l.bf16 %v1207_v52  ;;  %v1301_v2 = vunpack.c.l.bf16 %v1205_v58 }
 0x248   : > { %1479 = vmatpush1.msra.mxu1 %v1259_v5  ;;  %v1344_v5 = vunpack.c.h.bf16 %v1226_v3  ;;  %1428 = vmatpush2.msra.mxu0 %v1345_v0  ;;  %v1343_v7 = vunpack.c.l.bf16 %v1226_v3  ;;  %v1302_v0 = vunpack.c.h.bf16 %v1205_v58 }
 0x249   : > { %1480 = vmatprep.subr.mxu1 %v1256_v9  ;;  %v1224_v9 = vld [vmem:[#allocation13 + $0x198] sm:$0xff]  ;;  %1429 = vmatprep.subr.mxu0 %v1342_v4  ;;  %v18716_v4 = vld [vmem:[#allocation19 + $0x1e0] sm:$0xff] }
 0x24a   : > { %1481 = vmatpush1.msra.mxu1 %v1255_v11  ;;  %v1340_v11 = vunpack.c.h.bf16 %v1224_v9  ;;  %1430 = vmatpush2.msra.mxu0 %v1341_v6  ;;  %v1339_v13 = vunpack.c.l.bf16 %v1224_v9  ;;  %v2046_v6 = vunpack.c.h.bf16 %v18716_v4  ;;  %v18722_v9 = vshrl.u32 %v1019_v8, 7 }
 0x24b   : > { %1482 = vmatprep.subr.mxu1 %v1252_v15  ;;  %v1222_v15 = vld [vmem:[#allocation13 + $0x188] sm:$0xff]  ;;  %1431 = vmatprep.subr.mxu0 %v1338_v10 }
 0x24c   : > { %1483 = vmatpush1.msra.mxu1 %v1251_v17  ;;  %v1336_v17 = vunpack.c.h.bf16 %v1222_v15  ;;  %1432 = vmatpush2.msra.mxu0 %v1337_v12  ;;  %v1335_v19 = vunpack.c.l.bf16 %v1222_v15  ;;  %v18725_v10 = vsub.s32 0, %v18722_v9  ;;  %v18728_v12 = vsub.s32 1, %v18722_v9 }
 0x24d   : > { %1484 = vmatprep.subr.mxu1 %v1248_v21  ;;  %v1220_v21 = vld [vmem:[#allocation13 + $0x178] sm:$0xff]  ;;  %1433 = vmatprep.subr.mxu0 %v1334_v16 }
 0x24e   : > { %1485 = vmatpush1.msra.mxu1 %v1247_v23  ;;  %v1332_v23 = vunpack.c.h.bf16 %v1220_v21  ;;  %1434 = vmatpush2.msra.mxu0 %v1333_v18  ;;  %v1331_v25 = vunpack.c.l.bf16 %v1220_v21 }
 0x24f   : > { %1486 = vmatprep.subr.mxu1 %v1244_v27  ;;  %v1218_v27 = vld [vmem:[#allocation13 + $0x168] sm:$0xff]  ;;  %1435 = vmatprep.subr.mxu0 %v1330_v22 }
 0x250   : > { %1487 = vmatpush1.msra.mxu1 %v1243_v29  ;;  %v1328_v29 = vunpack.c.h.bf16 %v1218_v27  ;;  %1436 = vmatpush2.msra.mxu0 %v1329_v24  ;;  %v1327_v31 = vunpack.c.l.bf16 %v1218_v27 }
 0x251   : > { %1488 = vmatprep.subr.mxu1 %v1240_v33  ;;  %v1216_v33 = vld [vmem:[#allocation13 + $0x158] sm:$0xff]  ;;  %1437 = vmatprep.subr.mxu0 %v1326_v28 }
 0x252   : > { %1489 = vmatpush1.msra.mxu1 %v1239_v35  ;;  %v1324_v35 = vunpack.c.h.bf16 %v1216_v33  ;;  %1438 = vmatpush2.msra.mxu0 %v1325_v30  ;;  %v1323_v37 = vunpack.c.l.bf16 %v1216_v33 }
 0x253   : > { %1490 = vmatprep.subr.mxu1 %v1364_v39  ;;  %v1214_v39 = vld [vmem:[#allocation13 + $0x148] sm:$0xff]  ;;  %1439 = vmatprep.subr.mxu0 %v1322_v34 }
 0x254   : > { %1491 = vmatpush2.msra.mxu1 %v1363_v41  ;;  %v1320_v41 = vunpack.c.h.bf16 %v1214_v39  ;;  %1440 = vmatpush2.msra.mxu0 %v1321_v36  ;;  %v1319_v43 = vunpack.c.l.bf16 %v1214_v39 }
 0x255   : > { %1492 = vmatprep.subr.mxu1 %v1360_v45  ;;  %v1212_v45 = vld [vmem:[#allocation13 + $0x138] sm:$0xff]  ;;  %1441 = vmatprep.subr.mxu0 %v1318_v40 }
 0x256   : > { %1493 = vmatpush2.msra.mxu1 %v1359_v47  ;;  %v1314_v47 = vunpack.c.h.bf16 %v1211_v44  ;;  %v1315_v48 = vunpack.c.l.bf16 %v1212_v45  ;;  %v1316_v49 = vunpack.c.h.bf16 %v1212_v45  ;;  %1442 = vmatpush2.msra.mxu0 %v1317_v42 }
 0x257   : > { %1494 = vmatprep.subr.mxu1 %v1356_v51  ;;  %v1210_v51 = vld [vmem:[#allocation13 + $0x128] sm:$0xff] }
 0x258   : > { %1495 = vmatpush2.msra.mxu1 %v1355_v53  ;;  %v1309_v53 = vunpack.c.l.bf16 %v1209_v50  ;;  %v1311_v55 = vunpack.c.l.bf16 %v1210_v51  ;;  %v1312_v56 = vunpack.c.h.bf16 %v1210_v51  ;;  %1443 = vmatprep.subr.mxu0 %v1314_v47 }
 0x259   : > { %1496 = vmatprep.subr.mxu1 %v1352_v57  ;;  %v1208_v57 = vld [vmem:[#allocation13 + $0x118] sm:$0xff]  ;;  %1444 = vmatpush2.msra.mxu0 %v1313_v46 }
 0x25a   : > { %1497 = vmatpush2.msra.mxu1 %v1351_v59  ;;  %v1206_v59 = vld [vmem:[#allocation13 + $0x108] sm:$0xff]  ;;  %v1308_v61 = vunpack.c.h.bf16 %v1208_v57  ;;  %1445 = vmatprep.subr.mxu0 %v1310_v54 }
 0x25b   : > { %1498 = vmatprep.subr.mxu1 %v1348_v63  ;;  %v1307_v63 = vunpack.c.l.bf16 %v1208_v57  ;;  %1446 = vmatpush2.msra.mxu0 %v1309_v53  ;;  %v1303_v3 = vunpack.c.l.bf16 %v1206_v59  ;;  %v1133_v53 = vld [vmem:[#allocation10] sm:$0x3] }
 0x25c   : > { %1499 = vmatpush2.msra.mxu1 %v1347_v1  ;;  %v1304_v1 = vunpack.c.h.bf16 %v1206_v59  ;;  %1447 = vmatprep.subr.mxu0 %v1306_v60  ;;  %v1138_v54 = vrot.slane %v1133_v53, %v18725_v10 }
 0x25d   : > { %1500 = vmatprep.subr.mxu1 %v1344_v5  ;;  %1448 = vmatpush2.msra.mxu0 %v1305_v62  ;;  %v18718_v5 = vld [vmem:[#allocation19 + $0x5e0] sm:$0xff] }
 0x25e   : > { %1501 = vmatpush2.msra.mxu1 %v1343_v7  ;;  %1449 = vmatprep.subr.mxu0 %v1302_v0  ;;  %v2302_v7 = vunpack.c.h.bf16 %v18718_v5 }
 0x25f   : > { %1502 = vmatprep.subr.mxu1 %v1340_v11  ;;  %1450 = vmatpush2.msra.mxu0 %v1301_v2  ;;  %v1017_v11 = vld [vmem:[#allocation9] sm:$0x3] }
 0x260   : > { %1503 = vmatpush2.msra.mxu1 %v1339_v13  ;;  %2479 = vmatprep.subr.mxu0 %v2046_v6  ;;  %v1022_v13 = vrot.slane %v1017_v11, %v18725_v10  ;;  %v1026_v14 = vrot.slane %v1017_v11, %v18728_v12  ;;  %v1725_v6 = vld [vmem:[#allocation19 + $0x1c0] sm:$0xff]  ;;  %v2045_v11 = vunpack.c.l.bf16 %v18716_v4 }
 0x261   : > { %1504 = vmatprep.subr.mxu1 %v1336_v17  ;;  %v1849_v4 = vld [vmem:[#allocation19 + $0x5a0] sm:$0xff] }
 0x262   : > { %1505 = vmatpush2.msra.mxu1 %v1335_v19 }
 0x263   : > { %1506 = vmatprep.subr.mxu1 %v1332_v23 }
 0x264   : > { %1507 = vmatpush2.msra.mxu1 %v1331_v25 }
 0x265   : > { %1508 = vmatprep.subr.mxu1 %v1328_v29 }
 0x266   : > { %1509 = vmatpush2.msra.mxu1 %v1327_v31 }
 0x267   : > { %1510 = vmatprep.subr.mxu1 %v1324_v35 }
 0x268   : > { %1511 = vmatpush2.msra.mxu1 %v1323_v37 }
 0x269   : > { %1512 = vmatprep.subr.mxu1 %v1320_v41 }
 0x26a   : > { %1513 = vmatpush2.msra.mxu1 %v1319_v43 }
 0x26b   : > { %1514 = vmatprep.subr.mxu1 %v1316_v49 }
 0x26c   : > { %1515 = vmatpush2.msra.mxu1 %v1315_v48 }
 0x26d   : > { %1516 = vmatprep.subr.mxu1 %v1312_v56  ;;  %v1142_v56 = vrot.slane %v1133_v53, %v18728_v12 }
 0x26e   : > { %1517 = vmatpush2.msra.mxu1 %v1311_v55  ;;  %v1153_v55 = vld [vmem:[#allocation12] sm:$0x3] }
 0x26f   : > { %1518 = vmatprep.subr.mxu1 %v1308_v61  ;;  %v1158_v58 = vrot.slane %v1153_v55, %v18725_v10  ;;  %v1162_v62 = vrot.slane %v1153_v55, %v18728_v12  ;;  %v1825_v55 = vld [vmem:[#allocation19 + $0x4e0] sm:$0xff] }
 0x270   : > { %1519 = vmatpush2.msra.mxu1 %v1307_v63 }
 0x271   : > { %1520 = vmatprep.subr.mxu1 %v1304_v1 }
 0x272   : > { %1521 = vmatpush2.msra.mxu1 %v1303_v3 }
 0x273   : > { %2550 = vmatprep.subr.mxu1 %v2302_v7  ;;  %v1853_v7 = vld [vmem:[#allocation19 + $0x5c0] sm:$0xff] }
 0x2f3   : > { %v1095_v15 = vpop.f32.mrf.mxu1 }
 0x2f4   : > { %v1096_v16 = vadd.f32 %v1095_v15, %v1022_v13  ;;  %v2301_v13 = vunpack.c.l.bf16 %v18718_v5  ;;  %v2038_v15 = vunpack.c.h.bf16 %v1725_v6  ;;  %v2286_v5 = vunpack.c.h.bf16 %v1849_v4 }
 0x2f5   : > { %v1097_v17 = vpop.f32.mrf.mxu1 }
 0x2f6   : > { %v1100_v18 = vrot.slane %v1096_v16, 4  ;;  %v1098_v19 = vadd.f32 %v1097_v17, %v1026_v14 }
 0x2f8   : > { %v1101_v20 = vadd.f32 %v1100_v18, %v1096_v16  ;;  %v1106_v21 = vrot.slane %v1098_v19, 4  ;;  %v2037_v18 = vunpack.c.l.bf16 %v1725_v6 }
 0x2fa   : > { %v1102_v22 = vrot.slane %v1101_v20, 2  ;;  %v1107_v23 = vadd.f32 %v1106_v21, %v1098_v19 }
 0x2fc   : > { %v1103_v24 = vadd.f32 %v1102_v22, %v1101_v20  ;;  %v1108_v25 = vrot.slane %v1107_v23, 2  ;;  %v1721_v20 = vld [vmem:[#allocation19 + $0x1a0] sm:$0xff] }
 0x2fd   : > { %v2030_v21 = vunpack.c.h.bf16 %v1721_v20  ;;  %v2029_v22 = vunpack.c.l.bf16 %v1721_v20  ;;  %v1809_v20 = vld [vmem:[#allocation19 + $0x460] sm:$0xff] }
 0x2fe   : > { %v1104_v26 = vrot.slane %v1103_v24, 1  ;;  %v1109_v27 = vadd.f32 %v1108_v25, %v1107_v23  ;;  %v2285_v23 = vunpack.c.l.bf16 %v1849_v4  ;;  %v1845_v25 = vld [vmem:[#allocation19 + $0x580] sm:$0xff] }
 0x300   : > { %v1105_v28 = vadd.f32 %v1104_v26, %v1103_v24  ;;  %v1110_v29 = vrot.slane %v1109_v27, 1  ;;  %v1717_v24 = vld [vmem:[#allocation19 + $0x180] sm:$0xff] }
 0x301   : > { %v2022_v26 = vunpack.c.h.bf16 %v1717_v24 }
 0x302   : > { %v1113_v30 = vmul.f32 0.125, %v1105_v28  ;;  %v1111_v31 = vadd.f32 %v1110_v29, %v1109_v27  ;;  %v2278_v27 = vunpack.c.h.bf16 %v1845_v25  ;;  %v2021_v28 = vunpack.c.l.bf16 %v1717_v24  ;;  %v1805_v24 = vld [vmem:[#allocation19 + $0x440] sm:$0xff] }
 0x303   : > { %v2277_v29 = vunpack.c.l.bf16 %v1845_v25 }
 0x304   : > { %v1115_v32 = vsub.f32 %v1096_v16, %v1113_v30  ;;  %v1114_v33 = vmul.f32 0.125, %v1111_v31  ;;  %v2294_v16 = vunpack.c.h.bf16 %v1853_v7  ;;  %v1713_v30 = vld [vmem:[#allocation19 + $0x160] sm:$0xff] }
 0x305   : > { %v1841_v31 = vld [vmem:[#allocation19 + $0x560] sm:$0xff] }
 0x306   : > { %v1117_v34 = vmul.f32 %v1115_v32, %v1115_v32  ;;  %v1116_v35 = vsub.f32 %v1098_v19, %v1114_v33  ;;  %v1145_v57 = vmul.f32 %v1138_v54, %v1115_v32  ;;  %v2293_v19 = vunpack.c.l.bf16 %v1853_v7  ;;  %v1697_v54 = vld [vmem:[#allocation19 + $0xe0] sm:$0xff] }
 0x307   : > { %v2014_v32 = vunpack.c.h.bf16 %v1713_v30  ;;  %v2270_v33 = vunpack.c.h.bf16 %v1841_v31 }
 0x308   : > { %v1119_v36 = vrot.slane %v1117_v34, 4  ;;  %v1118_v37 = vmul.f32 %v1116_v35, %v1116_v35  ;;  %v1146_v61 = vmul.f32 %v1142_v56, %v1116_v35  ;;  %v2269_v35 = vunpack.c.l.bf16 %v1841_v31 }
 0x309   : > { %v1982_v56 = vunpack.c.h.bf16 %v1697_v54 }
 0x30a   : > { %v1120_v38 = vadd.f32 %v1119_v36, %v1117_v34  ;;  %v1125_v39 = vrot.slane %v1118_v37, 4  ;;  %v2013_v34 = vunpack.c.l.bf16 %v1713_v30  ;;  %v1709_v36 = vld [vmem:[#allocation19 + $0x140] sm:$0xff] }
 0x30b   : > { %v1801_v30 = vld [vmem:[#allocation19 + $0x420] sm:$0xff] }
 0x30c   : > { %v1121_v40 = vrot.slane %v1120_v38, 2  ;;  %v1126_v41 = vadd.f32 %v1125_v39, %v1118_v37  ;;  %v1837_v37 = vld [vmem:[#allocation19 + $0x540] sm:$0xff] }
 0x30d   : > { %v2262_v39 = vunpack.c.h.bf16 %v1837_v37 }
 0x30e   : > { %v1122_v42 = vadd.f32 %v1121_v40, %v1120_v38  ;;  %v1127_v43 = vrot.slane %v1126_v41, 2  ;;  %v2006_v38 = vunpack.c.h.bf16 %v1709_v36  ;;  %v2005_v40 = vunpack.c.l.bf16 %v1709_v36  ;;  %v1797_v36 = vld [vmem:[#allocation19 + $0x400] sm:$0xff] }
 0x310   : > { %v1123_v44 = vrot.slane %v1122_v42, 1  ;;  %v1128_v45 = vadd.f32 %v1127_v43, %v1126_v41  ;;  %v2261_v41 = vunpack.c.l.bf16 %v1837_v37  ;;  %v1833_v43 = vld [vmem:[#allocation19 + $0x520] sm:$0xff] }
 0x312   : > { %v1124_v46 = vadd.f32 %v1123_v44, %v1122_v42  ;;  %v1129_v47 = vrot.slane %v1128_v45, 1  ;;  %v1705_v42 = vld [vmem:[#allocation19 + $0x120] sm:$0xff] }
 0x313   : > { %v1998_v44 = vunpack.c.h.bf16 %v1705_v42 }
 0x314   : > { %v1131_v48 = vmul.f32 0.125, %v1124_v46  ;;  %v1130_v49 = vadd.f32 %v1129_v47, %v1128_v45  ;;  %v2254_v45 = vunpack.c.h.bf16 %v1833_v43  ;;  %v1997_v46 = vunpack.c.l.bf16 %v1705_v42  ;;  %v1921_v42 = vld [vmem:[#allocation19 + $0x7e0] sm:$0xff] }
 0x315   : > { %v2253_v47 = vunpack.c.l.bf16 %v1833_v43 }
 0x316   : > { %v1147_v50 = vadd.f32 0.8, %v1131_v48  ;;  %v1132_v51 = vmul.f32 0.125, %v1130_v49  ;;  %v1701_v48 = vld [vmem:[#allocation19 + $0x100] sm:$0xff] }
 0x317   : > { %v1829_v49 = vld [vmem:[#allocation19 + $0x500] sm:$0xff] }
 0x318   : > { %17628 = vrsqrt.f32 %v1147_v50  ;;  %v1148_v52 = vadd.f32 0.8, %v1132_v51  ;;  %v1990_v50 = vunpack.c.h.bf16 %v1701_v48  ;;  %v2246_v51 = vunpack.c.h.bf16 %v1829_v49 }
 0x319   : > { %v2245_v53 = vunpack.c.l.bf16 %v1829_v49 }
 0x31a   : > { %17630 = vrsqrt.f32 %v1148_v52  ;;  %v1989_v52 = vunpack.c.l.bf16 %v1701_v48  ;;  %v1917_v48 = vld [vmem:[#allocation19 + $0x7c0] sm:$0xff] }
 0x325   : > { %v17629_v59 = vpop.eup %17628 }
 0x326   : > { %v1151_v60 = vmul.f32 %v17629_v59, %v1145_v57  ;;  %v2238_v57 = vunpack.c.h.bf16 %v1825_v55  ;;  %v2237_v59 = vunpack.c.l.bf16 %v1825_v55 }
 0x327   : > { %v17631_v63 = vpop.eup %17630 }
 0x328   : > { %v1152_v0 = vmul.f32 %v17631_v63, %v1146_v61  ;;  %v1165_v1 = vadd.f32 %v1158_v58, %v1151_v60  ;;  %v1981_v58 = vunpack.c.l.bf16 %v1697_v54  ;;  %v1693_v60 = vld [vmem:[#allocation19 + $0xc0] sm:$0xff] }
 0x329   : > { %v1821_v61 = vld [vmem:[#allocation19 + $0x4c0] sm:$0xff] }
 0x32a   : > { %v1166_v2 = vadd.f32 %v1162_v62, %v1152_v0  ;;  %v1169_v3 = vmul.f32 0.2, %v1165_v1  ;;  %vm1167_vm4 = vcmp.ge.f32.partialorder %v1165_v1, 0.0  ;;  %v1974_v62 = vunpack.c.h.bf16 %v1693_v60  ;;  %v1913_v54 = vld [vmem:[#allocation19 + $0x7a0] sm:$0xff] }
 0x32b   : > { %v2230_v63 = vunpack.c.h.bf16 %v1821_v61  ;;  %v1973_v0 = vunpack.c.l.bf16 %v1693_v60  ;;  %v1909_v60 = vld [vmem:[#allocation19 + $0x780] sm:$0xff] }
 0x32c   : > { %vm1168_vm3 = vcmp.ge.f32.partialorder %v1166_v2, 0.0  ;;  %v1170_v8 = vmul.f32 0.2, %v1166_v2  ;;  %v1171_v17 = vsel %vm1167_vm4, %v1165_v1, %v1169_v3  ;;  %v2229_v1 = vunpack.c.l.bf16 %v1821_v61  ;;  %v1817_v3 = vld [vmem:[#allocation19 + $0x4a0] sm:$0xff] }
 0x32d   : > { %v2222_v7 = vunpack.c.h.bf16 %v1817_v3 }
 0x32e   : > { %v1172_v14 = vsel %vm1168_vm3, %v1166_v2, %v1170_v8  ;;  %v1689_v2 = vld [vmem:[#allocation19 + $0xa0] sm:$0xff] }
 0x32f   : > { %1451 = vmatprep.mubr.f32.mxu0 %v1172_v14  ;;  %1522 = vmatprep.mubr.f32.mxu1 %v1172_v14  ;;  %v1966_v6 = vunpack.c.h.bf16 %v1689_v2  ;;  %v1965_v8 = vunpack.c.l.bf16 %v1689_v2  ;;  %v1813_v14 = vld [vmem:[#allocation19 + $0x480] sm:$0xff] }
 0x330   : > { %1452 = vmatmul.mubr.f32.vlgmr.msra.gmra.mxu0 %v1171_v17  ;;  %1523 = vmatmul.mubr.f32.vlgmr.msra.gmra.mxu1 %v1171_v17  ;;  %v1905_v2 = vld [vmem:[#allocation19 + $0x760] sm:$0xff] }
 0x331   : > { %2480 = vmatpush1.msra.mxu0 %v2045_v11  ;;  %2551 = vmatpush1.msra.mxu1 %v2301_v13  ;;  %v2221_v11 = vunpack.c.l.bf16 %v1817_v3  ;;  %v1685_v13 = vld [vmem:[#allocation19 + $0x80] sm:$0xff] }
 0x332   : > { %2481 = vmatprep.subr.mxu0 %v2038_v15  ;;  %2552 = vmatprep.subr.mxu1 %v2294_v16  ;;  %v1958_v15 = vunpack.c.h.bf16 %v1685_v13  ;;  %v2214_v16 = vunpack.c.h.bf16 %v1813_v14  ;;  %v1957_v17 = vunpack.c.l.bf16 %v1685_v13  ;;  %v1901_v13 = vld [vmem:[#allocation19 + $0x740] sm:$0xff] }
 0x333   : > { %2482 = vmatpush1.msra.mxu0 %v2037_v18  ;;  %2553 = vmatpush1.msra.mxu1 %v2293_v19  ;;  %v2213_v18 = vunpack.c.l.bf16 %v1813_v14  ;;  %v1681_v19 = vld [vmem:[#allocation19 + $0x60] sm:$0xff] }
 0x334   : > { %2483 = vmatprep.subr.mxu0 %v2030_v21  ;;  %2554 = vmatprep.subr.mxu1 %v2286_v5  ;;  %v1950_v4 = vunpack.c.h.bf16 %v1681_v19  ;;  %v2206_v21 = vunpack.c.h.bf16 %v1809_v20  ;;  %v1949_v5 = vunpack.c.l.bf16 %v1681_v19  ;;  %v1897_v19 = vld [vmem:[#allocation19 + $0x720] sm:$0xff] }
 0x335   : > { %2484 = vmatpush1.msra.mxu0 %v2029_v22  ;;  %2555 = vmatpush1.msra.mxu1 %v2285_v23  ;;  %v2205_v22 = vunpack.c.l.bf16 %v1809_v20  ;;  %v1677_v23 = vld [vmem:[#allocation19 + $0x40] sm:$0xff] }
 0x336   : > { %2485 = vmatprep.subr.mxu0 %v2022_v26  ;;  %2556 = vmatprep.subr.mxu1 %v2278_v27  ;;  %v1942_v25 = vunpack.c.h.bf16 %v1677_v23  ;;  %v2198_v26 = vunpack.c.h.bf16 %v1805_v24  ;;  %v1941_v27 = vunpack.c.l.bf16 %v1677_v23  ;;  %v1893_v23 = vld [vmem:[#allocation19 + $0x700] sm:$0xff] }
 0x337   : > { %2486 = vmatpush1.msra.mxu0 %v2021_v28  ;;  %2557 = vmatpush1.msra.mxu1 %v2277_v29  ;;  %v2197_v28 = vunpack.c.l.bf16 %v1805_v24  ;;  %v1673_v29 = vld [vmem:[#allocation19 + $0x20] sm:$0xff] }
 0x338   : > { %2487 = vmatprep.subr.mxu0 %v2014_v32  ;;  %2558 = vmatprep.subr.mxu1 %v2270_v33  ;;  %v1934_v31 = vunpack.c.h.bf16 %v1673_v29  ;;  %v2190_v32 = vunpack.c.h.bf16 %v1801_v30  ;;  %v1933_v33 = vunpack.c.l.bf16 %v1673_v29  ;;  %v1889_v29 = vld [vmem:[#allocation19 + $0x6e0] sm:$0xff] }
 0x339   : > { %2488 = vmatpush1.msra.mxu0 %v2013_v34  ;;  %2559 = vmatpush1.msra.mxu1 %v2269_v35  ;;  %v2189_v34 = vunpack.c.l.bf16 %v1801_v30  ;;  %v1669_v35 = vld [vmem:[#allocation19] sm:$0xff] }
 0x33a   : > { %2489 = vmatprep.subr.mxu0 %v2006_v38  ;;  %2560 = vmatprep.subr.mxu1 %v2262_v39  ;;  %v1926_v37 = vunpack.c.h.bf16 %v1669_v35  ;;  %v2182_v38 = vunpack.c.h.bf16 %v1797_v36  ;;  %v1925_v39 = vunpack.c.l.bf16 %v1669_v35  ;;  %v1885_v35 = vld [vmem:[#allocation19 + $0x6c0] sm:$0xff] }
 0x33b   : > { %2490 = vmatpush1.msra.mxu0 %v2005_v40  ;;  %2561 = vmatpush1.msra.mxu1 %v2261_v41  ;;  %v2181_v40 = vunpack.c.l.bf16 %v1797_v36  ;;  %v1793_v41 = vld [vmem:[#allocation19 + $0x3e0] sm:$0xff] }
 0x33c   : > { %2491 = vmatprep.subr.mxu0 %v1998_v44  ;;  %2562 = vmatprep.subr.mxu1 %v2254_v45  ;;  %v2174_v43 = vunpack.c.h.bf16 %v1793_v41  ;;  %v2430_v44 = vunpack.c.h.bf16 %v1921_v42  ;;  %v2173_v45 = vunpack.c.l.bf16 %v1793_v41  ;;  %v1881_v41 = vld [vmem:[#allocation19 + $0x6a0] sm:$0xff] }
 0x33d   : > { %2492 = vmatpush1.msra.mxu0 %v1997_v46  ;;  %2563 = vmatpush1.msra.mxu1 %v2253_v47  ;;  %v2429_v46 = vunpack.c.l.bf16 %v1921_v42  ;;  %v1789_v47 = vld [vmem:[#allocation19 + $0x3c0] sm:$0xff] }
 0x33e   : > { %2493 = vmatprep.subr.mxu0 %v1990_v50  ;;  %2564 = vmatprep.subr.mxu1 %v2246_v51  ;;  %v2166_v49 = vunpack.c.h.bf16 %v1789_v47  ;;  %v2422_v50 = vunpack.c.h.bf16 %v1917_v48  ;;  %v2165_v51 = vunpack.c.l.bf16 %v1789_v47  ;;  %v1877_v47 = vld [vmem:[#allocation19 + $0x680] sm:$0xff] }
 0x33f   : > { %2494 = vmatpush1.msra.mxu0 %v1989_v52  ;;  %2565 = vmatpush1.msra.mxu1 %v2245_v53  ;;  %v2421_v52 = vunpack.c.l.bf16 %v1917_v48  ;;  %v1785_v53 = vld [vmem:[#allocation19 + $0x3a0] sm:$0xff] }
 0x340   : > { %2495 = vmatprep.subr.mxu0 %v1982_v56  ;;  %2566 = vmatprep.subr.mxu1 %v2238_v57  ;;  %v2158_v55 = vunpack.c.h.bf16 %v1785_v53  ;;  %v2414_v56 = vunpack.c.h.bf16 %v1913_v54  ;;  %v2157_v57 = vunpack.c.l.bf16 %v1785_v53  ;;  %v1873_v53 = vld [vmem:[#allocation19 + $0x660] sm:$0xff] }
 0x341   : > { %2496 = vmatpush1.msra.mxu0 %v1981_v58  ;;  %2567 = vmatpush1.msra.mxu1 %v2237_v59  ;;  %v2413_v58 = vunpack.c.l.bf16 %v1913_v54  ;;  %v1781_v59 = vld [vmem:[#allocation19 + $0x380] sm:$0xff] }
 0x342   : > { %2497 = vmatprep.subr.mxu0 %v1974_v62  ;;  %2568 = vmatprep.subr.mxu1 %v2230_v63  ;;  %v2150_v61 = vunpack.c.h.bf16 %v1781_v59  ;;  %v2406_v62 = vunpack.c.h.bf16 %v1909_v60  ;;  %v2149_v63 = vunpack.c.l.bf16 %v1781_v59  ;;  %v1869_v59 = vld [vmem:[#allocation19 + $0x640] sm:$0xff] }
 0x343   : > { %2498 = vmatpush1.msra.mxu0 %v1973_v0  ;;  %2569 = vmatpush1.msra.mxu1 %v2229_v1  ;;  %v2405_v0 = vunpack.c.l.bf16 %v1909_v60  ;;  %v1777_v1 = vld [vmem:[#allocation19 + $0x360] sm:$0xff] }
 0x344   : > { %2499 = vmatprep.subr.mxu0 %v1966_v6  ;;  %2570 = vmatprep.subr.mxu1 %v2222_v7  ;;  %v2142_v3 = vunpack.c.h.bf16 %v1777_v1  ;;  %v2398_v6 = vunpack.c.h.bf16 %v1905_v2  ;;  %v2141_v7 = vunpack.c.l.bf16 %v1777_v1  ;;  %v1865_v1 = vld [vmem:[#allocation19 + $0x620] sm:$0xff] }
 0x345   : > { %2500 = vmatpush1.msra.mxu0 %v1965_v8  ;;  %2571 = vmatpush1.msra.mxu1 %v2221_v11  ;;  %v2397_v8 = vunpack.c.l.bf16 %v1905_v2  ;;  %v1773_v11 = vld [vmem:[#allocation19 + $0x340] sm:$0xff] }
 0x346   : > { %2501 = vmatprep.subr.mxu0 %v1958_v15  ;;  %2572 = vmatprep.subr.mxu1 %v2214_v16  ;;  %v2134_v14 = vunpack.c.h.bf16 %v1773_v11  ;;  %v2390_v15 = vunpack.c.h.bf16 %v1901_v13  ;;  %v2133_v16 = vunpack.c.l.bf16 %v1773_v11  ;;  %v1733_v2 = vld [vmem:[#allocation19 + $0x200] sm:$0xff] }
 0x347   : > { %2502 = vmatpush1.msra.mxu0 %v1957_v17  ;;  %2573 = vmatpush1.msra.mxu1 %v2213_v18  ;;  %v2389_v17 = vunpack.c.l.bf16 %v1901_v13  ;;  %v1769_v18 = vld [vmem:[#allocation19 + $0x320] sm:$0xff]  ;;  %v2053_v13 = vunpack.c.l.bf16 %v1733_v2 }
 0x348   : > { %2503 = vmatprep.subr.mxu0 %v1950_v4  ;;  %2574 = vmatprep.subr.mxu1 %v2206_v21  ;;  %v2126_v20 = vunpack.c.h.bf16 %v1769_v18  ;;  %v2382_v4 = vunpack.c.h.bf16 %v1897_v19  ;;  %v2125_v21 = vunpack.c.l.bf16 %v1769_v18  ;;  %v1861_v11 = vld [vmem:[#allocation19 + $0x600] sm:$0xff]  ;;  %v18740_v18 = vld [vmem:[#allocation19 + $0x5e8] sm:$0xff] }
 0x349   : > { %2504 = vmatpush1.msra.mxu0 %v1949_v5  ;;  %2575 = vmatpush1.msra.mxu1 %v2205_v22  ;;  %v2381_v5 = vunpack.c.l.bf16 %v1897_v19  ;;  %v1765_v22 = vld [vmem:[#allocation19 + $0x300] sm:$0xff] }
 0x34a   : > { %2505 = vmatprep.subr.mxu0 %v1942_v25  ;;  %2576 = vmatprep.subr.mxu1 %v2198_v26  ;;  %v2118_v24 = vunpack.c.h.bf16 %v1765_v22  ;;  %v2374_v25 = vunpack.c.h.bf16 %v1893_v23  ;;  %v2117_v26 = vunpack.c.l.bf16 %v1765_v22 }
 0x34b   : > { %2506 = vmatpush1.msra.mxu0 %v1941_v27  ;;  %2577 = vmatpush1.msra.mxu1 %v2197_v28  ;;  %v2373_v27 = vunpack.c.l.bf16 %v1893_v23  ;;  %v1761_v28 = vld [vmem:[#allocation19 + $0x2e0] sm:$0xff] }
 0x34c   : > { %2507 = vmatprep.subr.mxu0 %v1934_v31  ;;  %2578 = vmatprep.subr.mxu1 %v2190_v32  ;;  %v2110_v30 = vunpack.c.h.bf16 %v1761_v28  ;;  %v2366_v31 = vunpack.c.h.bf16 %v1889_v29  ;;  %v2109_v32 = vunpack.c.l.bf16 %v1761_v28 }
 0x34d   : > { %2508 = vmatpush1.msra.mxu0 %v1933_v33  ;;  %2579 = vmatpush1.msra.mxu1 %v2189_v34  ;;  %v2365_v33 = vunpack.c.l.bf16 %v1889_v29  ;;  %v1757_v34 = vld [vmem:[#allocation19 + $0x2c0] sm:$0xff] }
 0x34e   : > { %2509 = vmatprep.subr.mxu0 %v1926_v37  ;;  %2580 = vmatprep.subr.mxu1 %v2182_v38  ;;  %v2102_v36 = vunpack.c.h.bf16 %v1757_v34  ;;  %v2358_v37 = vunpack.c.h.bf16 %v1885_v35  ;;  %v2101_v38 = vunpack.c.l.bf16 %v1757_v34 }
 0x34f   : > { %2510 = vmatpush1.msra.mxu0 %v1925_v39  ;;  %2581 = vmatpush1.msra.mxu1 %v2181_v40  ;;  %v2357_v39 = vunpack.c.l.bf16 %v1885_v35  ;;  %v1753_v40 = vld [vmem:[#allocation19 + $0x2a0] sm:$0xff] }
 0x350   : > { %2511 = vmatprep.subr.mxu0 %v2174_v43  ;;  %2582 = vmatprep.subr.mxu1 %v2430_v44  ;;  %v2094_v42 = vunpack.c.h.bf16 %v1753_v40  ;;  %v2350_v43 = vunpack.c.h.bf16 %v1881_v41  ;;  %v2093_v44 = vunpack.c.l.bf16 %v1753_v40 }
 0x351   : > { %2512 = vmatpush2.msra.mxu0 %v2173_v45  ;;  %2583 = vmatpush2.msra.mxu1 %v2429_v46  ;;  %v2349_v45 = vunpack.c.l.bf16 %v1881_v41  ;;  %v1749_v46 = vld [vmem:[#allocation19 + $0x280] sm:$0xff] }
 0x352   : > { %2513 = vmatprep.subr.mxu0 %v2166_v49  ;;  %2584 = vmatprep.subr.mxu1 %v2422_v50  ;;  %v2086_v48 = vunpack.c.h.bf16 %v1749_v46  ;;  %v2342_v49 = vunpack.c.h.bf16 %v1877_v47  ;;  %v2085_v50 = vunpack.c.l.bf16 %v1749_v46 }
 0x353   : > { %2514 = vmatpush2.msra.mxu0 %v2165_v51  ;;  %2585 = vmatpush2.msra.mxu1 %v2421_v52  ;;  %v2341_v51 = vunpack.c.l.bf16 %v1877_v47  ;;  %v1745_v52 = vld [vmem:[#allocation19 + $0x260] sm:$0xff] }
 0x354   : > { %2515 = vmatprep.subr.mxu0 %v2158_v55  ;;  %2586 = vmatprep.subr.mxu1 %v2414_v56  ;;  %v2078_v54 = vunpack.c.h.bf16 %v1745_v52  ;;  %v2334_v55 = vunpack.c.h.bf16 %v1873_v53  ;;  %v2077_v56 = vunpack.c.l.bf16 %v1745_v52 }
 0x355   : > { %2516 = vmatpush2.msra.mxu0 %v2157_v57  ;;  %2587 = vmatpush2.msra.mxu1 %v2413_v58  ;;  %v2333_v57 = vunpack.c.l.bf16 %v1873_v53  ;;  %v1741_v58 = vld [vmem:[#allocation19 + $0x240] sm:$0xff] }
 0x356   : > { %2517 = vmatprep.subr.mxu0 %v2150_v61  ;;  %2588 = vmatprep.subr.mxu1 %v2406_v62  ;;  %v2070_v60 = vunpack.c.h.bf16 %v1741_v58  ;;  %v2326_v61 = vunpack.c.h.bf16 %v1869_v59  ;;  %v2069_v62 = vunpack.c.l.bf16 %v1741_v58 }
 0x357   : > { %2518 = vmatpush2.msra.mxu0 %v2149_v63  ;;  %2589 = vmatpush2.msra.mxu1 %v2405_v0  ;;  %v2325_v63 = vunpack.c.l.bf16 %v1869_v59  ;;  %v1737_v0 = vld [vmem:[#allocation19 + $0x220] sm:$0xff] }
 0x358   : > { %2519 = vmatprep.subr.mxu0 %v2142_v3  ;;  %2590 = vmatprep.subr.mxu1 %v2398_v6  ;;  %v2061_v3 = vunpack.c.l.bf16 %v1737_v0  ;;  %v2062_v6 = vunpack.c.h.bf16 %v1737_v0 }
 0x359   : > { %2520 = vmatpush2.msra.mxu0 %v2141_v7  ;;  %2591 = vmatpush2.msra.mxu1 %v2397_v8  ;;  %v2317_v7 = vunpack.c.l.bf16 %v1865_v1  ;;  %v2318_v8 = vunpack.c.h.bf16 %v1865_v1 }
 0x35a   : > { %2521 = vmatprep.subr.mxu0 %v2134_v14  ;;  %2592 = vmatprep.subr.mxu1 %v2390_v15  ;;  %v2054_v14 = vunpack.c.h.bf16 %v1733_v2  ;;  %v2309_v15 = vunpack.c.l.bf16 %v1861_v11 }
 0x35b   : > { %2522 = vmatpush2.msra.mxu0 %v2133_v16  ;;  %2593 = vmatpush2.msra.mxu1 %v2389_v17  ;;  %v2310_v16 = vunpack.c.h.bf16 %v1861_v11  ;;  %v18738_v17 = vld [vmem:[#allocation19 + $0x1e8] sm:$0xff] }
 0x35c   : > { %2523 = vmatprep.subr.mxu0 %v2126_v20  ;;  %2594 = vmatprep.subr.mxu1 %v2382_v4  ;;  %v2048_v19 = vunpack.c.h.bf16 %v18738_v17  ;;  %v2304_v20 = vunpack.c.h.bf16 %v18740_v18  ;;  %v18745_v4 = vsub.s32 2, %v18722_v9 }
 0x35d   : > { %2524 = vmatpush2.msra.mxu0 %v2125_v21  ;;  %2595 = vmatpush2.msra.mxu1 %v2381_v5  ;;  %v1365_v21 = vld [vmem:[#allocation15] sm:$0xf]  ;;  %v18748_v5 = vsub.s32 3, %v18722_v9 }
 0x35e   : > { %2525 = vmatprep.subr.mxu0 %v2118_v24  ;;  %2596 = vmatprep.subr.mxu1 %v2374_v25  ;;  %v1370_v22 = vrot.slane %v1365_v21, %v18725_v10  ;;  %v1378_v23 = vrot.slane %v1365_v21, %v18745_v4  ;;  %v1374_v24 = vrot.slane %v1365_v21, %v18728_v12 }
 0x35f   : > { %2526 = vmatpush2.msra.mxu0 %v2117_v26  ;;  %2597 = vmatpush2.msra.mxu1 %v2373_v27  ;;  %v1382_v25 = vrot.slane %v1365_v21, %v18748_v5 }
 0x360   : > { %2527 = vmatprep.subr.mxu0 %v2110_v30  ;;  %2598 = vmatprep.subr.mxu1 %v2366_v31 }
 0x361   : > { %2528 = vmatpush2.msra.mxu0 %v2109_v32  ;;  %2599 = vmatpush2.msra.mxu1 %v2365_v33 }
 0x362   : > { %2529 = vmatprep.subr.mxu0 %v2102_v36  ;;  %2600 = vmatprep.subr.mxu1 %v2358_v37 }
 0x363   : > { %2530 = vmatpush2.msra.mxu0 %v2101_v38  ;;  %2601 = vmatpush2.msra.mxu1 %v2357_v39 }
 0x364   : > { %2531 = vmatprep.subr.mxu0 %v2094_v42  ;;  %2602 = vmatprep.subr.mxu1 %v2350_v43 }
 0x365   : > { %2532 = vmatpush2.msra.mxu0 %v2093_v44  ;;  %2603 = vmatpush2.msra.mxu1 %v2349_v45 }
 0x366   : > { %2533 = vmatprep.subr.mxu0 %v2086_v48  ;;  %2604 = vmatprep.subr.mxu1 %v2342_v49 }
 0x367   : > { %2534 = vmatpush2.msra.mxu0 %v2085_v50  ;;  %2605 = vmatpush2.msra.mxu1 %v2341_v51 }
 0x368   : > { %2535 = vmatprep.subr.mxu0 %v2078_v54  ;;  %2606 = vmatprep.subr.mxu1 %v2334_v55 }
 0x369   : > { %2536 = vmatpush2.msra.mxu0 %v2077_v56  ;;  %2607 = vmatpush2.msra.mxu1 %v2333_v57 }
 0x36a   : > { %2537 = vmatprep.subr.mxu0 %v2070_v60  ;;  %2608 = vmatprep.subr.mxu1 %v2326_v61 }
 0x36b   : > { %2538 = vmatpush2.msra.mxu0 %v2069_v62  ;;  %2609 = vmatpush2.msra.mxu1 %v2325_v63 }
 0x36c   : > { %2539 = vmatprep.subr.mxu0 %v2062_v6  ;;  %2610 = vmatprep.subr.mxu1 %v2318_v8 }
 0x36d   : > { %2540 = vmatpush2.msra.mxu0 %v2061_v3  ;;  %2611 = vmatpush2.msra.mxu1 %v2317_v7 }
 0x36e   : > { %2541 = vmatprep.subr.mxu0 %v2054_v14  ;;  %2612 = vmatprep.subr.mxu1 %v2310_v16 }
 0x36f   : > { %2542 = vmatpush2.msra.mxu0 %v2053_v13  ;;  %2613 = vmatpush2.msra.mxu1 %v2309_v15 }
 0x370   : > { %2621 = vmatprep.subr.mxu0 %v2048_v19  ;;  %2692 = vmatprep.subr.mxu1 %v2304_v20 }
 0x3f0   : > { %v1453_v26 = vpop.f32.mrf.mxu0  ;;  %v1524_v27 = vpop.f32.mrf.mxu1 }
 0x3f1   : > { %v1454_v28 = vadd.f32 %v1453_v26, %v1370_v22  ;;  %v1525_v29 = vadd.f32 %v1524_v27, %v1378_v23 }
 0x3f2   : > { %v1455_v30 = vpop.f32.mrf.mxu0  ;;  %v1526_v31 = vpop.f32.mrf.mxu1 }
 0x3f3   : > { %v1529_v32 = vrot.slane %v1454_v28, 4  ;;  %v1541_v33 = vrot.slane %v1525_v29, 4  ;;  %v1456_v34 = vadd.f32 %v1455_v30, %v1374_v24  ;;  %v1527_v35 = vadd.f32 %v1526_v31, %v1382_v25 }
 0x3f5   : > { %v1530_v36 = vadd.f32 %v1529_v32, %v1454_v28  ;;  %v1542_v37 = vadd.f32 %v1541_v33, %v1525_v29  ;;  %v1535_v38 = vrot.slane %v1456_v34, 4  ;;  %v1547_v39 = vrot.slane %v1527_v35, 4 }
 0x3f7   : > { %v1531_v40 = vrot.slane %v1530_v36, 2  ;;  %v1543_v41 = vrot.slane %v1542_v37, 2  ;;  %v1536_v42 = vadd.f32 %v1535_v38, %v1456_v34  ;;  %v1548_v43 = vadd.f32 %v1547_v39, %v1527_v35 }
 0x3f9   : > { %v1532_v44 = vadd.f32 %v1531_v40, %v1530_v36  ;;  %v1544_v45 = vadd.f32 %v1543_v41, %v1542_v37  ;;  %v1537_v46 = vrot.slane %v1536_v42, 2  ;;  %v1549_v47 = vrot.slane %v1548_v43, 2 }
 0x3fb   : > { %v1533_v48 = vrot.slane %v1532_v44, 1  ;;  %v1545_v49 = vrot.slane %v1544_v45, 1  ;;  %v1538_v50 = vadd.f32 %v1537_v46, %v1536_v42  ;;  %v1550_v51 = vadd.f32 %v1549_v47, %v1548_v43 }
 0x3fd   : > { %v1534_v52 = vadd.f32 %v1533_v48, %v1532_v44  ;;  %v1546_v53 = vadd.f32 %v1545_v49, %v1544_v45  ;;  %v1539_v54 = vrot.slane %v1538_v50, 1  ;;  %v1551_v55 = vrot.slane %v1550_v51, 1  ;;  %v1593_v45 = vld [vmem:[#allocation16] sm:$0xf]  ;;  %v1631_v48 = vld [vmem:[#allocation18] sm:$0xf] }
 0x3fe   : > { %v1598_v46 = vrot.slane %v1593_v45, %v18725_v10  ;;  %v1606_v47 = vrot.slane %v1593_v45, %v18745_v4  ;;  %v1602_v49 = vrot.slane %v1593_v45, %v18728_v12 }
 0x3ff   : > { %v1553_v56 = vmul.f32 0.125, %v1534_v52  ;;  %v1555_v57 = vmul.f32 0.125, %v1546_v53  ;;  %v1540_v58 = vadd.f32 %v1539_v54, %v1538_v50  ;;  %v1552_v59 = vadd.f32 %v1551_v55, %v1550_v51 }
 0x400   : > { %v1610_v51 = vrot.slane %v1593_v45, %v18748_v5  ;;  %v1636_v52 = vrot.slane %v1631_v48, %v18725_v10  ;;  %v1644_v55 = vrot.slane %v1631_v48, %v18745_v4 }
 0x401   : > { %v1557_v60 = vsub.f32 %v1454_v28, %v1553_v56  ;;  %v1559_v61 = vsub.f32 %v1525_v29, %v1555_v57  ;;  %v1554_v62 = vmul.f32 0.125, %v1540_v58  ;;  %v1556_v63 = vmul.f32 0.125, %v1552_v59 }
 0x403   : > { %v1561_v0 = vmul.f32 %v1557_v60, %v1557_v60  ;;  %v1563_v1 = vmul.f32 %v1559_v61, %v1559_v61  ;;  %v1558_v2 = vsub.f32 %v1456_v34, %v1554_v62  ;;  %v1560_v3 = vsub.f32 %v1527_v35, %v1556_v63 }
 0x404   : > { %v1615_v50 = vmul.f32 %v1598_v46, %v1557_v60  ;;  %v1617_v54 = vmul.f32 %v1606_v47, %v1559_v61  ;;  %v1640_v62 = vrot.slane %v1631_v48, %v18728_v12  ;;  %v1706_v47 = vld [vmem:[#allocation19 + $0x128] sm:$0xff] }
 0x405   : > { %v1565_v6 = vrot.slane %v1561_v0, 4  ;;  %v1577_v7 = vrot.slane %v1563_v1, 4  ;;  %v1562_v8 = vmul.f32 %v1558_v2, %v1558_v2  ;;  %v1564_v11 = vmul.f32 %v1560_v3, %v1560_v3 }
 0x406   : > { %v1616_v59 = vmul.f32 %v1602_v49, %v1558_v2 }
 0x407   : > { %v1566_v13 = vadd.f32 %v1565_v6, %v1561_v0  ;;  %v1578_v14 = vadd.f32 %v1577_v7, %v1563_v1  ;;  %v1571_v15 = vrot.slane %v1562_v8, 4  ;;  %v1583_v16 = vrot.slane %v1564_v11, 4 }
 0x408   : > { %v1618_v0 = vmul.f32 %v1610_v51, %v1560_v3  ;;  %v1648_v1 = vrot.slane %v1631_v48, %v18748_v5  ;;  %v2047_v3 = vunpack.c.l.bf16 %v18738_v17 }
 0x409   : > { %v1567_v19 = vrot.slane %v1566_v13, 2  ;;  %v1579_v20 = vrot.slane %v1578_v14, 2  ;;  %v1572_v21 = vadd.f32 %v1571_v15, %v1562_v8  ;;  %v1584_v22 = vadd.f32 %v1583_v16, %v1564_v11  ;;  %v1726_v15 = vld [vmem:[#allocation19 + $0x1c8] sm:$0xff] }
 0x40a   : > { %v1854_v16 = vld [vmem:[#allocation19 + $0x5c8] sm:$0xff] }
 0x40b   : > { %v1568_v23 = vadd.f32 %v1567_v19, %v1566_v13  ;;  %v1580_v24 = vadd.f32 %v1579_v20, %v1578_v14  ;;  %v1573_v25 = vrot.slane %v1572_v21, 2  ;;  %v1585_v26 = vrot.slane %v1584_v22, 2 }
 0x40d   : > { %v1569_v27 = vrot.slane %v1568_v23, 1  ;;  %v1581_v28 = vrot.slane %v1580_v24, 1  ;;  %v1574_v29 = vadd.f32 %v1573_v25, %v1572_v21  ;;  %v1586_v30 = vadd.f32 %v1585_v26, %v1584_v22 }
 0x40e   : > { %v2303_v22 = vunpack.c.l.bf16 %v18740_v18  ;;  %v2295_v18 = vunpack.c.l.bf16 %v1854_v16 }
 0x40f   : > { %v1570_v31 = vadd.f32 %v1569_v27, %v1568_v23  ;;  %v1582_v32 = vadd.f32 %v1581_v28, %v1580_v24  ;;  %v1575_v33 = vrot.slane %v1574_v29, 1  ;;  %v1587_v34 = vrot.slane %v1586_v30, 1  ;;  %v1722_v24 = vld [vmem:[#allocation19 + $0x1a8] sm:$0xff] }
 0x410   : > { %v2040_v23 = vunpack.c.h.bf16 %v1726_v15  ;;  %v2296_v27 = vunpack.c.h.bf16 %v1854_v16  ;;  %v1850_v28 = vld [vmem:[#allocation19 + $0x5a8] sm:$0xff] }
 0x411   : > { %v1589_v35 = vmul.f32 0.125, %v1570_v31  ;;  %v1591_v36 = vmul.f32 0.125, %v1582_v32  ;;  %v1576_v37 = vadd.f32 %v1575_v33, %v1574_v29  ;;  %v1588_v38 = vadd.f32 %v1587_v34, %v1586_v30  ;;  %v1718_v30 = vld [vmem:[#allocation19 + $0x188] sm:$0xff] }
 0x412   : > { %v2039_v29 = vunpack.c.l.bf16 %v1726_v15  ;;  %v2032_v31 = vunpack.c.h.bf16 %v1722_v24  ;;  %v1846_v32 = vld [vmem:[#allocation19 + $0x588] sm:$0xff]  ;;  %v2031_v33 = vunpack.c.l.bf16 %v1722_v24  ;;  %v2288_v34 = vunpack.c.h.bf16 %v1850_v28 }
 0x413   : > { %v1619_v39 = vadd.f32 0.8, %v1589_v35  ;;  %v1621_v40 = vadd.f32 0.8, %v1591_v36  ;;  %v1590_v41 = vmul.f32 0.125, %v1576_v37  ;;  %v1592_v42 = vmul.f32 0.125, %v1588_v38 }
 0x414   : > { %v1714_v35 = vld [vmem:[#allocation19 + $0x168] sm:$0xff]  ;;  %v2287_v36 = vunpack.c.l.bf16 %v1850_v28  ;;  %v2024_v37 = vunpack.c.h.bf16 %v1718_v30 }
 0x415   : > { %17632 = vrsqrt.f32 %v1619_v39  ;;  %v1620_v43 = vadd.f32 0.8, %v1590_v41  ;;  %v1622_v44 = vadd.f32 0.8, %v1592_v42  ;;  %v1842_v38 = vld [vmem:[#allocation19 + $0x568] sm:$0xff]  ;;  %v2023_v39 = vunpack.c.l.bf16 %v1718_v30 }
 0x416   : > { %17634 = vrsqrt.f32 %v1621_v40  ;;  %v2280_v40 = vunpack.c.h.bf16 %v1846_v32  ;;  %v1710_v41 = vld [vmem:[#allocation19 + $0x148] sm:$0xff]  ;;  %v2279_v42 = vunpack.c.l.bf16 %v1846_v32  ;;  %v2015_v45 = vunpack.c.l.bf16 %v1714_v35 }
 0x417   : > { %17636 = vrsqrt.f32 %v1620_v43  ;;  %v2016_v43 = vunpack.c.h.bf16 %v1714_v35  ;;  %v2272_v46 = vunpack.c.h.bf16 %v1842_v38  ;;  %v2271_v48 = vunpack.c.l.bf16 %v1842_v38  ;;  %v1814_v24 = vld [vmem:[#allocation19 + $0x488] sm:$0xff] }
 0x418   : > { %17638 = vrsqrt.f32 %v1622_v44  ;;  %v1838_v44 = vld [vmem:[#allocation19 + $0x548] sm:$0xff]  ;;  %v2008_v49 = vunpack.c.h.bf16 %v1710_v41  ;;  %v2007_v51 = vunpack.c.l.bf16 %v1710_v41  ;;  %v2215_v35 = vunpack.c.l.bf16 %v1814_v24 }
 0x422   : > { %v17633_v53 = vpop.eup %17632 }
 0x423   : > { %v17635_v56 = vpop.eup %17634  ;;  %v1627_v57 = vmul.f32 %v17633_v53, %v1615_v50  ;;  %v1834_v50 = vld [vmem:[#allocation19 + $0x528] sm:$0xff] }
 0x424   : > { %v1629_v58 = vmul.f32 %v17635_v56, %v1617_v54  ;;  %v17637_v63 = vpop.eup %17636  ;;  %v1702_v53 = vld [vmem:[#allocation19 + $0x108] sm:$0xff]  ;;  %v2263_v54 = vunpack.c.l.bf16 %v1838_v44 }
 0x425   : > { %v1653_v6 = vadd.f32 %v1636_v52, %v1627_v57  ;;  %v17639_v60 = vpop.eup %17638  ;;  %v1628_v7 = vmul.f32 %v17637_v63, %v1616_v59  ;;  %v2264_v52 = vunpack.c.h.bf16 %v1838_v44  ;;  %v1830_v56 = vld [vmem:[#allocation19 + $0x508] sm:$0xff]  ;;  %v1999_v57 = vunpack.c.l.bf16 %v1706_v47 }
 0x426   : > { %v1655_v8 = vadd.f32 %v1644_v55, %v1629_v58  ;;  %v1630_v11 = vmul.f32 %v17639_v60, %v1618_v0  ;;  %v2000_v55 = vunpack.c.h.bf16 %v1706_v47  ;;  %v2256_v58 = vunpack.c.h.bf16 %v1834_v50  ;;  %v1698_v59 = vld [vmem:[#allocation19 + $0xe8] sm:$0xff] }
 0x427   : > { %v1654_v13 = vadd.f32 %v1640_v62, %v1628_v7  ;;  %v1661_v61 = vmul.f32 0.2, %v1653_v6  ;;  %vm1657_vm6 = vcmp.ge.f32.partialorder %v1653_v6, 0.0  ;;  %v2255_v62 = vunpack.c.l.bf16 %v1834_v50  ;;  %v1826_v0 = vld [vmem:[#allocation19 + $0x4e8] sm:$0xff] }
 0x428   : > { %v1656_v14 = vadd.f32 %v1648_v1, %v1630_v11  ;;  %v1663_v2 = vmul.f32 0.2, %v1655_v8  ;;  %vm1659_vm8 = vcmp.ge.f32.partialorder %v1655_v8, 0.0  ;;  %v1992_v63 = vunpack.c.h.bf16 %v1702_v53  ;;  %v1694_v60 = vld [vmem:[#allocation19 + $0xc8] sm:$0xff] }
 0x429   : > { %vm1658_vm5 = vcmp.ge.f32.partialorder %v1654_v13, 0.0  ;;  %v1662_v19 = vmul.f32 0.2, %v1654_v13  ;;  %v18769_v26 = vsel %vm1657_vm6, %v1653_v6, %v1661_v61  ;;  %v1991_v1 = vunpack.c.l.bf16 %v1702_v53  ;;  %v1822_v11 = vld [vmem:[#allocation19 + $0x4c8] sm:$0xff] }
 0x42a   : > { %vm1660_vm7 = vcmp.ge.f32.partialorder %v1656_v14, 0.0  ;;  %v1664_v20 = vmul.f32 0.2, %v1656_v14  ;;  %v18773_v17 = vsel %vm1659_vm8, %v1655_v8, %v1663_v2  ;;  %v2248_v6 = vunpack.c.h.bf16 %v1830_v56  ;;  %v1690_v61 = vld [vmem:[#allocation19 + $0xa8] sm:$0xff] }
 0x42b   : > { %v18763_v21 = vsel %vm1658_vm5, %v1654_v13, %v1662_v19  ;;  %v2247_v7 = vunpack.c.l.bf16 %v1830_v56  ;;  %v1984_v8 = vunpack.c.h.bf16 %v1698_v59  ;;  %v1983_v13 = vunpack.c.l.bf16 %v1698_v59  ;;  %v1818_v19 = vld [vmem:[#allocation19 + $0x4a8] sm:$0xff] }
 0x42c   : > { %2543 = vmatprep.mubr.f32.mxu0 %v18763_v21  ;;  %v18767_v25 = vsel %vm1660_vm7, %v1656_v14, %v1664_v20  ;;  %v2240_v14 = vunpack.c.h.bf16 %v1826_v0  ;;  %v2239_v15 = vunpack.c.l.bf16 %v1826_v0  ;;  %v1976_v16 = vunpack.c.h.bf16 %v1694_v60 }
 0x42d   : > { %2614 = vmatprep.mubr.f32.mxu1 %v18767_v25  ;;  %2544 = vmatmul.mubr.f32.vlgmr.msra.gmra.mxu0 %v18769_v26  ;;  %v1975_v2 = vunpack.c.l.bf16 %v1694_v60  ;;  %v2232_v20 = vunpack.c.h.bf16 %v1822_v11  ;;  %v2224_v28 = vunpack.c.h.bf16 %v1818_v19  ;;  %v2223_v30 = vunpack.c.l.bf16 %v1818_v19 }
 0x42e   : > { %2615 = vmatmul.mubr.f32.vlgmr.msra.gmra.mxu1 %v18773_v17  ;;  %2622 = vmatpush1.msra.mxu0 %v2047_v3  ;;  %v1686_v3 = vld [vmem:[#allocation19 + $0x88] sm:$0xff] }
 0x42f   : > { %2693 = vmatpush1.msra.mxu1 %v2303_v22  ;;  %2623 = vmatprep.subr.mxu0 %v2040_v23  ;;  %v2231_v22 = vunpack.c.l.bf16 %v1822_v11  ;;  %v1968_v23 = vunpack.c.h.bf16 %v1690_v61  ;;  %v1959_v32 = vunpack.c.l.bf16 %v1686_v3 }
 0x430   : > { %2685 = vmatprep.mubr.f32.mxu0 %v18763_v21  ;;  %2694 = vmatprep.subr.mxu1 %v2296_v27  ;;  %v1967_v27 = vunpack.c.l.bf16 %v1690_v61 }
 0x431   : > { %2756 = vmatprep.mubr.f32.mxu1 %v18767_v25  ;;  %2624 = vmatpush1.msra.mxu0 %v2039_v29  ;;  %v1682_v29 = vld [vmem:[#allocation19 + $0x68] sm:$0xff] }
 0x432   : > { %2695 = vmatpush1.msra.mxu1 %v2295_v18  ;;  %2625 = vmatprep.subr.mxu0 %v2032_v31  ;;  %v1960_v18 = vunpack.c.h.bf16 %v1686_v3  ;;  %v1810_v31 = vld [vmem:[#allocation19 + $0x468] sm:$0xff]  ;;  %v1951_v38 = vunpack.c.l.bf16 %v1682_v29 }
 0x433   : > { %2696 = vmatprep.subr.mxu1 %v2288_v34  ;;  %2626 = vmatpush1.msra.mxu0 %v2031_v33  ;;  %v2216_v33 = vunpack.c.h.bf16 %v1814_v24  ;;  %v1678_v34 = vld [vmem:[#allocation19 + $0x48] sm:$0xff]  ;;  %v2207_v41 = vunpack.c.l.bf16 %v1810_v31 }
 0x434   : > { %2697 = vmatpush1.msra.mxu1 %v2287_v36  ;;  %2627 = vmatprep.subr.mxu0 %v2024_v37  ;;  %v1952_v36 = vunpack.c.h.bf16 %v1682_v29  ;;  %v1806_v37 = vld [vmem:[#allocation19 + $0x448] sm:$0xff]  ;;  %v1943_v44 = vunpack.c.l.bf16 %v1678_v34 }
 0x435   : > { %2698 = vmatprep.subr.mxu1 %v2280_v40  ;;  %2628 = vmatpush1.msra.mxu0 %v2023_v39  ;;  %v2208_v39 = vunpack.c.h.bf16 %v1810_v31  ;;  %v1674_v40 = vld [vmem:[#allocation19 + $0x28] sm:$0xff]  ;;  %v2199_v47 = vunpack.c.l.bf16 %v1806_v37 }
 0x436   : > { %2699 = vmatpush1.msra.mxu1 %v2279_v42  ;;  %2629 = vmatprep.subr.mxu0 %v2016_v43  ;;  %v1944_v42 = vunpack.c.h.bf16 %v1678_v34  ;;  %v1802_v43 = vld [vmem:[#allocation19 + $0x428] sm:$0xff]  ;;  %v1935_v50 = vunpack.c.l.bf16 %v1674_v40 }
 0x437   : > { %2700 = vmatprep.subr.mxu1 %v2272_v46  ;;  %2630 = vmatpush1.msra.mxu0 %v2015_v45  ;;  %v2200_v45 = vunpack.c.h.bf16 %v1806_v37  ;;  %v1670_v46 = vld [vmem:[#allocation19 + $0x8] sm:$0xff]  ;;  %v2191_v53 = vunpack.c.l.bf16 %v1802_v43 }
 0x438   : > { %2701 = vmatpush1.msra.mxu1 %v2271_v48  ;;  %2631 = vmatprep.subr.mxu0 %v2008_v49  ;;  %v1936_v48 = vunpack.c.h.bf16 %v1674_v40  ;;  %v1798_v49 = vld [vmem:[#allocation19 + $0x408] sm:$0xff]  ;;  %v1927_v56 = vunpack.c.l.bf16 %v1670_v46 }
 0x439   : > { %2702 = vmatprep.subr.mxu1 %v2264_v52  ;;  %2632 = vmatpush1.msra.mxu0 %v2007_v51  ;;  %v2192_v51 = vunpack.c.h.bf16 %v1802_v43  ;;  %v1794_v52 = vld [vmem:[#allocation19 + $0x3e8] sm:$0xff]  ;;  %v2183_v59 = vunpack.c.l.bf16 %v1798_v49 }
 0x43a   : > { %2703 = vmatpush1.msra.mxu1 %v2263_v54  ;;  %2633 = vmatprep.subr.mxu0 %v2000_v55  ;;  %v1928_v54 = vunpack.c.h.bf16 %v1670_v46  ;;  %v1922_v55 = vld [vmem:[#allocation19 + $0x7e8] sm:$0xff]  ;;  %v2175_v0 = vunpack.c.l.bf16 %v1794_v52 }
 0x43b   : > { %2704 = vmatprep.subr.mxu1 %v2256_v58  ;;  %2634 = vmatpush1.msra.mxu0 %v1999_v57  ;;  %v2184_v57 = vunpack.c.h.bf16 %v1798_v49  ;;  %v1790_v58 = vld [vmem:[#allocation19 + $0x3c8] sm:$0xff]  ;;  %v2431_v60 = vunpack.c.l.bf16 %v1922_v55 }
 0x43c   : > { %2705 = vmatpush1.msra.mxu1 %v2255_v62  ;;  %2635 = vmatprep.subr.mxu0 %v1992_v63  ;;  %v2176_v62 = vunpack.c.h.bf16 %v1794_v52  ;;  %v1918_v63 = vld [vmem:[#allocation19 + $0x7c8] sm:$0xff]  ;;  %v2167_v11 = vunpack.c.l.bf16 %v1790_v58 }
 0x43d   : > { %2706 = vmatprep.subr.mxu1 %v2248_v6  ;;  %2636 = vmatpush1.msra.mxu0 %v1991_v1  ;;  %v2432_v1 = vunpack.c.h.bf16 %v1922_v55  ;;  %v1786_v6 = vld [vmem:[#allocation19 + $0x3a8] sm:$0xff]  ;;  %v2423_v61 = vunpack.c.l.bf16 %v1918_v63 }
 0x43e   : > { %2707 = vmatpush1.msra.mxu1 %v2247_v7  ;;  %2637 = vmatprep.subr.mxu0 %v1984_v8  ;;  %v2168_v7 = vunpack.c.h.bf16 %v1790_v58  ;;  %v1914_v8 = vld [vmem:[#allocation19 + $0x7a8] sm:$0xff]  ;;  %v2159_v19 = vunpack.c.l.bf16 %v1786_v6 }
 0x43f   : > { %2708 = vmatprep.subr.mxu1 %v2240_v14  ;;  %2638 = vmatpush1.msra.mxu0 %v1983_v13  ;;  %v2424_v13 = vunpack.c.h.bf16 %v1918_v63  ;;  %v1782_v14 = vld [vmem:[#allocation19 + $0x388] sm:$0xff]  ;;  %v2415_v3 = vunpack.c.l.bf16 %v1914_v8 }
 0x440   : > { %2709 = vmatpush1.msra.mxu1 %v2239_v15  ;;  %2639 = vmatprep.subr.mxu0 %v1976_v16  ;;  %v2160_v15 = vunpack.c.h.bf16 %v1786_v6  ;;  %v1910_v16 = vld [vmem:[#allocation19 + $0x788] sm:$0xff]  ;;  %v2151_v24 = vunpack.c.l.bf16 %v1782_v14 }
 0x441   : > { %2710 = vmatprep.subr.mxu1 %v2232_v20  ;;  %2640 = vmatpush1.msra.mxu0 %v1975_v2  ;;  %v2416_v2 = vunpack.c.h.bf16 %v1914_v8  ;;  %v1778_v20 = vld [vmem:[#allocation19 + $0x368] sm:$0xff]  ;;  %v2407_v29 = vunpack.c.l.bf16 %v1910_v16 }
 0x442   : > { %2711 = vmatpush1.msra.mxu1 %v2231_v22  ;;  %2641 = vmatprep.subr.mxu0 %v1968_v23  ;;  %v2152_v22 = vunpack.c.h.bf16 %v1782_v14  ;;  %v1906_v23 = vld [vmem:[#allocation19 + $0x768] sm:$0xff]  ;;  %v2143_v31 = vunpack.c.l.bf16 %v1778_v20 }
 0x443   : > { %2712 = vmatprep.subr.mxu1 %v2224_v28  ;;  %2642 = vmatpush1.msra.mxu0 %v1967_v27  ;;  %v2408_v27 = vunpack.c.h.bf16 %v1910_v16  ;;  %v1774_v28 = vld [vmem:[#allocation19 + $0x348] sm:$0xff]  ;;  %v2399_v34 = vunpack.c.l.bf16 %v1906_v23 }
 0x444   : > { %2713 = vmatpush1.msra.mxu1 %v2223_v30  ;;  %2643 = vmatprep.subr.mxu0 %v1960_v18  ;;  %v2144_v30 = vunpack.c.h.bf16 %v1778_v20  ;;  %v1902_v18 = vld [vmem:[#allocation19 + $0x748] sm:$0xff]  ;;  %v2135_v37 = vunpack.c.l.bf16 %v1774_v28 }
 0x445   : > { %2714 = vmatprep.subr.mxu1 %v2216_v33  ;;  %2644 = vmatpush1.msra.mxu0 %v1959_v32  ;;  %v2400_v32 = vunpack.c.h.bf16 %v1906_v23  ;;  %v1770_v33 = vld [vmem:[#allocation19 + $0x328] sm:$0xff]  ;;  %v2391_v40 = vunpack.c.l.bf16 %v1902_v18 }
 0x446   : > { %2715 = vmatpush1.msra.mxu1 %v2215_v35  ;;  %2645 = vmatprep.subr.mxu0 %v1952_v36  ;;  %v2136_v35 = vunpack.c.h.bf16 %v1774_v28  ;;  %v1898_v36 = vld [vmem:[#allocation19 + $0x728] sm:$0xff]  ;;  %v2127_v43 = vunpack.c.l.bf16 %v1770_v33 }
 0x447   : > { %2716 = vmatprep.subr.mxu1 %v2208_v39  ;;  %2646 = vmatpush1.msra.mxu0 %v1951_v38  ;;  %v2392_v38 = vunpack.c.h.bf16 %v1902_v18  ;;  %v1766_v39 = vld [vmem:[#allocation19 + $0x308] sm:$0xff]  ;;  %v2383_v46 = vunpack.c.l.bf16 %v1898_v36 }
 0x448   : > { %2717 = vmatpush1.msra.mxu1 %v2207_v41  ;;  %2647 = vmatprep.subr.mxu0 %v1944_v42  ;;  %v2128_v41 = vunpack.c.h.bf16 %v1770_v33  ;;  %v1894_v42 = vld [vmem:[#allocation19 + $0x708] sm:$0xff]  ;;  %v2119_v49 = vunpack.c.l.bf16 %v1766_v39 }
 0x449   : > { %2718 = vmatprep.subr.mxu1 %v2200_v45  ;;  %2648 = vmatpush1.msra.mxu0 %v1943_v44  ;;  %v2384_v44 = vunpack.c.h.bf16 %v1898_v36  ;;  %v1762_v45 = vld [vmem:[#allocation19 + $0x2e8] sm:$0xff]  ;;  %v2375_v52 = vunpack.c.l.bf16 %v1894_v42 }
 0x44a   : > { %2719 = vmatpush1.msra.mxu1 %v2199_v47  ;;  %2649 = vmatprep.subr.mxu0 %v1936_v48  ;;  %v2120_v47 = vunpack.c.h.bf16 %v1766_v39  ;;  %v1890_v48 = vld [vmem:[#allocation19 + $0x6e8] sm:$0xff]  ;;  %v2111_v55 = vunpack.c.l.bf16 %v1762_v45 }
 0x44b   : > { %2720 = vmatprep.subr.mxu1 %v2192_v51  ;;  %2650 = vmatpush1.msra.mxu0 %v1935_v50  ;;  %v2376_v50 = vunpack.c.h.bf16 %v1894_v42  ;;  %v1758_v51 = vld [vmem:[#allocation19 + $0x2c8] sm:$0xff]  ;;  %v2367_v58 = vunpack.c.l.bf16 %v1890_v48 }
 0x44c   : > { %2721 = vmatpush1.msra.mxu1 %v2191_v53  ;;  %2651 = vmatprep.subr.mxu0 %v1928_v54  ;;  %v2112_v53 = vunpack.c.h.bf16 %v1762_v45  ;;  %v1886_v54 = vld [vmem:[#allocation19 + $0x6c8] sm:$0xff]  ;;  %v2103_v63 = vunpack.c.l.bf16 %v1758_v51 }
 0x44d   : > { %2722 = vmatprep.subr.mxu1 %v2184_v57  ;;  %2652 = vmatpush1.msra.mxu0 %v1927_v56  ;;  %v2368_v56 = vunpack.c.h.bf16 %v1890_v48  ;;  %v1754_v57 = vld [vmem:[#allocation19 + $0x2a8] sm:$0xff]  ;;  %v2359_v6 = vunpack.c.l.bf16 %v1886_v54 }
 0x44e   : > { %2723 = vmatpush1.msra.mxu1 %v2183_v59  ;;  %2653 = vmatprep.subr.mxu0 %v2176_v62  ;;  %v2104_v59 = vunpack.c.h.bf16 %v1758_v51  ;;  %v1882_v62 = vld [vmem:[#allocation19 + $0x6a8] sm:$0xff]  ;;  %v2095_v8 = vunpack.c.l.bf16 %v1754_v57  ;;  %v1723_v51 = vld [vmem:[#allocation19 + $0x1b0] sm:$0xff] }
 0x44f   : > { %2724 = vmatprep.subr.mxu1 %v2432_v1  ;;  %2654 = vmatpush2.msra.mxu0 %v2175_v0  ;;  %v2360_v0 = vunpack.c.h.bf16 %v1886_v54  ;;  %v1750_v1 = vld [vmem:[#allocation19 + $0x288] sm:$0xff]  ;;  %v2351_v14 = vunpack.c.l.bf16 %v1882_v62 }
 0x450   : > { %2725 = vmatpush2.msra.mxu1 %v2431_v60  ;;  %2655 = vmatprep.subr.mxu0 %v2168_v7  ;;  %v2096_v60 = vunpack.c.h.bf16 %v1754_v57  ;;  %v1878_v7 = vld [vmem:[#allocation19 + $0x688] sm:$0xff]  ;;  %v2087_v16 = vunpack.c.l.bf16 %v1750_v1 }
 0x451   : > { %2726 = vmatprep.subr.mxu1 %v2424_v13  ;;  %2656 = vmatpush2.msra.mxu0 %v2167_v11  ;;  %v2352_v11 = vunpack.c.h.bf16 %v1882_v62  ;;  %v1746_v13 = vld [vmem:[#allocation19 + $0x268] sm:$0xff]  ;;  %v2343_v20 = vunpack.c.l.bf16 %v1878_v7  ;;  %v2033_v62 = vunpack.c.l.bf16 %v1723_v51 }
 0x452   : > { %2727 = vmatpush2.msra.mxu1 %v2423_v61  ;;  %2657 = vmatprep.subr.mxu0 %v2160_v15  ;;  %v2088_v61 = vunpack.c.h.bf16 %v1750_v1  ;;  %v1874_v15 = vld [vmem:[#allocation19 + $0x668] sm:$0xff]  ;;  %v2079_v23 = vunpack.c.l.bf16 %v1746_v13 }
 0x453   : > { %2728 = vmatprep.subr.mxu1 %v2416_v2  ;;  %2658 = vmatpush2.msra.mxu0 %v2159_v19  ;;  %v2344_v19 = vunpack.c.h.bf16 %v1878_v7  ;;  %v1742_v2 = vld [vmem:[#allocation19 + $0x248] sm:$0xff]  ;;  %v2335_v28 = vunpack.c.l.bf16 %v1874_v15 }
 0x454   : > { %2729 = vmatpush2.msra.mxu1 %v2415_v3  ;;  %2659 = vmatprep.subr.mxu0 %v2152_v22  ;;  %v2080_v3 = vunpack.c.h.bf16 %v1746_v13  ;;  %v1870_v22 = vld [vmem:[#allocation19 + $0x648] sm:$0xff]  ;;  %v2071_v18 = vunpack.c.l.bf16 %v1742_v2 }
 0x455   : > { %2730 = vmatprep.subr.mxu1 %v2408_v27  ;;  %2660 = vmatpush2.msra.mxu0 %v2151_v24  ;;  %v2336_v24 = vunpack.c.h.bf16 %v1874_v15  ;;  %v1738_v27 = vld [vmem:[#allocation19 + $0x228] sm:$0xff]  ;;  %v2327_v33 = vunpack.c.l.bf16 %v1870_v22 }
 0x456   : > { %2731 = vmatpush2.msra.mxu1 %v2407_v29  ;;  %2661 = vmatprep.subr.mxu0 %v2144_v30  ;;  %v2072_v29 = vunpack.c.h.bf16 %v1742_v2  ;;  %v1866_v30 = vld [vmem:[#allocation19 + $0x628] sm:$0xff]  ;;  %v2063_v36 = vunpack.c.l.bf16 %v1738_v27 }
 0x457   : > { %2732 = vmatprep.subr.mxu1 %v2400_v32  ;;  %2662 = vmatpush2.msra.mxu0 %v2143_v31  ;;  %v2328_v31 = vunpack.c.h.bf16 %v1870_v22  ;;  %v1734_v32 = vld [vmem:[#allocation19 + $0x208] sm:$0xff] }
 0x458   : > { %2733 = vmatpush2.msra.mxu1 %v2399_v34  ;;  %2663 = vmatprep.subr.mxu0 %v2136_v35  ;;  %v2064_v34 = vunpack.c.h.bf16 %v1738_v27  ;;  %v1862_v35 = vld [vmem:[#allocation19 + $0x608] sm:$0xff]  ;;  %v2056_v39 = vunpack.c.h.bf16 %v1734_v32 }
 0x459   : > { %2734 = vmatprep.subr.mxu1 %v2392_v38  ;;  %2664 = vmatpush2.msra.mxu0 %v2135_v37  ;;  %v2320_v37 = vunpack.c.h.bf16 %v1866_v30  ;;  %v2319_v38 = vunpack.c.l.bf16 %v1866_v30  ;;  %v2312_v42 = vunpack.c.h.bf16 %v1862_v35 }
 0x45a   : > { %2735 = vmatpush2.msra.mxu1 %v2391_v40  ;;  %2665 = vmatprep.subr.mxu0 %v2128_v41  ;;  %v1731_v40 = vld [vmem:[#allocation19 + $0x1f0] sm:$0xff]  ;;  %v2055_v41 = vunpack.c.l.bf16 %v1734_v32 }
 0x45b   : > { %2736 = vmatprep.subr.mxu1 %v2384_v44  ;;  %2666 = vmatpush2.msra.mxu0 %v2127_v43  ;;  %v1859_v43 = vld [vmem:[#allocation19 + $0x5f0] sm:$0xff]  ;;  %v2311_v44 = vunpack.c.l.bf16 %v1862_v35  ;;  %v2050_v45 = vunpack.c.h.bf16 %v1731_v40 }
 0x45c   : > { %2737 = vmatpush2.msra.mxu1 %v2383_v46  ;;  %2667 = vmatprep.subr.mxu0 %v2120_v47  ;;  %v1727_v46 = vld [vmem:[#allocation19 + $0x1d0] sm:$0xff]  ;;  %v2049_v47 = vunpack.c.l.bf16 %v1731_v40  ;;  %v2306_v48 = vunpack.c.h.bf16 %v1859_v43 }
 0x45d   : > { %2738 = vmatprep.subr.mxu1 %v2376_v50  ;;  %2668 = vmatpush2.msra.mxu0 %v2119_v49  ;;  %v1855_v49 = vld [vmem:[#allocation19 + $0x5d0] sm:$0xff]  ;;  %v2305_v50 = vunpack.c.l.bf16 %v1859_v43  ;;  %v2041_v54 = vunpack.c.l.bf16 %v1727_v46 }
 0x45e   : > { %2739 = vmatpush2.msra.mxu1 %v2375_v52  ;;  %2669 = vmatprep.subr.mxu0 %v2112_v53  ;;  %v2042_v52 = vunpack.c.h.bf16 %v1727_v46  ;;  %v1851_v53 = vld [vmem:[#allocation19 + $0x5b0] sm:$0xff]  ;;  %v2297_v57 = vunpack.c.l.bf16 %v1855_v49 }
 0x45f   : > { %2740 = vmatprep.subr.mxu1 %v2368_v56  ;;  %2670 = vmatpush2.msra.mxu0 %v2111_v55  ;;  %v2298_v55 = vunpack.c.h.bf16 %v1855_v49  ;;  %v1719_v56 = vld [vmem:[#allocation19 + $0x190] sm:$0xff]  ;;  %v2289_v1 = vunpack.c.l.bf16 %v1851_v53 }
 0x460   : > { %2741 = vmatpush2.msra.mxu1 %v2367_v58  ;;  %2671 = vmatprep.subr.mxu0 %v2104_v59  ;;  %v2034_v58 = vunpack.c.h.bf16 %v1723_v51  ;;  %v1847_v59 = vld [vmem:[#allocation19 + $0x590] sm:$0xff]  ;;  %v2025_v7 = vunpack.c.l.bf16 %v1719_v56 }
 0x461   : > { %2742 = vmatprep.subr.mxu1 %v2360_v0  ;;  %2672 = vmatpush2.msra.mxu0 %v2103_v63  ;;  %v2290_v63 = vunpack.c.h.bf16 %v1851_v53  ;;  %v1715_v0 = vld [vmem:[#allocation19 + $0x170] sm:$0xff]  ;;  %v2281_v13 = vunpack.c.l.bf16 %v1847_v59 }
 0x462   : > { %2743 = vmatpush2.msra.mxu1 %v2359_v6  ;;  %2673 = vmatprep.subr.mxu0 %v2096_v60  ;;  %v2026_v6 = vunpack.c.h.bf16 %v1719_v56  ;;  %v1843_v60 = vld [vmem:[#allocation19 + $0x570] sm:$0xff]  ;;  %v2017_v15 = vunpack.c.l.bf16 %v1715_v0 }
 0x463   : > { %2744 = vmatprep.subr.mxu1 %v2352_v11  ;;  %2674 = vmatpush2.msra.mxu0 %v2095_v8  ;;  %v2282_v8 = vunpack.c.h.bf16 %v1847_v59  ;;  %v1711_v11 = vld [vmem:[#allocation19 + $0x150] sm:$0xff]  ;;  %v2273_v2 = vunpack.c.l.bf16 %v1843_v60 }
 0x464   : > { %2745 = vmatpush2.msra.mxu1 %v2351_v14  ;;  %2675 = vmatprep.subr.mxu0 %v2088_v61  ;;  %v2018_v14 = vunpack.c.h.bf16 %v1715_v0  ;;  %v1839_v61 = vld [vmem:[#allocation19 + $0x550] sm:$0xff]  ;;  %v2009_v22 = vunpack.c.l.bf16 %v1711_v11 }
 0x465   : > { %2746 = vmatprep.subr.mxu1 %v2344_v19  ;;  %2676 = vmatpush2.msra.mxu0 %v2087_v16  ;;  %v2274_v16 = vunpack.c.h.bf16 %v1843_v60  ;;  %v1707_v19 = vld [vmem:[#allocation19 + $0x130] sm:$0xff]  ;;  %v2265_v27 = vunpack.c.l.bf16 %v1839_v61 }
 0x466   : > { %2747 = vmatpush2.msra.mxu1 %v2343_v20  ;;  %2677 = vmatprep.subr.mxu0 %v2080_v3  ;;  %v2010_v20 = vunpack.c.h.bf16 %v1711_v11  ;;  %v1835_v3 = vld [vmem:[#allocation19 + $0x530] sm:$0xff]  ;;  %v2001_v30 = vunpack.c.l.bf16 %v1707_v19 }
 0x467   : > { %2748 = vmatprep.subr.mxu1 %v2336_v24  ;;  %2678 = vmatpush2.msra.mxu0 %v2079_v23  ;;  %v2266_v23 = vunpack.c.h.bf16 %v1839_v61  ;;  %v1703_v24 = vld [vmem:[#allocation19 + $0x110] sm:$0xff]  ;;  %v2257_v32 = vunpack.c.l.bf16 %v1835_v3 }
 0x468   : > { %2749 = vmatpush2.msra.mxu1 %v2335_v28  ;;  %2679 = vmatprep.subr.mxu0 %v2072_v29  ;;  %v2002_v28 = vunpack.c.h.bf16 %v1707_v19  ;;  %v1831_v29 = vld [vmem:[#allocation19 + $0x510] sm:$0xff]  ;;  %v1993_v35 = vunpack.c.l.bf16 %v1703_v24 }
 0x469   : > { %2750 = vmatprep.subr.mxu1 %v2328_v31  ;;  %2680 = vmatpush2.msra.mxu0 %v2071_v18  ;;  %v2258_v18 = vunpack.c.h.bf16 %v1835_v3  ;;  %v1699_v31 = vld [vmem:[#allocation19 + $0xf0] sm:$0xff] }
 0x46a   : > { %2751 = vmatpush2.msra.mxu1 %v2327_v33  ;;  %2681 = vmatprep.subr.mxu0 %v2064_v34  ;;  %v1994_v33 = vunpack.c.h.bf16 %v1703_v24  ;;  %v1827_v34 = vld [vmem:[#allocation19 + $0x4f0] sm:$0xff] }
 0x46b   : > { %2752 = vmatprep.subr.mxu1 %v2320_v37  ;;  %2682 = vmatpush2.msra.mxu0 %v2063_v36  ;;  %v2250_v36 = vunpack.c.h.bf16 %v1831_v29  ;;  %v1695_v37 = vld [vmem:[#allocation19 + $0xd0] sm:$0xff] }
 0x46c   : > { %2753 = vmatpush2.msra.mxu1 %v2319_v38  ;;  %2683 = vmatprep.subr.mxu0 %v2056_v39  ;;  %v2249_v38 = vunpack.c.l.bf16 %v1831_v29  ;;  %v1986_v39 = vunpack.c.h.bf16 %v1699_v31  ;;  %v1823_v40 = vld [vmem:[#allocation19 + $0x4d0] sm:$0xff] }
 0x46d   : > { %2754 = vmatprep.subr.mxu1 %v2312_v42  ;;  %2684 = vmatpush2.msra.mxu0 %v2055_v41  ;;  %v1985_v41 = vunpack.c.l.bf16 %v1699_v31  ;;  %v2242_v42 = vunpack.c.h.bf16 %v1827_v34  ;;  %v1691_v43 = vld [vmem:[#allocation19 + $0xb0] sm:$0xff] }
 0x46e   : > { %2755 = vmatpush2.msra.mxu1 %v2311_v44  ;;  %2686 = vmatmul.mubr.f32.vlgmr.msra.gmra.mxu0 %v18769_v26  ;;  %v2241_v44 = vunpack.c.l.bf16 %v1827_v34  ;;  %v1819_v46 = vld [vmem:[#allocation19 + $0x4b0] sm:$0xff]  ;;  %v1970_v51 = vunpack.c.h.bf16 %v1691_v43  ;;  %v1969_v53 = vunpack.c.l.bf16 %v1691_v43 }
 0x46f   : > { %2757 = vmatmul.mubr.f32.vlgmr.msra.gmra.mxu1 %v18773_v17  ;;  %2763 = vmatprep.subr.mxu0 %v2050_v45  ;;  %v1978_v45 = vunpack.c.h.bf16 %v1695_v37  ;;  %v1687_v49 = vld [vmem:[#allocation19 + $0x90] sm:$0xff]  ;;  %v2225_v56 = vunpack.c.l.bf16 %v1819_v46 }
 0x470   : > { %2834 = vmatprep.subr.mxu1 %v2306_v48  ;;  %2764 = vmatpush1.msra.mxu0 %v2049_v47  ;;  %v1977_v47 = vunpack.c.l.bf16 %v1695_v37  ;;  %v2234_v48 = vunpack.c.h.bf16 %v1823_v40  ;;  %v1961_v59 = vunpack.c.l.bf16 %v1687_v49 }
 0x471   : > { %2827 = vmatprep.mubr.f32.mxu0 %v18763_v21  ;;  %2835 = vmatpush1.msra.mxu1 %v2305_v50  ;;  %v2233_v50 = vunpack.c.l.bf16 %v1823_v40 }
 0x472   : > { %2898 = vmatprep.mubr.f32.mxu1 %v18767_v25  ;;  %2765 = vmatprep.subr.mxu0 %v2042_v52  ;;  %v1815_v52 = vld [vmem:[#allocation19 + $0x490] sm:$0xff] }
 0x473   : > { %2836 = vmatprep.subr.mxu1 %v2298_v55  ;;  %2766 = vmatpush1.msra.mxu0 %v2041_v54  ;;  %v2226_v54 = vunpack.c.h.bf16 %v1819_v46  ;;  %v1683_v55 = vld [vmem:[#allocation19 + $0x70] sm:$0xff]  ;;  %v2217_v0 = vunpack.c.l.bf16 %v1815_v52 }
 0x474   : > { %2837 = vmatpush1.msra.mxu1 %v2297_v57  ;;  %2767 = vmatprep.subr.mxu0 %v2034_v58  ;;  %v1962_v57 = vunpack.c.h.bf16 %v1687_v49  ;;  %v1811_v58 = vld [vmem:[#allocation19 + $0x470] sm:$0xff]  ;;  %v1953_v60 = vunpack.c.l.bf16 %v1683_v55 }
 0x475   : > { %2838 = vmatprep.subr.mxu1 %v2290_v63  ;;  %2768 = vmatpush1.msra.mxu0 %v2033_v62  ;;  %v2218_v62 = vunpack.c.h.bf16 %v1815_v52  ;;  %v1679_v63 = vld [vmem:[#allocation19 + $0x50] sm:$0xff]  ;;  %v2209_v11 = vunpack.c.l.bf16 %v1811_v58 }
 0x476   : > { %2839 = vmatpush1.msra.mxu1 %v2289_v1  ;;  %2769 = vmatprep.subr.mxu0 %v2026_v6  ;;  %v1954_v1 = vunpack.c.h.bf16 %v1683_v55  ;;  %v1807_v6 = vld [vmem:[#allocation19 + $0x450] sm:$0xff]  ;;  %v1945_v61 = vunpack.c.l.bf16 %v1679_v63 }
 0x477   : > { %2840 = vmatprep.subr.mxu1 %v2282_v8  ;;  %2770 = vmatpush1.msra.mxu0 %v2025_v7  ;;  %v2210_v7 = vunpack.c.h.bf16 %v1811_v58  ;;  %v1675_v8 = vld [vmem:[#allocation19 + $0x30] sm:$0xff]  ;;  %v2201_v19 = vunpack.c.l.bf16 %v1807_v6 }
 0x478   : > { %2841 = vmatpush1.msra.mxu1 %v2281_v13  ;;  %2771 = vmatprep.subr.mxu0 %v2018_v14  ;;  %v1946_v13 = vunpack.c.h.bf16 %v1679_v63  ;;  %v1803_v14 = vld [vmem:[#allocation19 + $0x430] sm:$0xff]  ;;  %v1937_v3 = vunpack.c.l.bf16 %v1675_v8 }
 0x479   : > { %2842 = vmatprep.subr.mxu1 %v2274_v16  ;;  %2772 = vmatpush1.msra.mxu0 %v2017_v15  ;;  %v2202_v15 = vunpack.c.h.bf16 %v1807_v6  ;;  %v1671_v16 = vld [vmem:[#allocation19 + $0x10] sm:$0xff]  ;;  %v2193_v24 = vunpack.c.l.bf16 %v1803_v14 }
 0x47a   : > { %2843 = vmatpush1.msra.mxu1 %v2273_v2  ;;  %2773 = vmatprep.subr.mxu0 %v2010_v20  ;;  %v1938_v2 = vunpack.c.h.bf16 %v1675_v8  ;;  %v1799_v20 = vld [vmem:[#allocation19 + $0x410] sm:$0xff]  ;;  %v1929_v29 = vunpack.c.l.bf16 %v1671_v16 }
 0x47b   : > { %2844 = vmatprep.subr.mxu1 %v2266_v23  ;;  %2774 = vmatpush1.msra.mxu0 %v2009_v22  ;;  %v2194_v22 = vunpack.c.h.bf16 %v1803_v14  ;;  %v1795_v23 = vld [vmem:[#allocation19 + $0x3f0] sm:$0xff]  ;;  %v2185_v31 = vunpack.c.l.bf16 %v1799_v20 }
 0x47c   : > { %2845 = vmatpush1.msra.mxu1 %v2265_v27  ;;  %2775 = vmatprep.subr.mxu0 %v2002_v28  ;;  %v1930_v27 = vunpack.c.h.bf16 %v1671_v16  ;;  %v1923_v28 = vld [vmem:[#allocation19 + $0x7f0] sm:$0xff]  ;;  %v2177_v34 = vunpack.c.l.bf16 %v1795_v23 }
 0x47d   : > { %2846 = vmatprep.subr.mxu1 %v2258_v18  ;;  %2776 = vmatpush1.msra.mxu0 %v2001_v30  ;;  %v2186_v30 = vunpack.c.h.bf16 %v1799_v20  ;;  %v1791_v18 = vld [vmem:[#allocation19 + $0x3d0] sm:$0xff]  ;;  %v2433_v37 = vunpack.c.l.bf16 %v1923_v28 }
 0x47e   : > { %2847 = vmatpush1.msra.mxu1 %v2257_v32  ;;  %2777 = vmatprep.subr.mxu0 %v1994_v33  ;;  %v2178_v32 = vunpack.c.h.bf16 %v1795_v23  ;;  %v1919_v33 = vld [vmem:[#allocation19 + $0x7d0] sm:$0xff]  ;;  %v2169_v40 = vunpack.c.l.bf16 %v1791_v18 }
 0x47f   : > { %2848 = vmatprep.subr.mxu1 %v2250_v36  ;;  %2778 = vmatpush1.msra.mxu0 %v1993_v35  ;;  %v2434_v35 = vunpack.c.h.bf16 %v1923_v28  ;;  %v1787_v36 = vld [vmem:[#allocation19 + $0x3b0] sm:$0xff]  ;;  %v2425_v43 = vunpack.c.l.bf16 %v1919_v33 }
 0x480   : > { %2849 = vmatpush1.msra.mxu1 %v2249_v38  ;;  %2779 = vmatprep.subr.mxu0 %v1986_v39  ;;  %v2170_v38 = vunpack.c.h.bf16 %v1791_v18  ;;  %v1915_v39 = vld [vmem:[#allocation19 + $0x7b0] sm:$0xff]  ;;  %v2161_v46 = vunpack.c.l.bf16 %v1787_v36 }
 0x481   : > { %2850 = vmatprep.subr.mxu1 %v2242_v42  ;;  %2780 = vmatpush1.msra.mxu0 %v1985_v41  ;;  %v2426_v41 = vunpack.c.h.bf16 %v1919_v33  ;;  %v1783_v42 = vld [vmem:[#allocation19 + $0x390] sm:$0xff]  ;;  %v2417_v49 = vunpack.c.l.bf16 %v1915_v39 }
 0x482   : > { %2851 = vmatpush1.msra.mxu1 %v2241_v44  ;;  %2781 = vmatprep.subr.mxu0 %v1978_v45  ;;  %v2162_v44 = vunpack.c.h.bf16 %v1787_v36  ;;  %v1911_v45 = vld [vmem:[#allocation19 + $0x790] sm:$0xff]  ;;  %v2153_v52 = vunpack.c.l.bf16 %v1783_v42 }
 0x483   : > { %2852 = vmatprep.subr.mxu1 %v2234_v48  ;;  %2782 = vmatpush1.msra.mxu0 %v1977_v47  ;;  %v2418_v47 = vunpack.c.h.bf16 %v1915_v39  ;;  %v1779_v48 = vld [vmem:[#allocation19 + $0x370] sm:$0xff]  ;;  %v2409_v55 = vunpack.c.l.bf16 %v1911_v45 }
 0x484   : > { %2853 = vmatpush1.msra.mxu1 %v2233_v50  ;;  %2783 = vmatprep.subr.mxu0 %v1970_v51  ;;  %v2154_v50 = vunpack.c.h.bf16 %v1783_v42  ;;  %v1907_v51 = vld [vmem:[#allocation19 + $0x770] sm:$0xff]  ;;  %v2145_v58 = vunpack.c.l.bf16 %v1779_v48 }
 0x485   : > { %2854 = vmatprep.subr.mxu1 %v2226_v54  ;;  %2784 = vmatpush1.msra.mxu0 %v1969_v53  ;;  %v2410_v53 = vunpack.c.h.bf16 %v1911_v45  ;;  %v1775_v54 = vld [vmem:[#allocation19 + $0x350] sm:$0xff]  ;;  %v2401_v63 = vunpack.c.l.bf16 %v1907_v51 }
 0x486   : > { %2855 = vmatpush1.msra.mxu1 %v2225_v56  ;;  %2785 = vmatprep.subr.mxu0 %v1962_v57  ;;  %v2146_v56 = vunpack.c.h.bf16 %v1779_v48  ;;  %v1903_v57 = vld [vmem:[#allocation19 + $0x750] sm:$0xff]  ;;  %v2137_v6 = vunpack.c.l.bf16 %v1775_v54 }
 0x487   : > { %2856 = vmatprep.subr.mxu1 %v2218_v62  ;;  %2786 = vmatpush1.msra.mxu0 %v1961_v59  ;;  %v2402_v59 = vunpack.c.h.bf16 %v1907_v51  ;;  %v1771_v62 = vld [vmem:[#allocation19 + $0x330] sm:$0xff]  ;;  %v2393_v8 = vunpack.c.l.bf16 %v1903_v57 }
 0x488   : > { %2857 = vmatpush1.msra.mxu1 %v2217_v0  ;;  %2787 = vmatprep.subr.mxu0 %v1954_v1  ;;  %v2138_v0 = vunpack.c.h.bf16 %v1775_v54  ;;  %v1899_v1 = vld [vmem:[#allocation19 + $0x730] sm:$0xff]  ;;  %v2129_v14 = vunpack.c.l.bf16 %v1771_v62 }
 0x489   : > { %2858 = vmatprep.subr.mxu1 %v2210_v7  ;;  %2788 = vmatpush1.msra.mxu0 %v1953_v60  ;;  %v2394_v60 = vunpack.c.h.bf16 %v1903_v57  ;;  %v1767_v7 = vld [vmem:[#allocation19 + $0x310] sm:$0xff]  ;;  %v2385_v16 = vunpack.c.l.bf16 %v1899_v1 }
 0x48a   : > { %2859 = vmatpush1.msra.mxu1 %v2209_v11  ;;  %2789 = vmatprep.subr.mxu0 %v1946_v13  ;;  %v2130_v11 = vunpack.c.h.bf16 %v1771_v62  ;;  %v1895_v13 = vld [vmem:[#allocation19 + $0x710] sm:$0xff]  ;;  %v2121_v20 = vunpack.c.l.bf16 %v1767_v7 }
 0x48b   : > { %2860 = vmatprep.subr.mxu1 %v2202_v15  ;;  %2790 = vmatpush1.msra.mxu0 %v1945_v61  ;;  %v2386_v61 = vunpack.c.h.bf16 %v1899_v1  ;;  %v1763_v15 = vld [vmem:[#allocation19 + $0x2f0] sm:$0xff]  ;;  %v2377_v23 = vunpack.c.l.bf16 %v1895_v13 }
 0x48c   : > { %2861 = vmatpush1.msra.mxu1 %v2201_v19  ;;  %2791 = vmatprep.subr.mxu0 %v1938_v2  ;;  %v2122_v19 = vunpack.c.h.bf16 %v1767_v7  ;;  %v1891_v2 = vld [vmem:[#allocation19 + $0x6f0] sm:$0xff]  ;;  %v2113_v28 = vunpack.c.l.bf16 %v1763_v15 }
 0x48d   : > { %2862 = vmatprep.subr.mxu1 %v2194_v22  ;;  %2792 = vmatpush1.msra.mxu0 %v1937_v3  ;;  %v2378_v3 = vunpack.c.h.bf16 %v1895_v13  ;;  %v1759_v22 = vld [vmem:[#allocation19 + $0x2d0] sm:$0xff]  ;;  %v2369_v18 = vunpack.c.l.bf16 %v1891_v2 }
 0x48e   : > { %2863 = vmatpush1.msra.mxu1 %v2193_v24  ;;  %2793 = vmatprep.subr.mxu0 %v1930_v27  ;;  %v2114_v24 = vunpack.c.h.bf16 %v1763_v15  ;;  %v1887_v27 = vld [vmem:[#allocation19 + $0x6d0] sm:$0xff]  ;;  %v2105_v33 = vunpack.c.l.bf16 %v1759_v22 }
 0x48f   : > { %2864 = vmatprep.subr.mxu1 %v2186_v30  ;;  %2794 = vmatpush1.msra.mxu0 %v1929_v29  ;;  %v2370_v29 = vunpack.c.h.bf16 %v1891_v2  ;;  %v1755_v30 = vld [vmem:[#allocation19 + $0x2b0] sm:$0xff]  ;;  %v2361_v36 = vunpack.c.l.bf16 %v1887_v27 }
 0x490   : > { %2865 = vmatpush1.msra.mxu1 %v2185_v31  ;;  %2795 = vmatprep.subr.mxu0 %v2178_v32  ;;  %v2106_v31 = vunpack.c.h.bf16 %v1759_v22  ;;  %v1883_v32 = vld [vmem:[#allocation19 + $0x6b0] sm:$0xff]  ;;  %v2097_v39 = vunpack.c.l.bf16 %v1755_v30  ;;  %v1724_v22 = vld [vmem:[#allocation19 + $0x1b8] sm:$0xff] }
 0x491   : > { %2866 = vmatprep.subr.mxu1 %v2434_v35  ;;  %2796 = vmatpush2.msra.mxu0 %v2177_v34  ;;  %v2362_v34 = vunpack.c.h.bf16 %v1887_v27  ;;  %v1751_v35 = vld [vmem:[#allocation19 + $0x290] sm:$0xff]  ;;  %v2353_v42 = vunpack.c.l.bf16 %v1883_v32 }
 0x492   : > { %2867 = vmatpush2.msra.mxu1 %v2433_v37  ;;  %2797 = vmatprep.subr.mxu0 %v2170_v38  ;;  %v2098_v37 = vunpack.c.h.bf16 %v1755_v30  ;;  %v1879_v38 = vld [vmem:[#allocation19 + $0x690] sm:$0xff]  ;;  %v2089_v45 = vunpack.c.l.bf16 %v1751_v35 }
 0x493   : > { %2868 = vmatprep.subr.mxu1 %v2426_v41  ;;  %2798 = vmatpush2.msra.mxu0 %v2169_v40  ;;  %v2354_v40 = vunpack.c.h.bf16 %v1883_v32  ;;  %v1747_v41 = vld [vmem:[#allocation19 + $0x270] sm:$0xff]  ;;  %v2345_v48 = vunpack.c.l.bf16 %v1879_v38  ;;  %v2035_v32 = vunpack.c.l.bf16 %v1724_v22 }
 0x494   : > { %2869 = vmatpush2.msra.mxu1 %v2425_v43  ;;  %2799 = vmatprep.subr.mxu0 %v2162_v44  ;;  %v2090_v43 = vunpack.c.h.bf16 %v1751_v35  ;;  %v1875_v44 = vld [vmem:[#allocation19 + $0x670] sm:$0xff]  ;;  %v2081_v51 = vunpack.c.l.bf16 %v1747_v41 }
 0x495   : > { %2870 = vmatprep.subr.mxu1 %v2418_v47  ;;  %2800 = vmatpush2.msra.mxu0 %v2161_v46  ;;  %v2346_v46 = vunpack.c.h.bf16 %v1879_v38  ;;  %v1743_v47 = vld [vmem:[#allocation19 + $0x250] sm:$0xff]  ;;  %v2337_v54 = vunpack.c.l.bf16 %v1875_v44 }
 0x496   : > { %2871 = vmatpush2.msra.mxu1 %v2417_v49  ;;  %2801 = vmatprep.subr.mxu0 %v2154_v50  ;;  %v2082_v49 = vunpack.c.h.bf16 %v1747_v41  ;;  %v1871_v50 = vld [vmem:[#allocation19 + $0x650] sm:$0xff]  ;;  %v2073_v57 = vunpack.c.l.bf16 %v1743_v47 }
 0x497   : > { %2872 = vmatprep.subr.mxu1 %v2410_v53  ;;  %2802 = vmatpush2.msra.mxu0 %v2153_v52  ;;  %v2338_v52 = vunpack.c.h.bf16 %v1875_v44  ;;  %v1739_v53 = vld [vmem:[#allocation19 + $0x230] sm:$0xff]  ;;  %v2329_v62 = vunpack.c.l.bf16 %v1871_v50 }
 0x498   : > { %2873 = vmatpush2.msra.mxu1 %v2409_v55  ;;  %2803 = vmatprep.subr.mxu0 %v2146_v56  ;;  %v2074_v55 = vunpack.c.h.bf16 %v1743_v47  ;;  %v1867_v56 = vld [vmem:[#allocation19 + $0x630] sm:$0xff]  ;;  %v2065_v1 = vunpack.c.l.bf16 %v1739_v53  ;;  %v1836_v47 = vld [vmem:[#allocation19 + $0x538] sm:$0xff] }
 0x499   : > { %2874 = vmatprep.subr.mxu1 %v2402_v59  ;;  %2804 = vmatpush2.msra.mxu0 %v2145_v58  ;;  %v2330_v58 = vunpack.c.h.bf16 %v1871_v50  ;;  %v1735_v59 = vld [vmem:[#allocation19 + $0x210] sm:$0xff]  ;;  %v1704_v50 = vld [vmem:[#allocation19 + $0x118] sm:$0xff] }
 0x49a   : > { %2875 = vmatpush2.msra.mxu1 %v2401_v63  ;;  %2805 = vmatprep.subr.mxu0 %v2138_v0  ;;  %v2066_v63 = vunpack.c.h.bf16 %v1739_v53  ;;  %v1863_v0 = vld [vmem:[#allocation19 + $0x610] sm:$0xff]  ;;  %v2058_v7 = vunpack.c.h.bf16 %v1735_v59  ;;  %v1832_v53 = vld [vmem:[#allocation19 + $0x518] sm:$0xff] }
 0x49b   : > { %2876 = vmatprep.subr.mxu1 %v2394_v60  ;;  %2806 = vmatpush2.msra.mxu0 %v2137_v6  ;;  %v2322_v6 = vunpack.c.h.bf16 %v1867_v56  ;;  %v2321_v60 = vunpack.c.l.bf16 %v1867_v56  ;;  %v2314_v13 = vunpack.c.h.bf16 %v1863_v0  ;;  %v1700_v56 = vld [vmem:[#allocation19 + $0xf8] sm:$0xff] }
 0x49c   : > { %2877 = vmatpush2.msra.mxu1 %v2393_v8  ;;  %2807 = vmatprep.subr.mxu0 %v2130_v11  ;;  %v1732_v8 = vld [vmem:[#allocation19 + $0x1f8] sm:$0xff]  ;;  %v2057_v11 = vunpack.c.l.bf16 %v1735_v59 }
 0x49d   : > { %2878 = vmatprep.subr.mxu1 %v2386_v61  ;;  %2808 = vmatpush2.msra.mxu0 %v2129_v14  ;;  %v1860_v14 = vld [vmem:[#allocation19 + $0x5f8] sm:$0xff]  ;;  %v2313_v61 = vunpack.c.l.bf16 %v1863_v0  ;;  %v2052_v15 = vunpack.c.h.bf16 %v1732_v8 }
 0x49e   : > { %2879 = vmatpush2.msra.mxu1 %v2385_v16  ;;  %2809 = vmatprep.subr.mxu0 %v2122_v19  ;;  %v1728_v16 = vld [vmem:[#allocation19 + $0x1d8] sm:$0xff]  ;;  %v2051_v19 = vunpack.c.l.bf16 %v1732_v8  ;;  %v2308_v2 = vunpack.c.h.bf16 %v1860_v14 }
 0x49f   : > { %2880 = vmatprep.subr.mxu1 %v2378_v3  ;;  %2810 = vmatpush2.msra.mxu0 %v2121_v20  ;;  %v1856_v20 = vld [vmem:[#allocation19 + $0x5d8] sm:$0xff]  ;;  %v2307_v3 = vunpack.c.l.bf16 %v1860_v14  ;;  %v2043_v27 = vunpack.c.l.bf16 %v1728_v16 }
 0x4a0   : > { %2881 = vmatpush2.msra.mxu1 %v2377_v23  ;;  %2811 = vmatprep.subr.mxu0 %v2114_v24  ;;  %v2044_v23 = vunpack.c.h.bf16 %v1728_v16  ;;  %v1852_v24 = vld [vmem:[#allocation19 + $0x5b8] sm:$0xff]  ;;  %v2299_v30 = vunpack.c.l.bf16 %v1856_v20 }
 0x4a1   : > { %2882 = vmatprep.subr.mxu1 %v2370_v29  ;;  %2812 = vmatpush2.msra.mxu0 %v2113_v28  ;;  %v2300_v28 = vunpack.c.h.bf16 %v1856_v20  ;;  %v1720_v29 = vld [vmem:[#allocation19 + $0x198] sm:$0xff]  ;;  %v2291_v35 = vunpack.c.l.bf16 %v1852_v24 }
 0x4a2   : > { %2883 = vmatpush2.msra.mxu1 %v2369_v18  ;;  %2813 = vmatprep.subr.mxu0 %v2106_v31  ;;  %v2036_v18 = vunpack.c.h.bf16 %v1724_v22  ;;  %v1848_v31 = vld [vmem:[#allocation19 + $0x598] sm:$0xff]  ;;  %v2027_v38 = vunpack.c.l.bf16 %v1720_v29 }
 0x4a3   : > { %2884 = vmatprep.subr.mxu1 %v2362_v34  ;;  %2814 = vmatpush2.msra.mxu0 %v2105_v33  ;;  %v2292_v33 = vunpack.c.h.bf16 %v1852_v24  ;;  %v1716_v34 = vld [vmem:[#allocation19 + $0x178] sm:$0xff]  ;;  %v2283_v41 = vunpack.c.l.bf16 %v1848_v31 }
 0x4a4   : > { %2885 = vmatpush2.msra.mxu1 %v2361_v36  ;;  %2815 = vmatprep.subr.mxu0 %v2098_v37  ;;  %v2028_v36 = vunpack.c.h.bf16 %v1720_v29  ;;  %v1844_v37 = vld [vmem:[#allocation19 + $0x578] sm:$0xff] }
 0x4a5   : > { %2886 = vmatprep.subr.mxu1 %v2354_v40  ;;  %2816 = vmatpush2.msra.mxu0 %v2097_v39  ;;  %v2284_v39 = vunpack.c.h.bf16 %v1848_v31  ;;  %v1712_v40 = vld [vmem:[#allocation19 + $0x158] sm:$0xff]  ;;  %v2276_v44 = vunpack.c.h.bf16 %v1844_v37 }
 0x4a6   : > { %2887 = vmatpush2.msra.mxu1 %v2353_v42  ;;  %2817 = vmatprep.subr.mxu0 %v2090_v43  ;;  %v2020_v42 = vunpack.c.h.bf16 %v1716_v34  ;;  %v2019_v43 = vunpack.c.l.bf16 %v1716_v34  ;;  %v1828_v59 = vld [vmem:[#allocation19 + $0x4f8] sm:$0xff] }
 0x4a7   : > { %2888 = vmatprep.subr.mxu1 %v2346_v46  ;;  %2818 = vmatpush2.msra.mxu0 %v2089_v45  ;;  %v1708_v45 = vld [vmem:[#allocation19 + $0x138] sm:$0xff]  ;;  %v2012_v46 = vunpack.c.h.bf16 %v1712_v40  ;;  %v2244_v8 = vunpack.c.h.bf16 %v1828_v59 }
 0x4a8   : > { %2889 = vmatpush2.msra.mxu1 %v2345_v48  ;;  %2819 = vmatprep.subr.mxu0 %v2082_v49  ;;  %v2011_v48 = vunpack.c.l.bf16 %v1712_v40  ;;  %v1696_v0 = vld [vmem:[#allocation19 + $0xd8] sm:$0xff] }
 0x4a9   : > { %2890 = vmatprep.subr.mxu1 %v2338_v52  ;;  %2820 = vmatpush2.msra.mxu0 %v2081_v51  ;;  %v2004_v52 = vunpack.c.h.bf16 %v1708_v45  ;;  %v1980_v14 = vunpack.c.h.bf16 %v1696_v0  ;;  %v1684_v24 = vld [vmem:[#allocation19 + $0x78] sm:$0xff] }
 0x4aa   : > { %2891 = vmatpush2.msra.mxu1 %v2337_v54  ;;  %2821 = vmatprep.subr.mxu0 %v2074_v55  ;;  %v2003_v54 = vunpack.c.l.bf16 %v1708_v45  ;;  %v2260_v55 = vunpack.c.h.bf16 %v1836_v47  ;;  %v1812_v29 = vld [vmem:[#allocation19 + $0x478] sm:$0xff] }
 0x4ab   : > { %2892 = vmatprep.subr.mxu1 %v2330_v58  ;;  %2822 = vmatpush2.msra.mxu0 %v2073_v57  ;;  %v2259_v57 = vunpack.c.l.bf16 %v1836_v47  ;;  %v1996_v58 = vunpack.c.h.bf16 %v1704_v50  ;;  %v1680_v31 = vld [vmem:[#allocation19 + $0x58] sm:$0xff] }
 0x4ac   : > { %2893 = vmatpush2.msra.mxu1 %v2329_v62  ;;  %2823 = vmatprep.subr.mxu0 %v2066_v63  ;;  %v1995_v62 = vunpack.c.l.bf16 %v1704_v50  ;;  %v2252_v63 = vunpack.c.h.bf16 %v1832_v53  ;;  %v1808_v34 = vld [vmem:[#allocation19 + $0x458] sm:$0xff] }
 0x4ad   : > { %2894 = vmatprep.subr.mxu1 %v2322_v6  ;;  %2824 = vmatpush2.msra.mxu0 %v2065_v1  ;;  %v2251_v1 = vunpack.c.l.bf16 %v1832_v53  ;;  %v1988_v6 = vunpack.c.h.bf16 %v1700_v56  ;;  %v1804_v40 = vld [vmem:[#allocation19 + $0x438] sm:$0xff] }
 0x4ae   : > { %2895 = vmatpush2.msra.mxu1 %v2321_v60  ;;  %2825 = vmatprep.subr.mxu0 %v2058_v7  ;;  %v1824_v60 = vld [vmem:[#allocation19 + $0x4d8] sm:$0xff]  ;;  %v1987_v7 = vunpack.c.l.bf16 %v1700_v56 }
 0x4af   : > { %2896 = vmatprep.subr.mxu1 %v2314_v13  ;;  %2826 = vmatpush2.msra.mxu0 %v2057_v11  ;;  %v1692_v11 = vld [vmem:[#allocation19 + $0xb8] sm:$0xff]  ;;  %v2243_v13 = vunpack.c.l.bf16 %v1828_v59  ;;  %v2236_v16 = vunpack.c.h.bf16 %v1824_v60 }
 0x4b0   : > { %2897 = vmatpush2.msra.mxu1 %v2313_v61  ;;  %2828 = vmatmul.mubr.f32.vlgmr.msra.gmra.mxu0 %v18769_v26  ;;  %v1820_v61 = vld [vmem:[#allocation19 + $0x4b8] sm:$0xff]  ;;  %v1972_v20 = vunpack.c.h.bf16 %v1692_v11  ;;  %v1971_v22 = vunpack.c.l.bf16 %v1692_v11 }
 0x4b1   : > { %2899 = vmatmul.mubr.f32.vlgmr.msra.gmra.mxu1 %v18773_v17  ;;  %2905 = vmatprep.subr.mxu0 %v2052_v15  ;;  %v1979_v15 = vunpack.c.l.bf16 %v1696_v0  ;;  %v1800_v45 = vld [vmem:[#allocation19 + $0x418] sm:$0xff] }
 0x4b2   : > { %2976 = vmatprep.subr.mxu1 %v2308_v2  ;;  %2906 = vmatpush1.msra.mxu0 %v2051_v19  ;;  %v1688_v19 = vld [vmem:[#allocation19 + $0x98] sm:$0xff]  ;;  %v2235_v2 = vunpack.c.l.bf16 %v1824_v60 }
 0x4b3   : > { %2969 = vmatprep.mubr.f32.mxu0 %v18763_v21  ;;  %2977 = vmatpush1.msra.mxu1 %v2307_v3  ;;  %v1840_v21 = vld [vmem:[#allocation19 + $0x558] sm:$0xff] }
 0x4b4   : > { %3040 = vmatprep.mubr.f32.mxu1 %v18767_v25  ;;  %2907 = vmatprep.subr.mxu0 %v2044_v23  ;;  %v2275_v25 = vunpack.c.l.bf16 %v1844_v37  ;;  %v2268_v49 = vunpack.c.h.bf16 %v1840_v21  ;;  %v2267_v51 = vunpack.c.l.bf16 %v1840_v21  ;;  %v1816_v3 = vld [vmem:[#allocation19 + $0x498] sm:$0xff]  ;;  %v2228_v23 = vunpack.c.h.bf16 %v1820_v61 }
 0x4b5   : > { %2978 = vmatprep.subr.mxu1 %v2300_v28  ;;  %2908 = vmatpush1.msra.mxu0 %v2043_v27  ;;  %v2227_v27 = vunpack.c.l.bf16 %v1820_v61  ;;  %v1964_v28 = vunpack.c.h.bf16 %v1688_v19  ;;  %v1676_v37 = vld [vmem:[#allocation19 + $0x38] sm:$0xff] }
 0x4b6   : > { %2979 = vmatpush1.msra.mxu1 %v2299_v30  ;;  %2909 = vmatprep.subr.mxu0 %v2036_v18  ;;  %v1963_v30 = vunpack.c.l.bf16 %v1688_v19  ;;  %v2220_v18 = vunpack.c.h.bf16 %v1816_v3  ;;  %v1672_v21 = vld [vmem:[#allocation19 + $0x18] sm:$0xff] }
 0x4b7   : > { %2980 = vmatprep.subr.mxu1 %v2292_v33  ;;  %2910 = vmatpush1.msra.mxu0 %v2035_v32  ;;  %v2219_v32 = vunpack.c.l.bf16 %v1816_v3  ;;  %v1956_v33 = vunpack.c.h.bf16 %v1684_v24  ;;  %v1796_v47 = vld [vmem:[#allocation19 + $0x3f8] sm:$0xff] }
 0x4b8   : > { %2981 = vmatpush1.msra.mxu1 %v2291_v35  ;;  %2911 = vmatprep.subr.mxu0 %v2028_v36  ;;  %v1955_v35 = vunpack.c.l.bf16 %v1684_v24  ;;  %v2212_v36 = vunpack.c.h.bf16 %v1812_v29  ;;  %v1924_v50 = vld [vmem:[#allocation19 + $0x7f8] sm:$0xff] }
 0x4b9   : > { %2982 = vmatprep.subr.mxu1 %v2284_v39  ;;  %2912 = vmatpush1.msra.mxu0 %v2027_v38  ;;  %v2211_v38 = vunpack.c.l.bf16 %v1812_v29  ;;  %v1948_v39 = vunpack.c.h.bf16 %v1680_v31  ;;  %v1792_v53 = vld [vmem:[#allocation19 + $0x3d8] sm:$0xff] }
 0x4ba   : > { %2983 = vmatpush1.msra.mxu1 %v2283_v41  ;;  %2913 = vmatprep.subr.mxu0 %v2020_v42  ;;  %v1947_v41 = vunpack.c.l.bf16 %v1680_v31  ;;  %v2204_v42 = vunpack.c.h.bf16 %v1808_v34  ;;  %v1920_v56 = vld [vmem:[#allocation19 + $0x7d8] sm:$0xff] }
 0x4bb   : > { %2984 = vmatprep.subr.mxu1 %v2276_v44  ;;  %2914 = vmatpush1.msra.mxu0 %v2019_v43  ;;  %v2203_v43 = vunpack.c.l.bf16 %v1808_v34  ;;  %v1940_v44 = vunpack.c.h.bf16 %v1676_v37  ;;  %v1788_v59 = vld [vmem:[#allocation19 + $0x3b8] sm:$0xff] }
 0x4bc   : > { %2985 = vmatpush1.msra.mxu1 %v2275_v25  ;;  %2915 = vmatprep.subr.mxu0 %v2012_v46  ;;  %v1939_v25 = vunpack.c.l.bf16 %v1676_v37  ;;  %v2196_v46 = vunpack.c.h.bf16 %v1804_v40  ;;  %v1916_v0 = vld [vmem:[#allocation19 + $0x7b8] sm:$0xff] }
 0x4bd   : > { %2986 = vmatprep.subr.mxu1 %v2268_v49  ;;  %2916 = vmatpush1.msra.mxu0 %v2011_v48  ;;  %v2195_v48 = vunpack.c.l.bf16 %v1804_v40  ;;  %v1932_v49 = vunpack.c.h.bf16 %v1672_v21  ;;  %v1784_v60 = vld [vmem:[#allocation19 + $0x398] sm:$0xff] }
 0x4be   : > { %2987 = vmatpush1.msra.mxu1 %v2267_v51  ;;  %2917 = vmatprep.subr.mxu0 %v2004_v52  ;;  %v1931_v51 = vunpack.c.l.bf16 %v1672_v21  ;;  %v2188_v52 = vunpack.c.h.bf16 %v1800_v45  ;;  %v1912_v11 = vld [vmem:[#allocation19 + $0x798] sm:$0xff] }
 0x4bf   : > { %2988 = vmatprep.subr.mxu1 %v2260_v55  ;;  %2918 = vmatpush1.msra.mxu0 %v2003_v54  ;;  %v2187_v54 = vunpack.c.l.bf16 %v1800_v45  ;;  %v2180_v55 = vunpack.c.h.bf16 %v1796_v47  ;;  %v1780_v61 = vld [vmem:[#allocation19 + $0x378] sm:$0xff] }
 0x4c0   : > { %2989 = vmatpush1.msra.mxu1 %v2259_v57  ;;  %2919 = vmatprep.subr.mxu0 %v1996_v58  ;;  %v2179_v57 = vunpack.c.l.bf16 %v1796_v47  ;;  %v2436_v58 = vunpack.c.h.bf16 %v1924_v50  ;;  %v1908_v19 = vld [vmem:[#allocation19 + $0x778] sm:$0xff] }
 0x4c1   : > { %2990 = vmatprep.subr.mxu1 %v2252_v63  ;;  %2920 = vmatpush1.msra.mxu0 %v1995_v62  ;;  %v2435_v62 = vunpack.c.l.bf16 %v1924_v50  ;;  %v2172_v63 = vunpack.c.h.bf16 %v1792_v53  ;;  %v1776_v3 = vld [vmem:[#allocation19 + $0x358] sm:$0xff] }
 0x4c2   : > { %2991 = vmatpush1.msra.mxu1 %v2251_v1  ;;  %2921 = vmatprep.subr.mxu0 %v1988_v6  ;;  %v2171_v1 = vunpack.c.l.bf16 %v1792_v53  ;;  %v2428_v6 = vunpack.c.h.bf16 %v1920_v56  ;;  %v1904_v24 = vld [vmem:[#allocation19 + $0x758] sm:$0xff] }
 0x4c3   : > { %2992 = vmatprep.subr.mxu1 %v2244_v8  ;;  %2922 = vmatpush1.msra.mxu0 %v1987_v7  ;;  %v2427_v7 = vunpack.c.l.bf16 %v1920_v56  ;;  %v2164_v8 = vunpack.c.h.bf16 %v1788_v59  ;;  %v1772_v29 = vld [vmem:[#allocation19 + $0x338] sm:$0xff] }
 0x4c4   : > { %2993 = vmatpush1.msra.mxu1 %v2243_v13  ;;  %2923 = vmatprep.subr.mxu0 %v1980_v14  ;;  %v2163_v13 = vunpack.c.l.bf16 %v1788_v59  ;;  %v2420_v14 = vunpack.c.h.bf16 %v1916_v0  ;;  %v1900_v31 = vld [vmem:[#allocation19 + $0x738] sm:$0xff] }
 0x4c5   : > { %2994 = vmatprep.subr.mxu1 %v2236_v16  ;;  %2924 = vmatpush1.msra.mxu0 %v1979_v15  ;;  %v2419_v15 = vunpack.c.l.bf16 %v1916_v0  ;;  %v2156_v16 = vunpack.c.h.bf16 %v1784_v60  ;;  %v1768_v34 = vld [vmem:[#allocation19 + $0x318] sm:$0xff] }
 0x4c6   : > { %2995 = vmatpush1.msra.mxu1 %v2235_v2  ;;  %2925 = vmatprep.subr.mxu0 %v1972_v20  ;;  %v2155_v2 = vunpack.c.l.bf16 %v1784_v60  ;;  %v2412_v20 = vunpack.c.h.bf16 %v1912_v11  ;;  %v1896_v37 = vld [vmem:[#allocation19 + $0x718] sm:$0xff] }
 0x4c7   : > { %2996 = vmatprep.subr.mxu1 %v2228_v23  ;;  %2926 = vmatpush1.msra.mxu0 %v1971_v22  ;;  %v2411_v22 = vunpack.c.l.bf16 %v1912_v11  ;;  %v2148_v23 = vunpack.c.h.bf16 %v1780_v61  ;;  %v1764_v40 = vld [vmem:[#allocation19 + $0x2f8] sm:$0xff] }
 0x4c8   : > { %2997 = vmatpush1.msra.mxu1 %v2227_v27  ;;  %2927 = vmatprep.subr.mxu0 %v1964_v28  ;;  %v2147_v27 = vunpack.c.l.bf16 %v1780_v61  ;;  %v2404_v28 = vunpack.c.h.bf16 %v1908_v19  ;;  %v1892_v21 = vld [vmem:[#allocation19 + $0x6f8] sm:$0xff] }
 0x4c9   : > { %2998 = vmatprep.subr.mxu1 %v2220_v18  ;;  %2928 = vmatpush1.msra.mxu0 %v1963_v30  ;;  %v2403_v30 = vunpack.c.l.bf16 %v1908_v19  ;;  %v2140_v18 = vunpack.c.h.bf16 %v1776_v3  ;;  %v1760_v45 = vld [vmem:[#allocation19 + $0x2d8] sm:$0xff] }
 0x4ca   : > { %2999 = vmatpush1.msra.mxu1 %v2219_v32  ;;  %2929 = vmatprep.subr.mxu0 %v1956_v33  ;;  %v2139_v32 = vunpack.c.l.bf16 %v1776_v3  ;;  %v2396_v33 = vunpack.c.h.bf16 %v1904_v24  ;;  %v1888_v47 = vld [vmem:[#allocation19 + $0x6d8] sm:$0xff] }
 0x4cb   : > { %3000 = vmatprep.subr.mxu1 %v2212_v36  ;;  %2930 = vmatpush1.msra.mxu0 %v1955_v35  ;;  %v2395_v35 = vunpack.c.l.bf16 %v1904_v24  ;;  %v2132_v36 = vunpack.c.h.bf16 %v1772_v29  ;;  %v1756_v50 = vld [vmem:[#allocation19 + $0x2b8] sm:$0xff] }
 0x4cc   : > { %3001 = vmatpush1.msra.mxu1 %v2211_v38  ;;  %2931 = vmatprep.subr.mxu0 %v1948_v39  ;;  %v2131_v38 = vunpack.c.l.bf16 %v1772_v29  ;;  %v2388_v39 = vunpack.c.h.bf16 %v1900_v31  ;;  %v1884_v53 = vld [vmem:[#allocation19 + $0x6b8] sm:$0xff] }
 0x4cd   : > { %3002 = vmatprep.subr.mxu1 %v2204_v42  ;;  %2932 = vmatpush1.msra.mxu0 %v1947_v41  ;;  %v2387_v41 = vunpack.c.l.bf16 %v1900_v31  ;;  %v2124_v42 = vunpack.c.h.bf16 %v1768_v34  ;;  %v1752_v56 = vld [vmem:[#allocation19 + $0x298] sm:$0xff] }
 0x4ce   : > { %3003 = vmatpush1.msra.mxu1 %v2203_v43  ;;  %2933 = vmatprep.subr.mxu0 %v1940_v44  ;;  %v2123_v43 = vunpack.c.l.bf16 %v1768_v34  ;;  %v2380_v44 = vunpack.c.h.bf16 %v1896_v37  ;;  %v1880_v59 = vld [vmem:[#allocation19 + $0x698] sm:$0xff] }
 0x4cf   : > { %3004 = vmatprep.subr.mxu1 %v2196_v46  ;;  %2934 = vmatpush1.msra.mxu0 %v1939_v25  ;;  %v2379_v25 = vunpack.c.l.bf16 %v1896_v37  ;;  %v2116_v46 = vunpack.c.h.bf16 %v1764_v40  ;;  %v1748_v0 = vld [vmem:[#allocation19 + $0x278] sm:$0xff] }
 0x4d0   : > { %3005 = vmatpush1.msra.mxu1 %v2195_v48  ;;  %2935 = vmatprep.subr.mxu0 %v1932_v49  ;;  %v2115_v48 = vunpack.c.l.bf16 %v1764_v40  ;;  %v2372_v49 = vunpack.c.h.bf16 %v1892_v21  ;;  %v1876_v60 = vld [vmem:[#allocation19 + $0x678] sm:$0xff] }
 0x4d1   : > { %3006 = vmatprep.subr.mxu1 %v2188_v52  ;;  %2936 = vmatpush1.msra.mxu0 %v1931_v51  ;;  %v2371_v51 = vunpack.c.l.bf16 %v1892_v21  ;;  %v2108_v52 = vunpack.c.h.bf16 %v1760_v45  ;;  %v1744_v11 = vld [vmem:[#allocation19 + $0x258] sm:$0xff] }
 0x4d2   : > { %3007 = vmatpush1.msra.mxu1 %v2187_v54  ;;  %2937 = vmatprep.subr.mxu0 %v2180_v55  ;;  %v2107_v54 = vunpack.c.l.bf16 %v1760_v45  ;;  %v2364_v55 = vunpack.c.h.bf16 %v1888_v47  ;;  %v1872_v61 = vld [vmem:[#allocation19 + $0x658] sm:$0xff]  ;;  %v2076_v3 = vunpack.c.h.bf16 %v1744_v11 }
 0x4d3   : > { %3008 = vmatprep.subr.mxu1 %v2436_v58  ;;  %2938 = vmatpush2.msra.mxu0 %v2179_v57  ;;  %v2363_v57 = vunpack.c.l.bf16 %v1888_v47  ;;  %v2100_v58 = vunpack.c.h.bf16 %v1756_v50  ;;  %v1740_v19 = vld [vmem:[#allocation19 + $0x238] sm:$0xff]  ;;  %v2332_v24 = vunpack.c.h.bf16 %v1872_v61 }
 0x4d4   : > { %3009 = vmatpush2.msra.mxu1 %v2435_v62  ;;  %2939 = vmatprep.subr.mxu0 %v2172_v63  ;;  %v2099_v62 = vunpack.c.l.bf16 %v1756_v50  ;;  %v2356_v63 = vunpack.c.h.bf16 %v1884_v53  ;;  %v2068_v29 = vunpack.c.h.bf16 %v1740_v19  ;;  %v2067_v31 = vunpack.c.l.bf16 %v1740_v19  ;;  %v3395_v40 = vld [vmem:[%s18692_s6 + $0x240] sm:$0xff] }
 0x4d5   : > { %3010 = vmatprep.subr.mxu1 %v2428_v6  ;;  %2940 = vmatpush2.msra.mxu0 %v2171_v1  ;;  %v2355_v1 = vunpack.c.l.bf16 %v1884_v53  ;;  %v2092_v6 = vunpack.c.h.bf16 %v1752_v56  ;;  %v14340_v47 = vunpack.c.h.s8.bf16 %v3395_v40 }
 0x4d6   : > { %3011 = vmatpush2.msra.mxu1 %v2427_v7  ;;  %2941 = vmatprep.subr.mxu0 %v2164_v8  ;;  %v2091_v7 = vunpack.c.l.bf16 %v1752_v56  ;;  %v2348_v8 = vunpack.c.h.bf16 %v1880_v59 }
 0x4d7   : > { %3012 = vmatprep.subr.mxu1 %v2420_v14  ;;  %2942 = vmatpush2.msra.mxu0 %v2163_v13  ;;  %v2347_v13 = vunpack.c.l.bf16 %v1880_v59  ;;  %v2084_v14 = vunpack.c.h.bf16 %v1748_v0 }
 0x4d8   : > { %3013 = vmatpush2.msra.mxu1 %v2419_v15  ;;  %2943 = vmatprep.subr.mxu0 %v2156_v16  ;;  %v2083_v15 = vunpack.c.l.bf16 %v1748_v0  ;;  %v2340_v16 = vunpack.c.h.bf16 %v1876_v60  ;;  %v3371_v0 = vld [vmem:[%s18692_s6 + $0x180] sm:$0xff] }
 0x4d9   : > { %3014 = vmatprep.subr.mxu1 %v2412_v20  ;;  %2944 = vmatpush2.msra.mxu0 %v2155_v2  ;;  %v18786_v2 = vld [vmem:[#allocation21] sm:$0xff]  ;;  %v2339_v20 = vunpack.c.l.bf16 %v1876_v60 }
 0x4da   : > { %3015 = vmatpush2.msra.mxu1 %v2411_v22  ;;  %2945 = vmatprep.subr.mxu0 %v2148_v23  ;;  %v1868_v22 = vld [vmem:[#allocation19 + $0x638] sm:$0xff]  ;;  %v2075_v23 = vunpack.c.l.bf16 %v1744_v11  ;;  %v14348_v11 = vunpack.c.h.s8.bf16 %v3371_v0 }
 0x4db   : > { %3016 = vmatprep.subr.mxu1 %v2404_v28  ;;  %2946 = vmatpush2.msra.mxu0 %v2147_v27  ;;  %v1736_v27 = vld [vmem:[#allocation19 + $0x218] sm:$0xff]  ;;  %v2331_v28 = vunpack.c.l.bf16 %v1872_v61 }
 0x4dc   : > { %3017 = vmatpush2.msra.mxu1 %v2403_v30  ;;  %2947 = vmatprep.subr.mxu0 %v2140_v18  ;;  %v1864_v30 = vld [vmem:[#allocation19 + $0x618] sm:$0xff]  ;;  %v2442_v18 = vrot.slane %v18786_v2, %v18725_v10  ;;  %v2060_v34 = vunpack.c.h.bf16 %v1736_v27  ;;  %v2059_v37 = vunpack.c.l.bf16 %v1736_v27 }
 0x4dd   : > { %3018 = vmatprep.subr.mxu1 %v2396_v33  ;;  %2948 = vmatpush2.msra.mxu0 %v2139_v32  ;;  %v2324_v32 = vunpack.c.h.bf16 %v1868_v22  ;;  %v2323_v33 = vunpack.c.l.bf16 %v1868_v22  ;;  %v3347_v27 = vld [vmem:[%s18692_s6 + $0xc0] sm:$0xff] }
 0x4de   : > { %3019 = vmatpush2.msra.mxu1 %v2395_v35  ;;  %2949 = vmatprep.subr.mxu0 %v2132_v36  ;;  %v3396_v35 = vld [vmem:[%s18692_s6 + $0x248] sm:$0xff]  ;;  %v2446_v36 = vrot.slane %v18786_v2, %v18728_v12 }
 0x4df   : > { %3020 = vmatprep.subr.mxu1 %v2388_v39  ;;  %2950 = vmatpush2.msra.mxu0 %v2131_v38  ;;  %v2316_v38 = vunpack.c.h.bf16 %v1864_v30  ;;  %v14338_v45 = vunpack.c.h.s8.bf16 %v3396_v35 }
 0x4e0   : > { %3021 = vmatpush2.msra.mxu1 %v2387_v41  ;;  %2951 = vmatprep.subr.mxu0 %v2124_v42  ;;  %v3588_v41 = vld [vmem:[%s18692_s6 + $0x848] sm:$0xff]  ;;  %v2315_v42 = vunpack.c.l.bf16 %v1864_v30 }
 0x4e1   : > { %3022 = vmatprep.subr.mxu1 %v2380_v44  ;;  %2952 = vmatpush2.msra.mxu0 %v2123_v43  ;;  %v3587_v44 = vld [vmem:[%s18692_s6 + $0x840] sm:$0xff]  ;;  %v14406_v56 = vunpack.c.l.s8.bf16 %v3588_v41 }
 0x4e2   : > { %3023 = vmatpush2.msra.mxu1 %v2379_v25  ;;  %2953 = vmatprep.subr.mxu0 %v2116_v46 }
 0x4e3   : > { %3024 = vmatprep.subr.mxu1 %v2372_v49  ;;  %2954 = vmatpush2.msra.mxu0 %v2115_v48  ;;  %v14402_v49 = vunpack.c.h.s8.bf16 %v3588_v41  ;;  %v3516_v41 = vld [vmem:[%s18692_s6 + $0x608] sm:$0xff] }
 0x4e4   : > { %3025 = vmatpush2.msra.mxu1 %v2371_v51  ;;  %2955 = vmatprep.subr.mxu0 %v2108_v52  ;;  %v14342_v51 = vunpack.c.l.s8.bf16 %v3396_v35  ;;  %v14404_v52 = vunpack.c.h.s8.bf16 %v3587_v44 }
 0x4e5   : > { %3026 = vmatprep.subr.mxu1 %v2364_v55  ;;  %2956 = vmatpush2.msra.mxu0 %v2107_v54  ;;  %v3372_v55 = vld [vmem:[%s18692_s6 + $0x188] sm:$0xff] }
 0x4e6   : > { %3027 = vmatpush2.msra.mxu1 %v2363_v57  ;;  %2957 = vmatprep.subr.mxu0 %v2100_v58  ;;  %v3564_v57 = vld [vmem:[%s18692_s6 + $0x788] sm:$0xff] }
 0x4e7   : > { %3028 = vmatprep.subr.mxu1 %v2356_v63  ;;  %2958 = vmatpush2.msra.mxu0 %v2099_v62  ;;  %v14344_v62 = vunpack.c.l.s8.bf16 %v3395_v40  ;;  %v14346_v63 = vunpack.c.h.s8.bf16 %v3372_v55  ;;  %v14410_v60 = vunpack.c.h.s8.bf16 %v3564_v57  ;;  %v14414_v19 = vunpack.c.l.s8.bf16 %v3564_v57  ;;  %v3492_v57 = vld [vmem:[%s18692_s6 + $0x548] sm:$0xff] }
 0x4e8   : > { %3029 = vmatpush2.msra.mxu1 %v2355_v1  ;;  %2959 = vmatprep.subr.mxu0 %v2092_v6  ;;  %v14408_v1 = vunpack.c.l.s8.bf16 %v3587_v44 }
 0x4e9   : > { %3030 = vmatprep.subr.mxu1 %v2348_v8  ;;  %2960 = vmatpush2.msra.mxu0 %v2091_v7 }
 0x4ea   : > { %3031 = vmatpush2.msra.mxu1 %v2347_v13  ;;  %2961 = vmatprep.subr.mxu0 %v2084_v14  ;;  %v14350_v13 = vunpack.c.l.s8.bf16 %v3372_v55 }
 0x4eb   : > { %3032 = vmatprep.subr.mxu1 %v2340_v16  ;;  %2962 = vmatpush2.msra.mxu0 %v2083_v15  ;;  %v3348_v16 = vld [vmem:[%s18692_s6 + $0xc8] sm:$0xff] }
 0x4ec   : > { %3033 = vmatpush2.msra.mxu1 %v2339_v20  ;;  %2963 = vmatprep.subr.mxu0 %v2076_v3  ;;  %v3540_v20 = vld [vmem:[%s18692_s6 + $0x6c8] sm:$0xff]  ;;  %v14358_v35 = vunpack.c.l.s8.bf16 %v3348_v16 }
 0x4ed   : > { %3034 = vmatprep.subr.mxu1 %v2332_v24  ;;  %2964 = vmatpush2.msra.mxu0 %v2075_v23  ;;  %v2545_v39 = vpop.f32.mrf.mxu0  ;;  %v14352_v23 = vunpack.c.l.s8.bf16 %v3371_v0  ;;  %v14354_v24 = vunpack.c.h.s8.bf16 %v3348_v16  ;;  %v14422_v40 = vunpack.c.l.s8.bf16 %v3540_v20 }
 0x4ee   : > { %3035 = vmatpush2.msra.mxu1 %v2331_v28  ;;  %2965 = vmatprep.subr.mxu0 %v2068_v29  ;;  %v2546_v21 = vadd.f32 %v2545_v39, %v2442_v18  ;;  %v2616_v43 = vpop.f32.mrf.mxu1  ;;  %v14418_v18 = vunpack.c.h.s8.bf16 %v3540_v20  ;;  %v3324_v39 = vld [vmem:[%s18692_s6 + $0x8] sm:$0xff] }
 0x4ef   : > { %3036 = vmatprep.subr.mxu1 %v2324_v32  ;;  %2966 = vmatpush2.msra.mxu0 %v2067_v31  ;;  %v2547_v25 = vpop.f32.mrf.mxu0  ;;  %v3539_v31 = vld [vmem:[%s18692_s6 + $0x6c0] sm:$0xff]  ;;  %v14362_v44 = vunpack.c.h.s8.bf16 %v3324_v39  ;;  %v3468_v20 = vld [vmem:[%s18692_s6 + $0x488] sm:$0xff] }
 0x4f0   : > { %3037 = vmatpush2.msra.mxu1 %v2323_v33  ;;  %2967 = vmatprep.subr.mxu0 %v2060_v34  ;;  %v2617_v46 = vadd.f32 %v2616_v43, %v2546_v21  ;;  %v2548_v48 = vadd.f32 %v2547_v25, %v2446_v36  ;;  %v2618_v50 = vpop.f32.mrf.mxu1  ;;  %v14356_v34 = vunpack.c.h.s8.bf16 %v3347_v27  ;;  %v14420_v36 = vunpack.c.h.s8.bf16 %v3539_v31 }
 0x4f1   : > { %3038 = vmatprep.subr.mxu1 %v2316_v38  ;;  %2968 = vmatpush2.msra.mxu0 %v2059_v37  ;;  %v14360_v43 = vunpack.c.l.s8.bf16 %v3347_v27  ;;  %v14424_v25 = vunpack.c.l.s8.bf16 %v3539_v31  ;;  %v14378_v27 = vunpack.c.h.s8.bf16 %v3468_v20 }
 0x4f2   : > { %3039 = vmatpush2.msra.mxu1 %v2315_v42  ;;  %2970 = vmatmul.mubr.f32.vlgmr.msra.gmra.mxu0 %v18769_v26  ;;  %v3047_v53 = vrot.slane %v2617_v46, 4  ;;  %v2619_v54 = vadd.f32 %v2618_v50, %v2548_v48  ;;  %v14426_v48 = vunpack.c.h.s8.bf16 %v3516_v41 }
 0x4f3   : > { %3041 = vmatmul.mubr.f32.vlgmr.msra.gmra.mxu1 %v18773_v17  ;;  %14339 = vmatprep.subr.bf16.mxu0 %v14338_v45  ;;  %v3563_v17 = vld [vmem:[%s18692_s6 + $0x780] sm:$0xff] }
 0x4f4   : > { %v3048_v58 = vadd.f32 %v3047_v53, %v2617_v46  ;;  %14341 = vmatpush1.bf16.msra.mxu0 %v14340_v47  ;;  %v3053_v59 = vrot.slane %v2619_v54, 4  ;;  %14403 = vmatprep.subr.bf16.mxu1 %v14402_v49  ;;  %v14412_v14 = vunpack.c.h.s8.bf16 %v3563_v17  ;;  %v14416_v28 = vunpack.c.l.s8.bf16 %v3563_v17  ;;  %v3323_v45 = vld [vmem:[%s18692_s6] sm:$0xff] }
 0x4f5   : > { %14343 = vmatprep.subr.bf16.mxu0 %v14342_v51  ;;  %14405 = vmatpush1.bf16.msra.mxu1 %v14404_v52  ;;  %v3515_v49 = vld [vmem:[%s18692_s6 + $0x600] sm:$0xff]  ;;  %v14364_v52 = vunpack.c.h.s8.bf16 %v3323_v45  ;;  %v14366_v53 = vunpack.c.l.s8.bf16 %v3324_v39  ;;  %v14368_v0 = vunpack.c.l.s8.bf16 %v3323_v45 }
 0x4f6   : > { %v3049_v26 = vrot.slane %v3048_v58, 2  ;;  %v3054_v6 = vadd.f32 %v3053_v59, %v2619_v54  ;;  %14407 = vmatprep.subr.bf16.mxu1 %v14406_v56  ;;  %v3684_v59 = vld [vmem:[%s18692_s6 + $0xb48] sm:$0xff]  ;;  %v3635_v45 = vld [vmem:[%s18692_s6 + $0x9c0] sm:$0xff] }
 0x4f8   : > { %v3050_v7 = vadd.f32 %v3049_v26, %v3048_v58  ;;  %v3055_v8 = vrot.slane %v3054_v6, 2  ;;  %14345 = vmatpush1.bf16.msra.mxu0 %v14344_v62  ;;  %v14430_v58 = vunpack.c.l.s8.bf16 %v3516_v41  ;;  %v3491_v26 = vld [vmem:[%s18692_s6 + $0x540] sm:$0xff] }
 0x4f9   : > { %14347 = vmatprep.subr.bf16.mxu0 %v14346_v63  ;;  %14409 = vmatpush1.bf16.msra.mxu1 %v14408_v1  ;;  %v14370_v1 = vunpack.c.h.s8.bf16 %v3492_v57 }
 0x4fa   : > { %v3051_v61 = vrot.slane %v3050_v7, 1  ;;  %v3056_v15 = vadd.f32 %v3055_v8, %v3054_v6  ;;  %14411 = vmatprep.subr.bf16.mxu1 %v14410_v60  ;;  %v14432_v6 = vunpack.c.l.s8.bf16 %v3515_v49  ;;  %v3683_v8 = vld [vmem:[%s18692_s6 + $0xb40] sm:$0xff] }
 0x4fc   : > { %v3052_v3 = vadd.f32 %v3051_v61, %v3050_v7  ;;  %v3057_v22 = vrot.slane %v3056_v15, 1  ;;  %14349 = vmatpush1.bf16.msra.mxu0 %v14348_v11  ;;  %v14434_v7 = vunpack.c.h.s8.bf16 %v3684_v59  ;;  %v14374_v61 = vunpack.c.l.s8.bf16 %v3492_v57 }
 0x4fd   : > { %14351 = vmatprep.subr.bf16.mxu0 %v14350_v13  ;;  %14413 = vmatpush1.bf16.msra.mxu1 %v14412_v14  ;;  %v14372_v14 = vunpack.c.h.s8.bf16 %v3491_v26 }
 0x4fe   : > { %v3095_v29 = vmul.f32 0.125, %v3052_v3  ;;  %v3058_v30 = vadd.f32 %v3057_v22, %v3056_v15  ;;  %14415 = vmatprep.subr.bf16.mxu1 %v14414_v19  ;;  %v14436_v15 = vunpack.c.h.s8.bf16 %v3683_v8  ;;  %v14438_v3 = vunpack.c.l.s8.bf16 %v3684_v59  ;;  %v3660_v22 = vld [vmem:[%s18692_s6 + $0xa88] sm:$0xff] }
 0x500   : > { %v18806_v32 = vsub.f32 %v2617_v46, %v3095_v29  ;;  %v3096_v33 = vmul.f32 0.125, %v3058_v30  ;;  %14353 = vmatpush1.bf16.msra.mxu0 %v14352_v23  ;;  %v14440_v29 = vunpack.c.l.s8.bf16 %v3683_v8  ;;  %v14442_v30 = vunpack.c.h.s8.bf16 %v3660_v22 }
 0x501   : > { %14355 = vmatprep.subr.bf16.mxu0 %v14354_v24  ;;  %14417 = vmatpush1.bf16.msra.mxu1 %v14416_v28  ;;  %v14376_v24 = vunpack.c.l.s8.bf16 %v3491_v26  ;;  %v3467_v28 = vld [vmem:[%s18692_s6 + $0x480] sm:$0xff] }
 0x502   : > { %v3111_v37 = vmul.f32 %v18806_v32, %v18806_v32  ;;  %v18810_v38 = vsub.f32 %v2619_v54, %v3096_v33  ;;  %14419 = vmatprep.subr.bf16.mxu1 %v14418_v18  ;;  %v14428_v54 = vunpack.c.h.s8.bf16 %v3515_v49  ;;  %v3659_v18 = vld [vmem:[%s18692_s6 + $0xa80] sm:$0xff]  ;;  %v14380_v31 = vunpack.c.h.s8.bf16 %v3467_v28 }
 0x503   : > { %v14382_v33 = vunpack.c.l.s8.bf16 %v3468_v20  ;;  %v14384_v39 = vunpack.c.l.s8.bf16 %v3467_v28  ;;  %v14452_v49 = vunpack.c.h.s8.bf16 %v3635_v45 }
 0x504   : > { %v3119_v42 = vrot.slane %v3111_v37, 4  ;;  %v3112_v21 = vmul.f32 %v18810_v38, %v18810_v38  ;;  %14357 = vmatpush1.bf16.msra.mxu0 %v14356_v34  ;;  %v14444_v34 = vunpack.c.h.s8.bf16 %v3659_v18 }
 0x505   : > { %14359 = vmatprep.subr.bf16.mxu0 %v14358_v35  ;;  %14421 = vmatpush1.bf16.msra.mxu1 %v14420_v36  ;;  %v3444_v35 = vld [vmem:[%s18692_s6 + $0x3c8] sm:$0xff]  ;;  %v14446_v36 = vunpack.c.l.s8.bf16 %v3660_v22  ;;  %v3779_v22 = vld [vmem:[%s18692_s6 + $0xe40] sm:$0xff] }
 0x506   : > { %v3120_v46 = vadd.f32 %v3119_v42, %v3111_v37  ;;  %v3125_v47 = vrot.slane %v3112_v21, 4  ;;  %14423 = vmatprep.subr.bf16.mxu1 %v14422_v40  ;;  %v3636_v37 = vld [vmem:[%s18692_s6 + $0x9c8] sm:$0xff]  ;;  %v18828_v40 = vld [vmem:[#allocation22] sm:$0xff]  ;;  %v14386_v41 = vunpack.c.h.s8.bf16 %v3444_v35  ;;  %v3443_v42 = vld [vmem:[%s18692_s6 + $0x3c0] sm:$0xff] }
 0x507   : > { %v14392_v59 = vunpack.c.l.s8.bf16 %v3443_v42 }
 0x508   : > { %v3121_v50 = vrot.slane %v3120_v46, 2  ;;  %v3126_v51 = vadd.f32 %v3125_v47, %v3112_v21  ;;  %14361 = vmatpush1.bf16.msra.mxu0 %v14360_v43  ;;  %v14448_v21 = vunpack.c.l.s8.bf16 %v3659_v18  ;;  %v3184_v43 = vrot.slane %v18828_v40, %v18728_v12  ;;  %v18836_v47 = vld [vmem:[#allocation24] sm:$0xff] }
 0x509   : > { %14363 = vmatprep.subr.bf16.mxu0 %v14362_v44  ;;  %14425 = vmatpush1.bf16.msra.mxu1 %v14424_v25  ;;  %v14450_v44 = vunpack.c.h.s8.bf16 %v3636_v37  ;;  %v3180_v25 = vrot.slane %v18828_v40, %v18725_v10 }
 0x50a   : > { %v3122_v55 = vadd.f32 %v3121_v50, %v3120_v46  ;;  %v3127_v56 = vrot.slane %v3126_v51, 2  ;;  %14427 = vmatprep.subr.bf16.mxu1 %v14426_v48  ;;  %v14388_v46 = vunpack.c.h.s8.bf16 %v3443_v42  ;;  %v14390_v48 = vunpack.c.l.s8.bf16 %v3444_v35 }
 0x50b   : > { %v3217_v57 = vmul.f32 %v3180_v25, %v18806_v32  ;;  %v3755_v25 = vld [vmem:[%s18692_s6 + $0xd80] sm:$0xff] }
 0x50c   : > { %v3123_v62 = vrot.slane %v3122_v55, 1  ;;  %v3128_v63 = vadd.f32 %v3127_v56, %v3126_v51  ;;  %14365 = vmatpush1.bf16.msra.mxu0 %v14364_v52  ;;  %v3218_v51 = vmul.f32 %v3184_v43, %v18810_v38  ;;  %v3258_v52 = vrot.slane %v18836_v47, %v18728_v12  ;;  %v3612_v56 = vld [vmem:[%s18692_s6 + $0x908] sm:$0xff] }
 0x50d   : > { %14367 = vmatprep.subr.bf16.mxu0 %v14366_v53  ;;  %14429 = vmatpush1.bf16.msra.mxu1 %v14428_v54  ;;  %v3420_v53 = vld [vmem:[%s18692_s6 + $0x308] sm:$0xff]  ;;  %v14454_v54 = vunpack.c.l.s8.bf16 %v3636_v37 }
 0x50e   : > { %v3124_v60 = vadd.f32 %v3123_v62, %v3122_v55  ;;  %v3129_v17 = vrot.slane %v3128_v63, 1  ;;  %14431 = vmatprep.subr.bf16.mxu1 %v14430_v58  ;;  %v14394_v62 = vunpack.c.h.s8.bf16 %v3420_v53 }
 0x510   : > { %v3167_v11 = vmul.f32 0.125, %v3124_v60  ;;  %v3130_v13 = vadd.f32 %v3129_v17, %v3128_v63  ;;  %14369 = vmatpush1.bf16.msra.mxu0 %v14368_v0  ;;  %v3419_v63 = vld [vmem:[%s18692_s6 + $0x300] sm:$0xff]  ;;  %v14456_v0 = vunpack.c.l.s8.bf16 %v3635_v45 }
 0x511   : > { %14371 = vmatprep.subr.bf16.mxu0 %v14370_v1  ;;  %14433 = vmatpush1.bf16.msra.mxu1 %v14432_v6  ;;  %v3254_v1 = vrot.slane %v18836_v47, %v18725_v10  ;;  %v14458_v6 = vunpack.c.h.s8.bf16 %v3612_v56  ;;  %v3611_v60 = vld [vmem:[%s18692_s6 + $0x900] sm:$0xff]  ;;  %v14396_v32 = vunpack.c.h.s8.bf16 %v3419_v63 }
 0x512   : > { %v3225_v16 = vadd.f32 0.8, %v3167_v11  ;;  %v3168_v19 = vmul.f32 0.125, %v3130_v13  ;;  %14435 = vmatprep.subr.bf16.mxu1 %v14434_v7  ;;  %v14398_v7 = vunpack.c.l.s8.bf16 %v3420_v53  ;;  %v14460_v8 = vunpack.c.h.s8.bf16 %v3611_v60  ;;  %v3732_v53 = vld [vmem:[%s18692_s6 + $0xcc8] sm:$0xff] }
 0x513   : > { %v14464_v20 = vunpack.c.l.s8.bf16 %v3611_v60  ;;  %v3708_v60 = vld [vmem:[%s18692_s6 + $0xc08] sm:$0xff] }
 0x514   : > { %v3226_v23 = vadd.f32 0.8, %v3168_v19  ;;  %14373 = vmatpush2.bf16.msra.mxu0 %v14372_v14  ;;  %17640 = vrsqrt.f32 %v3225_v16  ;;  %v14462_v14 = vunpack.c.l.s8.bf16 %v3612_v56  ;;  %v14400_v16 = vunpack.c.l.s8.bf16 %v3419_v63 }
 0x515   : > { %14375 = vmatprep.subr.bf16.mxu0 %v14374_v61  ;;  %14437 = vmatpush2.bf16.msra.mxu1 %v14436_v15  ;;  %v3780_v61 = vld [vmem:[%s18692_s6 + $0xe48] sm:$0xff]  ;;  %v2450_v15 = vrot.slane %v18786_v2, %v18745_v4  ;;  %v2454_v19 = vrot.slane %v18786_v2, %v18748_v5  ;;  %v14480_v56 = vunpack.c.l.s8.bf16 %v3755_v25 }
 0x516   : > { %17642 = vrsqrt.f32 %v3226_v23  ;;  %14439 = vmatprep.subr.bf16.mxu1 %v14438_v3  ;;  %v14466_v3 = vunpack.c.h.s8.bf16 %v3780_v61  ;;  %v14470_v35 = vunpack.c.l.s8.bf16 %v3780_v61  ;;  %v3707_v61 = vld [vmem:[%s18692_s6 + $0xc00] sm:$0xff] }
 0x518   : > { %14377 = vmatpush2.bf16.msra.mxu0 %v14376_v24 }
 0x519   : > { %14379 = vmatprep.subr.bf16.mxu0 %v14378_v27  ;;  %14441 = vmatpush2.bf16.msra.mxu1 %v14440_v29  ;;  %v18858_v27 = vld [vmem:[%s18692_s6 + $0x1448] sm:$0xff] }
 0x51a   : > { %14443 = vmatprep.subr.bf16.mxu1 %v14442_v30  ;;  %v14530_v30 = vunpack.c.h.s8.bf16 %v18858_v27 }
 0x51c   : > { %14381 = vmatpush2.bf16.msra.mxu0 %v14380_v31  ;;  %v14468_v31 = vunpack.c.h.s8.bf16 %v3779_v22 }
 0x51d   : > { %14383 = vmatprep.subr.bf16.mxu0 %v14382_v33  ;;  %14445 = vmatpush2.bf16.msra.mxu1 %v14444_v34 }
 0x51e   : > { %14447 = vmatprep.subr.bf16.mxu1 %v14446_v36 }
 0x520   : > { %14385 = vmatpush2.bf16.msra.mxu0 %v14384_v39  ;;  %v3756_v39 = vld [vmem:[%s18692_s6 + $0xd88] sm:$0xff] }
 0x521   : > { %14387 = vmatprep.subr.bf16.mxu0 %v14386_v41  ;;  %14449 = vmatpush2.bf16.msra.mxu1 %v14448_v21  ;;  %v17641_v50 = vpop.eup %17640  ;;  %v14472_v21 = vunpack.c.l.s8.bf16 %v3779_v22  ;;  %v14474_v45 = vunpack.c.h.s8.bf16 %v3756_v39  ;;  %v14494_v22 = vunpack.c.l.s8.bf16 %v3708_v60 }
 0x522   : > { %14451 = vmatprep.subr.bf16.mxu1 %v14450_v44  ;;  %v3241_v38 = vmul.f32 %v17641_v50, %v3217_v57 }
 0x523   : > { %v17643_v55 = vpop.eup %17642 }
 0x524   : > { %v3242_v58 = vmul.f32 %v17643_v55, %v3218_v51  ;;  %14389 = vmatpush2.bf16.msra.mxu0 %v14388_v46  ;;  %v3291_v11 = vadd.f32 %v3254_v1, %v3241_v38 }
 0x525   : > { %14391 = vmatprep.subr.bf16.mxu0 %v14390_v48  ;;  %14453 = vmatpush2.bf16.msra.mxu1 %v14452_v49  ;;  %v14476_v49 = vunpack.c.h.s8.bf16 %v3755_v25 }
 0x526   : > { %v3292_v26 = vadd.f32 %v3258_v52, %v3242_v58  ;;  %14455 = vmatprep.subr.bf16.mxu1 %v14454_v54  ;;  %v3307_v23 = vmul.f32 0.2, %v3291_v11  ;;  %vm3299_vm10 = vcmp.ge.f32.partialorder %v3291_v11, 0.0  ;;  %v14478_v52 = vunpack.c.l.s8.bf16 %v3756_v39 }
 0x528   : > { %vm3300_vm9 = vcmp.ge.f32.partialorder %v3292_v26, 0.0  ;;  %v3308_v17 = vmul.f32 0.2, %v3292_v26  ;;  %14393 = vmatpush2.bf16.msra.mxu0 %v14392_v59  ;;  %v18861_v36 = vsel %vm3299_vm10, %v3291_v11, %v3307_v23  ;;  %v14482_v59 = vunpack.c.h.s8.bf16 %v3732_v53  ;;  %v3876_v23 = vld [vmem:[%s18692_s6 + $0x1148] sm:$0xff] }
 0x529   : > { %14395 = vmatprep.subr.bf16.mxu0 %v14394_v62  ;;  %14457 = vmatpush2.bf16.msra.mxu1 %v14456_v0  ;;  %v3731_v62 = vld [vmem:[%s18692_s6 + $0xcc0] sm:$0xff] }
 0x52a   : > { %v18848_v13 = vsel %vm3300_vm9, %v3292_v26, %v3308_v17  ;;  %14459 = vmatprep.subr.bf16.mxu1 %v14458_v6  ;;  %v14484_v38 = vunpack.c.h.s8.bf16 %v3731_v62  ;;  %v14486_v6 = vunpack.c.l.s8.bf16 %v3732_v53  ;;  %v3188_v53 = vrot.slane %v18828_v40, %v18745_v4 }
 0x52b   : > { %10299 = vmatprep.mubr.f32.mxu0 %v18848_v13 }
 0x52c   : > { %14397 = vmatpush2.bf16.msra.mxu0 %v14396_v32 }
 0x52d   : > { %14399 = vmatprep.subr.bf16.mxu0 %v14398_v7  ;;  %14461 = vmatpush2.bf16.msra.mxu1 %v14460_v8  ;;  %v14488_v7 = vunpack.c.l.s8.bf16 %v3731_v62 }
 0x52e   : > { %v2687_v24 = vpop.f32.mrf.mxu0  ;;  %14463 = vmatprep.subr.bf16.mxu1 %v14462_v14  ;;  %v14490_v14 = vunpack.c.h.s8.bf16 %v3708_v60 }
 0x52f   : > { %v2688_v28 = vadd.f32 %v2687_v24, %v2450_v15  ;;  %v2758_v29 = vpop.f32.mrf.mxu1 }
 0x530   : > { %14401 = vmatpush2.bf16.msra.mxu0 %v14400_v16  ;;  %v2689_v18 = vpop.f32.mrf.mxu0 }
 0x531   : > { %v2759_v33 = vadd.f32 %v2758_v29, %v2688_v28  ;;  %v2690_v34 = vadd.f32 %v2689_v18, %v2454_v19  ;;  %14465 = vmatpush2.bf16.msra.mxu1 %v14464_v20  ;;  %14467 = vmatprep.subr.bf16.mxu0 %v14466_v3  ;;  %v2760_v37 = vpop.f32.mrf.mxu1  ;;  %v14492_v19 = vunpack.c.h.s8.bf16 %v3707_v61  ;;  %v14496_v29 = vunpack.c.l.s8.bf16 %v3707_v61  ;;  %v3971_v61 = vld [vmem:[%s18692_s6 + $0x1440] sm:$0xff] }
 0x532   : > { %14531 = vmatprep.subr.bf16.mxu1 %v14530_v30 }
 0x533   : > { %v3059_v41 = vrot.slane %v2759_v33, 4  ;;  %10300 = vmatmul.mubr.f32.vlgmr.msra.gmra.mxu0 %v18861_v36  ;;  %v2761_v42 = vadd.f32 %v2760_v37, %v2690_v34 }
 0x534   : > { %14469 = vmatpush1.bf16.msra.mxu0 %v14468_v31  ;;  %v14498_v31 = vunpack.c.h.s8.bf16 %v3876_v23 }
 0x535   : > { %v3060_v43 = vadd.f32 %v3059_v41, %v2759_v33  ;;  %v3065_v44 = vrot.slane %v2761_v42, 4  ;;  %14471 = vmatprep.subr.bf16.mxu0 %v14470_v35 }
 0x537   : > { %v3061_v46 = vrot.slane %v3060_v43, 2  ;;  %v3066_v48 = vadd.f32 %v3065_v44, %v2761_v42 }
 0x538   : > { %14473 = vmatpush1.bf16.msra.mxu0 %v14472_v21  ;;  %v3852_v21 = vld [vmem:[%s18692_s6 + $0x1088] sm:$0xff] }
 0x539   : > { %v3062_v50 = vadd.f32 %v3061_v46, %v3060_v43  ;;  %v3067_v51 = vrot.slane %v3066_v48, 2  ;;  %14475 = vmatprep.subr.bf16.mxu0 %v14474_v45  ;;  %v14506_v46 = vunpack.c.h.s8.bf16 %v3852_v21 }
 0x53b   : > { %v3063_v54 = vrot.slane %v3062_v50, 1  ;;  %v3068_v55 = vadd.f32 %v3067_v51, %v3066_v48  ;;  %v3851_v48 = vld [vmem:[%s18692_s6 + $0x1080] sm:$0xff]  ;;  %v3828_v51 = vld [vmem:[%s18692_s6 + $0xfc8] sm:$0xff] }
 0x53c   : > { %14477 = vmatpush1.bf16.msra.mxu0 %v14476_v49  ;;  %v14508_v49 = vunpack.c.h.s8.bf16 %v3851_v48  ;;  %v14518_v62 = vunpack.c.l.s8.bf16 %v3828_v51 }
 0x53d   : > { %v3064_v57 = vadd.f32 %v3063_v54, %v3062_v50  ;;  %v3069_v58 = vrot.slane %v3068_v55, 1  ;;  %14479 = vmatprep.subr.bf16.mxu0 %v14478_v52  ;;  %v14510_v50 = vunpack.c.l.s8.bf16 %v3852_v21  ;;  %v14512_v52 = vunpack.c.l.s8.bf16 %v3851_v48  ;;  %v3924_v48 = vld [vmem:[%s18692_s6 + $0x12c8] sm:$0xff] }
 0x53e   : > { %v14514_v54 = vunpack.c.h.s8.bf16 %v3828_v51 }
 0x53f   : > { %v3097_v63 = vmul.f32 0.125, %v3064_v57  ;;  %v3070_v0 = vadd.f32 %v3069_v58, %v3068_v55  ;;  %v3827_v55 = vld [vmem:[%s18692_s6 + $0xfc0] sm:$0xff] }
 0x540   : > { %14481 = vmatpush1.bf16.msra.mxu0 %v14480_v56  ;;  %v3192_v56 = vrot.slane %v18828_v40, %v18748_v5  ;;  %v14516_v57 = vunpack.c.h.s8.bf16 %v3827_v55 }
 0x541   : > { %v18868_v1 = vsub.f32 %v2759_v33, %v3097_v63  ;;  %v3098_v26 = vmul.f32 0.125, %v3070_v0  ;;  %14483 = vmatprep.subr.bf16.mxu0 %v14482_v59  ;;  %v3875_v33 = vld [vmem:[%s18692_s6 + $0x1140] sm:$0xff]  ;;  %v3262_v59 = vrot.slane %v18836_v47, %v18745_v4  ;;  %v3804_v0 = vld [vmem:[%s18692_s6 + $0xf08] sm:$0xff] }
 0x542   : > { %v14500_v37 = vunpack.c.h.s8.bf16 %v3875_v33  ;;  %v14504_v45 = vunpack.c.l.s8.bf16 %v3875_v33 }
 0x543   : > { %v3113_v17 = vmul.f32 %v18868_v1, %v18868_v1  ;;  %v18873_v32 = vsub.f32 %v2761_v42, %v3098_v26  ;;  %v14502_v42 = vunpack.c.l.s8.bf16 %v3876_v23  ;;  %v3219_v58 = vmul.f32 %v3188_v53, %v18868_v1 }
 0x544   : > { %14485 = vmatpush1.bf16.msra.mxu0 %v14484_v38  ;;  %v14546_v53 = vunpack.c.h.s8.bf16 %v3924_v48 }
 0x545   : > { %v3131_v8 = vrot.slane %v3113_v17, 4  ;;  %v3114_v11 = vmul.f32 %v18873_v32, %v18873_v32  ;;  %14487 = vmatprep.subr.bf16.mxu0 %v14486_v6  ;;  %v3220_v26 = vmul.f32 %v3192_v56, %v18873_v32  ;;  %v3266_v6 = vrot.slane %v18836_v47, %v18748_v5 }
 0x547   : > { %v3132_v15 = vadd.f32 %v3131_v8, %v3113_v17  ;;  %v3137_v16 = vrot.slane %v3114_v11, 4  ;;  %v14520_v17 = vunpack.c.l.s8.bf16 %v3827_v55  ;;  %v14522_v8 = vunpack.c.h.s8.bf16 %v3804_v0 }
 0x548   : > { %14489 = vmatpush1.bf16.msra.mxu0 %v14488_v7 }
 0x549   : > { %v3133_v20 = vrot.slane %v3132_v15, 2  ;;  %v3138_v3 = vadd.f32 %v3137_v16, %v3114_v11  ;;  %14491 = vmatprep.subr.bf16.mxu0 %v14490_v14  ;;  %v3803_v11 = vld [vmem:[%s18692_s6 + $0xf00] sm:$0xff]  ;;  %v18898_v16 = vsub.s32 4, %v18722_v9 }
 0x54a   : > { %v14524_v32 = vunpack.c.h.s8.bf16 %v3803_v11 }
 0x54b   : > { %v3134_v24 = vadd.f32 %v3133_v20, %v3132_v15  ;;  %v3139_v28 = vrot.slane %v3138_v3, 2  ;;  %v14526_v20 = vunpack.c.l.s8.bf16 %v3804_v0 }
 0x54c   : > { %14493 = vmatpush1.bf16.msra.mxu0 %v14492_v19 }
 0x54d   : > { %v3135_v30 = vrot.slane %v3134_v24, 1  ;;  %v3140_v18 = vadd.f32 %v3139_v28, %v3138_v3  ;;  %14495 = vmatprep.subr.bf16.mxu0 %v14494_v22  ;;  %v18901_v3 = vld [vmem:[%s18692_s6 + $0x258] sm:$0xff]  ;;  %v14532_v22 = vunpack.c.h.s8.bf16 %v3971_v61  ;;  %v14534_v28 = vunpack.c.l.s8.bf16 %v18858_v27 }
 0x54e   : > { %v14594_v33 = vunpack.c.h.s8.bf16 %v18901_v3 }
 0x54f   : > { %v3136_v34 = vadd.f32 %v3135_v30, %v3134_v24  ;;  %v3141_v35 = vrot.slane %v3140_v18, 1  ;;  %v18906_v24 = vsub.s32 5, %v18722_v9  ;;  %v14528_v30 = vunpack.c.l.s8.bf16 %v3803_v11 }
 0x550   : > { %14497 = vmatpush1.bf16.msra.mxu0 %v14496_v29 }
 0x551   : > { %v3169_v39 = vmul.f32 0.125, %v3136_v34  ;;  %v3142_v41 = vadd.f32 %v3141_v35, %v3140_v18  ;;  %14499 = vmatprep.subr.bf16.mxu0 %v14498_v31  ;;  %v3948_v18 = vld [vmem:[%s18692_s6 + $0x1388] sm:$0xff]  ;;  %v2458_v31 = vrot.slane %v18786_v2, %v18898_v16  ;;  %v14536_v34 = vunpack.c.l.s8.bf16 %v3971_v61 }
 0x552   : > { %v2462_v27 = vrot.slane %v18786_v2, %v18906_v24  ;;  %v14538_v35 = vunpack.c.h.s8.bf16 %v3948_v18 }
 0x553   : > { %v3227_v43 = vadd.f32 0.8, %v3169_v39  ;;  %v3170_v44 = vmul.f32 0.125, %v3142_v41 }
 0x554   : > { %14501 = vmatpush2.bf16.msra.mxu0 %v14500_v37  ;;  %v3947_v37 = vld [vmem:[%s18692_s6 + $0x1380] sm:$0xff] }
 0x555   : > { %17644 = vrsqrt.f32 %v3227_v43  ;;  %v3228_v25 = vadd.f32 0.8, %v3170_v44  ;;  %14503 = vmatprep.subr.bf16.mxu0 %v14502_v42  ;;  %v14540_v43 = vunpack.c.h.s8.bf16 %v3947_v37 }
 0x557   : > { %17646 = vrsqrt.f32 %v3228_v25  ;;  %v14542_v25 = vunpack.c.l.s8.bf16 %v3948_v18 }
 0x558   : > { %14505 = vmatpush2.bf16.msra.mxu0 %v14504_v45 }
 0x559   : > { %14507 = vmatprep.subr.bf16.mxu0 %v14506_v46 }
 0x55c   : > { %14509 = vmatpush2.bf16.msra.mxu0 %v14508_v49 }
 0x55d   : > { %14511 = vmatprep.subr.bf16.mxu0 %v14510_v50  ;;  %v14544_v50 = vunpack.c.l.s8.bf16 %v3947_v37 }
 0x560   : > { %14513 = vmatpush2.bf16.msra.mxu0 %v14512_v52 }
 0x561   : > { %14515 = vmatprep.subr.bf16.mxu0 %v14514_v54  ;;  %v3923_v54 = vld [vmem:[%s18692_s6 + $0x12c0] sm:$0xff] }
 0x562   : > { %v17645_v63 = vpop.eup %17644 }
 0x563   : > { %v3243_v38 = vmul.f32 %v17645_v63, %v3219_v58  ;;  %v3900_v63 = vld [vmem:[%s18692_s6 + $0x1208] sm:$0xff] }
 0x564   : > { %v17647_v60 = vpop.eup %17646  ;;  %14517 = vmatpush2.bf16.msra.mxu0 %v14516_v57  ;;  %v14548_v57 = vunpack.c.h.s8.bf16 %v3923_v54 }
 0x565   : > { %v3293_v7 = vadd.f32 %v3262_v59, %v3243_v38  ;;  %v3244_v1 = vmul.f32 %v17647_v60, %v3220_v26  ;;  %14519 = vmatprep.subr.bf16.mxu0 %v14518_v62  ;;  %v14550_v62 = vunpack.c.l.s8.bf16 %v3924_v48  ;;  %v14552_v26 = vunpack.c.l.s8.bf16 %v3923_v54 }
 0x567   : > { %v3294_v14 = vadd.f32 %v3266_v6, %v3244_v1  ;;  %v3309_v15 = vmul.f32 0.2, %v3293_v7  ;;  %vm3301_vm11 = vcmp.ge.f32.partialorder %v3293_v7, 0.0 }
 0x568   : > { %14521 = vmatpush2.bf16.msra.mxu0 %v14520_v17  ;;  %v14554_v17 = vunpack.c.h.s8.bf16 %v3900_v63 }
 0x569   : > { %vm3302_vm12 = vcmp.ge.f32.partialorder %v3294_v14, 0.0  ;;  %v3310_v19 = vmul.f32 0.2, %v3294_v14  ;;  %14523 = vmatprep.subr.bf16.mxu0 %v14522_v8  ;;  %v18909_v29 = vsel %vm3301_vm11, %v3293_v7, %v3309_v15  ;;  %v3899_v7 = vld [vmem:[%s18692_s6 + $0x1200] sm:$0xff]  ;;  %v14558_v15 = vunpack.c.l.s8.bf16 %v3900_v63 }
 0x56a   : > { %v14556_v11 = vunpack.c.h.s8.bf16 %v3899_v7 }
 0x56b   : > { %v18903_v23 = vsel %vm3302_vm12, %v3294_v14, %v3310_v19 }
 0x56c   : > { %10370 = vmatprep.mubr.f32.mxu1 %v18903_v23  ;;  %14525 = vmatpush2.bf16.msra.mxu0 %v14524_v32  ;;  %v4068_v32 = vld [vmem:[%s18692_s6 + $0x1748] sm:$0xff] }
 0x56d   : > { %10371 = vmatmul.mubr.f32.vlgmr.msra.gmra.mxu1 %v18909_v29  ;;  %14527 = vmatprep.subr.bf16.mxu0 %v14526_v20  ;;  %v14562_v18 = vunpack.c.h.s8.bf16 %v4068_v32 }
 0x56e   : > { %14533 = vmatpush1.bf16.msra.mxu1 %v14532_v22  ;;  %v14560_v22 = vunpack.c.l.s8.bf16 %v3899_v7 }
 0x56f   : > { %14535 = vmatprep.subr.bf16.mxu1 %v14534_v28 }
 0x570   : > { %v2829_v39 = vpop.f32.mrf.mxu0  ;;  %14529 = vmatpush2.bf16.msra.mxu0 %v14528_v30 }
 0x571   : > { %v2830_v41 = vadd.f32 %v2829_v39, %v2458_v31  ;;  %v2900_v42 = vpop.f32.mrf.mxu1  ;;  %14595 = vmatprep.subr.bf16.mxu0 %v14594_v33  ;;  %v4067_v31 = vld [vmem:[%s18692_s6 + $0x1740] sm:$0xff]  ;;  %v14566_v39 = vunpack.c.l.s8.bf16 %v4068_v32 }
 0x572   : > { %v2831_v21 = vpop.f32.mrf.mxu0  ;;  %14537 = vmatpush1.bf16.msra.mxu1 %v14536_v34 }
 0x573   : > { %v2901_v44 = vadd.f32 %v2900_v42, %v2830_v41  ;;  %v2832_v45 = vadd.f32 %v2831_v21, %v2462_v27  ;;  %14539 = vmatprep.subr.bf16.mxu1 %v14538_v35  ;;  %v2902_v46 = vpop.f32.mrf.mxu1  ;;  %v14564_v27 = vunpack.c.h.s8.bf16 %v4067_v31  ;;  %v4044_v41 = vld [vmem:[%s18692_s6 + $0x1688] sm:$0xff] }
 0x575   : > { %v3071_v2 = vrot.slane %v2901_v44, 4  ;;  %v2903_v49 = vadd.f32 %v2902_v46, %v2832_v45  ;;  %v4043_v46 = vld [vmem:[%s18692_s6 + $0x1680] sm:$0xff] }
 0x576   : > { %14541 = vmatpush1.bf16.msra.mxu1 %v14540_v43  ;;  %v14568_v43 = vunpack.c.l.s8.bf16 %v4067_v31 }
 0x577   : > { %v3072_v51 = vadd.f32 %v3071_v2, %v2901_v44  ;;  %v3077_v52 = vrot.slane %v2903_v49, 4  ;;  %14543 = vmatprep.subr.bf16.mxu1 %v14542_v25  ;;  %v14570_v25 = vunpack.c.h.s8.bf16 %v4044_v41 }
 0x579   : > { %v3073_v55 = vrot.slane %v3072_v51, 2  ;;  %v3078_v56 = vadd.f32 %v3077_v52, %v2903_v49  ;;  %v14574_v52 = vunpack.c.l.s8.bf16 %v4044_v41  ;;  %v18961_v41 = vsub.s32 7, %v18722_v9 }
 0x57a   : > { %14545 = vmatpush1.bf16.msra.mxu1 %v14544_v50 }
 0x57b   : > { %v3074_v58 = vadd.f32 %v3073_v55, %v3072_v51  ;;  %v3079_v59 = vrot.slane %v3078_v56, 2  ;;  %14547 = vmatprep.subr.bf16.mxu1 %v14546_v53  ;;  %v4020_v53 = vld [vmem:[%s18692_s6 + $0x15c8] sm:$0xff] }
 0x57c   : > { %v14582_v63 = vunpack.c.l.s8.bf16 %v4020_v53 }
 0x57d   : > { %v3075_v0 = vrot.slane %v3074_v58, 1  ;;  %v3080_v38 = vadd.f32 %v3079_v59, %v3078_v56  ;;  %v14576_v56 = vunpack.c.l.s8.bf16 %v4043_v46  ;;  %v4019_v59 = vld [vmem:[%s18692_s6 + $0x15c0] sm:$0xff] }
 0x57e   : > { %14549 = vmatpush1.bf16.msra.mxu1 %v14548_v57 }
 0x57f   : > { %v3076_v6 = vadd.f32 %v3075_v0, %v3074_v58  ;;  %v3081_v60 = vrot.slane %v3080_v38, 1  ;;  %14551 = vmatprep.subr.bf16.mxu1 %v14550_v62  ;;  %v14578_v58 = vunpack.c.h.s8.bf16 %v4020_v53  ;;  %v14580_v62 = vunpack.c.h.s8.bf16 %v4019_v59  ;;  %v3996_v0 = vld [vmem:[%s18692_s6 + $0x1508] sm:$0xff] }
 0x581   : > { %v3099_v1 = vmul.f32 0.125, %v3076_v6  ;;  %v3082_v8 = vadd.f32 %v3081_v60, %v3080_v38  ;;  %v14584_v38 = vunpack.c.l.s8.bf16 %v4019_v59  ;;  %v14586_v6 = vunpack.c.h.s8.bf16 %v3996_v0  ;;  %v3995_v60 = vld [vmem:[%s18692_s6 + $0x1500] sm:$0xff] }
 0x582   : > { %14553 = vmatpush1.bf16.msra.mxu1 %v14552_v26  ;;  %v3196_v26 = vrot.slane %v18828_v40, %v18898_v16  ;;  %v14588_v7 = vunpack.c.h.s8.bf16 %v3995_v60 }
 0x583   : > { %v18924_v14 = vsub.f32 %v2901_v44, %v3099_v1  ;;  %v3100_v61 = vmul.f32 0.125, %v3082_v8  ;;  %14555 = vmatprep.subr.bf16.mxu1 %v14554_v17  ;;  %v3200_v17 = vrot.slane %v18828_v40, %v18906_v24  ;;  %v3270_v8 = vrot.slane %v18836_v47, %v18898_v16 }
 0x585   : > { %v3115_v19 = vmul.f32 %v18924_v14, %v18924_v14  ;;  %v18929_v20 = vsub.f32 %v2903_v49, %v3100_v61  ;;  %v14572_v49 = vunpack.c.h.s8.bf16 %v4043_v46  ;;  %v3221_v1 = vmul.f32 %v3196_v26, %v18924_v14 }
 0x586   : > { %14557 = vmatpush1.bf16.msra.mxu1 %v14556_v11  ;;  %v14590_v11 = vunpack.c.l.s8.bf16 %v3996_v0 }
 0x587   : > { %v3143_v28 = vrot.slane %v3115_v19, 4  ;;  %v3116_v30 = vmul.f32 %v18929_v20, %v18929_v20  ;;  %14559 = vmatprep.subr.bf16.mxu1 %v14558_v15  ;;  %v18948_v15 = vld [vmem:[%s18692_s6 + $0x858] sm:$0xff] }
 0x588   : > { %v14658_v31 = vunpack.c.h.s8.bf16 %v18948_v15 }
 0x589   : > { %v3144_v33 = vadd.f32 %v3143_v28, %v3115_v19  ;;  %v3149_v34 = vrot.slane %v3116_v30, 4  ;;  %v3222_v19 = vmul.f32 %v3200_v17, %v18929_v20  ;;  %v18956_v20 = vsub.s32 6, %v18722_v9 }
 0x58a   : > { %14561 = vmatpush1.bf16.msra.mxu1 %v14560_v22  ;;  %v3274_v22 = vrot.slane %v18836_v47, %v18906_v24 }
 0x58b   : > { %v3145_v35 = vrot.slane %v3144_v33, 2  ;;  %v3150_v37 = vadd.f32 %v3149_v34, %v3116_v30  ;;  %14563 = vmatprep.subr.bf16.mxu1 %v14562_v18  ;;  %v14592_v30 = vunpack.c.l.s8.bf16 %v3995_v60  ;;  %v3397_v34 = vld [vmem:[%s18692_s6 + $0x250] sm:$0xff] }
 0x58d   : > { %v3146_v42 = vadd.f32 %v3145_v35, %v3144_v33  ;;  %v3151_v21 = vrot.slane %v3150_v37, 2 }
 0x58e   : > { %14565 = vmatpush2.bf16.msra.mxu1 %v14564_v27 }
 0x58f   : > { %v3147_v44 = vrot.slane %v3146_v42, 1  ;;  %v3152_v45 = vadd.f32 %v3151_v21, %v3150_v37  ;;  %14567 = vmatprep.subr.bf16.mxu1 %v14566_v39  ;;  %v14596_v37 = vunpack.c.h.s8.bf16 %v3397_v34 }
 0x591   : > { %v3148_v48 = vadd.f32 %v3147_v44, %v3146_v42  ;;  %v3153_v2 = vrot.slane %v3152_v45, 1  ;;  %v14598_v42 = vunpack.c.l.s8.bf16 %v18901_v3  ;;  %v17704_v44 = vld [vmem:[#allocation21] sm:$0xff]  ;;  %v3373_v3 = vld [vmem:[%s18692_s6 + $0x190] sm:$0xff] }
 0x592   : > { %14569 = vmatpush2.bf16.msra.mxu1 %v14568_v43  ;;  %v3374_v43 = vld [vmem:[%s18692_s6 + $0x198] sm:$0xff]  ;;  %v2470_v9 = vrot.slane %v17704_v44, %v18961_v41  ;;  %v14608_v59 = vunpack.c.l.s8.bf16 %v3373_v3 }
 0x593   : > { %v3171_v50 = vmul.f32 0.125, %v3148_v48  ;;  %v3154_v51 = vadd.f32 %v3153_v2, %v3152_v45  ;;  %14571 = vmatprep.subr.bf16.mxu1 %v14570_v25  ;;  %v2466_v45 = vrot.slane %v17704_v44, %v18956_v20  ;;  %v14600_v25 = vunpack.c.l.s8.bf16 %v3397_v34 }
 0x594   : > { %v14602_v46 = vunpack.c.h.s8.bf16 %v3374_v43 }
 0x595   : > { %v3229_v54 = vadd.f32 0.8, %v3171_v50  ;;  %v3172_v55 = vmul.f32 0.125, %v3154_v51  ;;  %v14604_v51 = vunpack.c.h.s8.bf16 %v3373_v3 }
 0x596   : > { %14573 = vmatpush2.bf16.msra.mxu1 %v14572_v49 }
 0x597   : > { %17648 = vrsqrt.f32 %v3229_v54  ;;  %v3230_v57 = vadd.f32 0.8, %v3172_v55  ;;  %14575 = vmatprep.subr.bf16.mxu1 %v14574_v52  ;;  %v14606_v54 = vunpack.c.l.s8.bf16 %v3374_v43 }
 0x599   : > { %17650 = vrsqrt.f32 %v3230_v57 }
 0x59a   : > { %14577 = vmatpush2.bf16.msra.mxu1 %v14576_v56  ;;  %v3350_v56 = vld [vmem:[%s18692_s6 + $0xd8] sm:$0xff] }
 0x59b   : > { %14579 = vmatprep.subr.bf16.mxu1 %v14578_v58  ;;  %v14610_v0 = vunpack.c.h.s8.bf16 %v3350_v56 }
 0x59e   : > { %14581 = vmatpush2.bf16.msra.mxu1 %v14580_v62 }
 0x59f   : > { %14583 = vmatprep.subr.bf16.mxu1 %v14582_v63 }
 0x5a2   : > { %14585 = vmatpush2.bf16.msra.mxu1 %v14584_v38  ;;  %v3349_v38 = vld [vmem:[%s18692_s6 + $0xd0] sm:$0xff] }
 0x5a3   : > { %14587 = vmatprep.subr.bf16.mxu1 %v14586_v6  ;;  %v14612_v60 = vunpack.c.h.s8.bf16 %v3349_v38 }
 0x5a4   : > { %v17649_v61 = vpop.eup %17648 }
 0x5a5   : > { %v3245_v32 = vmul.f32 %v17649_v61, %v3221_v1  ;;  %v14614_v1 = vunpack.c.l.s8.bf16 %v3350_v56 }
 0x5a6   : > { %v17651_v28 = vpop.eup %17650  ;;  %14589 = vmatpush2.bf16.msra.mxu1 %v14588_v7 }
 0x5a7   : > { %v3295_v18 = vadd.f32 %v3270_v8, %v3245_v32  ;;  %v3246_v14 = vmul.f32 %v17651_v28, %v3222_v19  ;;  %14591 = vmatprep.subr.bf16.mxu1 %v14590_v11  ;;  %v3326_v8 = vld [vmem:[%s18692_s6 + $0x18] sm:$0xff]  ;;  %v14616_v32 = vunpack.c.l.s8.bf16 %v3349_v38 }
 0x5a8   : > { %v14618_v28 = vunpack.c.h.s8.bf16 %v3326_v8 }
 0x5a9   : > { %v3296_v33 = vadd.f32 %v3274_v22, %v3246_v14  ;;  %v3311_v27 = vmul.f32 0.2, %v3295_v18  ;;  %vm3303_vm13 = vcmp.ge.f32.partialorder %v3295_v18, 0.0 }
 0x5aa   : > { %14593 = vmatpush2.bf16.msra.mxu1 %v14592_v30  ;;  %v3325_v30 = vld [vmem:[%s18692_s6 + $0x10] sm:$0xff] }
 0x5ab   : > { %vm3304_vm14 = vcmp.ge.f32.partialorder %v3296_v33, 0.0  ;;  %v3312_v35 = vmul.f32 0.2, %v3296_v33  ;;  %14659 = vmatprep.subr.bf16.mxu1 %v14658_v31  ;;  %v18964_v21 = vsel %vm3303_vm13, %v3295_v18, %v3311_v27  ;;  %v14620_v31 = vunpack.c.h.s8.bf16 %v3325_v30 }
 0x5ac   : > { %v14622_v27 = vunpack.c.l.s8.bf16 %v3326_v8  ;;  %v14624_v43 = vunpack.c.l.s8.bf16 %v3325_v30 }
 0x5ad   : > { %v18958_v39 = vsel %vm3304_vm14, %v3296_v33, %v3312_v35  ;;  %v3494_v35 = vld [vmem:[%s18692_s6 + $0x558] sm:$0xff] }
 0x5ae   : > { %10441 = vmatprep.mubr.f32.mxu0 %v18958_v39 }
 0x5af   : > { %10442 = vmatmul.mubr.f32.vlgmr.msra.gmra.mxu0 %v18964_v21 }
 0x5b0   : > { %14597 = vmatpush1.bf16.msra.mxu0 %v14596_v37  ;;  %10583 = vmatprep.mubr.f32.mxu0 %v18848_v13 }
 0x5b1   : > { %14599 = vmatprep.subr.bf16.mxu0 %v14598_v42 }
 0x5b2   : > { %v2971_v48 = vpop.f32.mrf.mxu0 }
 0x5b3   : > { %v2972_v2 = vadd.f32 %v2971_v48, %v2466_v45  ;;  %v3042_v49 = vpop.f32.mrf.mxu1 }
 0x5b4   : > { %v2973_v50 = vpop.f32.mrf.mxu0  ;;  %14601 = vmatpush1.bf16.msra.mxu0 %v14600_v25  ;;  %v14626_v25 = vunpack.c.h.s8.bf16 %v3494_v35 }
 0x5b5   : > { %v3043_v52 = vadd.f32 %v3042_v49, %v2972_v2  ;;  %v2974_v53 = vadd.f32 %v2973_v50, %v2470_v9  ;;  %14603 = vmatprep.subr.bf16.mxu0 %v14602_v46  ;;  %v3044_v55 = vpop.f32.mrf.mxu1  ;;  %v3493_v9 = vld [vmem:[%s18692_s6 + $0x550] sm:$0xff]  ;;  %v14630_v50 = vunpack.c.l.s8.bf16 %v3494_v35 }
 0x5b6   : > { %v14628_v48 = vunpack.c.h.s8.bf16 %v3493_v9 }
 0x5b7   : > { %v3083_v57 = vrot.slane %v3043_v52, 4  ;;  %v3045_v58 = vadd.f32 %v3044_v55, %v2974_v53 }
 0x5b8   : > { %14605 = vmatpush1.bf16.msra.mxu0 %v14604_v51  ;;  %v3470_v51 = vld [vmem:[%s18692_s6 + $0x498] sm:$0xff] }
 0x5b9   : > { %v3084_v62 = vadd.f32 %v3083_v57, %v3043_v52  ;;  %v3089_v63 = vrot.slane %v3045_v58, 4  ;;  %14607 = vmatprep.subr.bf16.mxu0 %v14606_v54  ;;  %v14632_v54 = vunpack.c.l.s8.bf16 %v3493_v9  ;;  %v14634_v57 = vunpack.c.h.s8.bf16 %v3470_v51 }
 0x5bb   : > { %v3085_v26 = vrot.slane %v3084_v62, 2  ;;  %v3090_v6 = vadd.f32 %v3089_v63, %v3045_v58 }
 0x5bc   : > { %14609 = vmatpush1.bf16.msra.mxu0 %v14608_v59 }
 0x5bd   : > { %v3086_v17 = vadd.f32 %v3085_v26, %v3084_v62  ;;  %v3091_v7 = vrot.slane %v3090_v6, 2  ;;  %14611 = vmatprep.subr.bf16.mxu0 %v14610_v0  ;;  %v14638_v26 = vunpack.c.l.s8.bf16 %v3470_v51 }
 0x5bf   : > { %v3087_v11 = vrot.slane %v3086_v17, 1  ;;  %v3092_v61 = vadd.f32 %v3091_v7, %v3090_v6  ;;  %v3446_v6 = vld [vmem:[%s18692_s6 + $0x3d8] sm:$0xff] }
 0x5c0   : > { %14613 = vmatpush1.bf16.msra.mxu0 %v14612_v60  ;;  %v14642_v8 = vunpack.c.h.s8.bf16 %v3446_v6 }
 0x5c1   : > { %v3088_v19 = vadd.f32 %v3087_v11, %v3086_v17  ;;  %v3093_v22 = vrot.slane %v3092_v61, 1  ;;  %14615 = vmatprep.subr.bf16.mxu0 %v14614_v1  ;;  %v3445_v11 = vld [vmem:[%s18692_s6 + $0x3d0] sm:$0xff] }
 0x5c3   : > { %v3101_v18 = vmul.f32 0.125, %v3088_v19  ;;  %v3094_v14 = vadd.f32 %v3093_v22, %v3092_v61  ;;  %v14644_v61 = vunpack.c.h.s8.bf16 %v3445_v11  ;;  %v3422_v19 = vld [vmem:[%s18692_s6 + $0x318] sm:$0xff]  ;;  %v14648_v22 = vunpack.c.l.s8.bf16 %v3445_v11  ;;  %v3733_v11 = vld [vmem:[%s18692_s6 + $0xcd0] sm:$0xff] }
 0x5c4   : > { %14617 = vmatpush1.bf16.msra.mxu0 %v14616_v32  ;;  %v14646_v32 = vunpack.c.l.s8.bf16 %v3446_v6  ;;  %v14650_v30 = vunpack.c.h.s8.bf16 %v3422_v19  ;;  %v14654_v35 = vunpack.c.l.s8.bf16 %v3422_v19  ;;  %v3541_v19 = vld [vmem:[%s18692_s6 + $0x6d0] sm:$0xff] }
 0x5c5   : > { %v18977_v33 = vsub.f32 %v3043_v52, %v3101_v18  ;;  %v3102_v34 = vmul.f32 0.125, %v3094_v14  ;;  %14619 = vmatprep.subr.bf16.mxu0 %v14618_v28  ;;  %v3204_v28 = vrot.slane %v18828_v40, %v18956_v20  ;;  %v3421_v18 = vld [vmem:[%s18692_s6 + $0x310] sm:$0xff]  ;;  %v3208_v14 = vrot.slane %v18828_v40, %v18961_v41 }
 0x5c6   : > { %v14656_v9 = vunpack.c.l.s8.bf16 %v3421_v18 }
 0x5c7   : > { %v3117_v37 = vmul.f32 %v18977_v33, %v18977_v33  ;;  %v18982_v42 = vsub.f32 %v3045_v58, %v3102_v34  ;;  %v3469_v58 = vld [vmem:[%s18692_s6 + $0x490] sm:$0xff]  ;;  %v3223_v34 = vmul.f32 %v3204_v28, %v18977_v33 }
 0x5c8   : > { %14621 = vmatpush1.bf16.msra.mxu0 %v14620_v31  ;;  %v14636_v63 = vunpack.c.h.s8.bf16 %v3469_v58  ;;  %v14640_v7 = vunpack.c.l.s8.bf16 %v3469_v58  ;;  %v14652_v31 = vunpack.c.h.s8.bf16 %v3421_v18  ;;  %v3566_v58 = vld [vmem:[%s18692_s6 + $0x798] sm:$0xff] }
 0x5c9   : > { %v3155_v44 = vrot.slane %v3117_v37, 4  ;;  %v3118_v45 = vmul.f32 %v18982_v42, %v18982_v42  ;;  %14623 = vmatprep.subr.bf16.mxu0 %v14622_v27  ;;  %v3278_v27 = vrot.slane %v18836_v47, %v18956_v20  ;;  %v3710_v18 = vld [vmem:[%s18692_s6 + $0xc18] sm:$0xff] }
 0x5cb   : > { %v3156_v46 = vadd.f32 %v3155_v44, %v3117_v37  ;;  %v3161_v3 = vrot.slane %v3118_v45, 4 }
 0x5cc   : > { %14625 = vmatpush1.bf16.msra.mxu0 %v14624_v43  ;;  %v3782_v43 = vld [vmem:[%s18692_s6 + $0xe58] sm:$0xff] }
 0x5cd   : > { %v3157_v2 = vrot.slane %v3156_v46, 2  ;;  %v3162_v49 = vadd.f32 %v3161_v3, %v3118_v45  ;;  %14627 = vmatprep.subr.bf16.mxu0 %v14626_v25  ;;  %v3224_v45 = vmul.f32 %v3208_v14, %v18982_v42  ;;  %v3282_v25 = vrot.slane %v18836_v47, %v18961_v41 }
 0x5ce   : > { %v14722_v3 = vunpack.c.h.s8.bf16 %v3782_v43 }
 0x5cf   : > { %v3158_v52 = vadd.f32 %v3157_v2, %v3156_v46  ;;  %v3163_v53 = vrot.slane %v3162_v49, 2 }
 0x5d0   : > { %14629 = vmatpush2.bf16.msra.mxu0 %v14628_v48  ;;  %v3781_v48 = vld [vmem:[%s18692_s6 + $0xe50] sm:$0xff] }
 0x5d1   : > { %v3159_v55 = vrot.slane %v3158_v52, 1  ;;  %v3164_v56 = vadd.f32 %v3163_v53, %v3162_v49  ;;  %14631 = vmatprep.subr.bf16.mxu0 %v14630_v50  ;;  %v3589_v49 = vld [vmem:[%s18692_s6 + $0x850] sm:$0xff]  ;;  %v14724_v51 = vunpack.c.h.s8.bf16 %v3781_v48 }
 0x5d2   : > { %v14660_v47 = vunpack.c.h.s8.bf16 %v3589_v49 }
 0x5d3   : > { %v3160_v59 = vadd.f32 %v3159_v55, %v3158_v52  ;;  %v3165_v62 = vrot.slane %v3164_v56, 1  ;;  %v3758_v52 = vld [vmem:[%s18692_s6 + $0xd98] sm:$0xff]  ;;  %v14726_v55 = vunpack.c.l.s8.bf16 %v3782_v43 }
 0x5d4   : > { %14633 = vmatpush2.bf16.msra.mxu0 %v14632_v54  ;;  %v14662_v54 = vunpack.c.l.s8.bf16 %v18948_v15  ;;  %v14664_v15 = vunpack.c.l.s8.bf16 %v3589_v49 }
 0x5d5   : > { %v3173_v0 = vmul.f32 0.125, %v3160_v59  ;;  %v3166_v38 = vadd.f32 %v3165_v62, %v3164_v56  ;;  %14635 = vmatprep.subr.bf16.mxu0 %v14634_v57  ;;  %v14728_v57 = vunpack.c.l.s8.bf16 %v3781_v48  ;;  %v14730_v59 = vunpack.c.h.s8.bf16 %v3758_v52  ;;  %v3757_v62 = vld [vmem:[%s18692_s6 + $0xd90] sm:$0xff] }
 0x5d7   : > { %v3231_v60 = vadd.f32 0.8, %v3173_v0  ;;  %v3174_v17 = vmul.f32 0.125, %v3166_v38  ;;  %v3565_v0 = vld [vmem:[%s18692_s6 + $0x790] sm:$0xff]  ;;  %v14732_v38 = vunpack.c.h.s8.bf16 %v3757_v62 }
 0x5d8   : > { %14637 = vmatpush2.bf16.msra.mxu0 %v14636_v63  ;;  %v14666_v63 = vunpack.c.h.s8.bf16 %v3566_v58  ;;  %v14668_v6 = vunpack.c.h.s8.bf16 %v3565_v0 }
 0x5d9   : > { %17652 = vrsqrt.f32 %v3231_v60  ;;  %v3232_v1 = vadd.f32 0.8, %v3174_v17  ;;  %14639 = vmatprep.subr.bf16.mxu0 %v14638_v26  ;;  %v14734_v26 = vunpack.c.l.s8.bf16 %v3758_v52  ;;  %v3734_v60 = vld [vmem:[%s18692_s6 + $0xcd8] sm:$0xff]  ;;  %v14670_v17 = vunpack.c.l.s8.bf16 %v3566_v58 }
 0x5da   : > { %v14742_v28 = vunpack.c.l.s8.bf16 %v3734_v60  ;;  %v3662_v58 = vld [vmem:[%s18692_s6 + $0xa98] sm:$0xff] }
 0x5db   : > { %17654 = vrsqrt.f32 %v3232_v1  ;;  %v3542_v1 = vld [vmem:[%s18692_s6 + $0x6d8] sm:$0xff] }
 0x5dc   : > { %14641 = vmatpush2.bf16.msra.mxu0 %v14640_v7  ;;  %v14736_v7 = vunpack.c.l.s8.bf16 %v3757_v62  ;;  %v14678_v14 = vunpack.c.l.s8.bf16 %v3542_v1  ;;  %v3853_v62 = vld [vmem:[%s18692_s6 + $0x1090] sm:$0xff] }
 0x5dd   : > { %14643 = vmatprep.subr.bf16.mxu0 %v14642_v8  ;;  %v14738_v8 = vunpack.c.h.s8.bf16 %v3734_v60  ;;  %v3830_v60 = vld [vmem:[%s18692_s6 + $0xfd8] sm:$0xff] }
 0x5e0   : > { %14645 = vmatpush2.bf16.msra.mxu0 %v14644_v61  ;;  %v14672_v61 = vunpack.c.l.s8.bf16 %v3565_v0  ;;  %v3661_v0 = vld [vmem:[%s18692_s6 + $0xa90] sm:$0xff] }
 0x5e1   : > { %14647 = vmatprep.subr.bf16.mxu0 %v14646_v32  ;;  %v14674_v32 = vunpack.c.h.s8.bf16 %v3542_v1  ;;  %v3638_v1 = vld [vmem:[%s18692_s6 + $0x9d8] sm:$0xff] }
 0x5e4   : > { %14649 = vmatpush2.bf16.msra.mxu0 %v14648_v22  ;;  %v14740_v22 = vunpack.c.h.s8.bf16 %v3733_v11 }
 0x5e5   : > { %14651 = vmatprep.subr.bf16.mxu0 %v14650_v30  ;;  %v14676_v30 = vunpack.c.h.s8.bf16 %v3541_v19 }
 0x5e6   : > { %v17653_v37 = vpop.eup %17652 }
 0x5e7   : > { %v3247_v44 = vmul.f32 %v17653_v37, %v3223_v34  ;;  %v3518_v34 = vld [vmem:[%s18692_s6 + $0x618] sm:$0xff]  ;;  %v14680_v37 = vunpack.c.l.s8.bf16 %v3541_v19  ;;  %v3637_v19 = vld [vmem:[%s18692_s6 + $0x9d0] sm:$0xff] }
 0x5e8   : > { %v17655_v40 = vpop.eup %17654  ;;  %14653 = vmatpush2.bf16.msra.mxu0 %v14652_v31  ;;  %v14744_v31 = vunpack.c.l.s8.bf16 %v3733_v11  ;;  %v14682_v43 = vunpack.c.h.s8.bf16 %v3518_v34  ;;  %v3829_v11 = vld [vmem:[%s18692_s6 + $0xfd0] sm:$0xff] }
 0x5e9   : > { %v3297_v33 = vadd.f32 %v3278_v27, %v3247_v44  ;;  %v3248_v46 = vmul.f32 %v17655_v40, %v3224_v45  ;;  %14655 = vmatprep.subr.bf16.mxu0 %v14654_v35  ;;  %v14746_v27 = vunpack.c.h.s8.bf16 %v3710_v18  ;;  %v3709_v35 = vld [vmem:[%s18692_s6 + $0xc10] sm:$0xff] }
 0x5ea   : > { %v3517_v44 = vld [vmem:[%s18692_s6 + $0x610] sm:$0xff]  ;;  %v14748_v45 = vunpack.c.h.s8.bf16 %v3709_v35 }
 0x5eb   : > { %v3298_v2 = vadd.f32 %v3282_v25, %v3248_v46  ;;  %v3313_v50 = vmul.f32 0.2, %v3297_v33  ;;  %vm3305_vm15 = vcmp.ge.f32.partialorder %v3297_v33, 0.0  ;;  %v14750_v25 = vunpack.c.l.s8.bf16 %v3710_v18  ;;  %v3806_v18 = vld [vmem:[%s18692_s6 + $0xf18] sm:$0xff] }
 0x5ec   : > { %14657 = vmatpush2.bf16.msra.mxu0 %v14656_v9  ;;  %v14684_v40 = vunpack.c.h.s8.bf16 %v3517_v44  ;;  %v3878_v9 = vld [vmem:[%s18692_s6 + $0x1158] sm:$0xff]  ;;  %v14752_v46 = vunpack.c.l.s8.bf16 %v3709_v35  ;;  %v14688_v49 = vunpack.c.l.s8.bf16 %v3517_v44  ;;  %v3805_v35 = vld [vmem:[%s18692_s6 + $0xf10] sm:$0xff] }
 0x5ed   : > { %vm3306_vm0 = vcmp.ge.f32.partialorder %v3298_v2, 0.0  ;;  %v3314_v42 = vmul.f32 0.2, %v3298_v2  ;;  %14723 = vmatprep.subr.bf16.mxu0 %v14722_v3  ;;  %v19011_v56 = vsel %vm3305_vm15, %v3297_v33, %v3313_v50  ;;  %v14686_v33 = vunpack.c.l.s8.bf16 %v3518_v34  ;;  %v3686_v3 = vld [vmem:[%s18692_s6 + $0xb58] sm:$0xff]  ;;  %v3613_v44 = vld [vmem:[%s18692_s6 + $0x910] sm:$0xff] }
 0x5ee   : > { %v14754_v48 = vunpack.c.h.s8.bf16 %v3878_v9  ;;  %v14690_v50 = vunpack.c.h.s8.bf16 %v3686_v3  ;;  %v3614_v34 = vld [vmem:[%s18692_s6 + $0x918] sm:$0xff] }
 0x5ef   : > { %v19007_v53 = vsel %vm3306_vm0, %v3298_v2, %v3314_v42  ;;  %10584 = vmatmul.mubr.f32.vlgmr.msra.gmra.mxu0 %v18861_v36  ;;  %v3877_v2 = vld [vmem:[%s18692_s6 + $0x1150] sm:$0xff] }
 0x5f0   : > { %10512 = vmatprep.mubr.f32.mxu1 %v19007_v53  ;;  %14725 = vmatpush1.bf16.msra.mxu0 %v14724_v51  ;;  %v3685_v51 = vld [vmem:[%s18692_s6 + $0xb50] sm:$0xff]  ;;  %v14756_v42 = vunpack.c.h.s8.bf16 %v3877_v2 }
 0x5f1   : > { %10513 = vmatmul.mubr.f32.vlgmr.msra.gmra.mxu1 %v19011_v56  ;;  %10725 = vmatprep.mubr.f32.mxu0 %v18958_v39  ;;  %v14692_v52 = vunpack.c.h.s8.bf16 %v3685_v51 }
 0x5f2   : > { %14661 = vmatpush1.bf16.msra.mxu1 %v14660_v47  ;;  %10654 = vmatprep.mubr.f32.mxu1 %v18903_v23  ;;  %v14758_v47 = vunpack.c.l.s8.bf16 %v3878_v9  ;;  %v3400_v9 = vld [vmem:[%s18692_s6 + $0x268] sm:$0xff] }
 0x5f3   : > { %14663 = vmatprep.subr.bf16.mxu1 %v14662_v54  ;;  %14727 = vmatprep.subr.bf16.mxu0 %v14726_v55  ;;  %v3854_v54 = vld [vmem:[%s18692_s6 + $0x1098] sm:$0xff]  ;;  %v14694_v55 = vunpack.c.l.s8.bf16 %v3686_v3 }
 0x5f4   : > { %14729 = vmatpush1.bf16.msra.mxu0 %v14728_v57  ;;  %v14760_v57 = vunpack.c.l.s8.bf16 %v3877_v2  ;;  %v3974_v3 = vld [vmem:[%s18692_s6 + $0x1458] sm:$0xff]  ;;  %v3399_v2 = vld [vmem:[%s18692_s6 + $0x260] sm:$0xff] }
 0x5f5   : > { %14731 = vmatprep.subr.bf16.mxu0 %v14730_v59  ;;  %v14762_v59 = vunpack.c.h.s8.bf16 %v3854_v54 }
 0x5f6   : > { %14665 = vmatpush1.bf16.msra.mxu1 %v14664_v15  ;;  %v14696_v15 = vunpack.c.l.s8.bf16 %v3685_v51  ;;  %v3973_v51 = vld [vmem:[%s18692_s6 + $0x1450] sm:$0xff] }
 0x5f7   : > { %14667 = vmatprep.subr.bf16.mxu1 %v14666_v63  ;;  %v14698_v63 = vunpack.c.h.s8.bf16 %v3662_v58 }
 0x5f8   : > { %14733 = vmatpush1.bf16.msra.mxu0 %v14732_v38  ;;  %v14764_v38 = vunpack.c.h.s8.bf16 %v3853_v62 }
 0x5f9   : > { %14735 = vmatprep.subr.bf16.mxu0 %v14734_v26  ;;  %v14766_v26 = vunpack.c.l.s8.bf16 %v3854_v54  ;;  %v3376_v54 = vld [vmem:[%s18692_s6 + $0x1a8] sm:$0xff] }
 0x5fa   : > { %14669 = vmatpush1.bf16.msra.mxu1 %v14668_v6  ;;  %v14700_v6 = vunpack.c.h.s8.bf16 %v3661_v0 }
 0x5fb   : > { %14671 = vmatprep.subr.bf16.mxu1 %v14670_v17  ;;  %v14702_v17 = vunpack.c.l.s8.bf16 %v3662_v58  ;;  %v3950_v58 = vld [vmem:[%s18692_s6 + $0x1398] sm:$0xff] }
 0x5fc   : > { %14737 = vmatpush1.bf16.msra.mxu0 %v14736_v7  ;;  %v14768_v7 = vunpack.c.l.s8.bf16 %v3853_v62  ;;  %v3375_v62 = vld [vmem:[%s18692_s6 + $0x1a0] sm:$0xff] }
 0x5fd   : > { %14739 = vmatprep.subr.bf16.mxu0 %v14738_v8  ;;  %v14770_v8 = vunpack.c.h.s8.bf16 %v3830_v60 }
 0x5fe   : > { %14673 = vmatpush1.bf16.msra.mxu1 %v14672_v61  ;;  %v14704_v61 = vunpack.c.l.s8.bf16 %v3661_v0  ;;  %v3949_v0 = vld [vmem:[%s18692_s6 + $0x1390] sm:$0xff] }
 0x5ff   : > { %14675 = vmatprep.subr.bf16.mxu1 %v14674_v32  ;;  %v14706_v32 = vunpack.c.h.s8.bf16 %v3638_v1 }
 0x600   : > { %14741 = vmatpush1.bf16.msra.mxu0 %v14740_v22  ;;  %v14772_v22 = vunpack.c.h.s8.bf16 %v3829_v11 }
 0x601   : > { %14743 = vmatprep.subr.bf16.mxu0 %v14742_v28  ;;  %v14774_v28 = vunpack.c.l.s8.bf16 %v3830_v60  ;;  %v3352_v60 = vld [vmem:[%s18692_s6 + $0xe8] sm:$0xff] }
 0x602   : > { %14677 = vmatpush1.bf16.msra.mxu1 %v14676_v30  ;;  %v14708_v30 = vunpack.c.h.s8.bf16 %v3637_v19 }
 0x603   : > { %14679 = vmatprep.subr.bf16.mxu1 %v14678_v14  ;;  %v14710_v14 = vunpack.c.l.s8.bf16 %v3638_v1  ;;  %v3926_v1 = vld [vmem:[%s18692_s6 + $0x12d8] sm:$0xff] }
 0x604   : > { %14745 = vmatpush1.bf16.msra.mxu0 %v14744_v31  ;;  %v14776_v31 = vunpack.c.l.s8.bf16 %v3829_v11  ;;  %v3351_v11 = vld [vmem:[%s18692_s6 + $0xe0] sm:$0xff] }
 0x605   : > { %14747 = vmatprep.subr.bf16.mxu0 %v14746_v27  ;;  %v14778_v27 = vunpack.c.h.s8.bf16 %v3806_v18 }
 0x606   : > { %14681 = vmatpush1.bf16.msra.mxu1 %v14680_v37  ;;  %v14712_v37 = vunpack.c.l.s8.bf16 %v3637_v19  ;;  %v3925_v19 = vld [vmem:[%s18692_s6 + $0x12d0] sm:$0xff] }
 0x607   : > { %14683 = vmatprep.subr.bf16.mxu1 %v14682_v43  ;;  %v14714_v43 = vunpack.c.h.s8.bf16 %v3614_v34 }
 0x608   : > { %14749 = vmatpush1.bf16.msra.mxu0 %v14748_v45  ;;  %v14780_v45 = vunpack.c.h.s8.bf16 %v3805_v35 }
 0x609   : > { %14751 = vmatprep.subr.bf16.mxu0 %v14750_v25  ;;  %v14782_v25 = vunpack.c.l.s8.bf16 %v3806_v18  ;;  %v3328_v18 = vld [vmem:[%s18692_s6 + $0x28] sm:$0xff] }
 0x60a   : > { %14685 = vmatpush1.bf16.msra.mxu1 %v14684_v40  ;;  %v14716_v40 = vunpack.c.h.s8.bf16 %v3613_v44 }
 0x60b   : > { %14687 = vmatprep.subr.bf16.mxu1 %v14686_v33  ;;  %v14718_v33 = vunpack.c.l.s8.bf16 %v3614_v34  ;;  %v3902_v34 = vld [vmem:[%s18692_s6 + $0x1218] sm:$0xff] }
 0x60c   : > { %14753 = vmatpush1.bf16.msra.mxu0 %v14752_v46  ;;  %v14784_v46 = vunpack.c.l.s8.bf16 %v3805_v35  ;;  %v3327_v35 = vld [vmem:[%s18692_s6 + $0x20] sm:$0xff] }
 0x60d   : > { %14755 = vmatprep.subr.bf16.mxu0 %v14754_v48  ;;  %v14850_v48 = vunpack.c.h.s8.bf16 %v3400_v9 }
 0x60e   : > { %14689 = vmatpush1.bf16.msra.mxu1 %v14688_v49  ;;  %v14720_v49 = vunpack.c.l.s8.bf16 %v3613_v44  ;;  %v3901_v44 = vld [vmem:[%s18692_s6 + $0x1210] sm:$0xff] }
 0x60f   : > { %14691 = vmatprep.subr.bf16.mxu1 %v14690_v50  ;;  %v14786_v50 = vunpack.c.h.s8.bf16 %v3974_v3 }
 0x610   : > { %14757 = vmatpush2.bf16.msra.mxu0 %v14756_v42  ;;  %v14852_v42 = vunpack.c.h.s8.bf16 %v3399_v2 }
 0x611   : > { %14759 = vmatprep.subr.bf16.mxu0 %v14758_v47  ;;  %v14854_v47 = vunpack.c.l.s8.bf16 %v3400_v9  ;;  %v3496_v9 = vld [vmem:[%s18692_s6 + $0x568] sm:$0xff] }
 0x612   : > { %14693 = vmatpush2.bf16.msra.mxu1 %v14692_v52  ;;  %v14788_v52 = vunpack.c.h.s8.bf16 %v3973_v51 }
 0x613   : > { %14695 = vmatprep.subr.bf16.mxu1 %v14694_v55  ;;  %v14790_v55 = vunpack.c.l.s8.bf16 %v3974_v3  ;;  %v4070_v3 = vld [vmem:[%s18692_s6 + $0x1758] sm:$0xff] }
 0x614   : > { %14761 = vmatpush2.bf16.msra.mxu0 %v14760_v57  ;;  %v14856_v57 = vunpack.c.l.s8.bf16 %v3399_v2  ;;  %v3495_v2 = vld [vmem:[%s18692_s6 + $0x560] sm:$0xff] }
 0x615   : > { %14763 = vmatprep.subr.bf16.mxu0 %v14762_v59  ;;  %v14858_v59 = vunpack.c.h.s8.bf16 %v3376_v54 }
 0x616   : > { %14697 = vmatpush2.bf16.msra.mxu1 %v14696_v15  ;;  %v14792_v15 = vunpack.c.l.s8.bf16 %v3973_v51  ;;  %v4069_v51 = vld [vmem:[%s18692_s6 + $0x1750] sm:$0xff] }
 0x617   : > { %14699 = vmatprep.subr.bf16.mxu1 %v14698_v63  ;;  %v14794_v63 = vunpack.c.h.s8.bf16 %v3950_v58 }
 0x618   : > { %14765 = vmatpush2.bf16.msra.mxu0 %v14764_v38  ;;  %v14860_v38 = vunpack.c.h.s8.bf16 %v3375_v62 }
 0x619   : > { %14767 = vmatprep.subr.bf16.mxu0 %v14766_v26  ;;  %v14862_v26 = vunpack.c.l.s8.bf16 %v3376_v54  ;;  %v3472_v54 = vld [vmem:[%s18692_s6 + $0x4a8] sm:$0xff] }
 0x61a   : > { %14701 = vmatpush2.bf16.msra.mxu1 %v14700_v6  ;;  %v14796_v6 = vunpack.c.h.s8.bf16 %v3949_v0 }
 0x61b   : > { %14703 = vmatprep.subr.bf16.mxu1 %v14702_v17  ;;  %v14798_v17 = vunpack.c.l.s8.bf16 %v3950_v58  ;;  %v4046_v58 = vld [vmem:[%s18692_s6 + $0x1698] sm:$0xff] }
 0x61c   : > { %14769 = vmatpush2.bf16.msra.mxu0 %v14768_v7  ;;  %v14864_v7 = vunpack.c.l.s8.bf16 %v3375_v62  ;;  %v3471_v62 = vld [vmem:[%s18692_s6 + $0x4a0] sm:$0xff] }
 0x61d   : > { %14771 = vmatprep.subr.bf16.mxu0 %v14770_v8  ;;  %v14866_v8 = vunpack.c.h.s8.bf16 %v3352_v60 }
 0x61e   : > { %14705 = vmatpush2.bf16.msra.mxu1 %v14704_v61  ;;  %v14800_v61 = vunpack.c.l.s8.bf16 %v3949_v0  ;;  %v4045_v0 = vld [vmem:[%s18692_s6 + $0x1690] sm:$0xff] }
 0x61f   : > { %14707 = vmatprep.subr.bf16.mxu1 %v14706_v32  ;;  %v14802_v32 = vunpack.c.h.s8.bf16 %v3926_v1 }
 0x620   : > { %14773 = vmatpush2.bf16.msra.mxu0 %v14772_v22  ;;  %v14868_v22 = vunpack.c.h.s8.bf16 %v3351_v11 }
 0x621   : > { %14775 = vmatprep.subr.bf16.mxu0 %v14774_v28  ;;  %v14870_v28 = vunpack.c.l.s8.bf16 %v3352_v60  ;;  %v3448_v60 = vld [vmem:[%s18692_s6 + $0x3e8] sm:$0xff] }
 0x622   : > { %14709 = vmatpush2.bf16.msra.mxu1 %v14708_v30  ;;  %v14804_v30 = vunpack.c.h.s8.bf16 %v3925_v19 }
 0x623   : > { %14711 = vmatprep.subr.bf16.mxu1 %v14710_v14  ;;  %v14806_v14 = vunpack.c.l.s8.bf16 %v3926_v1  ;;  %v4022_v1 = vld [vmem:[%s18692_s6 + $0x15d8] sm:$0xff] }
 0x624   : > { %14777 = vmatpush2.bf16.msra.mxu0 %v14776_v31  ;;  %v14872_v31 = vunpack.c.l.s8.bf16 %v3351_v11  ;;  %v3447_v11 = vld [vmem:[%s18692_s6 + $0x3e0] sm:$0xff] }
 0x625   : > { %14779 = vmatprep.subr.bf16.mxu0 %v14778_v27  ;;  %v14874_v27 = vunpack.c.h.s8.bf16 %v3328_v18 }
 0x626   : > { %14713 = vmatpush2.bf16.msra.mxu1 %v14712_v37  ;;  %v14808_v37 = vunpack.c.l.s8.bf16 %v3925_v19  ;;  %v4021_v19 = vld [vmem:[%s18692_s6 + $0x15d0] sm:$0xff] }
 0x627   : > { %14715 = vmatprep.subr.bf16.mxu1 %v14714_v43  ;;  %v14810_v43 = vunpack.c.h.s8.bf16 %v3902_v34 }
 0x628   : > { %14781 = vmatpush2.bf16.msra.mxu0 %v14780_v45  ;;  %v14876_v45 = vunpack.c.h.s8.bf16 %v3327_v35 }
 0x629   : > { %14783 = vmatprep.subr.bf16.mxu0 %v14782_v25  ;;  %v14878_v25 = vunpack.c.l.s8.bf16 %v3328_v18  ;;  %v3424_v18 = vld [vmem:[%s18692_s6 + $0x328] sm:$0xff] }
 0x62a   : > { %14717 = vmatpush2.bf16.msra.mxu1 %v14716_v40  ;;  %v14812_v40 = vunpack.c.h.s8.bf16 %v3901_v44 }
 0x62b   : > { %14719 = vmatprep.subr.bf16.mxu1 %v14718_v33  ;;  %v14814_v33 = vunpack.c.l.s8.bf16 %v3902_v34  ;;  %v3998_v34 = vld [vmem:[%s18692_s6 + $0x1518] sm:$0xff] }
 0x62c   : > { %14785 = vmatpush2.bf16.msra.mxu0 %v14784_v46  ;;  %v14880_v46 = vunpack.c.l.s8.bf16 %v3327_v35  ;;  %v3423_v35 = vld [vmem:[%s18692_s6 + $0x320] sm:$0xff] }
 0x62d   : > { %14851 = vmatprep.subr.bf16.mxu0 %v14850_v48  ;;  %v14882_v48 = vunpack.c.h.s8.bf16 %v3496_v9 }
 0x62e   : > { %14721 = vmatpush2.bf16.msra.mxu1 %v14720_v49  ;;  %v14816_v49 = vunpack.c.l.s8.bf16 %v3901_v44  ;;  %v3997_v44 = vld [vmem:[%s18692_s6 + $0x1510] sm:$0xff] }
 0x62f   : > { %10726 = vmatmul.mubr.f32.vlgmr.msra.gmra.mxu0 %v18964_v21  ;;  %14787 = vmatprep.subr.bf16.mxu1 %v14786_v50  ;;  %v14818_v50 = vunpack.c.h.s8.bf16 %v4070_v3 }
 0x630   : > { %14853 = vmatpush1.bf16.msra.mxu0 %v14852_v42  ;;  %10867 = vmatprep.mubr.f32.mxu0 %v18848_v13  ;;  %v14884_v42 = vunpack.c.h.s8.bf16 %v3495_v2 }
 0x631   : > { %10655 = vmatmul.mubr.f32.vlgmr.msra.gmra.mxu1 %v18909_v29  ;;  %14855 = vmatprep.subr.bf16.mxu0 %v14854_v47  ;;  %v14886_v47 = vunpack.c.l.s8.bf16 %v3496_v9  ;;  %v3784_v9 = vld [vmem:[%s18692_s6 + $0xe68] sm:$0xff] }
 0x632   : > { %14789 = vmatpush1.bf16.msra.mxu1 %v14788_v52  ;;  %10796 = vmatprep.mubr.f32.mxu1 %v19007_v53  ;;  %v14820_v52 = vunpack.c.h.s8.bf16 %v4069_v51 }
 0x633   : > { %14791 = vmatprep.subr.bf16.mxu1 %v14790_v55  ;;  %v14822_v55 = vunpack.c.l.s8.bf16 %v4070_v3  ;;  %v3592_v3 = vld [vmem:[%s18692_s6 + $0x868] sm:$0xff] }
 0x634   : > { %14857 = vmatpush1.bf16.msra.mxu0 %v14856_v57  ;;  %v14888_v57 = vunpack.c.l.s8.bf16 %v3495_v2  ;;  %v3783_v2 = vld [vmem:[%s18692_s6 + $0xe60] sm:$0xff] }
 0x635   : > { %14859 = vmatprep.subr.bf16.mxu0 %v14858_v59  ;;  %v14890_v59 = vunpack.c.h.s8.bf16 %v3472_v54 }
 0x636   : > { %14793 = vmatpush1.bf16.msra.mxu1 %v14792_v15  ;;  %v14824_v15 = vunpack.c.l.s8.bf16 %v4069_v51  ;;  %v3591_v51 = vld [vmem:[%s18692_s6 + $0x860] sm:$0xff] }
 0x637   : > { %14795 = vmatprep.subr.bf16.mxu1 %v14794_v63  ;;  %v14826_v63 = vunpack.c.h.s8.bf16 %v4046_v58 }
 0x638   : > { %14861 = vmatpush1.bf16.msra.mxu0 %v14860_v38  ;;  %v14892_v38 = vunpack.c.h.s8.bf16 %v3471_v62 }
 0x639   : > { %14863 = vmatprep.subr.bf16.mxu0 %v14862_v26  ;;  %v14894_v26 = vunpack.c.l.s8.bf16 %v3472_v54  ;;  %v3760_v54 = vld [vmem:[%s18692_s6 + $0xda8] sm:$0xff] }
 0x63a   : > { %14797 = vmatpush1.bf16.msra.mxu1 %v14796_v6  ;;  %v14828_v6 = vunpack.c.h.s8.bf16 %v4045_v0 }
 0x63b   : > { %14799 = vmatprep.subr.bf16.mxu1 %v14798_v17  ;;  %v14830_v17 = vunpack.c.l.s8.bf16 %v4046_v58  ;;  %v3568_v58 = vld [vmem:[%s18692_s6 + $0x7a8] sm:$0xff] }
 0x63c   : > { %14865 = vmatpush1.bf16.msra.mxu0 %v14864_v7  ;;  %v14896_v7 = vunpack.c.l.s8.bf16 %v3471_v62  ;;  %v3759_v62 = vld [vmem:[%s18692_s6 + $0xda0] sm:$0xff] }
 0x63d   : > { %14867 = vmatprep.subr.bf16.mxu0 %v14866_v8  ;;  %v14898_v8 = vunpack.c.h.s8.bf16 %v3448_v60 }
 0x63e   : > { %14801 = vmatpush1.bf16.msra.mxu1 %v14800_v61  ;;  %v14832_v61 = vunpack.c.l.s8.bf16 %v4045_v0  ;;  %v3567_v0 = vld [vmem:[%s18692_s6 + $0x7a0] sm:$0xff] }
 0x63f   : > { %14803 = vmatprep.subr.bf16.mxu1 %v14802_v32  ;;  %v14834_v32 = vunpack.c.h.s8.bf16 %v4022_v1 }
 0x640   : > { %14869 = vmatpush1.bf16.msra.mxu0 %v14868_v22  ;;  %v14900_v22 = vunpack.c.h.s8.bf16 %v3447_v11 }
 0x641   : > { %14871 = vmatprep.subr.bf16.mxu0 %v14870_v28  ;;  %v14902_v28 = vunpack.c.l.s8.bf16 %v3448_v60  ;;  %v3736_v60 = vld [vmem:[%s18692_s6 + $0xce8] sm:$0xff] }
 0x642   : > { %14805 = vmatpush1.bf16.msra.mxu1 %v14804_v30  ;;  %v14836_v30 = vunpack.c.h.s8.bf16 %v4021_v19 }
 0x643   : > { %14807 = vmatprep.subr.bf16.mxu1 %v14806_v14  ;;  %v14838_v14 = vunpack.c.l.s8.bf16 %v4022_v1  ;;  %v3544_v1 = vld [vmem:[%s18692_s6 + $0x6e8] sm:$0xff] }
 0x644   : > { %14873 = vmatpush1.bf16.msra.mxu0 %v14872_v31  ;;  %v14904_v31 = vunpack.c.l.s8.bf16 %v3447_v11  ;;  %v3735_v11 = vld [vmem:[%s18692_s6 + $0xce0] sm:$0xff] }
 0x645   : > { %14875 = vmatprep.subr.bf16.mxu0 %v14874_v27  ;;  %v14906_v27 = vunpack.c.h.s8.bf16 %v3424_v18 }
 0x646   : > { %14809 = vmatpush1.bf16.msra.mxu1 %v14808_v37  ;;  %v14840_v37 = vunpack.c.l.s8.bf16 %v4021_v19  ;;  %v3543_v19 = vld [vmem:[%s18692_s6 + $0x6e0] sm:$0xff] }
 0x647   : > { %14811 = vmatprep.subr.bf16.mxu1 %v14810_v43  ;;  %v14842_v43 = vunpack.c.h.s8.bf16 %v3998_v34 }
 0x648   : > { %14877 = vmatpush1.bf16.msra.mxu0 %v14876_v45  ;;  %v14908_v45 = vunpack.c.h.s8.bf16 %v3423_v35 }
 0x649   : > { %14879 = vmatprep.subr.bf16.mxu0 %v14878_v25  ;;  %v14910_v25 = vunpack.c.l.s8.bf16 %v3424_v18  ;;  %v3712_v18 = vld [vmem:[%s18692_s6 + $0xc28] sm:$0xff] }
 0x64a   : > { %14813 = vmatpush1.bf16.msra.mxu1 %v14812_v40  ;;  %v14844_v40 = vunpack.c.h.s8.bf16 %v3997_v44 }
 0x64b   : > { %14815 = vmatprep.subr.bf16.mxu1 %v14814_v33  ;;  %v14846_v33 = vunpack.c.l.s8.bf16 %v3998_v34  ;;  %v3520_v34 = vld [vmem:[%s18692_s6 + $0x628] sm:$0xff] }
 0x64c   : > { %14881 = vmatpush1.bf16.msra.mxu0 %v14880_v46  ;;  %v14912_v46 = vunpack.c.l.s8.bf16 %v3423_v35  ;;  %v3711_v35 = vld [vmem:[%s18692_s6 + $0xc20] sm:$0xff] }
 0x64d   : > { %14883 = vmatprep.subr.bf16.mxu0 %v14882_v48  ;;  %v14978_v48 = vunpack.c.h.s8.bf16 %v3784_v9 }
 0x64e   : > { %14817 = vmatpush1.bf16.msra.mxu1 %v14816_v49  ;;  %v14848_v49 = vunpack.c.l.s8.bf16 %v3997_v44  ;;  %v3519_v44 = vld [vmem:[%s18692_s6 + $0x620] sm:$0xff] }
 0x64f   : > { %14819 = vmatprep.subr.bf16.mxu1 %v14818_v50  ;;  %v14914_v50 = vunpack.c.h.s8.bf16 %v3592_v3 }
 0x650   : > { %14885 = vmatpush2.bf16.msra.mxu0 %v14884_v42  ;;  %v14980_v42 = vunpack.c.h.s8.bf16 %v3783_v2 }
 0x651   : > { %14887 = vmatprep.subr.bf16.mxu0 %v14886_v47  ;;  %v14982_v47 = vunpack.c.l.s8.bf16 %v3784_v9  ;;  %v3880_v9 = vld [vmem:[%s18692_s6 + $0x1168] sm:$0xff] }
 0x652   : > { %14821 = vmatpush2.bf16.msra.mxu1 %v14820_v52  ;;  %v14916_v52 = vunpack.c.h.s8.bf16 %v3591_v51 }
 0x653   : > { %14823 = vmatprep.subr.bf16.mxu1 %v14822_v55  ;;  %v14918_v55 = vunpack.c.l.s8.bf16 %v3592_v3  ;;  %v3688_v3 = vld [vmem:[%s18692_s6 + $0xb68] sm:$0xff] }
 0x654   : > { %14889 = vmatpush2.bf16.msra.mxu0 %v14888_v57  ;;  %v14984_v57 = vunpack.c.l.s8.bf16 %v3783_v2  ;;  %v3879_v2 = vld [vmem:[%s18692_s6 + $0x1160] sm:$0xff] }
 0x655   : > { %14891 = vmatprep.subr.bf16.mxu0 %v14890_v59  ;;  %v14986_v59 = vunpack.c.h.s8.bf16 %v3760_v54 }
 0x656   : > { %14825 = vmatpush2.bf16.msra.mxu1 %v14824_v15  ;;  %v14920_v15 = vunpack.c.l.s8.bf16 %v3591_v51  ;;  %v3687_v51 = vld [vmem:[%s18692_s6 + $0xb60] sm:$0xff] }
 0x657   : > { %14827 = vmatprep.subr.bf16.mxu1 %v14826_v63  ;;  %v14922_v63 = vunpack.c.h.s8.bf16 %v3568_v58 }
 0x658   : > { %14893 = vmatpush2.bf16.msra.mxu0 %v14892_v38  ;;  %v14988_v38 = vunpack.c.h.s8.bf16 %v3759_v62 }
 0x659   : > { %14895 = vmatprep.subr.bf16.mxu0 %v14894_v26  ;;  %v14990_v26 = vunpack.c.l.s8.bf16 %v3760_v54  ;;  %v3856_v54 = vld [vmem:[%s18692_s6 + $0x10a8] sm:$0xff] }
 0x65a   : > { %14829 = vmatpush2.bf16.msra.mxu1 %v14828_v6  ;;  %v14924_v6 = vunpack.c.h.s8.bf16 %v3567_v0 }
 0x65b   : > { %14831 = vmatprep.subr.bf16.mxu1 %v14830_v17  ;;  %v14926_v17 = vunpack.c.l.s8.bf16 %v3568_v58  ;;  %v3664_v58 = vld [vmem:[%s18692_s6 + $0xaa8] sm:$0xff] }
 0x65c   : > { %14897 = vmatpush2.bf16.msra.mxu0 %v14896_v7  ;;  %v14992_v7 = vunpack.c.l.s8.bf16 %v3759_v62  ;;  %v3855_v62 = vld [vmem:[%s18692_s6 + $0x10a0] sm:$0xff] }
 0x65d   : > { %14899 = vmatprep.subr.bf16.mxu0 %v14898_v8  ;;  %v14994_v8 = vunpack.c.h.s8.bf16 %v3736_v60 }
 0x65e   : > { %14833 = vmatpush2.bf16.msra.mxu1 %v14832_v61  ;;  %v14928_v61 = vunpack.c.l.s8.bf16 %v3567_v0  ;;  %v3663_v0 = vld [vmem:[%s18692_s6 + $0xaa0] sm:$0xff] }
 0x65f   : > { %14835 = vmatprep.subr.bf16.mxu1 %v14834_v32  ;;  %v14930_v32 = vunpack.c.h.s8.bf16 %v3544_v1 }
 0x660   : > { %14901 = vmatpush2.bf16.msra.mxu0 %v14900_v22  ;;  %v14996_v22 = vunpack.c.h.s8.bf16 %v3735_v11 }
 0x661   : > { %14903 = vmatprep.subr.bf16.mxu0 %v14902_v28  ;;  %v14998_v28 = vunpack.c.l.s8.bf16 %v3736_v60  ;;  %v3832_v60 = vld [vmem:[%s18692_s6 + $0xfe8] sm:$0xff] }
 0x662   : > { %14837 = vmatpush2.bf16.msra.mxu1 %v14836_v30  ;;  %v14932_v30 = vunpack.c.h.s8.bf16 %v3543_v19 }
 0x663   : > { %14839 = vmatprep.subr.bf16.mxu1 %v14838_v14  ;;  %v14934_v14 = vunpack.c.l.s8.bf16 %v3544_v1  ;;  %v3640_v1 = vld [vmem:[%s18692_s6 + $0x9e8] sm:$0xff] }
 0x664   : > { %14905 = vmatpush2.bf16.msra.mxu0 %v14904_v31  ;;  %v15000_v31 = vunpack.c.l.s8.bf16 %v3735_v11  ;;  %v3831_v11 = vld [vmem:[%s18692_s6 + $0xfe0] sm:$0xff] }
 0x665   : > { %14907 = vmatprep.subr.bf16.mxu0 %v14906_v27  ;;  %v15002_v27 = vunpack.c.h.s8.bf16 %v3712_v18 }
 0x666   : > { %14841 = vmatpush2.bf16.msra.mxu1 %v14840_v37  ;;  %v14936_v37 = vunpack.c.l.s8.bf16 %v3543_v19  ;;  %v3639_v19 = vld [vmem:[%s18692_s6 + $0x9e0] sm:$0xff] }
 0x667   : > { %14843 = vmatprep.subr.bf16.mxu1 %v14842_v43  ;;  %v14938_v43 = vunpack.c.h.s8.bf16 %v3520_v34 }
 0x668   : > { %14909 = vmatpush2.bf16.msra.mxu0 %v14908_v45  ;;  %v15004_v45 = vunpack.c.h.s8.bf16 %v3711_v35 }
 0x669   : > { %14911 = vmatprep.subr.bf16.mxu0 %v14910_v25  ;;  %v15006_v25 = vunpack.c.l.s8.bf16 %v3712_v18  ;;  %v3808_v18 = vld [vmem:[%s18692_s6 + $0xf28] sm:$0xff] }
 0x66a   : > { %14845 = vmatpush2.bf16.msra.mxu1 %v14844_v40  ;;  %v14940_v40 = vunpack.c.h.s8.bf16 %v3519_v44 }
 0x66b   : > { %14847 = vmatprep.subr.bf16.mxu1 %v14846_v33  ;;  %v14942_v33 = vunpack.c.l.s8.bf16 %v3520_v34  ;;  %v3616_v34 = vld [vmem:[%s18692_s6 + $0x928] sm:$0xff] }
 0x66c   : > { %14913 = vmatpush2.bf16.msra.mxu0 %v14912_v46  ;;  %v15008_v46 = vunpack.c.l.s8.bf16 %v3711_v35  ;;  %v3807_v35 = vld [vmem:[%s18692_s6 + $0xf20] sm:$0xff] }
 0x66d   : > { %14979 = vmatprep.subr.bf16.mxu0 %v14978_v48  ;;  %v15010_v48 = vunpack.c.h.s8.bf16 %v3880_v9 }
 0x66e   : > { %14849 = vmatpush2.bf16.msra.mxu1 %v14848_v49  ;;  %v14944_v49 = vunpack.c.l.s8.bf16 %v3519_v44  ;;  %v3615_v44 = vld [vmem:[%s18692_s6 + $0x920] sm:$0xff] }
 0x66f   : > { %10868 = vmatmul.mubr.f32.vlgmr.msra.gmra.mxu0 %v18861_v36  ;;  %14915 = vmatprep.subr.bf16.mxu1 %v14914_v50  ;;  %v14946_v50 = vunpack.c.h.s8.bf16 %v3688_v3 }
 0x670   : > { %14981 = vmatpush1.bf16.msra.mxu0 %v14980_v42  ;;  %11009 = vmatprep.mubr.f32.mxu0 %v18958_v39  ;;  %v15012_v42 = vunpack.c.h.s8.bf16 %v3879_v2 }
 0x671   : > { %10797 = vmatmul.mubr.f32.vlgmr.msra.gmra.mxu1 %v19011_v56  ;;  %14983 = vmatprep.subr.bf16.mxu0 %v14982_v47  ;;  %v15014_v47 = vunpack.c.l.s8.bf16 %v3880_v9  ;;  %v14972_v9 = vunpack.c.h.s8.bf16 %v3615_v44 }
 0x672   : > { %14917 = vmatpush1.bf16.msra.mxu1 %v14916_v52  ;;  %10938 = vmatprep.mubr.f32.mxu1 %v18903_v23  ;;  %v14948_v52 = vunpack.c.h.s8.bf16 %v3687_v51 }
 0x673   : > { %14919 = vmatprep.subr.bf16.mxu1 %v14918_v55  ;;  %v14950_v55 = vunpack.c.l.s8.bf16 %v3688_v3  ;;  %v15040_v3 = vunpack.c.l.s8.bf16 %v3807_v35 }
 0x674   : > { %14985 = vmatpush1.bf16.msra.mxu0 %v14984_v57  ;;  %v15016_v57 = vunpack.c.l.s8.bf16 %v3879_v2 }
 0x675   : > { %14987 = vmatprep.subr.bf16.mxu0 %v14986_v59  ;;  %v15018_v59 = vunpack.c.h.s8.bf16 %v3856_v54 }
 0x676   : > { %14921 = vmatpush1.bf16.msra.mxu1 %v14920_v15  ;;  %v14952_v15 = vunpack.c.l.s8.bf16 %v3687_v51  ;;  %v3401_v51 = vld [vmem:[%s18692_s6 + $0x270] sm:$0xff] }
 0x677   : > { %14923 = vmatprep.subr.bf16.mxu1 %v14922_v63  ;;  %v14954_v63 = vunpack.c.h.s8.bf16 %v3664_v58 }
 0x678   : > { %14989 = vmatpush1.bf16.msra.mxu0 %v14988_v38  ;;  %v15020_v38 = vunpack.c.h.s8.bf16 %v3855_v62 }
 0x679   : > { %14991 = vmatprep.subr.bf16.mxu0 %v14990_v26  ;;  %v15022_v26 = vunpack.c.l.s8.bf16 %v3856_v54  ;;  %v3975_v54 = vld [vmem:[%s18692_s6 + $0x1460] sm:$0xff] }
 0x67a   : > { %14925 = vmatpush1.bf16.msra.mxu1 %v14924_v6  ;;  %v14956_v6 = vunpack.c.h.s8.bf16 %v3663_v0 }
 0x67b   : > { %14927 = vmatprep.subr.bf16.mxu1 %v14926_v17  ;;  %v14958_v17 = vunpack.c.l.s8.bf16 %v3664_v58  ;;  %v19121_v58 = vld [vmem:[%s18698_s30] sm:$0xff] }
 0x67c   : > { %14993 = vmatpush1.bf16.msra.mxu0 %v14992_v7  ;;  %v15024_v7 = vunpack.c.l.s8.bf16 %v3855_v62 }
 0x67d   : > { %14995 = vmatprep.subr.bf16.mxu0 %v14994_v8  ;;  %v15026_v8 = vunpack.c.h.s8.bf16 %v3832_v60 }
 0x67e   : > { %14929 = vmatpush1.bf16.msra.mxu1 %v14928_v61  ;;  %v14960_v61 = vunpack.c.l.s8.bf16 %v3663_v0  ;;  %v3378_v0 = vld [vmem:[%s18692_s6 + $0x1b8] sm:$0xff] }
 0x67f   : > { %14931 = vmatprep.subr.bf16.mxu1 %v14930_v32  ;;  %v14962_v32 = vunpack.c.h.s8.bf16 %v3640_v1 }
 0x680   : > { %14997 = vmatpush1.bf16.msra.mxu0 %v14996_v22  ;;  %v15028_v22 = vunpack.c.h.s8.bf16 %v3831_v11 }
 0x681   : > { %14999 = vmatprep.subr.bf16.mxu0 %v14998_v28  ;;  %v15030_v28 = vunpack.c.l.s8.bf16 %v3832_v60 }
 0x682   : > { %14933 = vmatpush1.bf16.msra.mxu1 %v14932_v30  ;;  %v14964_v30 = vunpack.c.h.s8.bf16 %v3639_v19 }
 0x683   : > { %14935 = vmatprep.subr.bf16.mxu1 %v14934_v14  ;;  %v14966_v14 = vunpack.c.l.s8.bf16 %v3640_v1  ;;  %v3952_v1 = vld [vmem:[%s18692_s6 + $0x13a8] sm:$0xff] }
 0x684   : > { %15001 = vmatpush1.bf16.msra.mxu0 %v15000_v31  ;;  %v15032_v31 = vunpack.c.l.s8.bf16 %v3831_v11 }
 0x685   : > { %15003 = vmatprep.subr.bf16.mxu0 %v15002_v27  ;;  %v15034_v27 = vunpack.c.h.s8.bf16 %v3808_v18 }
 0x686   : > { %14937 = vmatpush1.bf16.msra.mxu1 %v14936_v37  ;;  %v14968_v37 = vunpack.c.l.s8.bf16 %v3639_v19 }
 0x687   : > { %14939 = vmatprep.subr.bf16.mxu1 %v14938_v43  ;;  %v14970_v43 = vunpack.c.h.s8.bf16 %v3616_v34 }
 0x688   : > { %15005 = vmatpush1.bf16.msra.mxu0 %v15004_v45  ;;  %v15036_v45 = vunpack.c.h.s8.bf16 %v3807_v35 }
 0x689   : > { %15007 = vmatprep.subr.bf16.mxu0 %v15006_v25  ;;  %v10301_v25 = vpop.f32.mrf.mxu0 }
 0x68a   : > { %14941 = vmatpush1.bf16.msra.mxu1 %v14940_v40  ;;  %v15038_v40 = vunpack.c.l.s8.bf16 %v3808_v18 }
 0x68b   : > { %14943 = vmatprep.subr.bf16.mxu1 %v14942_v33  ;;  %v3402_v33 = vld [vmem:[%s18692_s6 + $0x278] sm:$0xff]  ;;  %v10303_v2 = vpop.f32.mrf.mxu0 }
 0x68c   : > { %15009 = vmatpush1.bf16.msra.mxu0 %v15008_v46  ;;  %v14974_v46 = vunpack.c.l.s8.bf16 %v3616_v34 }
 0x68d   : > { %15011 = vmatprep.subr.bf16.mxu0 %v15010_v48  ;;  %v3976_v48 = vld [vmem:[%s18692_s6 + $0x1468] sm:$0xff] }
 0x68e   : > { %14945 = vmatpush1.bf16.msra.mxu1 %v14944_v49  ;;  %v10372_v49 = vpop.f32.mrf.mxu1 }
 0x68f   : > { %14947 = vmatprep.subr.bf16.mxu1 %v14946_v50  ;;  %v15106_v50 = vunpack.c.h.s8.bf16 %v3402_v33  ;;  %v10373_v62 = vadd.f32 %v10372_v49, %v10301_v25 }
 0x690   : > { %15013 = vmatpush2.bf16.msra.mxu0 %v15012_v42  ;;  %v14976_v42 = vunpack.c.l.s8.bf16 %v3615_v44 }
 0x691   : > { %15015 = vmatprep.subr.bf16.mxu0 %v15014_v47  ;;  %v10443_v47 = vpop.f32.mrf.mxu0 }
 0x692   : > { %14949 = vmatpush2.bf16.msra.mxu1 %v14948_v52  ;;  %v15042_v52 = vunpack.c.h.s8.bf16 %v3976_v48  ;;  %v10444_v60 = vadd.f32 %v10443_v47, %v10373_v62 }
 0x693   : > { %14951 = vmatprep.subr.bf16.mxu1 %v14950_v55  ;;  %v15108_v55 = vunpack.c.h.s8.bf16 %v3401_v51 }
 0x694   : > { %15017 = vmatpush2.bf16.msra.mxu0 %v15016_v57  ;;  %v10374_v57 = vpop.f32.mrf.mxu1 }
 0x695   : > { %15019 = vmatprep.subr.bf16.mxu0 %v15018_v59  ;;  %v15110_v59 = vunpack.c.l.s8.bf16 %v3402_v33 }
 0x696   : > { %14953 = vmatpush2.bf16.msra.mxu1 %v14952_v15  ;;  %v19124_v15 = vld [vmem:[%s18700_s16] sm:$0xff] }
 0x697   : > { %14955 = vmatprep.subr.bf16.mxu1 %v14954_v63  ;;  %v15044_v63 = vunpack.c.h.s8.bf16 %v3975_v54  ;;  %v13802_v11 = vrot.slane %v19124_v15, %v18725_v10  ;;  %v13806_v35 = vrot.slane %v19124_v15, %v18728_v12 }
 0x698   : > { %15021 = vmatpush2.bf16.msra.mxu0 %v15020_v38  ;;  %v10445_v38 = vpop.f32.mrf.mxu0 }
 0x699   : > { %15023 = vmatprep.subr.bf16.mxu0 %v15022_v26  ;;  %v15046_v26 = vunpack.c.l.s8.bf16 %v3976_v48 }
 0x69a   : > { %14957 = vmatpush2.bf16.msra.mxu1 %v14956_v6  ;;  %v10375_v6 = vadd.f32 %v10374_v57, %v10303_v2  ;;  %v3353_v2 = vld [vmem:[%s18692_s6 + $0xf0] sm:$0xff] }
 0x69b   : > { %14959 = vmatprep.subr.bf16.mxu1 %v14958_v17  ;;  %v13652_v17 = vrot.slane %v19121_v58, %v18725_v10  ;;  %v15128_v57 = vunpack.c.l.s8.bf16 %v3353_v2 }
 0x69c   : > { %15025 = vmatpush2.bf16.msra.mxu0 %v15024_v7  ;;  %v15112_v7 = vunpack.c.l.s8.bf16 %v3401_v51  ;;  %v10446_v19 = vadd.f32 %v10445_v38, %v10375_v6  ;;  %v3927_v51 = vld [vmem:[%s18692_s6 + $0x12e0] sm:$0xff] }
 0x69d   : > { %15027 = vmatprep.subr.bf16.mxu0 %v15026_v8 }
 0x69e   : > { %14961 = vmatpush2.bf16.msra.mxu1 %v14960_v61  ;;  %v15114_v61 = vunpack.c.h.s8.bf16 %v3378_v0 }
 0x69f   : > { %14963 = vmatprep.subr.bf16.mxu1 %v14962_v32  ;;  %v3377_v32 = vld [vmem:[%s18692_s6 + $0x1b0] sm:$0xff] }
 0x6a0   : > { %15029 = vmatpush2.bf16.msra.mxu0 %v15028_v22 }
 0x6a1   : > { %15031 = vmatprep.subr.bf16.mxu0 %v15030_v28  ;;  %v13656_v28 = vrot.slane %v19121_v58, %v18728_v12 }
 0x6a2   : > { %14965 = vmatpush2.bf16.msra.mxu1 %v14964_v30  ;;  %v15048_v30 = vunpack.c.l.s8.bf16 %v3975_v54  ;;  %v3330_v54 = vld [vmem:[%s18692_s6 + $0x38] sm:$0xff] }
 0x6a3   : > { %14967 = vmatprep.subr.bf16.mxu1 %v14966_v14  ;;  %v15050_v14 = vunpack.c.h.s8.bf16 %v3952_v1  ;;  %v15130_v62 = vunpack.c.h.s8.bf16 %v3330_v54 }
 0x6a4   : > { %15033 = vmatpush2.bf16.msra.mxu0 %v15032_v31  ;;  %v3951_v31 = vld [vmem:[%s18692_s6 + $0x13a0] sm:$0xff] }
 0x6a5   : > { %15035 = vmatprep.subr.bf16.mxu0 %v15034_v27  ;;  %v15052_v25 = vunpack.c.h.s8.bf16 %v3951_v31  ;;  %v15056_v49 = vunpack.c.l.s8.bf16 %v3951_v31 }
 0x6a6   : > { %14969 = vmatpush2.bf16.msra.mxu1 %v14968_v37  ;;  %v15116_v37 = vunpack.c.h.s8.bf16 %v3377_v32 }
 0x6a7   : > { %14971 = vmatprep.subr.bf16.mxu1 %v14970_v43  ;;  %v15118_v43 = vunpack.c.l.s8.bf16 %v3378_v0  ;;  %v15064_v0 = vunpack.c.l.s8.bf16 %v3927_v51 }
 0x6a8   : > { %15037 = vmatpush2.bf16.msra.mxu0 %v15036_v45 }
 0x6a9   : > { %15039 = vmatprep.subr.bf16.mxu0 %v15038_v40  ;;  %v3354_v40 = vld [vmem:[%s18692_s6 + $0xf8] sm:$0xff] }
 0x6aa   : > { %14973 = vmatpush2.bf16.msra.mxu1 %v14972_v9  ;;  %v15054_v9 = vunpack.c.l.s8.bf16 %v3952_v1  ;;  %v15122_v48 = vunpack.c.h.s8.bf16 %v3354_v40  ;;  %v15126_v47 = vunpack.c.l.s8.bf16 %v3354_v40  ;;  %v3498_v1 = vld [vmem:[%s18692_s6 + $0x578] sm:$0xff] }
 0x6ab   : > { %14975 = vmatprep.subr.bf16.mxu1 %v14974_v46  ;;  %v15120_v46 = vunpack.c.l.s8.bf16 %v3377_v32  ;;  %v4072_v32 = vld [vmem:[%s18692_s6 + $0x1768] sm:$0xff]  ;;  %v15142_v31 = vunpack.c.l.s8.bf16 %v3498_v1 }
 0x6ac   : > { %15041 = vmatpush2.bf16.msra.mxu0 %v15040_v3  ;;  %v3928_v3 = vld [vmem:[%s18692_s6 + $0x12e8] sm:$0xff] }
 0x6ad   : > { %15107 = vmatprep.subr.bf16.mxu0 %v15106_v50  ;;  %v15058_v50 = vunpack.c.h.s8.bf16 %v3928_v3 }
 0x6ae   : > { %14977 = vmatpush2.bf16.msra.mxu1 %v14976_v42  ;;  %v15124_v42 = vunpack.c.h.s8.bf16 %v3353_v2 }
 0x6af   : > { %11010 = vmatmul.mubr.f32.vlgmr.msra.gmra.mxu0 %v18964_v21  ;;  %15043 = vmatprep.subr.bf16.mxu1 %v15042_v52  ;;  %v15060_v52 = vunpack.c.h.s8.bf16 %v3927_v51 }
 0x6b0   : > { %15109 = vmatpush1.bf16.msra.mxu0 %v15108_v55  ;;  %11151 = vmatprep.mubr.f32.mxu0 %v18848_v13  ;;  %v15062_v55 = vunpack.c.l.s8.bf16 %v3928_v3 }
 0x6b1   : > { %10939 = vmatmul.mubr.f32.vlgmr.msra.gmra.mxu1 %v18909_v29  ;;  %v10514_v8 = vpop.f32.mrf.mxu1  ;;  %15111 = vmatprep.subr.bf16.mxu0 %v15110_v59  ;;  %v3904_v59 = vld [vmem:[%s18692_s6 + $0x1228] sm:$0xff] }
 0x6b2   : > { %v10515_v22 = vadd.f32 %v10514_v8, %v10444_v60  ;;  %15045 = vmatpush1.bf16.msra.mxu1 %v15044_v63  ;;  %11080 = vmatprep.mubr.f32.mxu1 %v19007_v53  ;;  %v3329_v63 = vld [vmem:[%s18692_s6 + $0x30] sm:$0xff]  ;;  %v15066_v38 = vunpack.c.h.s8.bf16 %v3904_v59 }
 0x6b3   : > { %v10516_v18 = vpop.f32.mrf.mxu1  ;;  %15047 = vmatprep.subr.bf16.mxu1 %v15046_v26  ;;  %v3903_v26 = vld [vmem:[%s18692_s6 + $0x1220] sm:$0xff]  ;;  %v15132_v6 = vunpack.c.h.s8.bf16 %v3329_v63 }
 0x6b4   : > { %v13769_v34 = vmul.f32 %v13652_v17, %v10515_v22  ;;  %v10517_v27 = vadd.f32 %v10516_v18, %v10446_v19  ;;  %15113 = vmatpush1.bf16.msra.mxu0 %v15112_v7  ;;  %v15134_v17 = vunpack.c.l.s8.bf16 %v3330_v54  ;;  %v15068_v7 = vunpack.c.h.s8.bf16 %v3903_v26  ;;  %v3497_v22 = vld [vmem:[%s18692_s6 + $0x570] sm:$0xff]  ;;  %v4071_v18 = vld [vmem:[%s18692_s6 + $0x1760] sm:$0xff] }
 0x6b5   : > { %15115 = vmatprep.subr.bf16.mxu0 %v15114_v61  ;;  %v15136_v61 = vunpack.c.l.s8.bf16 %v3329_v63  ;;  %v15138_v19 = vunpack.c.h.s8.bf16 %v3498_v1  ;;  %v4023_v54 = vld [vmem:[%s18692_s6 + $0x15e0] sm:$0xff] }
 0x6b6   : > { %v13919_v44 = vadd.f32 %v13802_v11, %v13769_v34  ;;  %v13770_v45 = vmul.f32 %v13656_v28, %v10517_v27  ;;  %15049 = vmatpush1.bf16.msra.mxu1 %v15048_v30  ;;  %v15070_v11 = vunpack.c.l.s8.bf16 %v3904_v59  ;;  %v15072_v28 = vunpack.c.l.s8.bf16 %v3903_v26  ;;  %v3474_v27 = vld [vmem:[%s18692_s6 + $0x4b8] sm:$0xff] }
 0x6b7   : > { %15051 = vmatprep.subr.bf16.mxu1 %v15050_v14  ;;  %v15074_v30 = vunpack.c.h.s8.bf16 %v4072_v32  ;;  %v15140_v14 = vunpack.c.h.s8.bf16 %v3497_v22  ;;  %v15076_v34 = vunpack.c.h.s8.bf16 %v4071_v18  ;;  %v15092_v59 = vunpack.c.h.s8.bf16 %v4023_v54 }
 0x6b8   : > { %17656 = vtanh.f32 %v13919_v44  ;;  %v13920_v33 = vadd.f32 %v13806_v35, %v13770_v45  ;;  %15117 = vmatpush1.bf16.msra.mxu0 %v15116_v37  ;;  %v15078_v35 = vunpack.c.l.s8.bf16 %v4072_v32  ;;  %v15144_v37 = vunpack.c.l.s8.bf16 %v3497_v22  ;;  %v3473_v45 = vld [vmem:[%s18692_s6 + $0x4b0] sm:$0xff]  ;;  %v3594_v22 = vld [vmem:[%s18692_s6 + $0x878] sm:$0xff] }
 0x6b9   : > { %15119 = vmatprep.subr.bf16.mxu0 %v15118_v43  ;;  %v4048_v43 = vld [vmem:[%s18692_s6 + $0x16a8] sm:$0xff]  ;;  %v15146_v44 = vunpack.c.h.s8.bf16 %v3474_v27 }
 0x6ba   : > { %17658 = vtanh.f32 %v13920_v33  ;;  %15053 = vmatpush1.bf16.msra.mxu1 %v15052_v25  ;;  %v15080_v25 = vunpack.c.l.s8.bf16 %v4071_v18  ;;  %v15082_v40 = vunpack.c.h.s8.bf16 %v4048_v43  ;;  %v15148_v33 = vunpack.c.h.s8.bf16 %v3473_v45 }
 0x6bb   : > { %15055 = vmatprep.subr.bf16.mxu1 %v15054_v9  ;;  %v4047_v9 = vld [vmem:[%s18692_s6 + $0x16a0] sm:$0xff]  ;;  %v15086_v2 = vunpack.c.l.s8.bf16 %v4048_v43  ;;  %v15174_v43 = vunpack.c.l.s8.bf16 %v3594_v22 }
 0x6bc   : > { %15121 = vmatpush1.bf16.msra.mxu0 %v15120_v46  ;;  %v15150_v46 = vunpack.c.l.s8.bf16 %v3474_v27  ;;  %v15084_v3 = vunpack.c.h.s8.bf16 %v4047_v9 }
 0x6bd   : > { %15123 = vmatprep.subr.bf16.mxu0 %v15122_v48  ;;  %v3450_v48 = vld [vmem:[%s18692_s6 + $0x3f8] sm:$0xff] }
 0x6be   : > { %15057 = vmatpush1.bf16.msra.mxu1 %v15056_v49  ;;  %v15152_v49 = vunpack.c.l.s8.bf16 %v3473_v45  ;;  %v15154_v51 = vunpack.c.h.s8.bf16 %v3450_v48  ;;  %v3570_v45 = vld [vmem:[%s18692_s6 + $0x7b8] sm:$0xff] }
 0x6bf   : > { %15059 = vmatprep.subr.bf16.mxu1 %v15058_v50  ;;  %v4024_v50 = vld [vmem:[%s18692_s6 + $0x15e8] sm:$0xff] }
 0x6c0   : > { %15125 = vmatpush1.bf16.msra.mxu0 %v15124_v42  ;;  %v3449_v42 = vld [vmem:[%s18692_s6 + $0x3f0] sm:$0xff]  ;;  %v15094_v63 = vunpack.c.l.s8.bf16 %v4024_v50 }
 0x6c1   : > { %15127 = vmatprep.subr.bf16.mxu0 %v15126_v47  ;;  %v15088_v47 = vunpack.c.l.s8.bf16 %v4047_v9 }
 0x6c2   : > { %15061 = vmatpush1.bf16.msra.mxu1 %v15060_v52  ;;  %v15090_v52 = vunpack.c.h.s8.bf16 %v4024_v50  ;;  %v15182_v50 = vunpack.c.l.s8.bf16 %v3570_v45 }
 0x6c3   : > { %15063 = vmatprep.subr.bf16.mxu1 %v15062_v55  ;;  %v15156_v55 = vunpack.c.h.s8.bf16 %v3449_v42 }
 0x6c4   : > { %15129 = vmatpush1.bf16.msra.mxu0 %v15128_v57  ;;  %v15158_v57 = vunpack.c.l.s8.bf16 %v3450_v48 }
 0x6c5   : > { %v17657_v60 = vpop.eup %17656  ;;  %15131 = vmatprep.subr.bf16.mxu0 %v15130_v62  ;;  %v3426_v62 = vld [vmem:[%s18692_s6 + $0x338] sm:$0xff] }
 0x6c6   : > { %13967 = vst [vmem:[%s19163_s5] sm:$0xff] %v17657_v60  ;;  %15065 = vmatpush1.bf16.msra.mxu1 %v15064_v0  ;;  %v15160_v0 = vunpack.c.l.s8.bf16 %v3449_v42  ;;  %v15162_v26 = vunpack.c.h.s8.bf16 %v3426_v62  ;;  %v15096_v60 = vunpack.c.l.s8.bf16 %v4023_v54  ;;  %v3546_v42 = vld [vmem:[%s18692_s6 + $0x6f8] sm:$0xff] }
 0x6c7   : > { %v17659_v8 = vpop.eup %17658  ;;  %15067 = vmatprep.subr.bf16.mxu1 %v15066_v38  ;;  %v4000_v38 = vld [vmem:[%s18692_s6 + $0x1528] sm:$0xff] }
 0x6c8   : > { %13968 = vst [vmem:[%s19163_s5 + $0x8] sm:$0xff] %v17659_v8  ;;  %15133 = vmatpush1.bf16.msra.mxu0 %v15132_v6  ;;  %v3425_v6 = vld [vmem:[%s18692_s6 + $0x330] sm:$0xff]  ;;  %v15166_v8 = vunpack.c.l.s8.bf16 %v3426_v62  ;;  %v15102_v32 = vunpack.c.l.s8.bf16 %v4000_v38 }
 0x6c9   : > { %15135 = vmatprep.subr.bf16.mxu0 %v15134_v17  ;;  %v15098_v17 = vunpack.c.h.s8.bf16 %v4000_v38  ;;  %v15164_v1 = vunpack.c.h.s8.bf16 %v3425_v6  ;;  %v15190_v38 = vunpack.c.l.s8.bf16 %v3546_v42 }
 0x6ca   : > { %15069 = vmatpush1.bf16.msra.mxu1 %v15068_v7  ;;  %v3999_v7 = vld [vmem:[%s18692_s6 + $0x1520] sm:$0xff] }
 0x6cb   : > { %15071 = vmatprep.subr.bf16.mxu1 %v15070_v11  ;;  %v15100_v11 = vunpack.c.h.s8.bf16 %v3999_v7  ;;  %v15104_v18 = vunpack.c.l.s8.bf16 %v3999_v7 }
 0x6cc   : > { %15137 = vmatpush1.bf16.msra.mxu0 %v15136_v61  ;;  %v3786_v61 = vld [vmem:[%s18692_s6 + $0xe78] sm:$0xff] }
 0x6cd   : > { %15139 = vmatprep.subr.bf16.mxu0 %v15138_v19  ;;  %v15168_v19 = vunpack.c.l.s8.bf16 %v3425_v6  ;;  %v15238_v27 = vunpack.c.l.s8.bf16 %v3786_v61  ;;  %v3522_v6 = vld [vmem:[%s18692_s6 + $0x638] sm:$0xff] }
 0x6ce   : > { %15073 = vmatpush1.bf16.msra.mxu1 %v15072_v28  ;;  %v15234_v28 = vunpack.c.h.s8.bf16 %v3786_v61 }
 0x6cf   : > { %15075 = vmatprep.subr.bf16.mxu1 %v15074_v30  ;;  %v3785_v30 = vld [vmem:[%s18692_s6 + $0xe70] sm:$0xff] }
 0x6d0   : > { %15141 = vmatpush2.bf16.msra.mxu0 %v15140_v14  ;;  %v15170_v14 = vunpack.c.h.s8.bf16 %v3594_v22  ;;  %v15198_v22 = vunpack.c.l.s8.bf16 %v3522_v6 }
 0x6d1   : > { %15143 = vmatprep.subr.bf16.mxu0 %v15142_v31  ;;  %v3593_v31 = vld [vmem:[%s18692_s6 + $0x870] sm:$0xff] }
 0x6d2   : > { %15077 = vmatpush2.bf16.msra.mxu1 %v15076_v34  ;;  %v15236_v34 = vunpack.c.h.s8.bf16 %v3785_v30  ;;  %v15176_v9 = vunpack.c.l.s8.bf16 %v3593_v31 }
 0x6d3   : > { %15079 = vmatprep.subr.bf16.mxu1 %v15078_v35  ;;  %v15172_v35 = vunpack.c.h.s8.bf16 %v3593_v31 }
 0x6d4   : > { %15145 = vmatpush2.bf16.msra.mxu0 %v15144_v37  ;;  %v3762_v37 = vld [vmem:[%s18692_s6 + $0xdb8] sm:$0xff] }
 0x6d5   : > { %15147 = vmatprep.subr.bf16.mxu0 %v15146_v44  ;;  %v15240_v44 = vunpack.c.l.s8.bf16 %v3785_v30  ;;  %v15246_v48 = vunpack.c.l.s8.bf16 %v3762_v37  ;;  %v3690_v30 = vld [vmem:[%s18692_s6 + $0xb78] sm:$0xff] }
 0x6d6   : > { %15081 = vmatpush2.bf16.msra.mxu1 %v15080_v25  ;;  %v15242_v25 = vunpack.c.h.s8.bf16 %v3762_v37 }
 0x6d7   : > { %15083 = vmatprep.subr.bf16.mxu1 %v15082_v40  ;;  %v3761_v40 = vld [vmem:[%s18692_s6 + $0xdb0] sm:$0xff] }
 0x6d8   : > { %15149 = vmatpush2.bf16.msra.mxu0 %v15148_v33  ;;  %v15178_v33 = vunpack.c.h.s8.bf16 %v3570_v45  ;;  %v15206_v45 = vunpack.c.l.s8.bf16 %v3690_v30 }
 0x6d9   : > { %15151 = vmatprep.subr.bf16.mxu0 %v15150_v46  ;;  %v3569_v46 = vld [vmem:[%s18692_s6 + $0x7b0] sm:$0xff] }
 0x6da   : > { %15085 = vmatpush2.bf16.msra.mxu1 %v15084_v3  ;;  %v15244_v3 = vunpack.c.h.s8.bf16 %v3761_v40  ;;  %v15184_v54 = vunpack.c.l.s8.bf16 %v3569_v46 }
 0x6db   : > { %15087 = vmatprep.subr.bf16.mxu1 %v15086_v2  ;;  %v15180_v2 = vunpack.c.h.s8.bf16 %v3569_v46 }
 0x6dc   : > { %15153 = vmatpush2.bf16.msra.mxu0 %v15152_v49  ;;  %v3738_v49 = vld [vmem:[%s18692_s6 + $0xcf8] sm:$0xff] }
 0x6dd   : > { %15155 = vmatprep.subr.bf16.mxu0 %v15154_v51  ;;  %v15248_v51 = vunpack.c.l.s8.bf16 %v3761_v40  ;;  %v15254_v62 = vunpack.c.l.s8.bf16 %v3738_v49  ;;  %v3666_v40 = vld [vmem:[%s18692_s6 + $0xab8] sm:$0xff] }
 0x6de   : > { %15089 = vmatpush2.bf16.msra.mxu1 %v15088_v47  ;;  %v15250_v47 = vunpack.c.h.s8.bf16 %v3738_v49 }
 0x6df   : > { %15091 = vmatprep.subr.bf16.mxu1 %v15090_v52  ;;  %v3737_v52 = vld [vmem:[%s18692_s6 + $0xcf0] sm:$0xff] }
 0x6e0   : > { %15157 = vmatpush2.bf16.msra.mxu0 %v15156_v55  ;;  %v15186_v55 = vunpack.c.h.s8.bf16 %v3546_v42  ;;  %v15214_v42 = vunpack.c.l.s8.bf16 %v3666_v40 }
 0x6e1   : > { %15159 = vmatprep.subr.bf16.mxu0 %v15158_v57  ;;  %v3545_v57 = vld [vmem:[%s18692_s6 + $0x6f0] sm:$0xff] }
 0x6e2   : > { %15093 = vmatpush2.bf16.msra.mxu1 %v15092_v59  ;;  %v15252_v59 = vunpack.c.h.s8.bf16 %v3737_v52  ;;  %v15192_v7 = vunpack.c.l.s8.bf16 %v3545_v57 }
 0x6e3   : > { %15095 = vmatprep.subr.bf16.mxu1 %v15094_v63  ;;  %v15188_v63 = vunpack.c.h.s8.bf16 %v3545_v57 }
 0x6e4   : > { %15161 = vmatpush2.bf16.msra.mxu0 %v15160_v0  ;;  %v3714_v0 = vld [vmem:[%s18692_s6 + $0xc38] sm:$0xff] }
 0x6e5   : > { %15163 = vmatprep.subr.bf16.mxu0 %v15162_v26  ;;  %v15256_v26 = vunpack.c.l.s8.bf16 %v3737_v52  ;;  %v15262_v61 = vunpack.c.l.s8.bf16 %v3714_v0  ;;  %v3642_v52 = vld [vmem:[%s18692_s6 + $0x9f8] sm:$0xff] }
 0x6e6   : > { %15097 = vmatpush2.bf16.msra.mxu1 %v15096_v60  ;;  %v15258_v60 = vunpack.c.h.s8.bf16 %v3714_v0 }
 0x6e7   : > { %15099 = vmatprep.subr.bf16.mxu1 %v15098_v17  ;;  %v3713_v17 = vld [vmem:[%s18692_s6 + $0xc30] sm:$0xff] }
 0x6e8   : > { %15165 = vmatpush2.bf16.msra.mxu0 %v15164_v1  ;;  %v15194_v1 = vunpack.c.h.s8.bf16 %v3522_v6  ;;  %v15222_v6 = vunpack.c.l.s8.bf16 %v3642_v52 }
 0x6e9   : > { %15167 = vmatprep.subr.bf16.mxu0 %v15166_v8  ;;  %v3521_v8 = vld [vmem:[%s18692_s6 + $0x630] sm:$0xff] }
 0x6ea   : > { %15101 = vmatpush2.bf16.msra.mxu1 %v15100_v11  ;;  %v15260_v11 = vunpack.c.h.s8.bf16 %v3713_v17  ;;  %v15200_v31 = vunpack.c.l.s8.bf16 %v3521_v8 }
 0x6eb   : > { %15103 = vmatprep.subr.bf16.mxu1 %v15102_v32  ;;  %v15196_v32 = vunpack.c.h.s8.bf16 %v3521_v8 }
 0x6ec   : > { %15169 = vmatpush2.bf16.msra.mxu0 %v15168_v19  ;;  %v3882_v19 = vld [vmem:[%s18692_s6 + $0x1178] sm:$0xff] }
 0x6ed   : > { %15235 = vmatprep.subr.bf16.mxu0 %v15234_v28  ;;  %v15264_v28 = vunpack.c.l.s8.bf16 %v3713_v17  ;;  %v15270_v37 = vunpack.c.l.s8.bf16 %v3882_v19  ;;  %v3618_v17 = vld [vmem:[%s18692_s6 + $0x938] sm:$0xff] }
 0x6ee   : > { %15105 = vmatpush2.bf16.msra.mxu1 %v15104_v18  ;;  %v15266_v18 = vunpack.c.h.s8.bf16 %v3882_v19 }
 0x6ef   : > { %11152 = vmatmul.mubr.f32.vlgmr.msra.gmra.mxu0 %v18861_v36  ;;  %15171 = vmatprep.subr.bf16.mxu1 %v15170_v14  ;;  %v3881_v14 = vld [vmem:[%s18692_s6 + $0x1170] sm:$0xff] }
 0x6f0   : > { %15237 = vmatpush1.bf16.msra.mxu0 %v15236_v34  ;;  %11293 = vmatprep.mubr.f32.mxu0 %v18958_v39  ;;  %v15202_v34 = vunpack.c.h.s8.bf16 %v3690_v30  ;;  %v10585_v30 = vpop.f32.mrf.mxu0 }
 0x6f1   : > { %11081 = vmatmul.mubr.f32.vlgmr.msra.gmra.mxu1 %v19011_v56  ;;  %15239 = vmatprep.subr.bf16.mxu0 %v15238_v27  ;;  %v3689_v27 = vld [vmem:[%s18692_s6 + $0xb70] sm:$0xff] }
 0x6f2   : > { %15173 = vmatpush1.bf16.msra.mxu1 %v15172_v35  ;;  %11222 = vmatprep.mubr.f32.mxu1 %v18903_v23  ;;  %v15268_v35 = vunpack.c.h.s8.bf16 %v3881_v14  ;;  %v15208_v46 = vunpack.c.l.s8.bf16 %v3689_v27 }
 0x6f3   : > { %15175 = vmatprep.subr.bf16.mxu1 %v15174_v43  ;;  %v15204_v43 = vunpack.c.h.s8.bf16 %v3689_v27 }
 0x6f4   : > { %15241 = vmatpush1.bf16.msra.mxu0 %v15240_v44  ;;  %v3858_v44 = vld [vmem:[%s18692_s6 + $0x10b8] sm:$0xff] }
 0x6f5   : > { %15243 = vmatprep.subr.bf16.mxu0 %v15242_v25  ;;  %v15272_v25 = vunpack.c.l.s8.bf16 %v3881_v14  ;;  %v15278_v49 = vunpack.c.l.s8.bf16 %v3858_v44  ;;  %v15230_v14 = vunpack.c.l.s8.bf16 %v3618_v17 }
 0x6f6   : > { %15177 = vmatpush1.bf16.msra.mxu1 %v15176_v9  ;;  %v15274_v9 = vunpack.c.h.s8.bf16 %v3858_v44 }
 0x6f7   : > { %15179 = vmatprep.subr.bf16.mxu1 %v15178_v33  ;;  %v3857_v33 = vld [vmem:[%s18692_s6 + $0x10b0] sm:$0xff] }
 0x6f8   : > { %15245 = vmatpush1.bf16.msra.mxu0 %v15244_v3  ;;  %v15210_v3 = vunpack.c.h.s8.bf16 %v3666_v40 }
 0x6f9   : > { %15247 = vmatprep.subr.bf16.mxu0 %v15246_v48  ;;  %v3665_v48 = vld [vmem:[%s18692_s6 + $0xab0] sm:$0xff] }
 0x6fa   : > { %15181 = vmatpush1.bf16.msra.mxu1 %v15180_v2  ;;  %v15276_v2 = vunpack.c.h.s8.bf16 %v3857_v33  ;;  %v15216_v57 = vunpack.c.l.s8.bf16 %v3665_v48 }
 0x6fb   : > { %15183 = vmatprep.subr.bf16.mxu1 %v15182_v50  ;;  %v15212_v50 = vunpack.c.h.s8.bf16 %v3665_v48 }
 0x6fc   : > { %15249 = vmatpush1.bf16.msra.mxu0 %v15248_v51  ;;  %v3834_v51 = vld [vmem:[%s18692_s6 + $0xff8] sm:$0xff] }
 0x6fd   : > { %15251 = vmatprep.subr.bf16.mxu0 %v15250_v47  ;;  %v15280_v47 = vunpack.c.l.s8.bf16 %v3857_v33  ;;  %v15286_v0 = vunpack.c.l.s8.bf16 %v3834_v51 }
 0x6fe   : > { %15185 = vmatpush1.bf16.msra.mxu1 %v15184_v54  ;;  %v15282_v54 = vunpack.c.h.s8.bf16 %v3834_v51  ;;  %v13660_v51 = vrot.slane %v19121_v58, %v18745_v4 }
 0x6ff   : > { %15187 = vmatprep.subr.bf16.mxu1 %v15186_v55  ;;  %v3833_v55 = vld [vmem:[%s18692_s6 + $0xff0] sm:$0xff] }
 0x700   : > { %15253 = vmatpush1.bf16.msra.mxu0 %v15252_v59  ;;  %v15218_v59 = vunpack.c.h.s8.bf16 %v3642_v52 }
 0x701   : > { %15255 = vmatprep.subr.bf16.mxu0 %v15254_v62  ;;  %v3641_v62 = vld [vmem:[%s18692_s6 + $0x9f0] sm:$0xff] }
 0x702   : > { %15189 = vmatpush1.bf16.msra.mxu1 %v15188_v63  ;;  %v15284_v63 = vunpack.c.h.s8.bf16 %v3833_v55  ;;  %v15224_v8 = vunpack.c.l.s8.bf16 %v3641_v62 }
 0x703   : > { %15191 = vmatprep.subr.bf16.mxu1 %v15190_v38  ;;  %v15220_v38 = vunpack.c.h.s8.bf16 %v3641_v62 }
 0x704   : > { %15257 = vmatpush1.bf16.msra.mxu0 %v15256_v26  ;;  %v3810_v26 = vld [vmem:[%s18692_s6 + $0xf38] sm:$0xff] }
 0x705   : > { %15259 = vmatprep.subr.bf16.mxu0 %v15258_v60  ;;  %v15288_v60 = vunpack.c.l.s8.bf16 %v3833_v55  ;;  %v15294_v19 = vunpack.c.l.s8.bf16 %v3810_v26  ;;  %v13810_v55 = vrot.slane %v19124_v15, %v18745_v4 }
 0x706   : > { %15193 = vmatpush1.bf16.msra.mxu1 %v15192_v7  ;;  %v15290_v7 = vunpack.c.h.s8.bf16 %v3810_v26 }
 0x707   : > { %15195 = vmatprep.subr.bf16.mxu1 %v15194_v1  ;;  %v3809_v1 = vld [vmem:[%s18692_s6 + $0xf30] sm:$0xff] }
 0x708   : > { %15261 = vmatpush1.bf16.msra.mxu0 %v15260_v11  ;;  %v15226_v11 = vunpack.c.h.s8.bf16 %v3618_v17 }
 0x709   : > { %15263 = vmatprep.subr.bf16.mxu0 %v15262_v61  ;;  %v3617_v61 = vld [vmem:[%s18692_s6 + $0x930] sm:$0xff] }
 0x70a   : > { %15197 = vmatpush1.bf16.msra.mxu1 %v15196_v32  ;;  %v15292_v32 = vunpack.c.h.s8.bf16 %v3809_v1 }
 0x70b   : > { %15199 = vmatprep.subr.bf16.mxu1 %v15198_v22  ;;  %v15228_v22 = vunpack.c.h.s8.bf16 %v3617_v61 }
 0x70c   : > { %15265 = vmatpush1.bf16.msra.mxu0 %v15264_v28  ;;  %v3404_v28 = vld [vmem:[%s18692_s6 + $0x288] sm:$0xff] }
 0x70d   : > { %15267 = vmatprep.subr.bf16.mxu0 %v15266_v18  ;;  %v10656_v18 = vpop.f32.mrf.mxu1  ;;  %v15362_v27 = vunpack.c.h.s8.bf16 %v3404_v28 }
 0x70e   : > { %15201 = vmatpush1.bf16.msra.mxu1 %v15200_v31  ;;  %v15296_v31 = vunpack.c.l.s8.bf16 %v3809_v1  ;;  %v10657_v40 = vadd.f32 %v10656_v18, %v10585_v30  ;;  %v13814_v1 = vrot.slane %v19124_v15, %v18748_v5  ;;  %v3930_v18 = vld [vmem:[%s18692_s6 + $0x12f8] sm:$0xff] }
 0x70f   : > { %15203 = vmatprep.subr.bf16.mxu1 %v15202_v34  ;;  %v3978_v34 = vld [vmem:[%s18692_s6 + $0x1478] sm:$0xff]  ;;  %v10658_v44 = vpop.f32.mrf.mxu1 }
 0x710   : > { %15269 = vmatpush2.bf16.msra.mxu0 %v15268_v35  ;;  %v3403_v35 = vld [vmem:[%s18692_s6 + $0x280] sm:$0xff] }
 0x711   : > { %15271 = vmatprep.subr.bf16.mxu0 %v15270_v37  ;;  %v15232_v37 = vunpack.c.l.s8.bf16 %v3617_v61 }
 0x712   : > { %15205 = vmatpush2.bf16.msra.mxu1 %v15204_v43  ;;  %v10587_v43 = vpop.f32.mrf.mxu0 }
 0x713   : > { %15207 = vmatprep.subr.bf16.mxu1 %v15206_v45  ;;  %v15298_v45 = vunpack.c.h.s8.bf16 %v3978_v34 }
 0x714   : > { %15273 = vmatpush2.bf16.msra.mxu0 %v15272_v25  ;;  %v3977_v25 = vld [vmem:[%s18692_s6 + $0x1470] sm:$0xff]  ;;  %v10727_v33 = vpop.f32.mrf.mxu0 }
 0x715   : > { %15275 = vmatprep.subr.bf16.mxu0 %v15274_v9  ;;  %v15364_v9 = vunpack.c.h.s8.bf16 %v3403_v35  ;;  %v15300_v48 = vunpack.c.h.s8.bf16 %v3977_v25 }
 0x716   : > { %15209 = vmatpush2.bf16.msra.mxu1 %v15208_v46  ;;  %v15366_v46 = vunpack.c.l.s8.bf16 %v3404_v28  ;;  %v10729_v52 = vpop.f32.mrf.mxu0 }
 0x717   : > { %15211 = vmatprep.subr.bf16.mxu1 %v15210_v3  ;;  %v10659_v3 = vadd.f32 %v10658_v44, %v10587_v43  ;;  %v3332_v44 = vld [vmem:[%s18692_s6 + $0x48] sm:$0xff] }
 0x718   : > { %15277 = vmatpush2.bf16.msra.mxu0 %v15276_v2  ;;  %v3380_v2 = vld [vmem:[%s18692_s6 + $0x1c8] sm:$0xff] }
 0x719   : > { %15279 = vmatprep.subr.bf16.mxu0 %v15278_v49  ;;  %v15302_v49 = vunpack.c.l.s8.bf16 %v3978_v34  ;;  %v10730_v62 = vadd.f32 %v10729_v52, %v10659_v3  ;;  %v15314_v34 = vunpack.c.h.s8.bf16 %v3930_v18 }
 0x71a   : > { %15213 = vmatpush2.bf16.msra.mxu1 %v15212_v50  ;;  %v10728_v50 = vadd.f32 %v10727_v33, %v10657_v40  ;;  %v3906_v40 = vld [vmem:[%s18692_s6 + $0x1238] sm:$0xff]  ;;  %v3331_v33 = vld [vmem:[%s18692_s6 + $0x40] sm:$0xff] }
 0x71b   : > { %15215 = vmatprep.subr.bf16.mxu1 %v15214_v42  ;;  %v15368_v42 = vunpack.c.l.s8.bf16 %v3403_v35  ;;  %v15322_v3 = vunpack.c.h.s8.bf16 %v3906_v40  ;;  %v15326_v52 = vunpack.c.l.s8.bf16 %v3906_v40 }
 0x71c   : > { %15281 = vmatpush2.bf16.msra.mxu0 %v15280_v47  ;;  %v3954_v47 = vld [vmem:[%s18692_s6 + $0x13b8] sm:$0xff] }
 0x71d   : > { %15283 = vmatprep.subr.bf16.mxu0 %v15282_v54 }
 0x71e   : > { %15217 = vmatpush2.bf16.msra.mxu1 %v15216_v57  ;;  %v15370_v57 = vunpack.c.h.s8.bf16 %v3380_v2 }
 0x71f   : > { %15219 = vmatprep.subr.bf16.mxu1 %v15218_v59  ;;  %v3379_v59 = vld [vmem:[%s18692_s6 + $0x1c0] sm:$0xff] }
 0x720   : > { %15285 = vmatpush2.bf16.msra.mxu0 %v15284_v63  ;;  %v15376_v30 = vunpack.c.l.s8.bf16 %v3379_v59 }
 0x721   : > { %15287 = vmatprep.subr.bf16.mxu0 %v15286_v0  ;;  %v13664_v0 = vrot.slane %v19121_v58, %v18748_v5 }
 0x722   : > { %15221 = vmatpush2.bf16.msra.mxu1 %v15220_v38  ;;  %v15304_v38 = vunpack.c.l.s8.bf16 %v3977_v25 }
 0x723   : > { %15223 = vmatprep.subr.bf16.mxu1 %v15222_v6  ;;  %v15306_v6 = vunpack.c.h.s8.bf16 %v3954_v47 }
 0x724   : > { %15289 = vmatpush2.bf16.msra.mxu0 %v15288_v60  ;;  %v3953_v60 = vld [vmem:[%s18692_s6 + $0x13b0] sm:$0xff] }
 0x725   : > { %15291 = vmatprep.subr.bf16.mxu0 %v15290_v7  ;;  %v15308_v58 = vunpack.c.h.s8.bf16 %v3953_v60 }
 0x726   : > { %15225 = vmatpush2.bf16.msra.mxu1 %v15224_v8  ;;  %v15372_v8 = vunpack.c.h.s8.bf16 %v3379_v59  ;;  %v3499_v59 = vld [vmem:[%s18692_s6 + $0x580] sm:$0xff] }
 0x727   : > { %15227 = vmatprep.subr.bf16.mxu1 %v15226_v11  ;;  %v15374_v11 = vunpack.c.l.s8.bf16 %v3380_v2  ;;  %v15388_v2 = vunpack.c.h.s8.bf16 %v3331_v33 }
 0x728   : > { %15293 = vmatpush2.bf16.msra.mxu0 %v15292_v32 }
 0x729   : > { %15295 = vmatprep.subr.bf16.mxu0 %v15294_v19  ;;  %v3356_v19 = vld [vmem:[%s18692_s6 + $0x108] sm:$0xff] }
 0x72a   : > { %15229 = vmatpush2.bf16.msra.mxu1 %v15228_v22  ;;  %v15310_v22 = vunpack.c.l.s8.bf16 %v3954_v47  ;;  %v15378_v15 = vunpack.c.h.s8.bf16 %v3356_v19 }
 0x72b   : > { %15231 = vmatprep.subr.bf16.mxu1 %v15230_v14  ;;  %v3355_v14 = vld [vmem:[%s18692_s6 + $0x100] sm:$0xff] }
 0x72c   : > { %15297 = vmatpush2.bf16.msra.mxu0 %v15296_v31  ;;  %v15312_v31 = vunpack.c.l.s8.bf16 %v3953_v60  ;;  %v15380_v35 = vunpack.c.h.s8.bf16 %v3355_v14  ;;  %v15384_v25 = vunpack.c.l.s8.bf16 %v3355_v14  ;;  %v3476_v60 = vld [vmem:[%s18692_s6 + $0x4c8] sm:$0xff]  ;;  %v4026_v14 = vld [vmem:[%s18692_s6 + $0x15f8] sm:$0xff] }
 0x72d   : > { %15363 = vmatprep.subr.bf16.mxu0 %v15362_v27  ;;  %v3929_v27 = vld [vmem:[%s18692_s6 + $0x12f0] sm:$0xff]  ;;  %v15350_v40 = vunpack.c.l.s8.bf16 %v4026_v14 }
 0x72e   : > { %15233 = vmatpush2.bf16.msra.mxu1 %v15232_v37  ;;  %v15382_v37 = vunpack.c.l.s8.bf16 %v3356_v19  ;;  %v15316_v43 = vunpack.c.h.s8.bf16 %v3929_v27 }
 0x72f   : > { %11294 = vmatmul.mubr.f32.vlgmr.msra.gmra.mxu0 %v18964_v21  ;;  %15299 = vmatprep.subr.bf16.mxu1 %v15298_v45  ;;  %v15318_v45 = vunpack.c.l.s8.bf16 %v3930_v18 }
 0x730   : > { %15365 = vmatpush1.bf16.msra.mxu0 %v15364_v9  ;;  %11435 = vmatprep.mubr.f32.mxu0 %v18848_v13  ;;  %v15386_v9 = vunpack.c.h.s8.bf16 %v3332_v44 }
 0x731   : > { %v10798_v54 = vpop.f32.mrf.mxu1  ;;  %11223 = vmatmul.mubr.f32.vlgmr.msra.gmra.mxu1 %v18909_v29  ;;  %15367 = vmatprep.subr.bf16.mxu0 %v15366_v46  ;;  %v15320_v46 = vunpack.c.l.s8.bf16 %v3929_v27 }
 0x732   : > { %v10799_v63 = vadd.f32 %v10798_v54, %v10728_v50  ;;  %15301 = vmatpush1.bf16.msra.mxu1 %v15300_v48  ;;  %11364 = vmatprep.mubr.f32.mxu1 %v19007_v53  ;;  %v3905_v48 = vld [vmem:[%s18692_s6 + $0x1230] sm:$0xff]  ;;  %v15390_v50 = vunpack.c.l.s8.bf16 %v3332_v44  ;;  %v15392_v54 = vunpack.c.l.s8.bf16 %v3331_v33  ;;  %v4002_v33 = vld [vmem:[%s18692_s6 + $0x1538] sm:$0xff] }
 0x733   : > { %v10800_v26 = vpop.f32.mrf.mxu1  ;;  %15303 = vmatprep.subr.bf16.mxu1 %v15302_v49 }
 0x734   : > { %v13771_v17 = vmul.f32 %v13660_v51, %v10799_v63  ;;  %v10801_v7 = vadd.f32 %v10800_v26, %v10730_v62  ;;  %15369 = vmatpush1.bf16.msra.mxu0 %v15368_v42  ;;  %v15324_v51 = vunpack.c.h.s8.bf16 %v3905_v48  ;;  %v3500_v42 = vld [vmem:[%s18692_s6 + $0x588] sm:$0xff]  ;;  %v15328_v62 = vunpack.c.l.s8.bf16 %v3905_v48 }
 0x735   : > { %15371 = vmatprep.subr.bf16.mxu0 %v15370_v57  ;;  %v15394_v57 = vunpack.c.h.s8.bf16 %v3500_v42  ;;  %v15398_v26 = vunpack.c.l.s8.bf16 %v3500_v42 }
 0x736   : > { %v13921_v61 = vadd.f32 %v13810_v55, %v13771_v17  ;;  %v13772_v32 = vmul.f32 %v13664_v0, %v10801_v7  ;;  %15305 = vmatpush1.bf16.msra.mxu1 %v15304_v38  ;;  %v4074_v55 = vld [vmem:[%s18692_s6 + $0x1778] sm:$0xff]  ;;  %v4073_v0 = vld [vmem:[%s18692_s6 + $0x1770] sm:$0xff]  ;;  %v15396_v38 = vunpack.c.h.s8.bf16 %v3499_v59  ;;  %v15400_v7 = vunpack.c.l.s8.bf16 %v3499_v59  ;;  %v3787_v59 = vld [vmem:[%s18692_s6 + $0xe80] sm:$0xff] }
 0x737   : > { %15307 = vmatprep.subr.bf16.mxu1 %v15306_v6  ;;  %v15330_v63 = vunpack.c.h.s8.bf16 %v4074_v55  ;;  %v15332_v6 = vunpack.c.h.s8.bf16 %v4073_v0  ;;  %v15334_v17 = vunpack.c.l.s8.bf16 %v4074_v55  ;;  %v3596_v55 = vld [vmem:[%s18692_s6 + $0x888] sm:$0xff] }
 0x738   : > { %17660 = vtanh.f32 %v13921_v61  ;;  %v13922_v28 = vadd.f32 %v13814_v1, %v13772_v32  ;;  %15373 = vmatpush1.bf16.msra.mxu0 %v15372_v8  ;;  %v4050_v1 = vld [vmem:[%s18692_s6 + $0x16b8] sm:$0xff]  ;;  %v15402_v8 = vunpack.c.h.s8.bf16 %v3476_v60  ;;  %v15336_v61 = vunpack.c.l.s8.bf16 %v4073_v0  ;;  %v3595_v0 = vld [vmem:[%s18692_s6 + $0x880] sm:$0xff] }
 0x739   : > { %15375 = vmatprep.subr.bf16.mxu0 %v15374_v11  ;;  %v3475_v11 = vld [vmem:[%s18692_s6 + $0x4c0] sm:$0xff]  ;;  %v15338_v32 = vunpack.c.h.s8.bf16 %v4050_v1  ;;  %v15342_v18 = vunpack.c.l.s8.bf16 %v4050_v1  ;;  %v3572_v1 = vld [vmem:[%s18692_s6 + $0x7c8] sm:$0xff] }
 0x73a   : > { %17662 = vtanh.f32 %v13922_v28  ;;  %15309 = vmatpush1.bf16.msra.mxu1 %v15308_v58  ;;  %v4049_v58 = vld [vmem:[%s18692_s6 + $0x16b0] sm:$0xff]  ;;  %v15404_v19 = vunpack.c.h.s8.bf16 %v3475_v11 }
 0x73b   : > { %15311 = vmatprep.subr.bf16.mxu1 %v15310_v22  ;;  %v15406_v22 = vunpack.c.l.s8.bf16 %v3476_v60  ;;  %v15340_v28 = vunpack.c.h.s8.bf16 %v4049_v58  ;;  %v15344_v27 = vunpack.c.l.s8.bf16 %v4049_v58  ;;  %v3764_v60 = vld [vmem:[%s18692_s6 + $0xdc8] sm:$0xff]  ;;  %v3571_v58 = vld [vmem:[%s18692_s6 + $0x7c0] sm:$0xff] }
 0x73c   : > { %15377 = vmatpush1.bf16.msra.mxu0 %v15376_v30  ;;  %v3452_v30 = vld [vmem:[%s18692_s6 + $0x408] sm:$0xff] }
 0x73d   : > { %15379 = vmatprep.subr.bf16.mxu0 %v15378_v15  ;;  %v15408_v15 = vunpack.c.l.s8.bf16 %v3475_v11  ;;  %v15414_v44 = vunpack.c.l.s8.bf16 %v3452_v30  ;;  %v3763_v11 = vld [vmem:[%s18692_s6 + $0xdc0] sm:$0xff] }
 0x73e   : > { %15313 = vmatpush1.bf16.msra.mxu1 %v15312_v31  ;;  %v15410_v31 = vunpack.c.h.s8.bf16 %v3452_v30  ;;  %v3740_v30 = vld [vmem:[%s18692_s6 + $0xd08] sm:$0xff] }
 0x73f   : > { %15315 = vmatprep.subr.bf16.mxu1 %v15314_v34  ;;  %v3451_v34 = vld [vmem:[%s18692_s6 + $0x400] sm:$0xff] }
 0x740   : > { %15381 = vmatpush1.bf16.msra.mxu0 %v15380_v35  ;;  %v15346_v35 = vunpack.c.h.s8.bf16 %v4026_v14  ;;  %v3548_v14 = vld [vmem:[%s18692_s6 + $0x708] sm:$0xff] }
 0x741   : > { %15383 = vmatprep.subr.bf16.mxu0 %v15382_v37  ;;  %v4025_v37 = vld [vmem:[%s18692_s6 + $0x15f0] sm:$0xff] }
 0x742   : > { %15317 = vmatpush1.bf16.msra.mxu1 %v15316_v43  ;;  %v15412_v43 = vunpack.c.h.s8.bf16 %v3451_v34  ;;  %v15352_v48 = vunpack.c.l.s8.bf16 %v4025_v37 }
 0x743   : > { %15319 = vmatprep.subr.bf16.mxu1 %v15318_v45  ;;  %v15348_v45 = vunpack.c.h.s8.bf16 %v4025_v37  ;;  %v3547_v37 = vld [vmem:[%s18692_s6 + $0x700] sm:$0xff] }
 0x744   : > { %15385 = vmatpush1.bf16.msra.mxu0 %v15384_v25  ;;  %v3428_v25 = vld [vmem:[%s18692_s6 + $0x348] sm:$0xff] }
 0x745   : > { %v17661_v49 = vpop.eup %17660  ;;  %15387 = vmatprep.subr.bf16.mxu0 %v15386_v9  ;;  %v15416_v9 = vunpack.c.l.s8.bf16 %v3451_v34  ;;  %v3739_v34 = vld [vmem:[%s18692_s6 + $0xd00] sm:$0xff] }
 0x746   : > { %13969 = vst [vmem:[%s19163_s5 + $0x10] sm:$0xff] %v17661_v49  ;;  %15321 = vmatpush1.bf16.msra.mxu1 %v15320_v46  ;;  %v15418_v46 = vunpack.c.h.s8.bf16 %v3428_v25  ;;  %v4001_v49 = vld [vmem:[%s18692_s6 + $0x1530] sm:$0xff] }
 0x747   : > { %v17663_v47 = vpop.eup %17662  ;;  %15323 = vmatprep.subr.bf16.mxu1 %v15322_v3  ;;  %v3427_v3 = vld [vmem:[%s18692_s6 + $0x340] sm:$0xff]  ;;  %v15356_v42 = vunpack.c.h.s8.bf16 %v4001_v49 }
 0x748   : > { %13970 = vst [vmem:[%s19163_s5 + $0x18] sm:$0xff] %v17663_v47  ;;  %15389 = vmatpush1.bf16.msra.mxu0 %v15388_v2  ;;  %v15354_v2 = vunpack.c.h.s8.bf16 %v4002_v33  ;;  %v3788_v47 = vld [vmem:[%s18692_s6 + $0xe88] sm:$0xff] }
 0x749   : > { %15391 = vmatprep.subr.bf16.mxu0 %v15390_v50  ;;  %v15420_v50 = vunpack.c.h.s8.bf16 %v3427_v3 }
 0x74a   : > { %15325 = vmatpush1.bf16.msra.mxu1 %v15324_v51  ;;  %v15422_v51 = vunpack.c.l.s8.bf16 %v3428_v25  ;;  %v3716_v25 = vld [vmem:[%s18692_s6 + $0xc48] sm:$0xff] }
 0x74b   : > { %15327 = vmatprep.subr.bf16.mxu1 %v15326_v52  ;;  %v15358_v52 = vunpack.c.l.s8.bf16 %v4002_v33  ;;  %v3524_v33 = vld [vmem:[%s18692_s6 + $0x648] sm:$0xff] }
 0x74c   : > { %15393 = vmatpush1.bf16.msra.mxu0 %v15392_v54  ;;  %v15424_v54 = vunpack.c.l.s8.bf16 %v3427_v3  ;;  %v3715_v3 = vld [vmem:[%s18692_s6 + $0xc40] sm:$0xff] }
 0x74d   : > { %15395 = vmatprep.subr.bf16.mxu0 %v15394_v57  ;;  %v15490_v57 = vunpack.c.h.s8.bf16 %v3788_v47 }
 0x74e   : > { %15329 = vmatpush1.bf16.msra.mxu1 %v15328_v62  ;;  %v15360_v62 = vunpack.c.l.s8.bf16 %v4001_v49  ;;  %v3523_v49 = vld [vmem:[%s18692_s6 + $0x640] sm:$0xff] }
 0x74f   : > { %15331 = vmatprep.subr.bf16.mxu1 %v15330_v63  ;;  %v15426_v63 = vunpack.c.h.s8.bf16 %v3596_v55 }
 0x750   : > { %15397 = vmatpush2.bf16.msra.mxu0 %v15396_v38  ;;  %v15492_v38 = vunpack.c.h.s8.bf16 %v3787_v59 }
 0x751   : > { %15399 = vmatprep.subr.bf16.mxu0 %v15398_v26  ;;  %v15494_v26 = vunpack.c.l.s8.bf16 %v3788_v47  ;;  %v3884_v47 = vld [vmem:[%s18692_s6 + $0x1188] sm:$0xff] }
 0x752   : > { %15333 = vmatpush2.bf16.msra.mxu1 %v15332_v6  ;;  %v15428_v6 = vunpack.c.h.s8.bf16 %v3595_v0 }
 0x753   : > { %15335 = vmatprep.subr.bf16.mxu1 %v15334_v17  ;;  %v15430_v17 = vunpack.c.l.s8.bf16 %v3596_v55  ;;  %v3692_v55 = vld [vmem:[%s18692_s6 + $0xb88] sm:$0xff] }
 0x754   : > { %15401 = vmatpush2.bf16.msra.mxu0 %v15400_v7  ;;  %v15496_v7 = vunpack.c.l.s8.bf16 %v3787_v59  ;;  %v3883_v59 = vld [vmem:[%s18692_s6 + $0x1180] sm:$0xff] }
 0x755   : > { %15403 = vmatprep.subr.bf16.mxu0 %v15402_v8  ;;  %v15498_v8 = vunpack.c.h.s8.bf16 %v3764_v60 }
 0x756   : > { %15337 = vmatpush2.bf16.msra.mxu1 %v15336_v61  ;;  %v15432_v61 = vunpack.c.l.s8.bf16 %v3595_v0  ;;  %v3691_v0 = vld [vmem:[%s18692_s6 + $0xb80] sm:$0xff] }
 0x757   : > { %15339 = vmatprep.subr.bf16.mxu1 %v15338_v32  ;;  %v15434_v32 = vunpack.c.h.s8.bf16 %v3572_v1 }
 0x758   : > { %15405 = vmatpush2.bf16.msra.mxu0 %v15404_v19  ;;  %v15500_v19 = vunpack.c.h.s8.bf16 %v3763_v11 }
 0x759   : > { %15407 = vmatprep.subr.bf16.mxu0 %v15406_v22  ;;  %v15502_v22 = vunpack.c.l.s8.bf16 %v3764_v60  ;;  %v3860_v60 = vld [vmem:[%s18692_s6 + $0x10c8] sm:$0xff] }
 0x75a   : > { %15341 = vmatpush2.bf16.msra.mxu1 %v15340_v28  ;;  %v15436_v28 = vunpack.c.h.s8.bf16 %v3571_v58 }
 0x75b   : > { %15343 = vmatprep.subr.bf16.mxu1 %v15342_v18  ;;  %v15438_v18 = vunpack.c.l.s8.bf16 %v3572_v1  ;;  %v3668_v1 = vld [vmem:[%s18692_s6 + $0xac8] sm:$0xff] }
 0x75c   : > { %15409 = vmatpush2.bf16.msra.mxu0 %v15408_v15  ;;  %v15504_v15 = vunpack.c.l.s8.bf16 %v3763_v11  ;;  %v3859_v11 = vld [vmem:[%s18692_s6 + $0x10c0] sm:$0xff] }
 0x75d   : > { %15411 = vmatprep.subr.bf16.mxu0 %v15410_v31  ;;  %v15506_v31 = vunpack.c.h.s8.bf16 %v3740_v30 }
 0x75e   : > { %15345 = vmatpush2.bf16.msra.mxu1 %v15344_v27  ;;  %v15440_v27 = vunpack.c.l.s8.bf16 %v3571_v58  ;;  %v3667_v58 = vld [vmem:[%s18692_s6 + $0xac0] sm:$0xff] }
 0x75f   : > { %15347 = vmatprep.subr.bf16.mxu1 %v15346_v35  ;;  %v15442_v35 = vunpack.c.h.s8.bf16 %v3548_v14 }
 0x760   : > { %15413 = vmatpush2.bf16.msra.mxu0 %v15412_v43  ;;  %v15508_v43 = vunpack.c.h.s8.bf16 %v3739_v34 }
 0x761   : > { %15415 = vmatprep.subr.bf16.mxu0 %v15414_v44  ;;  %v15510_v44 = vunpack.c.l.s8.bf16 %v3740_v30  ;;  %v3836_v30 = vld [vmem:[%s18692_s6 + $0x1008] sm:$0xff] }
 0x762   : > { %15349 = vmatpush2.bf16.msra.mxu1 %v15348_v45  ;;  %v15444_v45 = vunpack.c.h.s8.bf16 %v3547_v37 }
 0x763   : > { %15351 = vmatprep.subr.bf16.mxu1 %v15350_v40  ;;  %v15446_v40 = vunpack.c.l.s8.bf16 %v3548_v14  ;;  %v3644_v14 = vld [vmem:[%s18692_s6 + $0xa08] sm:$0xff] }
 0x764   : > { %15417 = vmatpush2.bf16.msra.mxu0 %v15416_v9  ;;  %v15512_v9 = vunpack.c.l.s8.bf16 %v3739_v34  ;;  %v3835_v34 = vld [vmem:[%s18692_s6 + $0x1000] sm:$0xff] }
 0x765   : > { %15419 = vmatprep.subr.bf16.mxu0 %v15418_v46  ;;  %v15514_v46 = vunpack.c.h.s8.bf16 %v3716_v25 }
 0x766   : > { %15353 = vmatpush2.bf16.msra.mxu1 %v15352_v48  ;;  %v15448_v48 = vunpack.c.l.s8.bf16 %v3547_v37  ;;  %v3643_v37 = vld [vmem:[%s18692_s6 + $0xa00] sm:$0xff] }
 0x767   : > { %15355 = vmatprep.subr.bf16.mxu1 %v15354_v2  ;;  %v15450_v2 = vunpack.c.h.s8.bf16 %v3524_v33 }
 0x768   : > { %15421 = vmatpush2.bf16.msra.mxu0 %v15420_v50  ;;  %v15516_v50 = vunpack.c.h.s8.bf16 %v3715_v3 }
 0x769   : > { %15423 = vmatprep.subr.bf16.mxu0 %v15422_v51  ;;  %v15518_v51 = vunpack.c.l.s8.bf16 %v3716_v25  ;;  %v3812_v25 = vld [vmem:[%s18692_s6 + $0xf48] sm:$0xff] }
 0x76a   : > { %15357 = vmatpush2.bf16.msra.mxu1 %v15356_v42  ;;  %v15452_v42 = vunpack.c.h.s8.bf16 %v3523_v49 }
 0x76b   : > { %15359 = vmatprep.subr.bf16.mxu1 %v15358_v52  ;;  %v15454_v52 = vunpack.c.l.s8.bf16 %v3524_v33  ;;  %v3620_v33 = vld [vmem:[%s18692_s6 + $0x948] sm:$0xff] }
 0x76c   : > { %15425 = vmatpush2.bf16.msra.mxu0 %v15424_v54  ;;  %v15520_v54 = vunpack.c.l.s8.bf16 %v3715_v3  ;;  %v3811_v3 = vld [vmem:[%s18692_s6 + $0xf40] sm:$0xff] }
 0x76d   : > { %15491 = vmatprep.subr.bf16.mxu0 %v15490_v57  ;;  %v15522_v57 = vunpack.c.h.s8.bf16 %v3884_v47 }
 0x76e   : > { %15361 = vmatpush2.bf16.msra.mxu1 %v15360_v62  ;;  %v15456_v62 = vunpack.c.l.s8.bf16 %v3523_v49  ;;  %v3619_v49 = vld [vmem:[%s18692_s6 + $0x940] sm:$0xff] }
 0x76f   : > { %11436 = vmatmul.mubr.f32.vlgmr.msra.gmra.mxu0 %v18861_v36  ;;  %15427 = vmatprep.subr.bf16.mxu1 %v15426_v63  ;;  %v15458_v63 = vunpack.c.h.s8.bf16 %v3692_v55 }
 0x770   : > { %15493 = vmatpush1.bf16.msra.mxu0 %v15492_v38  ;;  %11577 = vmatprep.mubr.f32.mxu0 %v18958_v39  ;;  %v15524_v38 = vunpack.c.h.s8.bf16 %v3883_v59 }
 0x771   : > { %11365 = vmatmul.mubr.f32.vlgmr.msra.gmra.mxu1 %v19011_v56  ;;  %15495 = vmatprep.subr.bf16.mxu0 %v15494_v26  ;;  %v15526_v26 = vunpack.c.l.s8.bf16 %v3884_v47  ;;  %v3406_v47 = vld [vmem:[%s18692_s6 + $0x298] sm:$0xff] }
 0x772   : > { %15429 = vmatpush1.bf16.msra.mxu1 %v15428_v6  ;;  %11506 = vmatprep.mubr.f32.mxu1 %v18903_v23  ;;  %v15460_v6 = vunpack.c.h.s8.bf16 %v3691_v0 }
 0x773   : > { %15431 = vmatprep.subr.bf16.mxu1 %v15430_v17  ;;  %v15462_v17 = vunpack.c.l.s8.bf16 %v3692_v55  ;;  %v15486_v55 = vunpack.c.l.s8.bf16 %v3620_v33 }
 0x774   : > { %15497 = vmatpush1.bf16.msra.mxu0 %v15496_v7  ;;  %v15528_v7 = vunpack.c.l.s8.bf16 %v3883_v59  ;;  %v3980_v59 = vld [vmem:[%s18692_s6 + $0x1488] sm:$0xff] }
 0x775   : > { %15499 = vmatprep.subr.bf16.mxu0 %v15498_v8  ;;  %v15530_v8 = vunpack.c.h.s8.bf16 %v3860_v60 }
 0x776   : > { %15433 = vmatpush1.bf16.msra.mxu1 %v15432_v61  ;;  %v15464_v61 = vunpack.c.l.s8.bf16 %v3691_v0  ;;  %v15488_v0 = vunpack.c.l.s8.bf16 %v3619_v49 }
 0x777   : > { %15435 = vmatprep.subr.bf16.mxu1 %v15434_v32  ;;  %v15466_v32 = vunpack.c.h.s8.bf16 %v3668_v1 }
 0x778   : > { %15501 = vmatpush1.bf16.msra.mxu0 %v15500_v19  ;;  %v15532_v19 = vunpack.c.h.s8.bf16 %v3859_v11 }
 0x779   : > { %15503 = vmatprep.subr.bf16.mxu0 %v15502_v22  ;;  %v15534_v22 = vunpack.c.l.s8.bf16 %v3860_v60  ;;  %v3979_v60 = vld [vmem:[%s18692_s6 + $0x1480] sm:$0xff] }
 0x77a   : > { %15437 = vmatpush1.bf16.msra.mxu1 %v15436_v28  ;;  %v15468_v28 = vunpack.c.h.s8.bf16 %v3667_v58 }
 0x77b   : > { %15439 = vmatprep.subr.bf16.mxu1 %v15438_v18  ;;  %v15470_v18 = vunpack.c.l.s8.bf16 %v3668_v1 }
 0x77c   : > { %15505 = vmatpush1.bf16.msra.mxu0 %v15504_v15  ;;  %v15536_v15 = vunpack.c.l.s8.bf16 %v3859_v11 }
 0x77d   : > { %15507 = vmatprep.subr.bf16.mxu0 %v15506_v31  ;;  %v15538_v31 = vunpack.c.h.s8.bf16 %v3836_v30 }
 0x77e   : > { %15441 = vmatpush1.bf16.msra.mxu1 %v15440_v27  ;;  %v15472_v27 = vunpack.c.l.s8.bf16 %v3667_v58  ;;  %v15558_v58 = vunpack.c.l.s8.bf16 %v3980_v59 }
 0x77f   : > { %15443 = vmatprep.subr.bf16.mxu1 %v15442_v35  ;;  %v15474_v35 = vunpack.c.h.s8.bf16 %v3644_v14 }
 0x780   : > { %15509 = vmatpush1.bf16.msra.mxu0 %v15508_v43  ;;  %v15540_v43 = vunpack.c.h.s8.bf16 %v3835_v34 }
 0x781   : > { %15511 = vmatprep.subr.bf16.mxu0 %v15510_v44  ;;  %v15542_v44 = vunpack.c.l.s8.bf16 %v3836_v30 }
 0x782   : > { %15445 = vmatpush1.bf16.msra.mxu1 %v15444_v45  ;;  %v15476_v45 = vunpack.c.h.s8.bf16 %v3643_v37 }
 0x783   : > { %15447 = vmatprep.subr.bf16.mxu1 %v15446_v40  ;;  %v15478_v40 = vunpack.c.l.s8.bf16 %v3644_v14 }
 0x784   : > { %15513 = vmatpush1.bf16.msra.mxu0 %v15512_v9  ;;  %v15544_v9 = vunpack.c.l.s8.bf16 %v3835_v34 }
 0x785   : > { %15515 = vmatprep.subr.bf16.mxu0 %v15514_v46  ;;  %v15546_v46 = vunpack.c.h.s8.bf16 %v3812_v25 }
 0x786   : > { %15449 = vmatpush1.bf16.msra.mxu1 %v15448_v48  ;;  %v15480_v48 = vunpack.c.l.s8.bf16 %v3643_v37 }
 0x787   : > { %15451 = vmatprep.subr.bf16.mxu1 %v15450_v2  ;;  %v15482_v2 = vunpack.c.h.s8.bf16 %v3620_v33 }
 0x788   : > { %15517 = vmatpush1.bf16.msra.mxu0 %v15516_v50  ;;  %v15548_v50 = vunpack.c.h.s8.bf16 %v3811_v3 }
 0x789   : > { %15519 = vmatprep.subr.bf16.mxu0 %v15518_v51  ;;  %v15550_v51 = vunpack.c.l.s8.bf16 %v3812_v25 }
 0x78a   : > { %15453 = vmatpush1.bf16.msra.mxu1 %v15452_v42  ;;  %v15484_v42 = vunpack.c.h.s8.bf16 %v3619_v49 }
 0x78b   : > { %15455 = vmatprep.subr.bf16.mxu1 %v15454_v52  ;;  %v10869_v52 = vpop.f32.mrf.mxu0 }
 0x78c   : > { %15521 = vmatpush1.bf16.msra.mxu0 %v15520_v54  ;;  %v10940_v54 = vpop.f32.mrf.mxu1 }
 0x78d   : > { %15523 = vmatprep.subr.bf16.mxu0 %v15522_v57  ;;  %v15552_v57 = vunpack.c.l.s8.bf16 %v3811_v3 }
 0x78e   : > { %15457 = vmatpush1.bf16.msra.mxu1 %v15456_v62  ;;  %v15618_v62 = vunpack.c.h.s8.bf16 %v3406_v47 }
 0x78f   : > { %15459 = vmatprep.subr.bf16.mxu1 %v15458_v63  ;;  %v3405_v63 = vld [vmem:[%s18692_s6 + $0x290] sm:$0xff] }
 0x790   : > { %15525 = vmatpush2.bf16.msra.mxu0 %v15524_v38  ;;  %v10871_v38 = vpop.f32.mrf.mxu0  ;;  %v15624_v30 = vunpack.c.l.s8.bf16 %v3405_v63 }
 0x791   : > { %15527 = vmatprep.subr.bf16.mxu0 %v15526_v26  ;;  %v10942_v26 = vpop.f32.mrf.mxu1 }
 0x792   : > { %15461 = vmatpush2.bf16.msra.mxu1 %v15460_v6  ;;  %v15554_v6 = vunpack.c.h.s8.bf16 %v3980_v59  ;;  %v11011_v1 = vpop.f32.mrf.mxu0  ;;  %v10943_v11 = vadd.f32 %v10942_v26, %v10871_v38  ;;  %v3357_v59 = vld [vmem:[%s18692_s6 + $0x110] sm:$0xff] }
 0x793   : > { %15463 = vmatprep.subr.bf16.mxu1 %v15462_v17  ;;  %v10941_v17 = vadd.f32 %v10940_v54, %v10869_v52  ;;  %v15636_v38 = vunpack.c.h.s8.bf16 %v3357_v59 }
 0x794   : > { %15529 = vmatpush2.bf16.msra.mxu0 %v15528_v7  ;;  %v15620_v7 = vunpack.c.h.s8.bf16 %v3405_v63 }
 0x795   : > { %15531 = vmatprep.subr.bf16.mxu0 %v15530_v8  ;;  %v15622_v8 = vunpack.c.l.s8.bf16 %v3406_v47 }
 0x796   : > { %15465 = vmatpush2.bf16.msra.mxu1 %v15464_v61  ;;  %v15556_v61 = vunpack.c.h.s8.bf16 %v3979_v60 }
 0x797   : > { %15467 = vmatprep.subr.bf16.mxu1 %v15466_v32  ;;  %v3382_v32 = vld [vmem:[%s18692_s6 + $0x1d8] sm:$0xff] }
 0x798   : > { %15533 = vmatpush2.bf16.msra.mxu0 %v15532_v19  ;;  %v11012_v19 = vadd.f32 %v11011_v1, %v10941_v17  ;;  %v3908_v1 = vld [vmem:[%s18692_s6 + $0x1248] sm:$0xff] }
 0x799   : > { %15535 = vmatprep.subr.bf16.mxu0 %v15534_v22  ;;  %v19309_v22 = vld [vmem:[%s18698_s30] sm:$0xff] }
 0x79a   : > { %15469 = vmatpush2.bf16.msra.mxu1 %v15468_v28  ;;  %v13668_v28 = vrot.slane %v19309_v22, %v18898_v16 }
 0x79b   : > { %15471 = vmatprep.subr.bf16.mxu1 %v15470_v18  ;;  %v3956_v18 = vld [vmem:[%s18692_s6 + $0x13c8] sm:$0xff] }
 0x79c   : > { %15537 = vmatpush2.bf16.msra.mxu0 %v15536_v15  ;;  %v11013_v15 = vpop.f32.mrf.mxu0  ;;  %v15566_v47 = vunpack.c.l.s8.bf16 %v3956_v18 }
 0x79d   : > { %15539 = vmatprep.subr.bf16.mxu0 %v15538_v31  ;;  %v19316_v31 = vld [vmem:[%s18700_s16] sm:$0xff]  ;;  %v11014_v37 = vadd.f32 %v11013_v15, %v10943_v11  ;;  %v3502_v15 = vld [vmem:[%s18692_s6 + $0x598] sm:$0xff] }
 0x79e   : > { %15473 = vmatpush2.bf16.msra.mxu1 %v15472_v27  ;;  %v13818_v34 = vrot.slane %v19316_v31, %v18898_v16  ;;  %v15626_v27 = vunpack.c.h.s8.bf16 %v3382_v32  ;;  %v13822_v3 = vrot.slane %v19316_v31, %v18906_v24  ;;  %v3333_v11 = vld [vmem:[%s18692_s6 + $0x50] sm:$0xff] }
 0x79f   : > { %15475 = vmatprep.subr.bf16.mxu1 %v15474_v35  ;;  %v3381_v35 = vld [vmem:[%s18692_s6 + $0x1d0] sm:$0xff] }
 0x7a0   : > { %15541 = vmatpush2.bf16.msra.mxu0 %v15540_v43  ;;  %v15632_v54 = vunpack.c.l.s8.bf16 %v3381_v35 }
 0x7a1   : > { %15543 = vmatprep.subr.bf16.mxu0 %v15542_v44  ;;  %v13672_v44 = vrot.slane %v19309_v22, %v18906_v24 }
 0x7a2   : > { %15477 = vmatpush2.bf16.msra.mxu1 %v15476_v45  ;;  %v15560_v45 = vunpack.c.l.s8.bf16 %v3979_v60  ;;  %v3334_v60 = vld [vmem:[%s18692_s6 + $0x58] sm:$0xff] }
 0x7a3   : > { %15479 = vmatprep.subr.bf16.mxu1 %v15478_v40  ;;  %v15562_v40 = vunpack.c.h.s8.bf16 %v3956_v18 }
 0x7a4   : > { %15545 = vmatpush2.bf16.msra.mxu0 %v15544_v9  ;;  %v3955_v9 = vld [vmem:[%s18692_s6 + $0x13c0] sm:$0xff] }
 0x7a5   : > { %15547 = vmatprep.subr.bf16.mxu0 %v15546_v46 }
 0x7a6   : > { %15481 = vmatpush2.bf16.msra.mxu1 %v15480_v48  ;;  %v15628_v48 = vunpack.c.h.s8.bf16 %v3381_v35  ;;  %v4076_v35 = vld [vmem:[%s18692_s6 + $0x1788] sm:$0xff] }
 0x7a7   : > { %15483 = vmatprep.subr.bf16.mxu1 %v15482_v2  ;;  %v15630_v2 = vunpack.c.l.s8.bf16 %v3382_v32  ;;  %v15578_v32 = vunpack.c.h.s8.bf16 %v3908_v1 }
 0x7a8   : > { %15549 = vmatpush2.bf16.msra.mxu0 %v15548_v50 }
 0x7a9   : > { %15551 = vmatprep.subr.bf16.mxu0 %v15550_v51  ;;  %v15564_v51 = vunpack.c.h.s8.bf16 %v3955_v9 }
 0x7aa   : > { %15485 = vmatpush2.bf16.msra.mxu1 %v15484_v42  ;;  %v3358_v42 = vld [vmem:[%s18692_s6 + $0x118] sm:$0xff] }
 0x7ab   : > { %15487 = vmatprep.subr.bf16.mxu1 %v15486_v55  ;;  %v3932_v55 = vld [vmem:[%s18692_s6 + $0x1308] sm:$0xff]  ;;  %v15638_v26 = vunpack.c.l.s8.bf16 %v3358_v42 }
 0x7ac   : > { %15553 = vmatpush2.bf16.msra.mxu0 %v15552_v57  ;;  %v15634_v57 = vunpack.c.h.s8.bf16 %v3358_v42  ;;  %v15570_v63 = vunpack.c.h.s8.bf16 %v3932_v55  ;;  %v15574_v17 = vunpack.c.l.s8.bf16 %v3932_v55 }
 0x7ad   : > { %15619 = vmatprep.subr.bf16.mxu0 %v15618_v62  ;;  %v15568_v62 = vunpack.c.l.s8.bf16 %v3955_v9  ;;  %v15654_v9 = vunpack.c.l.s8.bf16 %v3502_v15 }
 0x7ae   : > { %15489 = vmatpush2.bf16.msra.mxu1 %v15488_v0  ;;  %v3931_v0 = vld [vmem:[%s18692_s6 + $0x1300] sm:$0xff] }
 0x7af   : > { %11578 = vmatmul.mubr.f32.vlgmr.msra.gmra.mxu0 %v18964_v21  ;;  %15555 = vmatprep.subr.bf16.mxu1 %v15554_v6  ;;  %v15572_v6 = vunpack.c.h.s8.bf16 %v3931_v0 }
 0x7b0   : > { %15621 = vmatpush1.bf16.msra.mxu0 %v15620_v7  ;;  %11719 = vmatprep.mubr.f32.mxu0 %v18848_v13  ;;  %v15640_v7 = vunpack.c.l.s8.bf16 %v3357_v59 }
 0x7b1   : > { %v11082_v14 = vpop.f32.mrf.mxu1  ;;  %11507 = vmatmul.mubr.f32.vlgmr.msra.gmra.mxu1 %v18909_v29  ;;  %15623 = vmatprep.subr.bf16.mxu0 %v15622_v8  ;;  %v15642_v8 = vunpack.c.h.s8.bf16 %v3334_v60 }
 0x7b2   : > { %v11083_v43 = vadd.f32 %v11082_v14, %v11012_v19  ;;  %15557 = vmatpush1.bf16.msra.mxu1 %v15556_v61  ;;  %11648 = vmatprep.mubr.f32.mxu1 %v19007_v53  ;;  %v15576_v61 = vunpack.c.l.s8.bf16 %v3931_v0  ;;  %v15644_v19 = vunpack.c.h.s8.bf16 %v3333_v11 }
 0x7b3   : > { %v11084_v25 = vpop.f32.mrf.mxu1  ;;  %15559 = vmatprep.subr.bf16.mxu1 %v15558_v58  ;;  %v3907_v58 = vld [vmem:[%s18692_s6 + $0x1240] sm:$0xff] }
 0x7b4   : > { %v13773_v33 = vmul.f32 %v13668_v28, %v11083_v43  ;;  %v11085_v46 = vadd.f32 %v11084_v25, %v11014_v37  ;;  %15625 = vmatpush1.bf16.msra.mxu0 %v15624_v30  ;;  %v15646_v30 = vunpack.c.l.s8.bf16 %v3334_v60  ;;  %v15580_v18 = vunpack.c.h.s8.bf16 %v3907_v58  ;;  %v3501_v43 = vld [vmem:[%s18692_s6 + $0x590] sm:$0xff]  ;;  %v4075_v25 = vld [vmem:[%s18692_s6 + $0x1780] sm:$0xff] }
 0x7b5   : > { %15627 = vmatprep.subr.bf16.mxu0 %v15626_v27  ;;  %v15648_v27 = vunpack.c.l.s8.bf16 %v3333_v11  ;;  %v15650_v37 = vunpack.c.h.s8.bf16 %v3502_v15  ;;  %v4027_v60 = vld [vmem:[%s18692_s6 + $0x1600] sm:$0xff] }
 0x7b6   : > { %v13923_v49 = vadd.f32 %v13818_v34, %v13773_v33  ;;  %v13774_v50 = vmul.f32 %v13672_v44, %v11085_v46  ;;  %15561 = vmatpush1.bf16.msra.mxu1 %v15560_v45  ;;  %v15582_v34 = vunpack.c.l.s8.bf16 %v3908_v1  ;;  %v15584_v44 = vunpack.c.l.s8.bf16 %v3907_v58  ;;  %v3478_v46 = vld [vmem:[%s18692_s6 + $0x4d8] sm:$0xff] }
 0x7b7   : > { %15563 = vmatprep.subr.bf16.mxu1 %v15562_v40  ;;  %v15586_v45 = vunpack.c.h.s8.bf16 %v4076_v35  ;;  %v15652_v40 = vunpack.c.h.s8.bf16 %v3501_v43  ;;  %v15588_v33 = vunpack.c.h.s8.bf16 %v4075_v25  ;;  %v15604_v1 = vunpack.c.h.s8.bf16 %v4027_v60 }
 0x7b8   : > { %17664 = vtanh.f32 %v13923_v49  ;;  %v13924_v52 = vadd.f32 %v13822_v3, %v13774_v50  ;;  %15629 = vmatpush1.bf16.msra.mxu0 %v15628_v48  ;;  %v15590_v3 = vunpack.c.l.s8.bf16 %v4076_v35  ;;  %v15656_v48 = vunpack.c.l.s8.bf16 %v3501_v43  ;;  %v3477_v50 = vld [vmem:[%s18692_s6 + $0x4d0] sm:$0xff]  ;;  %v3598_v43 = vld [vmem:[%s18692_s6 + $0x898] sm:$0xff] }
 0x7b9   : > { %15631 = vmatprep.subr.bf16.mxu0 %v15630_v2  ;;  %v4052_v2 = vld [vmem:[%s18692_s6 + $0x16c8] sm:$0xff]  ;;  %v15658_v49 = vunpack.c.h.s8.bf16 %v3478_v46 }
 0x7ba   : > { %17666 = vtanh.f32 %v13924_v52  ;;  %15565 = vmatpush1.bf16.msra.mxu1 %v15564_v51  ;;  %v15592_v51 = vunpack.c.l.s8.bf16 %v4075_v25  ;;  %v15594_v42 = vunpack.c.h.s8.bf16 %v4052_v2  ;;  %v15660_v52 = vunpack.c.h.s8.bf16 %v3477_v50 }
 0x7bb   : > { %15567 = vmatprep.subr.bf16.mxu1 %v15566_v47  ;;  %v4051_v47 = vld [vmem:[%s18692_s6 + $0x16c0] sm:$0xff]  ;;  %v15598_v59 = vunpack.c.l.s8.bf16 %v4052_v2  ;;  %v15686_v2 = vunpack.c.l.s8.bf16 %v3598_v43 }
 0x7bc   : > { %15633 = vmatpush1.bf16.msra.mxu0 %v15632_v54  ;;  %v15662_v54 = vunpack.c.l.s8.bf16 %v3478_v46  ;;  %v15596_v55 = vunpack.c.h.s8.bf16 %v4051_v47 }
 0x7bd   : > { %15635 = vmatprep.subr.bf16.mxu0 %v15634_v57  ;;  %v3454_v57 = vld [vmem:[%s18692_s6 + $0x418] sm:$0xff] }
 0x7be   : > { %15569 = vmatpush1.bf16.msra.mxu1 %v15568_v62  ;;  %v15664_v62 = vunpack.c.l.s8.bf16 %v3477_v50  ;;  %v15666_v0 = vunpack.c.h.s8.bf16 %v3454_v57  ;;  %v3574_v50 = vld [vmem:[%s18692_s6 + $0x7d8] sm:$0xff] }
 0x7bf   : > { %15571 = vmatprep.subr.bf16.mxu1 %v15570_v63  ;;  %v4028_v63 = vld [vmem:[%s18692_s6 + $0x1608] sm:$0xff] }
 0x7c0   : > { %15637 = vmatpush1.bf16.msra.mxu0 %v15636_v38  ;;  %v3453_v38 = vld [vmem:[%s18692_s6 + $0x410] sm:$0xff]  ;;  %v15606_v11 = vunpack.c.l.s8.bf16 %v4028_v63 }
 0x7c1   : > { %15639 = vmatprep.subr.bf16.mxu0 %v15638_v26  ;;  %v15600_v26 = vunpack.c.l.s8.bf16 %v4051_v47 }
 0x7c2   : > { %15573 = vmatpush1.bf16.msra.mxu1 %v15572_v6  ;;  %v15602_v6 = vunpack.c.h.s8.bf16 %v4028_v63  ;;  %v15694_v63 = vunpack.c.l.s8.bf16 %v3574_v50 }
 0x7c3   : > { %15575 = vmatprep.subr.bf16.mxu1 %v15574_v17  ;;  %v15668_v17 = vunpack.c.h.s8.bf16 %v3453_v38 }
 0x7c4   : > { %15641 = vmatpush1.bf16.msra.mxu0 %v15640_v7  ;;  %v15670_v7 = vunpack.c.l.s8.bf16 %v3454_v57 }
 0x7c5   : > { %v17665_v28 = vpop.eup %17664  ;;  %15643 = vmatprep.subr.bf16.mxu0 %v15642_v8  ;;  %v3430_v8 = vld [vmem:[%s18692_s6 + $0x358] sm:$0xff] }
 0x7c6   : > { %13971 = vst [vmem:[%s19163_s5 + $0x20] sm:$0xff] %v17665_v28  ;;  %15577 = vmatpush1.bf16.msra.mxu1 %v15576_v61  ;;  %v15672_v61 = vunpack.c.l.s8.bf16 %v3453_v38  ;;  %v15674_v58 = vunpack.c.h.s8.bf16 %v3430_v8  ;;  %v15608_v28 = vunpack.c.l.s8.bf16 %v4027_v60  ;;  %v3550_v38 = vld [vmem:[%s18692_s6 + $0x718] sm:$0xff] }
 0x7c7   : > { %v17667_v14 = vpop.eup %17666  ;;  %15579 = vmatprep.subr.bf16.mxu1 %v15578_v32  ;;  %v4004_v32 = vld [vmem:[%s18692_s6 + $0x1548] sm:$0xff] }
 0x7c8   : > { %13972 = vst [vmem:[%s19163_s5 + $0x28] sm:$0xff] %v17667_v14  ;;  %15645 = vmatpush1.bf16.msra.mxu0 %v15644_v19  ;;  %v3429_v19 = vld [vmem:[%s18692_s6 + $0x350] sm:$0xff]  ;;  %v15678_v14 = vunpack.c.l.s8.bf16 %v3430_v8  ;;  %v15614_v35 = vunpack.c.l.s8.bf16 %v4004_v32 }
 0x7c9   : > { %15647 = vmatprep.subr.bf16.mxu0 %v15646_v30  ;;  %v15610_v30 = vunpack.c.h.s8.bf16 %v4004_v32  ;;  %v15676_v15 = vunpack.c.h.s8.bf16 %v3429_v19  ;;  %v15702_v32 = vunpack.c.l.s8.bf16 %v3550_v38 }
 0x7ca   : > { %15581 = vmatpush1.bf16.msra.mxu1 %v15580_v18  ;;  %v4003_v18 = vld [vmem:[%s18692_s6 + $0x1540] sm:$0xff] }
 0x7cb   : > { %15583 = vmatprep.subr.bf16.mxu1 %v15582_v34  ;;  %v15612_v34 = vunpack.c.h.s8.bf16 %v4003_v18  ;;  %v15616_v25 = vunpack.c.l.s8.bf16 %v4003_v18 }
 0x7cc   : > { %15649 = vmatpush1.bf16.msra.mxu0 %v15648_v27  ;;  %v3790_v27 = vld [vmem:[%s18692_s6 + $0xe98] sm:$0xff] }
 0x7cd   : > { %15651 = vmatprep.subr.bf16.mxu0 %v15650_v37  ;;  %v15680_v37 = vunpack.c.l.s8.bf16 %v3429_v19  ;;  %v15750_v46 = vunpack.c.l.s8.bf16 %v3790_v27  ;;  %v3526_v19 = vld [vmem:[%s18692_s6 + $0x658] sm:$0xff] }
 0x7ce   : > { %15585 = vmatpush1.bf16.msra.mxu1 %v15584_v44  ;;  %v15746_v44 = vunpack.c.h.s8.bf16 %v3790_v27 }
 0x7cf   : > { %15587 = vmatprep.subr.bf16.mxu1 %v15586_v45  ;;  %v3789_v45 = vld [vmem:[%s18692_s6 + $0xe90] sm:$0xff] }
 0x7d0   : > { %15653 = vmatpush2.bf16.msra.mxu0 %v15652_v40  ;;  %v15682_v40 = vunpack.c.h.s8.bf16 %v3598_v43  ;;  %v15710_v43 = vunpack.c.l.s8.bf16 %v3526_v19 }
 0x7d1   : > { %15655 = vmatprep.subr.bf16.mxu0 %v15654_v9  ;;  %v3597_v9 = vld [vmem:[%s18692_s6 + $0x890] sm:$0xff] }
 0x7d2   : > { %15589 = vmatpush2.bf16.msra.mxu1 %v15588_v33  ;;  %v15748_v33 = vunpack.c.h.s8.bf16 %v3789_v45  ;;  %v15688_v47 = vunpack.c.l.s8.bf16 %v3597_v9 }
 0x7d3   : > { %15591 = vmatprep.subr.bf16.mxu1 %v15590_v3  ;;  %v15684_v3 = vunpack.c.h.s8.bf16 %v3597_v9 }
 0x7d4   : > { %15657 = vmatpush2.bf16.msra.mxu0 %v15656_v48  ;;  %v3766_v48 = vld [vmem:[%s18692_s6 + $0xdd8] sm:$0xff] }
 0x7d5   : > { %15659 = vmatprep.subr.bf16.mxu0 %v15658_v49  ;;  %v15752_v49 = vunpack.c.l.s8.bf16 %v3789_v45  ;;  %v15758_v57 = vunpack.c.l.s8.bf16 %v3766_v48  ;;  %v3694_v45 = vld [vmem:[%s18692_s6 + $0xb98] sm:$0xff] }
 0x7d6   : > { %15593 = vmatpush2.bf16.msra.mxu1 %v15592_v51  ;;  %v15754_v51 = vunpack.c.h.s8.bf16 %v3766_v48 }
 0x7d7   : > { %15595 = vmatprep.subr.bf16.mxu1 %v15594_v42  ;;  %v3765_v42 = vld [vmem:[%s18692_s6 + $0xdd0] sm:$0xff] }
 0x7d8   : > { %15661 = vmatpush2.bf16.msra.mxu0 %v15660_v52  ;;  %v15690_v52 = vunpack.c.h.s8.bf16 %v3574_v50  ;;  %v15718_v50 = vunpack.c.l.s8.bf16 %v3694_v45 }
 0x7d9   : > { %15663 = vmatprep.subr.bf16.mxu0 %v15662_v54  ;;  %v3573_v54 = vld [vmem:[%s18692_s6 + $0x7d0] sm:$0xff] }
 0x7da   : > { %15597 = vmatpush2.bf16.msra.mxu1 %v15596_v55  ;;  %v15756_v55 = vunpack.c.h.s8.bf16 %v3765_v42  ;;  %v15696_v60 = vunpack.c.l.s8.bf16 %v3573_v54 }
 0x7db   : > { %15599 = vmatprep.subr.bf16.mxu1 %v15598_v59  ;;  %v15692_v59 = vunpack.c.h.s8.bf16 %v3573_v54 }
 0x7dc   : > { %15665 = vmatpush2.bf16.msra.mxu0 %v15664_v62  ;;  %v3742_v62 = vld [vmem:[%s18692_s6 + $0xd18] sm:$0xff] }
 0x7dd   : > { %15667 = vmatprep.subr.bf16.mxu0 %v15666_v0  ;;  %v15760_v0 = vunpack.c.l.s8.bf16 %v3765_v42  ;;  %v15766_v8 = vunpack.c.l.s8.bf16 %v3742_v62  ;;  %v3670_v42 = vld [vmem:[%s18692_s6 + $0xad8] sm:$0xff] }
 0x7de   : > { %15601 = vmatpush2.bf16.msra.mxu1 %v15600_v26  ;;  %v15762_v26 = vunpack.c.h.s8.bf16 %v3742_v62 }
 0x7df   : > { %15603 = vmatprep.subr.bf16.mxu1 %v15602_v6  ;;  %v3741_v6 = vld [vmem:[%s18692_s6 + $0xd10] sm:$0xff] }
 0x7e0   : > { %15669 = vmatpush2.bf16.msra.mxu0 %v15668_v17  ;;  %v15698_v17 = vunpack.c.h.s8.bf16 %v3550_v38  ;;  %v15726_v38 = vunpack.c.l.s8.bf16 %v3670_v42 }
 0x7e1   : > { %15671 = vmatprep.subr.bf16.mxu0 %v15670_v7  ;;  %v3549_v7 = vld [vmem:[%s18692_s6 + $0x710] sm:$0xff] }
 0x7e2   : > { %15605 = vmatpush2.bf16.msra.mxu1 %v15604_v1  ;;  %v15764_v1 = vunpack.c.h.s8.bf16 %v3741_v6  ;;  %v15704_v18 = vunpack.c.l.s8.bf16 %v3549_v7 }
 0x7e3   : > { %15607 = vmatprep.subr.bf16.mxu1 %v15606_v11  ;;  %v15700_v11 = vunpack.c.h.s8.bf16 %v3549_v7 }
 0x7e4   : > { %15673 = vmatpush2.bf16.msra.mxu0 %v15672_v61  ;;  %v3718_v61 = vld [vmem:[%s18692_s6 + $0xc58] sm:$0xff] }
 0x7e5   : > { %15675 = vmatprep.subr.bf16.mxu0 %v15674_v58  ;;  %v15768_v58 = vunpack.c.l.s8.bf16 %v3741_v6  ;;  %v15774_v27 = vunpack.c.l.s8.bf16 %v3718_v61  ;;  %v3646_v6 = vld [vmem:[%s18692_s6 + $0xa18] sm:$0xff] }
 0x7e6   : > { %15609 = vmatpush2.bf16.msra.mxu1 %v15608_v28  ;;  %v15770_v28 = vunpack.c.h.s8.bf16 %v3718_v61 }
 0x7e7   : > { %15611 = vmatprep.subr.bf16.mxu1 %v15610_v30  ;;  %v3717_v30 = vld [vmem:[%s18692_s6 + $0xc50] sm:$0xff] }
 0x7e8   : > { %15677 = vmatpush2.bf16.msra.mxu0 %v15676_v15  ;;  %v15706_v15 = vunpack.c.h.s8.bf16 %v3526_v19  ;;  %v15734_v19 = vunpack.c.l.s8.bf16 %v3646_v6 }
 0x7e9   : > { %15679 = vmatprep.subr.bf16.mxu0 %v15678_v14  ;;  %v3525_v14 = vld [vmem:[%s18692_s6 + $0x650] sm:$0xff] }
 0x7ea   : > { %15613 = vmatpush2.bf16.msra.mxu1 %v15612_v34  ;;  %v15772_v34 = vunpack.c.h.s8.bf16 %v3717_v30  ;;  %v15712_v9 = vunpack.c.l.s8.bf16 %v3525_v14 }
 0x7eb   : > { %15615 = vmatprep.subr.bf16.mxu1 %v15614_v35  ;;  %v15708_v35 = vunpack.c.h.s8.bf16 %v3525_v14 }
 0x7ec   : > { %15681 = vmatpush2.bf16.msra.mxu0 %v15680_v37  ;;  %v3886_v37 = vld [vmem:[%s18692_s6 + $0x1198] sm:$0xff] }
 0x7ed   : > { %15747 = vmatprep.subr.bf16.mxu0 %v15746_v44  ;;  %v15776_v44 = vunpack.c.l.s8.bf16 %v3717_v30  ;;  %v15782_v48 = vunpack.c.l.s8.bf16 %v3886_v37  ;;  %v3622_v30 = vld [vmem:[%s18692_s6 + $0x958] sm:$0xff] }
 0x7ee   : > { %15617 = vmatpush2.bf16.msra.mxu1 %v15616_v25  ;;  %v15778_v25 = vunpack.c.h.s8.bf16 %v3886_v37 }
 0x7ef   : > { %11720 = vmatmul.mubr.f32.vlgmr.msra.gmra.mxu0 %v18861_v36  ;;  %15683 = vmatprep.subr.bf16.mxu1 %v15682_v40  ;;  %v3885_v40 = vld [vmem:[%s18692_s6 + $0x1190] sm:$0xff] }
 0x7f0   : > { %15749 = vmatpush1.bf16.msra.mxu0 %v15748_v33  ;;  %11861 = vmatprep.mubr.f32.mxu0 %v18958_v39  ;;  %v15714_v33 = vunpack.c.h.s8.bf16 %v3694_v45  ;;  %v11153_v45 = vpop.f32.mrf.mxu0 }
 0x7f1   : > { %11649 = vmatmul.mubr.f32.vlgmr.msra.gmra.mxu1 %v19011_v56  ;;  %15751 = vmatprep.subr.bf16.mxu0 %v15750_v46  ;;  %v3693_v46 = vld [vmem:[%s18692_s6 + $0xb90] sm:$0xff] }
 0x7f2   : > { %15685 = vmatpush1.bf16.msra.mxu1 %v15684_v3  ;;  %11790 = vmatprep.mubr.f32.mxu1 %v18903_v23  ;;  %v15780_v3 = vunpack.c.h.s8.bf16 %v3885_v40  ;;  %v15720_v54 = vunpack.c.l.s8.bf16 %v3693_v46 }
 0x7f3   : > { %15687 = vmatprep.subr.bf16.mxu1 %v15686_v2  ;;  %v15716_v2 = vunpack.c.h.s8.bf16 %v3693_v46 }
 0x7f4   : > { %15753 = vmatpush1.bf16.msra.mxu0 %v15752_v49  ;;  %v3862_v49 = vld [vmem:[%s18692_s6 + $0x10d8] sm:$0xff] }
 0x7f5   : > { %15755 = vmatprep.subr.bf16.mxu0 %v15754_v51  ;;  %v15784_v51 = vunpack.c.l.s8.bf16 %v3885_v40  ;;  %v15790_v62 = vunpack.c.l.s8.bf16 %v3862_v49  ;;  %v15742_v40 = vunpack.c.l.s8.bf16 %v3622_v30 }
 0x7f6   : > { %15689 = vmatpush1.bf16.msra.mxu1 %v15688_v47  ;;  %v15786_v47 = vunpack.c.h.s8.bf16 %v3862_v49 }
 0x7f7   : > { %15691 = vmatprep.subr.bf16.mxu1 %v15690_v52  ;;  %v3861_v52 = vld [vmem:[%s18692_s6 + $0x10d0] sm:$0xff] }
 0x7f8   : > { %15757 = vmatpush1.bf16.msra.mxu0 %v15756_v55  ;;  %v15722_v55 = vunpack.c.h.s8.bf16 %v3670_v42 }
 0x7f9   : > { %15759 = vmatprep.subr.bf16.mxu0 %v15758_v57  ;;  %v3669_v57 = vld [vmem:[%s18692_s6 + $0xad0] sm:$0xff] }
 0x7fa   : > { %15693 = vmatpush1.bf16.msra.mxu1 %v15692_v59  ;;  %v15788_v59 = vunpack.c.h.s8.bf16 %v3861_v52  ;;  %v15728_v7 = vunpack.c.l.s8.bf16 %v3669_v57 }
 0x7fb   : > { %15695 = vmatprep.subr.bf16.mxu1 %v15694_v63  ;;  %v15724_v63 = vunpack.c.h.s8.bf16 %v3669_v57 }
 0x7fc   : > { %15761 = vmatpush1.bf16.msra.mxu0 %v15760_v0  ;;  %v3838_v0 = vld [vmem:[%s18692_s6 + $0x1018] sm:$0xff] }
 0x7fd   : > { %15763 = vmatprep.subr.bf16.mxu0 %v15762_v26  ;;  %v15792_v26 = vunpack.c.l.s8.bf16 %v3861_v52  ;;  %v15798_v61 = vunpack.c.l.s8.bf16 %v3838_v0 }
 0x7fe   : > { %15697 = vmatpush1.bf16.msra.mxu1 %v15696_v60  ;;  %v15794_v60 = vunpack.c.h.s8.bf16 %v3838_v0  ;;  %v13676_v0 = vrot.slane %v19309_v22, %v18956_v20 }
 0x7ff   : > { %15699 = vmatprep.subr.bf16.mxu1 %v15698_v17  ;;  %v3837_v17 = vld [vmem:[%s18692_s6 + $0x1010] sm:$0xff] }
 0x800   : > { %15765 = vmatpush1.bf16.msra.mxu0 %v15764_v1  ;;  %v15730_v1 = vunpack.c.h.s8.bf16 %v3646_v6 }
 0x801   : > { %15767 = vmatprep.subr.bf16.mxu0 %v15766_v8  ;;  %v3645_v8 = vld [vmem:[%s18692_s6 + $0xa10] sm:$0xff] }
 0x802   : > { %15701 = vmatpush1.bf16.msra.mxu1 %v15700_v11  ;;  %v15796_v11 = vunpack.c.h.s8.bf16 %v3837_v17  ;;  %v15736_v14 = vunpack.c.l.s8.bf16 %v3645_v8 }
 0x803   : > { %15703 = vmatprep.subr.bf16.mxu1 %v15702_v32  ;;  %v15732_v32 = vunpack.c.h.s8.bf16 %v3645_v8 }
 0x804   : > { %15769 = vmatpush1.bf16.msra.mxu0 %v15768_v58  ;;  %v3814_v58 = vld [vmem:[%s18692_s6 + $0xf58] sm:$0xff] }
 0x805   : > { %15771 = vmatprep.subr.bf16.mxu0 %v15770_v28  ;;  %v15800_v28 = vunpack.c.l.s8.bf16 %v3837_v17  ;;  %v15806_v37 = vunpack.c.l.s8.bf16 %v3814_v58  ;;  %v13826_v17 = vrot.slane %v19316_v31, %v18956_v20 }
 0x806   : > { %15705 = vmatpush1.bf16.msra.mxu1 %v15704_v18  ;;  %v15802_v18 = vunpack.c.h.s8.bf16 %v3814_v58 }
 0x807   : > { %15707 = vmatprep.subr.bf16.mxu1 %v15706_v15  ;;  %v3813_v15 = vld [vmem:[%s18692_s6 + $0xf50] sm:$0xff] }
 0x808   : > { %15773 = vmatpush1.bf16.msra.mxu0 %v15772_v34  ;;  %v15738_v34 = vunpack.c.h.s8.bf16 %v3622_v30 }
 0x809   : > { %15775 = vmatprep.subr.bf16.mxu0 %v15774_v27  ;;  %v3621_v27 = vld [vmem:[%s18692_s6 + $0x950] sm:$0xff] }
 0x80a   : > { %15709 = vmatpush1.bf16.msra.mxu1 %v15708_v35  ;;  %v15804_v35 = vunpack.c.h.s8.bf16 %v3813_v15 }
 0x80b   : > { %15711 = vmatprep.subr.bf16.mxu1 %v15710_v43  ;;  %v15740_v43 = vunpack.c.h.s8.bf16 %v3621_v27 }
 0x80c   : > { %15777 = vmatpush1.bf16.msra.mxu0 %v15776_v44  ;;  %v3408_v44 = vld [vmem:[%s18692_s6 + $0x2a8] sm:$0xff] }
 0x80d   : > { %15779 = vmatprep.subr.bf16.mxu0 %v15778_v25  ;;  %v11224_v25 = vpop.f32.mrf.mxu1  ;;  %v15874_v46 = vunpack.c.h.s8.bf16 %v3408_v44 }
 0x80e   : > { %15713 = vmatpush1.bf16.msra.mxu1 %v15712_v9  ;;  %v15808_v9 = vunpack.c.l.s8.bf16 %v3813_v15  ;;  %v11225_v42 = vadd.f32 %v11224_v25, %v11153_v45  ;;  %v13830_v15 = vrot.slane %v19316_v31, %v18961_v41  ;;  %v3934_v25 = vld [vmem:[%s18692_s6 + $0x1318] sm:$0xff] }
 0x80f   : > { %15715 = vmatprep.subr.bf16.mxu1 %v15714_v33  ;;  %v3982_v33 = vld [vmem:[%s18692_s6 + $0x1498] sm:$0xff]  ;;  %v11226_v49 = vpop.f32.mrf.mxu1 }
 0x810   : > { %15781 = vmatpush2.bf16.msra.mxu0 %v15780_v3  ;;  %v3407_v3 = vld [vmem:[%s18692_s6 + $0x2a0] sm:$0xff] }
 0x811   : > { %15783 = vmatprep.subr.bf16.mxu0 %v15782_v48  ;;  %v15744_v48 = vunpack.c.l.s8.bf16 %v3621_v27 }
 0x812   : > { %15717 = vmatpush2.bf16.msra.mxu1 %v15716_v2  ;;  %v11155_v2 = vpop.f32.mrf.mxu0 }
 0x813   : > { %15719 = vmatprep.subr.bf16.mxu1 %v15718_v50  ;;  %v15810_v50 = vunpack.c.h.s8.bf16 %v3982_v33 }
 0x814   : > { %15785 = vmatpush2.bf16.msra.mxu0 %v15784_v51  ;;  %v3981_v51 = vld [vmem:[%s18692_s6 + $0x1490] sm:$0xff]  ;;  %v11295_v52 = vpop.f32.mrf.mxu0 }
 0x815   : > { %15787 = vmatprep.subr.bf16.mxu0 %v15786_v47  ;;  %v15876_v47 = vunpack.c.h.s8.bf16 %v3407_v3  ;;  %v15812_v57 = vunpack.c.h.s8.bf16 %v3981_v51 }
 0x816   : > { %15721 = vmatpush2.bf16.msra.mxu1 %v15720_v54  ;;  %v15878_v54 = vunpack.c.l.s8.bf16 %v3408_v44  ;;  %v11297_v6 = vpop.f32.mrf.mxu0 }
 0x817   : > { %15723 = vmatprep.subr.bf16.mxu1 %v15722_v55  ;;  %v11227_v55 = vadd.f32 %v11226_v49, %v11155_v2  ;;  %v3336_v49 = vld [vmem:[%s18692_s6 + $0x68] sm:$0xff] }
 0x818   : > { %15789 = vmatpush2.bf16.msra.mxu0 %v15788_v59  ;;  %v3384_v59 = vld [vmem:[%s18692_s6 + $0x1e8] sm:$0xff] }
 0x819   : > { %15791 = vmatprep.subr.bf16.mxu0 %v15790_v62  ;;  %v15814_v62 = vunpack.c.l.s8.bf16 %v3982_v33  ;;  %v11298_v8 = vadd.f32 %v11297_v6, %v11227_v55  ;;  %v15826_v33 = vunpack.c.h.s8.bf16 %v3934_v25 }
 0x81a   : > { %15725 = vmatpush2.bf16.msra.mxu1 %v15724_v63  ;;  %v11296_v63 = vadd.f32 %v11295_v52, %v11225_v42  ;;  %v3910_v42 = vld [vmem:[%s18692_s6 + $0x1258] sm:$0xff]  ;;  %v3335_v52 = vld [vmem:[%s18692_s6 + $0x60] sm:$0xff] }
 0x81b   : > { %15727 = vmatprep.subr.bf16.mxu1 %v15726_v38  ;;  %v15880_v38 = vunpack.c.l.s8.bf16 %v3407_v3  ;;  %v15834_v55 = vunpack.c.h.s8.bf16 %v3910_v42  ;;  %v15838_v6 = vunpack.c.l.s8.bf16 %v3910_v42 }
 0x81c   : > { %15793 = vmatpush2.bf16.msra.mxu0 %v15792_v26  ;;  %v3958_v26 = vld [vmem:[%s18692_s6 + $0x13d8] sm:$0xff] }
 0x81d   : > { %15795 = vmatprep.subr.bf16.mxu0 %v15794_v60 }
 0x81e   : > { %15729 = vmatpush2.bf16.msra.mxu1 %v15728_v7  ;;  %v15882_v7 = vunpack.c.h.s8.bf16 %v3384_v59 }
 0x81f   : > { %15731 = vmatprep.subr.bf16.mxu1 %v15730_v1  ;;  %v3383_v1 = vld [vmem:[%s18692_s6 + $0x1e0] sm:$0xff] }
 0x820   : > { %15797 = vmatpush2.bf16.msra.mxu0 %v15796_v11  ;;  %v15888_v45 = vunpack.c.l.s8.bf16 %v3383_v1 }
 0x821   : > { %15799 = vmatprep.subr.bf16.mxu0 %v15798_v61  ;;  %v13680_v61 = vrot.slane %v19309_v22, %v18961_v41 }
 0x822   : > { %15733 = vmatpush2.bf16.msra.mxu1 %v15732_v32  ;;  %v15816_v32 = vunpack.c.l.s8.bf16 %v3981_v51 }
 0x823   : > { %15735 = vmatprep.subr.bf16.mxu1 %v15734_v19  ;;  %v15818_v19 = vunpack.c.h.s8.bf16 %v3958_v26 }
 0x824   : > { %15801 = vmatpush2.bf16.msra.mxu0 %v15800_v28  ;;  %v3957_v28 = vld [vmem:[%s18692_s6 + $0x13d0] sm:$0xff] }
 0x825   : > { %15803 = vmatprep.subr.bf16.mxu0 %v15802_v18  ;;  %v15820_v22 = vunpack.c.h.s8.bf16 %v3957_v28 }
 0x826   : > { %15737 = vmatpush2.bf16.msra.mxu1 %v15736_v14  ;;  %v15884_v14 = vunpack.c.h.s8.bf16 %v3383_v1  ;;  %v3503_v1 = vld [vmem:[%s18692_s6 + $0x5a0] sm:$0xff] }
 0x827   : > { %15739 = vmatprep.subr.bf16.mxu1 %v15738_v34  ;;  %v15886_v34 = vunpack.c.l.s8.bf16 %v3384_v59  ;;  %v15900_v59 = vunpack.c.h.s8.bf16 %v3335_v52 }
 0x828   : > { %15805 = vmatpush2.bf16.msra.mxu0 %v15804_v35 }
 0x829   : > { %15807 = vmatprep.subr.bf16.mxu0 %v15806_v37  ;;  %v3360_v37 = vld [vmem:[%s18692_s6 + $0x128] sm:$0xff] }
 0x82a   : > { %15741 = vmatpush2.bf16.msra.mxu1 %v15740_v43  ;;  %v15822_v43 = vunpack.c.l.s8.bf16 %v3958_v26  ;;  %v15890_v31 = vunpack.c.h.s8.bf16 %v3360_v37 }
 0x82b   : > { %15743 = vmatprep.subr.bf16.mxu1 %v15742_v40  ;;  %v3359_v40 = vld [vmem:[%s18692_s6 + $0x120] sm:$0xff] }
 0x82c   : > { %15809 = vmatpush2.bf16.msra.mxu0 %v15808_v9  ;;  %v15824_v9 = vunpack.c.l.s8.bf16 %v3957_v28  ;;  %v15892_v3 = vunpack.c.h.s8.bf16 %v3359_v40  ;;  %v15896_v51 = vunpack.c.l.s8.bf16 %v3359_v40  ;;  %v3480_v28 = vld [vmem:[%s18692_s6 + $0x4e8] sm:$0xff]  ;;  %v4030_v40 = vld [vmem:[%s18692_s6 + $0x1618] sm:$0xff] }
 0x82d   : > { %15875 = vmatprep.subr.bf16.mxu0 %v15874_v46  ;;  %v3933_v46 = vld [vmem:[%s18692_s6 + $0x1310] sm:$0xff]  ;;  %v15862_v42 = vunpack.c.l.s8.bf16 %v4030_v40 }
 0x82e   : > { %15745 = vmatpush2.bf16.msra.mxu1 %v15744_v48  ;;  %v15894_v48 = vunpack.c.l.s8.bf16 %v3360_v37  ;;  %v15828_v2 = vunpack.c.h.s8.bf16 %v3933_v46 }
 0x82f   : > { %11862 = vmatmul.mubr.f32.vlgmr.msra.gmra.mxu0 %v18964_v21  ;;  %15811 = vmatprep.subr.bf16.mxu1 %v15810_v50  ;;  %v15830_v50 = vunpack.c.l.s8.bf16 %v3934_v25 }
 0x830   : > { %15877 = vmatpush1.bf16.msra.mxu0 %v15876_v47  ;;  %12003 = vmatprep.mubr.f32.mxu0 %v18848_v13  ;;  %v15898_v47 = vunpack.c.h.s8.bf16 %v3336_v49 }
 0x831   : > { %v11366_v60 = vpop.f32.mrf.mxu1  ;;  %11791 = vmatmul.mubr.f32.vlgmr.msra.gmra.mxu1 %v18909_v29  ;;  %15879 = vmatprep.subr.bf16.mxu0 %v15878_v54  ;;  %v15832_v54 = vunpack.c.l.s8.bf16 %v3933_v46 }
 0x832   : > { %v11367_v11 = vadd.f32 %v11366_v60, %v11296_v63  ;;  %15813 = vmatpush1.bf16.msra.mxu1 %v15812_v57  ;;  %11932 = vmatprep.mubr.f32.mxu1 %v19007_v53  ;;  %v3909_v57 = vld [vmem:[%s18692_s6 + $0x1250] sm:$0xff]  ;;  %v15902_v63 = vunpack.c.l.s8.bf16 %v3336_v49  ;;  %v15904_v60 = vunpack.c.l.s8.bf16 %v3335_v52  ;;  %v4006_v52 = vld [vmem:[%s18692_s6 + $0x1558] sm:$0xff] }
 0x833   : > { %v11368_v58 = vpop.f32.mrf.mxu1  ;;  %15815 = vmatprep.subr.bf16.mxu1 %v15814_v62 }
 0x834   : > { %v13775_v30 = vmul.f32 %v13676_v0, %v11367_v11  ;;  %v11369_v18 = vadd.f32 %v11368_v58, %v11298_v8  ;;  %15881 = vmatpush1.bf16.msra.mxu0 %v15880_v38  ;;  %v15836_v0 = vunpack.c.h.s8.bf16 %v3909_v57  ;;  %v3504_v38 = vld [vmem:[%s18692_s6 + $0x5a8] sm:$0xff]  ;;  %v15840_v8 = vunpack.c.l.s8.bf16 %v3909_v57 }
 0x835   : > { %15883 = vmatprep.subr.bf16.mxu0 %v15882_v7  ;;  %v15906_v7 = vunpack.c.h.s8.bf16 %v3504_v38  ;;  %v15910_v58 = vunpack.c.l.s8.bf16 %v3504_v38 }
 0x836   : > { %v13925_v27 = vadd.f32 %v13826_v17, %v13775_v30  ;;  %v13776_v35 = vmul.f32 %v13680_v61, %v11369_v18  ;;  %15817 = vmatpush1.bf16.msra.mxu1 %v15816_v32  ;;  %v4078_v17 = vld [vmem:[%s18692_s6 + $0x1798] sm:$0xff]  ;;  %v4077_v61 = vld [vmem:[%s18692_s6 + $0x1790] sm:$0xff]  ;;  %v15908_v32 = vunpack.c.h.s8.bf16 %v3503_v1  ;;  %v15912_v18 = vunpack.c.l.s8.bf16 %v3503_v1  ;;  %v3791_v1 = vld [vmem:[%s18692_s6 + $0xea0] sm:$0xff] }
 0x837   : > { %15819 = vmatprep.subr.bf16.mxu1 %v15818_v19  ;;  %v15842_v11 = vunpack.c.h.s8.bf16 %v4078_v17  ;;  %v15844_v19 = vunpack.c.h.s8.bf16 %v4077_v61  ;;  %v15846_v30 = vunpack.c.l.s8.bf16 %v4078_v17  ;;  %v3600_v17 = vld [vmem:[%s18692_s6 + $0x8a8] sm:$0xff] }
 0x838   : > { %17668 = vtanh.f32 %v13925_v27  ;;  %v13926_v44 = vadd.f32 %v13830_v15, %v13776_v35  ;;  %15885 = vmatpush1.bf16.msra.mxu0 %v15884_v14  ;;  %v4054_v15 = vld [vmem:[%s18692_s6 + $0x16d8] sm:$0xff]  ;;  %v15914_v14 = vunpack.c.h.s8.bf16 %v3480_v28  ;;  %v15848_v27 = vunpack.c.l.s8.bf16 %v4077_v61  ;;  %v3599_v61 = vld [vmem:[%s18692_s6 + $0x8a0] sm:$0xff] }
 0x839   : > { %15887 = vmatprep.subr.bf16.mxu0 %v15886_v34  ;;  %v3479_v34 = vld [vmem:[%s18692_s6 + $0x4e0] sm:$0xff]  ;;  %v15850_v35 = vunpack.c.h.s8.bf16 %v4054_v15  ;;  %v15854_v25 = vunpack.c.l.s8.bf16 %v4054_v15  ;;  %v3576_v15 = vld [vmem:[%s18692_s6 + $0x7e8] sm:$0xff] }
 0x83a   : > { %17670 = vtanh.f32 %v13926_v44  ;;  %15821 = vmatpush1.bf16.msra.mxu1 %v15820_v22  ;;  %v4053_v22 = vld [vmem:[%s18692_s6 + $0x16d0] sm:$0xff]  ;;  %v15916_v37 = vunpack.c.h.s8.bf16 %v3479_v34 }
 0x83b   : > { %15823 = vmatprep.subr.bf16.mxu1 %v15822_v43  ;;  %v15918_v43 = vunpack.c.l.s8.bf16 %v3480_v28  ;;  %v15852_v44 = vunpack.c.h.s8.bf16 %v4053_v22  ;;  %v15856_v46 = vunpack.c.l.s8.bf16 %v4053_v22  ;;  %v3768_v28 = vld [vmem:[%s18692_s6 + $0xde8] sm:$0xff]  ;;  %v3575_v22 = vld [vmem:[%s18692_s6 + $0x7e0] sm:$0xff] }
 0x83c   : > { %15889 = vmatpush1.bf16.msra.mxu0 %v15888_v45  ;;  %v3456_v45 = vld [vmem:[%s18692_s6 + $0x428] sm:$0xff] }
 0x83d   : > { %15891 = vmatprep.subr.bf16.mxu0 %v15890_v31  ;;  %v15920_v31 = vunpack.c.l.s8.bf16 %v3479_v34  ;;  %v15926_v49 = vunpack.c.l.s8.bf16 %v3456_v45  ;;  %v3767_v34 = vld [vmem:[%s18692_s6 + $0xde0] sm:$0xff] }
 0x83e   : > { %15825 = vmatpush1.bf16.msra.mxu1 %v15824_v9  ;;  %v15922_v9 = vunpack.c.h.s8.bf16 %v3456_v45  ;;  %v3744_v45 = vld [vmem:[%s18692_s6 + $0xd28] sm:$0xff] }
 0x83f   : > { %15827 = vmatprep.subr.bf16.mxu1 %v15826_v33  ;;  %v3455_v33 = vld [vmem:[%s18692_s6 + $0x420] sm:$0xff] }
 0x840   : > { %15893 = vmatpush1.bf16.msra.mxu0 %v15892_v3  ;;  %v15858_v3 = vunpack.c.h.s8.bf16 %v4030_v40  ;;  %v3552_v40 = vld [vmem:[%s18692_s6 + $0x728] sm:$0xff] }
 0x841   : > { %15895 = vmatprep.subr.bf16.mxu0 %v15894_v48  ;;  %v4029_v48 = vld [vmem:[%s18692_s6 + $0x1610] sm:$0xff] }
 0x842   : > { %15829 = vmatpush1.bf16.msra.mxu1 %v15828_v2  ;;  %v15924_v2 = vunpack.c.h.s8.bf16 %v3455_v33  ;;  %v15864_v57 = vunpack.c.l.s8.bf16 %v4029_v48 }
 0x843   : > { %15831 = vmatprep.subr.bf16.mxu1 %v15830_v50  ;;  %v15860_v50 = vunpack.c.h.s8.bf16 %v4029_v48  ;;  %v3551_v48 = vld [vmem:[%s18692_s6 + $0x720] sm:$0xff] }
 0x844   : > { %15897 = vmatpush1.bf16.msra.mxu0 %v15896_v51  ;;  %v3432_v51 = vld [vmem:[%s18692_s6 + $0x368] sm:$0xff] }
 0x845   : > { %v17669_v62 = vpop.eup %17668  ;;  %15899 = vmatprep.subr.bf16.mxu0 %v15898_v47  ;;  %v15928_v47 = vunpack.c.l.s8.bf16 %v3455_v33  ;;  %v3743_v33 = vld [vmem:[%s18692_s6 + $0xd20] sm:$0xff] }
 0x846   : > { %13973 = vst [vmem:[%s19163_s5 + $0x30] sm:$0xff] %v17669_v62  ;;  %15833 = vmatpush1.bf16.msra.mxu1 %v15832_v54  ;;  %v15930_v54 = vunpack.c.h.s8.bf16 %v3432_v51  ;;  %v4005_v62 = vld [vmem:[%s18692_s6 + $0x1550] sm:$0xff] }
 0x847   : > { %v17671_v26 = vpop.eup %17670  ;;  %15835 = vmatprep.subr.bf16.mxu1 %v15834_v55  ;;  %v3431_v55 = vld [vmem:[%s18692_s6 + $0x360] sm:$0xff]  ;;  %v15868_v38 = vunpack.c.h.s8.bf16 %v4005_v62 }
 0x848   : > { %13974 = vst [vmem:[%s19163_s5 + $0x38] sm:$0xff] %v17671_v26  ;;  %15901 = vmatpush1.bf16.msra.mxu0 %v15900_v59  ;;  %v15866_v59 = vunpack.c.h.s8.bf16 %v4006_v52  ;;  %v3792_v26 = vld [vmem:[%s18692_s6 + $0xea8] sm:$0xff] }
 0x849   : > { %15903 = vmatprep.subr.bf16.mxu0 %v15902_v63  ;;  %v15932_v63 = vunpack.c.h.s8.bf16 %v3431_v55 }
 0x84a   : > { %15837 = vmatpush1.bf16.msra.mxu1 %v15836_v0  ;;  %v15934_v0 = vunpack.c.l.s8.bf16 %v3432_v51  ;;  %v3720_v51 = vld [vmem:[%s18692_s6 + $0xc68] sm:$0xff] }
 0x84b   : > { %15839 = vmatprep.subr.bf16.mxu1 %v15838_v6  ;;  %v15870_v6 = vunpack.c.l.s8.bf16 %v4006_v52  ;;  %v3528_v52 = vld [vmem:[%s18692_s6 + $0x668] sm:$0xff] }
 0x84c   : > { %15905 = vmatpush1.bf16.msra.mxu0 %v15904_v60  ;;  %v15936_v60 = vunpack.c.l.s8.bf16 %v3431_v55  ;;  %v3719_v55 = vld [vmem:[%s18692_s6 + $0xc60] sm:$0xff] }
 0x84d   : > { %15907 = vmatprep.subr.bf16.mxu0 %v15906_v7  ;;  %v16002_v7 = vunpack.c.h.s8.bf16 %v3792_v26 }
 0x84e   : > { %15841 = vmatpush1.bf16.msra.mxu1 %v15840_v8  ;;  %v15872_v8 = vunpack.c.l.s8.bf16 %v4005_v62  ;;  %v3527_v62 = vld [vmem:[%s18692_s6 + $0x660] sm:$0xff] }
 0x84f   : > { %15843 = vmatprep.subr.bf16.mxu1 %v15842_v11  ;;  %v15938_v11 = vunpack.c.h.s8.bf16 %v3600_v17 }
 0x850   : > { %15909 = vmatpush2.bf16.msra.mxu0 %v15908_v32  ;;  %v16004_v32 = vunpack.c.h.s8.bf16 %v3791_v1 }
 0x851   : > { %15911 = vmatprep.subr.bf16.mxu0 %v15910_v58  ;;  %v16006_v58 = vunpack.c.l.s8.bf16 %v3792_v26  ;;  %v3888_v26 = vld [vmem:[%s18692_s6 + $0x11a8] sm:$0xff] }
 0x852   : > { %15845 = vmatpush2.bf16.msra.mxu1 %v15844_v19  ;;  %v15940_v19 = vunpack.c.h.s8.bf16 %v3599_v61 }
 0x853   : > { %15847 = vmatprep.subr.bf16.mxu1 %v15846_v30  ;;  %v15942_v30 = vunpack.c.l.s8.bf16 %v3600_v17  ;;  %v3696_v17 = vld [vmem:[%s18692_s6 + $0xba8] sm:$0xff] }
 0x854   : > { %15913 = vmatpush2.bf16.msra.mxu0 %v15912_v18  ;;  %v16008_v18 = vunpack.c.l.s8.bf16 %v3791_v1  ;;  %v3887_v1 = vld [vmem:[%s18692_s6 + $0x11a0] sm:$0xff] }
 0x855   : > { %15915 = vmatprep.subr.bf16.mxu0 %v15914_v14  ;;  %v16010_v14 = vunpack.c.h.s8.bf16 %v3768_v28 }
 0x856   : > { %15849 = vmatpush2.bf16.msra.mxu1 %v15848_v27  ;;  %v15944_v27 = vunpack.c.l.s8.bf16 %v3599_v61  ;;  %v3695_v61 = vld [vmem:[%s18692_s6 + $0xba0] sm:$0xff] }
 0x857   : > { %15851 = vmatprep.subr.bf16.mxu1 %v15850_v35  ;;  %v15946_v35 = vunpack.c.h.s8.bf16 %v3576_v15 }
 0x858   : > { %15917 = vmatpush2.bf16.msra.mxu0 %v15916_v37  ;;  %v16012_v37 = vunpack.c.h.s8.bf16 %v3767_v34 }
 0x859   : > { %15919 = vmatprep.subr.bf16.mxu0 %v15918_v43  ;;  %v16014_v43 = vunpack.c.l.s8.bf16 %v3768_v28  ;;  %v3864_v28 = vld [vmem:[%s18692_s6 + $0x10e8] sm:$0xff] }
 0x85a   : > { %15853 = vmatpush2.bf16.msra.mxu1 %v15852_v44  ;;  %v15948_v44 = vunpack.c.h.s8.bf16 %v3575_v22 }
 0x85b   : > { %15855 = vmatprep.subr.bf16.mxu1 %v15854_v25  ;;  %v15950_v25 = vunpack.c.l.s8.bf16 %v3576_v15  ;;  %v3672_v15 = vld [vmem:[%s18692_s6 + $0xae8] sm:$0xff] }
 0x85c   : > { %15921 = vmatpush2.bf16.msra.mxu0 %v15920_v31  ;;  %v16016_v31 = vunpack.c.l.s8.bf16 %v3767_v34  ;;  %v3863_v34 = vld [vmem:[%s18692_s6 + $0x10e0] sm:$0xff] }
 0x85d   : > { %15923 = vmatprep.subr.bf16.mxu0 %v15922_v9  ;;  %v16018_v9 = vunpack.c.h.s8.bf16 %v3744_v45 }
 0x85e   : > { %15857 = vmatpush2.bf16.msra.mxu1 %v15856_v46  ;;  %v15952_v46 = vunpack.c.l.s8.bf16 %v3575_v22  ;;  %v3671_v22 = vld [vmem:[%s18692_s6 + $0xae0] sm:$0xff] }
 0x85f   : > { %15859 = vmatprep.subr.bf16.mxu1 %v15858_v3  ;;  %v15954_v3 = vunpack.c.h.s8.bf16 %v3552_v40 }
 0x860   : > { %15925 = vmatpush2.bf16.msra.mxu0 %v15924_v2  ;;  %v16020_v2 = vunpack.c.h.s8.bf16 %v3743_v33 }
 0x861   : > { %15927 = vmatprep.subr.bf16.mxu0 %v15926_v49  ;;  %v16022_v49 = vunpack.c.l.s8.bf16 %v3744_v45  ;;  %v3840_v45 = vld [vmem:[%s18692_s6 + $0x1028] sm:$0xff] }
 0x862   : > { %15861 = vmatpush2.bf16.msra.mxu1 %v15860_v50  ;;  %v15956_v50 = vunpack.c.h.s8.bf16 %v3551_v48 }
 0x863   : > { %15863 = vmatprep.subr.bf16.mxu1 %v15862_v42  ;;  %v15958_v42 = vunpack.c.l.s8.bf16 %v3552_v40  ;;  %v3648_v40 = vld [vmem:[%s18692_s6 + $0xa28] sm:$0xff] }
 0x864   : > { %15929 = vmatpush2.bf16.msra.mxu0 %v15928_v47  ;;  %v16024_v47 = vunpack.c.l.s8.bf16 %v3743_v33  ;;  %v3839_v33 = vld [vmem:[%s18692_s6 + $0x1020] sm:$0xff] }
 0x865   : > { %15931 = vmatprep.subr.bf16.mxu0 %v15930_v54  ;;  %v16026_v54 = vunpack.c.h.s8.bf16 %v3720_v51 }
 0x866   : > { %15865 = vmatpush2.bf16.msra.mxu1 %v15864_v57  ;;  %v15960_v57 = vunpack.c.l.s8.bf16 %v3551_v48  ;;  %v3647_v48 = vld [vmem:[%s18692_s6 + $0xa20] sm:$0xff] }
 0x867   : > { %15867 = vmatprep.subr.bf16.mxu1 %v15866_v59  ;;  %v15962_v59 = vunpack.c.h.s8.bf16 %v3528_v52 }
 0x868   : > { %15933 = vmatpush2.bf16.msra.mxu0 %v15932_v63  ;;  %v16028_v63 = vunpack.c.h.s8.bf16 %v3719_v55 }
 0x869   : > { %15935 = vmatprep.subr.bf16.mxu0 %v15934_v0  ;;  %v16030_v0 = vunpack.c.l.s8.bf16 %v3720_v51  ;;  %v3816_v51 = vld [vmem:[%s18692_s6 + $0xf68] sm:$0xff] }
 0x86a   : > { %15869 = vmatpush2.bf16.msra.mxu1 %v15868_v38  ;;  %v15964_v38 = vunpack.c.h.s8.bf16 %v3527_v62 }
 0x86b   : > { %15871 = vmatprep.subr.bf16.mxu1 %v15870_v6  ;;  %v15966_v6 = vunpack.c.l.s8.bf16 %v3528_v52  ;;  %v3624_v52 = vld [vmem:[%s18692_s6 + $0x968] sm:$0xff] }
 0x86c   : > { %15937 = vmatpush2.bf16.msra.mxu0 %v15936_v60  ;;  %v16032_v60 = vunpack.c.l.s8.bf16 %v3719_v55  ;;  %v3815_v55 = vld [vmem:[%s18692_s6 + $0xf60] sm:$0xff] }
 0x86d   : > { %16003 = vmatprep.subr.bf16.mxu0 %v16002_v7  ;;  %v16034_v7 = vunpack.c.h.s8.bf16 %v3888_v26 }
 0x86e   : > { %15873 = vmatpush2.bf16.msra.mxu1 %v15872_v8  ;;  %v15968_v8 = vunpack.c.l.s8.bf16 %v3527_v62  ;;  %v3623_v62 = vld [vmem:[%s18692_s6 + $0x960] sm:$0xff] }
 0x86f   : > { %12004 = vmatmul.mubr.f32.vlgmr.msra.gmra.mxu0 %v18861_v36  ;;  %15939 = vmatprep.subr.bf16.mxu1 %v15938_v11  ;;  %v15970_v11 = vunpack.c.h.s8.bf16 %v3696_v17 }
 0x870   : > { %16005 = vmatpush1.bf16.msra.mxu0 %v16004_v32  ;;  %12145 = vmatprep.mubr.f32.mxu0 %v18958_v39  ;;  %v16036_v32 = vunpack.c.h.s8.bf16 %v3887_v1 }
 0x871   : > { %11933 = vmatmul.mubr.f32.vlgmr.msra.gmra.mxu1 %v19011_v56  ;;  %16007 = vmatprep.subr.bf16.mxu0 %v16006_v58  ;;  %v16038_v58 = vunpack.c.l.s8.bf16 %v3888_v26  ;;  %v3410_v26 = vld [vmem:[%s18692_s6 + $0x2b8] sm:$0xff] }
 0x872   : > { %15941 = vmatpush1.bf16.msra.mxu1 %v15940_v19  ;;  %12074 = vmatprep.mubr.f32.mxu1 %v18903_v23  ;;  %v15972_v19 = vunpack.c.h.s8.bf16 %v3695_v61 }
 0x873   : > { %15943 = vmatprep.subr.bf16.mxu1 %v15942_v30  ;;  %v15974_v30 = vunpack.c.l.s8.bf16 %v3696_v17  ;;  %v15998_v17 = vunpack.c.l.s8.bf16 %v3624_v52 }
 0x874   : > { %16009 = vmatpush1.bf16.msra.mxu0 %v16008_v18  ;;  %v16040_v18 = vunpack.c.l.s8.bf16 %v3887_v1  ;;  %v3984_v1 = vld [vmem:[%s18692_s6 + $0x14a8] sm:$0xff] }
 0x875   : > { %16011 = vmatprep.subr.bf16.mxu0 %v16010_v14  ;;  %v16042_v14 = vunpack.c.h.s8.bf16 %v3864_v28 }
 0x876   : > { %15945 = vmatpush1.bf16.msra.mxu1 %v15944_v27  ;;  %v15976_v27 = vunpack.c.l.s8.bf16 %v3695_v61  ;;  %v16000_v61 = vunpack.c.l.s8.bf16 %v3623_v62 }
 0x877   : > { %15947 = vmatprep.subr.bf16.mxu1 %v15946_v35  ;;  %v15978_v35 = vunpack.c.h.s8.bf16 %v3672_v15 }
 0x878   : > { %16013 = vmatpush1.bf16.msra.mxu0 %v16012_v37  ;;  %v16044_v37 = vunpack.c.h.s8.bf16 %v3863_v34 }
 0x879   : > { %16015 = vmatprep.subr.bf16.mxu0 %v16014_v43  ;;  %v16046_v43 = vunpack.c.l.s8.bf16 %v3864_v28  ;;  %v3983_v28 = vld [vmem:[%s18692_s6 + $0x14a0] sm:$0xff] }
 0x87a   : > { %15949 = vmatpush1.bf16.msra.mxu1 %v15948_v44  ;;  %v15980_v44 = vunpack.c.h.s8.bf16 %v3671_v22 }
 0x87b   : > { %15951 = vmatprep.subr.bf16.mxu1 %v15950_v25  ;;  %v15982_v25 = vunpack.c.l.s8.bf16 %v3672_v15 }
 0x87c   : > { %16017 = vmatpush1.bf16.msra.mxu0 %v16016_v31  ;;  %v16048_v31 = vunpack.c.l.s8.bf16 %v3863_v34  ;;  %v16134_v34 = vunpack.c.l.s8.bf16 %v3410_v26 }
 0x87d   : > { %16019 = vmatprep.subr.bf16.mxu0 %v16018_v9  ;;  %v16050_v9 = vunpack.c.h.s8.bf16 %v3840_v45 }
 0x87e   : > { %15953 = vmatpush1.bf16.msra.mxu1 %v15952_v46  ;;  %v15984_v46 = vunpack.c.l.s8.bf16 %v3671_v22  ;;  %v16068_v22 = vunpack.c.h.s8.bf16 %v3983_v28 }
 0x87f   : > { %15955 = vmatprep.subr.bf16.mxu1 %v15954_v3  ;;  %v15986_v3 = vunpack.c.h.s8.bf16 %v3648_v40 }
 0x880   : > { %16021 = vmatpush1.bf16.msra.mxu0 %v16020_v2  ;;  %v16052_v2 = vunpack.c.h.s8.bf16 %v3839_v33 }
 0x881   : > { %16023 = vmatprep.subr.bf16.mxu0 %v16022_v49  ;;  %v16054_v49 = vunpack.c.l.s8.bf16 %v3840_v45 }
 0x882   : > { %15957 = vmatpush1.bf16.msra.mxu1 %v15956_v50  ;;  %v15988_v50 = vunpack.c.h.s8.bf16 %v3647_v48 }
 0x883   : > { %15959 = vmatprep.subr.bf16.mxu1 %v15958_v42  ;;  %v15990_v42 = vunpack.c.l.s8.bf16 %v3648_v40 }
 0x884   : > { %16025 = vmatpush1.bf16.msra.mxu0 %v16024_v47  ;;  %v16056_v47 = vunpack.c.l.s8.bf16 %v3839_v33 }
 0x885   : > { %16027 = vmatprep.subr.bf16.mxu0 %v16026_v54  ;;  %v16058_v54 = vunpack.c.h.s8.bf16 %v3816_v51 }
 0x886   : > { %15961 = vmatpush1.bf16.msra.mxu1 %v15960_v57  ;;  %v15992_v57 = vunpack.c.l.s8.bf16 %v3647_v48 }
 0x887   : > { %15963 = vmatprep.subr.bf16.mxu1 %v15962_v59  ;;  %v15994_v59 = vunpack.c.h.s8.bf16 %v3624_v52 }
 0x888   : > { %16029 = vmatpush1.bf16.msra.mxu0 %v16028_v63  ;;  %v16060_v63 = vunpack.c.h.s8.bf16 %v3815_v55 }
 0x889   : > { %16031 = vmatprep.subr.bf16.mxu0 %v16030_v0  ;;  %v16062_v0 = vunpack.c.l.s8.bf16 %v3816_v51 }
 0x88a   : > { %15965 = vmatpush1.bf16.msra.mxu1 %v15964_v38  ;;  %v15996_v38 = vunpack.c.h.s8.bf16 %v3623_v62 }
 0x88b   : > { %15967 = vmatprep.subr.bf16.mxu1 %v15966_v6  ;;  %v11437_v6 = vpop.f32.mrf.mxu0 }
 0x88c   : > { %16033 = vmatpush1.bf16.msra.mxu0 %v16032_v60  ;;  %v11508_v60 = vpop.f32.mrf.mxu1 }
 0x88d   : > { %16035 = vmatprep.subr.bf16.mxu0 %v16034_v7  ;;  %v16064_v7 = vunpack.c.l.s8.bf16 %v3815_v55 }
 0x88e   : > { %15969 = vmatpush1.bf16.msra.mxu1 %v15968_v8  ;;  %v16130_v8 = vunpack.c.h.s8.bf16 %v3410_v26 }
 0x88f   : > { %15971 = vmatprep.subr.bf16.mxu1 %v15970_v11  ;;  %v3409_v11 = vld [vmem:[%s18692_s6 + $0x2b0] sm:$0xff] }
 0x890   : > { %16037 = vmatpush2.bf16.msra.mxu0 %v16036_v32  ;;  %v11439_v32 = vpop.f32.mrf.mxu0 }
 0x891   : > { %16039 = vmatprep.subr.bf16.mxu0 %v16038_v58  ;;  %v11510_v58 = vpop.f32.mrf.mxu1 }
 0x892   : > { %15973 = vmatpush2.bf16.msra.mxu1 %v15972_v19  ;;  %v16066_v19 = vunpack.c.h.s8.bf16 %v3984_v1  ;;  %v11579_v15 = vpop.f32.mrf.mxu0 }
 0x893   : > { %15975 = vmatprep.subr.bf16.mxu1 %v15974_v30  ;;  %v11509_v30 = vadd.f32 %v11508_v60, %v11437_v6 }
 0x894   : > { %16041 = vmatpush2.bf16.msra.mxu0 %v16040_v18  ;;  %v16132_v18 = vunpack.c.h.s8.bf16 %v3409_v11  ;;  %v11581_v40 = vpop.f32.mrf.mxu0 }
 0x895   : > { %16043 = vmatprep.subr.bf16.mxu0 %v16042_v14  ;;  %v19477_v14 = vld [vmem:[%s18698_s30 + $0x8] sm:$0xff] }
 0x896   : > { %15977 = vmatpush2.bf16.msra.mxu1 %v15976_v27  ;;  %v11511_v27 = vadd.f32 %v11510_v58, %v11439_v32  ;;  %v13684_v45 = vrot.slane %v19477_v14, %v18725_v10 }
 0x897   : > { %15979 = vmatprep.subr.bf16.mxu1 %v15978_v35  ;;  %v19480_v35 = vld [vmem:[%s18700_s16 + $0x8] sm:$0xff] }
 0x898   : > { %16045 = vmatpush2.bf16.msra.mxu0 %v16044_v37  ;;  %v3386_v37 = vld [vmem:[%s18692_s6 + $0x1f8] sm:$0xff]  ;;  %v13834_v33 = vrot.slane %v19480_v35, %v18725_v10  ;;  %v11582_v48 = vadd.f32 %v11581_v40, %v11511_v27  ;;  %v13838_v55 = vrot.slane %v19480_v35, %v18728_v12  ;;  %v3337_v27 = vld [vmem:[%s18692_s6 + $0x70] sm:$0xff] }
 0x899   : > { %16047 = vmatprep.subr.bf16.mxu0 %v16046_v43  ;;  %v16070_v43 = vunpack.c.l.s8.bf16 %v3984_v1  ;;  %v3361_v1 = vld [vmem:[%s18692_s6 + $0x130] sm:$0xff]  ;;  %v3506_v40 = vld [vmem:[%s18692_s6 + $0x5b8] sm:$0xff] }
 0x89a   : > { %15981 = vmatpush2.bf16.msra.mxu1 %v15980_v44  ;;  %v11580_v44 = vadd.f32 %v11579_v15, %v11509_v30  ;;  %v16148_v32 = vunpack.c.h.s8.bf16 %v3361_v1  ;;  %v3912_v15 = vld [vmem:[%s18692_s6 + $0x1268] sm:$0xff] }
 0x89b   : > { %15983 = vmatprep.subr.bf16.mxu1 %v15982_v25  ;;  %v16136_v25 = vunpack.c.l.s8.bf16 %v3409_v11 }
 0x89c   : > { %16049 = vmatpush2.bf16.msra.mxu0 %v16048_v31  ;;  %v3960_v31 = vld [vmem:[%s18692_s6 + $0x13e8] sm:$0xff] }
 0x89d   : > { %16051 = vmatprep.subr.bf16.mxu0 %v16050_v9  ;;  %v16078_v26 = vunpack.c.l.s8.bf16 %v3960_v31 }
 0x89e   : > { %15985 = vmatpush2.bf16.msra.mxu1 %v15984_v46  ;;  %v16138_v46 = vunpack.c.h.s8.bf16 %v3386_v37 }
 0x89f   : > { %15987 = vmatprep.subr.bf16.mxu1 %v15986_v3  ;;  %v3385_v3 = vld [vmem:[%s18692_s6 + $0x1f0] sm:$0xff] }
 0x8a0   : > { %16053 = vmatpush2.bf16.msra.mxu0 %v16052_v2  ;;  %v16144_v60 = vunpack.c.l.s8.bf16 %v3385_v3 }
 0x8a1   : > { %16055 = vmatprep.subr.bf16.mxu0 %v16054_v49  ;;  %v13688_v49 = vrot.slane %v19477_v14, %v18728_v12 }
 0x8a2   : > { %15989 = vmatpush2.bf16.msra.mxu1 %v15988_v50  ;;  %v16072_v50 = vunpack.c.l.s8.bf16 %v3983_v28  ;;  %v3338_v28 = vld [vmem:[%s18692_s6 + $0x78] sm:$0xff] }
 0x8a3   : > { %15991 = vmatprep.subr.bf16.mxu1 %v15990_v42  ;;  %v16074_v42 = vunpack.c.h.s8.bf16 %v3960_v31 }
 0x8a4   : > { %16057 = vmatpush2.bf16.msra.mxu0 %v16056_v47  ;;  %v3959_v47 = vld [vmem:[%s18692_s6 + $0x13e0] sm:$0xff] }
 0x8a5   : > { %16059 = vmatprep.subr.bf16.mxu0 %v16058_v54 }
 0x8a6   : > { %15993 = vmatpush2.bf16.msra.mxu1 %v15992_v57  ;;  %v16140_v57 = vunpack.c.h.s8.bf16 %v3385_v3  ;;  %v4080_v3 = vld [vmem:[%s18692_s6 + $0x17a8] sm:$0xff] }
 0x8a7   : > { %15995 = vmatprep.subr.bf16.mxu1 %v15994_v59  ;;  %v16142_v59 = vunpack.c.l.s8.bf16 %v3386_v37  ;;  %v16090_v37 = vunpack.c.h.s8.bf16 %v3912_v15 }
 0x8a8   : > { %16061 = vmatpush2.bf16.msra.mxu0 %v16060_v63 }
 0x8a9   : > { %16063 = vmatprep.subr.bf16.mxu0 %v16062_v0  ;;  %v16076_v0 = vunpack.c.h.s8.bf16 %v3959_v47 }
 0x8aa   : > { %15997 = vmatpush2.bf16.msra.mxu1 %v15996_v38  ;;  %v3362_v38 = vld [vmem:[%s18692_s6 + $0x138] sm:$0xff] }
 0x8ab   : > { %15999 = vmatprep.subr.bf16.mxu1 %v15998_v17  ;;  %v3936_v17 = vld [vmem:[%s18692_s6 + $0x1328] sm:$0xff]  ;;  %v16150_v58 = vunpack.c.l.s8.bf16 %v3362_v38 }
 0x8ac   : > { %16065 = vmatpush2.bf16.msra.mxu0 %v16064_v7  ;;  %v16146_v7 = vunpack.c.h.s8.bf16 %v3362_v38  ;;  %v16082_v11 = vunpack.c.h.s8.bf16 %v3936_v17  ;;  %v16086_v30 = vunpack.c.l.s8.bf16 %v3936_v17 }
 0x8ad   : > { %16131 = vmatprep.subr.bf16.mxu0 %v16130_v8  ;;  %v16080_v8 = vunpack.c.l.s8.bf16 %v3959_v47  ;;  %v16166_v47 = vunpack.c.l.s8.bf16 %v3506_v40 }
 0x8ae   : > { %16001 = vmatpush2.bf16.msra.mxu1 %v16000_v61  ;;  %v3935_v61 = vld [vmem:[%s18692_s6 + $0x1320] sm:$0xff] }
 0x8af   : > { %12146 = vmatmul.mubr.f32.vlgmr.msra.gmra.mxu0 %v18964_v21  ;;  %16067 = vmatprep.subr.bf16.mxu1 %v16066_v19  ;;  %v16084_v19 = vunpack.c.h.s8.bf16 %v3935_v61 }
 0x8b0   : > { %16133 = vmatpush1.bf16.msra.mxu0 %v16132_v18  ;;  %12287 = vmatprep.mubr.f32.mxu0 %v18848_v13  ;;  %v16152_v18 = vunpack.c.l.s8.bf16 %v3361_v1 }
 0x8b1   : > { %v11650_v9 = vpop.f32.mrf.mxu1  ;;  %12075 = vmatmul.mubr.f32.vlgmr.msra.gmra.mxu1 %v18909_v29  ;;  %16135 = vmatprep.subr.bf16.mxu0 %v16134_v34  ;;  %v16154_v34 = vunpack.c.h.s8.bf16 %v3338_v28 }
 0x8b2   : > { %v11651_v2 = vadd.f32 %v11650_v9, %v11580_v44  ;;  %16069 = vmatpush1.bf16.msra.mxu1 %v16068_v22  ;;  %12216 = vmatprep.mubr.f32.mxu1 %v19007_v53  ;;  %v16088_v22 = vunpack.c.l.s8.bf16 %v3935_v61  ;;  %v16156_v44 = vunpack.c.h.s8.bf16 %v3337_v27 }
 0x8b3   : > { %v11652_v51 = vpop.f32.mrf.mxu1  ;;  %16071 = vmatprep.subr.bf16.mxu1 %v16070_v43  ;;  %v3911_v43 = vld [vmem:[%s18692_s6 + $0x1260] sm:$0xff] }
 0x8b4   : > { %v13777_v52 = vmul.f32 %v13684_v45, %v11651_v2  ;;  %v11653_v54 = vadd.f32 %v11652_v51, %v11582_v48  ;;  %16137 = vmatpush1.bf16.msra.mxu0 %v16136_v25  ;;  %v16158_v25 = vunpack.c.l.s8.bf16 %v3338_v28  ;;  %v16092_v31 = vunpack.c.h.s8.bf16 %v3911_v43  ;;  %v3505_v2 = vld [vmem:[%s18692_s6 + $0x5b0] sm:$0xff]  ;;  %v4079_v51 = vld [vmem:[%s18692_s6 + $0x17a0] sm:$0xff] }
 0x8b5   : > { %16139 = vmatprep.subr.bf16.mxu0 %v16138_v46  ;;  %v16160_v46 = vunpack.c.l.s8.bf16 %v3337_v27  ;;  %v16162_v48 = vunpack.c.h.s8.bf16 %v3506_v40  ;;  %v4031_v28 = vld [vmem:[%s18692_s6 + $0x1620] sm:$0xff] }
 0x8b6   : > { %v13927_v62 = vadd.f32 %v13834_v33, %v13777_v52  ;;  %v13778_v63 = vmul.f32 %v13688_v49, %v11653_v54  ;;  %16073 = vmatpush1.bf16.msra.mxu1 %v16072_v50  ;;  %v16094_v33 = vunpack.c.l.s8.bf16 %v3912_v15  ;;  %v16096_v49 = vunpack.c.l.s8.bf16 %v3911_v43  ;;  %v3482_v54 = vld [vmem:[%s18692_s6 + $0x4f8] sm:$0xff] }
 0x8b7   : > { %16075 = vmatprep.subr.bf16.mxu1 %v16074_v42  ;;  %v16098_v50 = vunpack.c.h.s8.bf16 %v4080_v3  ;;  %v16164_v42 = vunpack.c.h.s8.bf16 %v3505_v2  ;;  %v16100_v52 = vunpack.c.h.s8.bf16 %v4079_v51  ;;  %v16116_v15 = vunpack.c.h.s8.bf16 %v4031_v28 }
 0x8b8   : > { %17672 = vtanh.f32 %v13927_v62  ;;  %v13928_v6 = vadd.f32 %v13838_v55, %v13778_v63  ;;  %16141 = vmatpush1.bf16.msra.mxu0 %v16140_v57  ;;  %v16102_v55 = vunpack.c.l.s8.bf16 %v4080_v3  ;;  %v16168_v57 = vunpack.c.l.s8.bf16 %v3505_v2  ;;  %v3481_v63 = vld [vmem:[%s18692_s6 + $0x4f0] sm:$0xff]  ;;  %v3602_v2 = vld [vmem:[%s18692_s6 + $0x8b8] sm:$0xff] }
 0x8b9   : > { %16143 = vmatprep.subr.bf16.mxu0 %v16142_v59  ;;  %v4056_v59 = vld [vmem:[%s18692_s6 + $0x16e8] sm:$0xff]  ;;  %v16170_v62 = vunpack.c.h.s8.bf16 %v3482_v54 }
 0x8ba   : > { %17674 = vtanh.f32 %v13928_v6  ;;  %16077 = vmatpush1.bf16.msra.mxu1 %v16076_v0  ;;  %v16104_v0 = vunpack.c.l.s8.bf16 %v4079_v51  ;;  %v16106_v38 = vunpack.c.h.s8.bf16 %v4056_v59  ;;  %v16172_v6 = vunpack.c.h.s8.bf16 %v3481_v63 }
 0x8bb   : > { %16079 = vmatprep.subr.bf16.mxu1 %v16078_v26  ;;  %v4055_v26 = vld [vmem:[%s18692_s6 + $0x16e0] sm:$0xff]  ;;  %v16110_v1 = vunpack.c.l.s8.bf16 %v4056_v59  ;;  %v16198_v59 = vunpack.c.l.s8.bf16 %v3602_v2 }
 0x8bc   : > { %16145 = vmatpush1.bf16.msra.mxu0 %v16144_v60  ;;  %v16174_v60 = vunpack.c.l.s8.bf16 %v3482_v54  ;;  %v16108_v17 = vunpack.c.h.s8.bf16 %v4055_v26 }
 0x8bd   : > { %16147 = vmatprep.subr.bf16.mxu0 %v16146_v7  ;;  %v3458_v7 = vld [vmem:[%s18692_s6 + $0x438] sm:$0xff] }
 0x8be   : > { %16081 = vmatpush1.bf16.msra.mxu1 %v16080_v8  ;;  %v16176_v8 = vunpack.c.l.s8.bf16 %v3481_v63  ;;  %v16178_v61 = vunpack.c.h.s8.bf16 %v3458_v7  ;;  %v3578_v63 = vld [vmem:[%s18692_s6 + $0x7f8] sm:$0xff] }
 0x8bf   : > { %16083 = vmatprep.subr.bf16.mxu1 %v16082_v11  ;;  %v4032_v11 = vld [vmem:[%s18692_s6 + $0x1628] sm:$0xff] }
 0x8c0   : > { %16149 = vmatpush1.bf16.msra.mxu0 %v16148_v32  ;;  %v3457_v32 = vld [vmem:[%s18692_s6 + $0x430] sm:$0xff]  ;;  %v16118_v27 = vunpack.c.l.s8.bf16 %v4032_v11 }
 0x8c1   : > { %16151 = vmatprep.subr.bf16.mxu0 %v16150_v58  ;;  %v16112_v58 = vunpack.c.l.s8.bf16 %v4055_v26 }
 0x8c2   : > { %16085 = vmatpush1.bf16.msra.mxu1 %v16084_v19  ;;  %v16114_v19 = vunpack.c.h.s8.bf16 %v4032_v11  ;;  %v16206_v11 = vunpack.c.l.s8.bf16 %v3578_v63 }
 0x8c3   : > { %16087 = vmatprep.subr.bf16.mxu1 %v16086_v30  ;;  %v16180_v30 = vunpack.c.h.s8.bf16 %v3457_v32 }
 0x8c4   : > { %16153 = vmatpush1.bf16.msra.mxu0 %v16152_v18  ;;  %v16182_v18 = vunpack.c.l.s8.bf16 %v3458_v7 }
 0x8c5   : > { %v17673_v45 = vpop.eup %17672  ;;  %16155 = vmatprep.subr.bf16.mxu0 %v16154_v34  ;;  %v3434_v34 = vld [vmem:[%s18692_s6 + $0x378] sm:$0xff] }
 0x8c6   : > { %13975 = vst [vmem:[%s19163_s5 + $0x40] sm:$0xff] %v17673_v45  ;;  %16089 = vmatpush1.bf16.msra.mxu1 %v16088_v22  ;;  %v16184_v22 = vunpack.c.l.s8.bf16 %v3457_v32  ;;  %v16186_v43 = vunpack.c.h.s8.bf16 %v3434_v34  ;;  %v16120_v45 = vunpack.c.l.s8.bf16 %v4031_v28  ;;  %v3554_v32 = vld [vmem:[%s18692_s6 + $0x738] sm:$0xff] }
 0x8c7   : > { %v17675_v9 = vpop.eup %17674  ;;  %16091 = vmatprep.subr.bf16.mxu1 %v16090_v37  ;;  %v4008_v37 = vld [vmem:[%s18692_s6 + $0x1568] sm:$0xff] }
 0x8c8   : > { %13976 = vst [vmem:[%s19163_s5 + $0x48] sm:$0xff] %v17675_v9  ;;  %16157 = vmatpush1.bf16.msra.mxu0 %v16156_v44  ;;  %v3433_v44 = vld [vmem:[%s18692_s6 + $0x370] sm:$0xff]  ;;  %v16190_v9 = vunpack.c.l.s8.bf16 %v3434_v34  ;;  %v16126_v3 = vunpack.c.l.s8.bf16 %v4008_v37 }
 0x8c9   : > { %16159 = vmatprep.subr.bf16.mxu0 %v16158_v25  ;;  %v16122_v25 = vunpack.c.h.s8.bf16 %v4008_v37  ;;  %v16188_v40 = vunpack.c.h.s8.bf16 %v3433_v44  ;;  %v16214_v37 = vunpack.c.l.s8.bf16 %v3554_v32 }
 0x8ca   : > { %16093 = vmatpush1.bf16.msra.mxu1 %v16092_v31  ;;  %v4007_v31 = vld [vmem:[%s18692_s6 + $0x1560] sm:$0xff] }
 0x8cb   : > { %16095 = vmatprep.subr.bf16.mxu1 %v16094_v33  ;;  %v16124_v33 = vunpack.c.h.s8.bf16 %v4007_v31  ;;  %v16128_v51 = vunpack.c.l.s8.bf16 %v4007_v31 }
 0x8cc   : > { %16161 = vmatpush1.bf16.msra.mxu0 %v16160_v46  ;;  %v3794_v46 = vld [vmem:[%s18692_s6 + $0xeb8] sm:$0xff] }
 0x8cd   : > { %16163 = vmatprep.subr.bf16.mxu0 %v16162_v48  ;;  %v16192_v48 = vunpack.c.l.s8.bf16 %v3433_v44  ;;  %v16262_v54 = vunpack.c.l.s8.bf16 %v3794_v46  ;;  %v3530_v44 = vld [vmem:[%s18692_s6 + $0x678] sm:$0xff] }
 0x8ce   : > { %16097 = vmatpush1.bf16.msra.mxu1 %v16096_v49  ;;  %v16258_v49 = vunpack.c.h.s8.bf16 %v3794_v46 }
 0x8cf   : > { %16099 = vmatprep.subr.bf16.mxu1 %v16098_v50  ;;  %v3793_v50 = vld [vmem:[%s18692_s6 + $0xeb0] sm:$0xff] }
 0x8d0   : > { %16165 = vmatpush2.bf16.msra.mxu0 %v16164_v42  ;;  %v16194_v42 = vunpack.c.h.s8.bf16 %v3602_v2  ;;  %v16222_v2 = vunpack.c.l.s8.bf16 %v3530_v44 }
 0x8d1   : > { %16167 = vmatprep.subr.bf16.mxu0 %v16166_v47  ;;  %v3601_v47 = vld [vmem:[%s18692_s6 + $0x8b0] sm:$0xff] }
 0x8d2   : > { %16101 = vmatpush2.bf16.msra.mxu1 %v16100_v52  ;;  %v16260_v52 = vunpack.c.h.s8.bf16 %v3793_v50  ;;  %v16200_v26 = vunpack.c.l.s8.bf16 %v3601_v47 }
 0x8d3   : > { %16103 = vmatprep.subr.bf16.mxu1 %v16102_v55  ;;  %v16196_v55 = vunpack.c.h.s8.bf16 %v3601_v47 }
 0x8d4   : > { %16169 = vmatpush2.bf16.msra.mxu0 %v16168_v57  ;;  %v3770_v57 = vld [vmem:[%s18692_s6 + $0xdf8] sm:$0xff] }
 0x8d5   : > { %16171 = vmatprep.subr.bf16.mxu0 %v16170_v62  ;;  %v16264_v62 = vunpack.c.l.s8.bf16 %v3793_v50  ;;  %v16270_v7 = vunpack.c.l.s8.bf16 %v3770_v57  ;;  %v3698_v50 = vld [vmem:[%s18692_s6 + $0xbb8] sm:$0xff] }
 0x8d6   : > { %16105 = vmatpush2.bf16.msra.mxu1 %v16104_v0  ;;  %v16266_v0 = vunpack.c.h.s8.bf16 %v3770_v57 }
 0x8d7   : > { %16107 = vmatprep.subr.bf16.mxu1 %v16106_v38  ;;  %v3769_v38 = vld [vmem:[%s18692_s6 + $0xdf0] sm:$0xff] }
 0x8d8   : > { %16173 = vmatpush2.bf16.msra.mxu0 %v16172_v6  ;;  %v16202_v6 = vunpack.c.h.s8.bf16 %v3578_v63  ;;  %v16230_v63 = vunpack.c.l.s8.bf16 %v3698_v50 }
 0x8d9   : > { %16175 = vmatprep.subr.bf16.mxu0 %v16174_v60  ;;  %v3577_v60 = vld [vmem:[%s18692_s6 + $0x7f0] sm:$0xff] }
 0x8da   : > { %16109 = vmatpush2.bf16.msra.mxu1 %v16108_v17  ;;  %v16268_v17 = vunpack.c.h.s8.bf16 %v3769_v38  ;;  %v16208_v28 = vunpack.c.l.s8.bf16 %v3577_v60 }
 0x8db   : > { %16111 = vmatprep.subr.bf16.mxu1 %v16110_v1  ;;  %v16204_v1 = vunpack.c.h.s8.bf16 %v3577_v60 }
 0x8dc   : > { %16177 = vmatpush2.bf16.msra.mxu0 %v16176_v8  ;;  %v3746_v8 = vld [vmem:[%s18692_s6 + $0xd38] sm:$0xff] }
 0x8dd   : > { %16179 = vmatprep.subr.bf16.mxu0 %v16178_v61  ;;  %v16272_v61 = vunpack.c.l.s8.bf16 %v3769_v38  ;;  %v16278_v34 = vunpack.c.l.s8.bf16 %v3746_v8  ;;  %v3674_v38 = vld [vmem:[%s18692_s6 + $0xaf8] sm:$0xff] }
 0x8de   : > { %16113 = vmatpush2.bf16.msra.mxu1 %v16112_v58  ;;  %v16274_v58 = vunpack.c.h.s8.bf16 %v3746_v8 }
 0x8df   : > { %16115 = vmatprep.subr.bf16.mxu1 %v16114_v19  ;;  %v3745_v19 = vld [vmem:[%s18692_s6 + $0xd30] sm:$0xff] }
 0x8e0   : > { %16181 = vmatpush2.bf16.msra.mxu0 %v16180_v30  ;;  %v16210_v30 = vunpack.c.h.s8.bf16 %v3554_v32  ;;  %v16238_v32 = vunpack.c.l.s8.bf16 %v3674_v38 }
 0x8e1   : > { %16183 = vmatprep.subr.bf16.mxu0 %v16182_v18  ;;  %v3553_v18 = vld [vmem:[%s18692_s6 + $0x730] sm:$0xff] }
 0x8e2   : > { %16117 = vmatpush2.bf16.msra.mxu1 %v16116_v15  ;;  %v16276_v15 = vunpack.c.h.s8.bf16 %v3745_v19  ;;  %v16216_v31 = vunpack.c.l.s8.bf16 %v3553_v18 }
 0x8e3   : > { %16119 = vmatprep.subr.bf16.mxu1 %v16118_v27  ;;  %v16212_v27 = vunpack.c.h.s8.bf16 %v3553_v18 }
 0x8e4   : > { %16185 = vmatpush2.bf16.msra.mxu0 %v16184_v22  ;;  %v3722_v22 = vld [vmem:[%s18692_s6 + $0xc78] sm:$0xff] }
 0x8e5   : > { %16187 = vmatprep.subr.bf16.mxu0 %v16186_v43  ;;  %v16280_v43 = vunpack.c.l.s8.bf16 %v3745_v19  ;;  %v16286_v46 = vunpack.c.l.s8.bf16 %v3722_v22  ;;  %v3650_v19 = vld [vmem:[%s18692_s6 + $0xa38] sm:$0xff] }
 0x8e6   : > { %16121 = vmatpush2.bf16.msra.mxu1 %v16120_v45  ;;  %v16282_v45 = vunpack.c.h.s8.bf16 %v3722_v22 }
 0x8e7   : > { %16123 = vmatprep.subr.bf16.mxu1 %v16122_v25  ;;  %v3721_v25 = vld [vmem:[%s18692_s6 + $0xc70] sm:$0xff] }
 0x8e8   : > { %16189 = vmatpush2.bf16.msra.mxu0 %v16188_v40  ;;  %v16218_v40 = vunpack.c.h.s8.bf16 %v3530_v44  ;;  %v16246_v44 = vunpack.c.l.s8.bf16 %v3650_v19 }
 0x8e9   : > { %16191 = vmatprep.subr.bf16.mxu0 %v16190_v9  ;;  %v3529_v9 = vld [vmem:[%s18692_s6 + $0x670] sm:$0xff] }
 0x8ea   : > { %16125 = vmatpush2.bf16.msra.mxu1 %v16124_v33  ;;  %v16284_v33 = vunpack.c.h.s8.bf16 %v3721_v25  ;;  %v16224_v47 = vunpack.c.l.s8.bf16 %v3529_v9 }
 0x8eb   : > { %16127 = vmatprep.subr.bf16.mxu1 %v16126_v3  ;;  %v16220_v3 = vunpack.c.h.s8.bf16 %v3529_v9 }
 0x8ec   : > { %16193 = vmatpush2.bf16.msra.mxu0 %v16192_v48  ;;  %v3890_v48 = vld [vmem:[%s18692_s6 + $0x11b8] sm:$0xff] }
 0x8ed   : > { %16259 = vmatprep.subr.bf16.mxu0 %v16258_v49  ;;  %v16288_v49 = vunpack.c.l.s8.bf16 %v3721_v25  ;;  %v16294_v57 = vunpack.c.l.s8.bf16 %v3890_v48  ;;  %v3626_v25 = vld [vmem:[%s18692_s6 + $0x978] sm:$0xff] }
 0x8ee   : > { %16129 = vmatpush2.bf16.msra.mxu1 %v16128_v51  ;;  %v16290_v51 = vunpack.c.h.s8.bf16 %v3890_v48 }
 0x8ef   : > { %12288 = vmatmul.mubr.f32.vlgmr.msra.gmra.mxu0 %v18861_v36  ;;  %16195 = vmatprep.subr.bf16.mxu1 %v16194_v42  ;;  %v3889_v42 = vld [vmem:[%s18692_s6 + $0x11b0] sm:$0xff] }
 0x8f0   : > { %16261 = vmatpush1.bf16.msra.mxu0 %v16260_v52  ;;  %12429 = vmatprep.mubr.f32.mxu0 %v18958_v39  ;;  %v16226_v52 = vunpack.c.h.s8.bf16 %v3698_v50  ;;  %v11721_v50 = vpop.f32.mrf.mxu0 }
 0x8f1   : > { %12217 = vmatmul.mubr.f32.vlgmr.msra.gmra.mxu1 %v19011_v56  ;;  %16263 = vmatprep.subr.bf16.mxu0 %v16262_v54  ;;  %v3697_v54 = vld [vmem:[%s18692_s6 + $0xbb0] sm:$0xff] }
 0x8f2   : > { %16197 = vmatpush1.bf16.msra.mxu1 %v16196_v55  ;;  %12358 = vmatprep.mubr.f32.mxu1 %v18903_v23  ;;  %v16292_v55 = vunpack.c.h.s8.bf16 %v3889_v42  ;;  %v16232_v60 = vunpack.c.l.s8.bf16 %v3697_v54 }
 0x8f3   : > { %16199 = vmatprep.subr.bf16.mxu1 %v16198_v59  ;;  %v16228_v59 = vunpack.c.h.s8.bf16 %v3697_v54 }
 0x8f4   : > { %16265 = vmatpush1.bf16.msra.mxu0 %v16264_v62  ;;  %v3866_v62 = vld [vmem:[%s18692_s6 + $0x10f8] sm:$0xff] }
 0x8f5   : > { %16267 = vmatprep.subr.bf16.mxu0 %v16266_v0  ;;  %v16296_v0 = vunpack.c.l.s8.bf16 %v3889_v42  ;;  %v16302_v8 = vunpack.c.l.s8.bf16 %v3866_v62  ;;  %v16254_v42 = vunpack.c.l.s8.bf16 %v3626_v25 }
 0x8f6   : > { %16201 = vmatpush1.bf16.msra.mxu1 %v16200_v26  ;;  %v16298_v26 = vunpack.c.h.s8.bf16 %v3866_v62 }
 0x8f7   : > { %16203 = vmatprep.subr.bf16.mxu1 %v16202_v6  ;;  %v3865_v6 = vld [vmem:[%s18692_s6 + $0x10f0] sm:$0xff] }
 0x8f8   : > { %16269 = vmatpush1.bf16.msra.mxu0 %v16268_v17  ;;  %v16234_v17 = vunpack.c.h.s8.bf16 %v3674_v38 }
 0x8f9   : > { %16271 = vmatprep.subr.bf16.mxu0 %v16270_v7  ;;  %v3673_v7 = vld [vmem:[%s18692_s6 + $0xaf0] sm:$0xff] }
 0x8fa   : > { %16205 = vmatpush1.bf16.msra.mxu1 %v16204_v1  ;;  %v16300_v1 = vunpack.c.h.s8.bf16 %v3865_v6  ;;  %v16240_v18 = vunpack.c.l.s8.bf16 %v3673_v7 }
 0x8fb   : > { %16207 = vmatprep.subr.bf16.mxu1 %v16206_v11  ;;  %v16236_v11 = vunpack.c.h.s8.bf16 %v3673_v7 }
 0x8fc   : > { %16273 = vmatpush1.bf16.msra.mxu0 %v16272_v61  ;;  %v3842_v61 = vld [vmem:[%s18692_s6 + $0x1038] sm:$0xff] }
 0x8fd   : > { %16275 = vmatprep.subr.bf16.mxu0 %v16274_v58  ;;  %v16304_v58 = vunpack.c.l.s8.bf16 %v3865_v6  ;;  %v16310_v22 = vunpack.c.l.s8.bf16 %v3842_v61 }
 0x8fe   : > { %16209 = vmatpush1.bf16.msra.mxu1 %v16208_v28  ;;  %v16306_v28 = vunpack.c.h.s8.bf16 %v3842_v61  ;;  %v13692_v61 = vrot.slane %v19477_v14, %v18745_v4 }
 0x8ff   : > { %16211 = vmatprep.subr.bf16.mxu1 %v16210_v30  ;;  %v3841_v30 = vld [vmem:[%s18692_s6 + $0x1030] sm:$0xff] }
 0x900   : > { %16277 = vmatpush1.bf16.msra.mxu0 %v16276_v15  ;;  %v16242_v15 = vunpack.c.h.s8.bf16 %v3650_v19 }
 0x901   : > { %16279 = vmatprep.subr.bf16.mxu0 %v16278_v34  ;;  %v3649_v34 = vld [vmem:[%s18692_s6 + $0xa30] sm:$0xff] }
 0x902   : > { %16213 = vmatpush1.bf16.msra.mxu1 %v16212_v27  ;;  %v16308_v27 = vunpack.c.h.s8.bf16 %v3841_v30  ;;  %v16248_v9 = vunpack.c.l.s8.bf16 %v3649_v34 }
 0x903   : > { %16215 = vmatprep.subr.bf16.mxu1 %v16214_v37  ;;  %v16244_v37 = vunpack.c.h.s8.bf16 %v3649_v34 }
 0x904   : > { %16281 = vmatpush1.bf16.msra.mxu0 %v16280_v43  ;;  %v3818_v43 = vld [vmem:[%s18692_s6 + $0xf78] sm:$0xff] }
 0x905   : > { %16283 = vmatprep.subr.bf16.mxu0 %v16282_v45  ;;  %v16312_v45 = vunpack.c.l.s8.bf16 %v3841_v30  ;;  %v16318_v48 = vunpack.c.l.s8.bf16 %v3818_v43  ;;  %v13842_v30 = vrot.slane %v19480_v35, %v18745_v4 }
 0x906   : > { %16217 = vmatpush1.bf16.msra.mxu1 %v16216_v31  ;;  %v16314_v31 = vunpack.c.h.s8.bf16 %v3818_v43 }
 0x907   : > { %16219 = vmatprep.subr.bf16.mxu1 %v16218_v40  ;;  %v3817_v40 = vld [vmem:[%s18692_s6 + $0xf70] sm:$0xff] }
 0x908   : > { %16285 = vmatpush1.bf16.msra.mxu0 %v16284_v33  ;;  %v16250_v33 = vunpack.c.h.s8.bf16 %v3626_v25 }
 0x909   : > { %16287 = vmatprep.subr.bf16.mxu0 %v16286_v46  ;;  %v3625_v46 = vld [vmem:[%s18692_s6 + $0x970] sm:$0xff] }
 0x90a   : > { %16221 = vmatpush1.bf16.msra.mxu1 %v16220_v3  ;;  %v16316_v3 = vunpack.c.h.s8.bf16 %v3817_v40 }
 0x90b   : > { %16223 = vmatprep.subr.bf16.mxu1 %v16222_v2  ;;  %v16252_v2 = vunpack.c.h.s8.bf16 %v3625_v46 }
 0x90c   : > { %16289 = vmatpush1.bf16.msra.mxu0 %v16288_v49  ;;  %v3412_v49 = vld [vmem:[%s18692_s6 + $0x2c8] sm:$0xff] }
 0x90d   : > { %16291 = vmatprep.subr.bf16.mxu0 %v16290_v51  ;;  %v11792_v51 = vpop.f32.mrf.mxu1  ;;  %v16386_v54 = vunpack.c.h.s8.bf16 %v3412_v49 }
 0x90e   : > { %16225 = vmatpush1.bf16.msra.mxu1 %v16224_v47  ;;  %v16320_v47 = vunpack.c.l.s8.bf16 %v3817_v40  ;;  %v11793_v38 = vadd.f32 %v11792_v51, %v11721_v50  ;;  %v13846_v40 = vrot.slane %v19480_v35, %v18748_v5  ;;  %v3938_v51 = vld [vmem:[%s18692_s6 + $0x1338] sm:$0xff] }
 0x90f   : > { %16227 = vmatprep.subr.bf16.mxu1 %v16226_v52  ;;  %v3986_v52 = vld [vmem:[%s18692_s6 + $0x14b8] sm:$0xff]  ;;  %v11794_v62 = vpop.f32.mrf.mxu1 }
 0x910   : > { %16293 = vmatpush2.bf16.msra.mxu0 %v16292_v55  ;;  %v3411_v55 = vld [vmem:[%s18692_s6 + $0x2c0] sm:$0xff] }
 0x911   : > { %16295 = vmatprep.subr.bf16.mxu0 %v16294_v57  ;;  %v16256_v57 = vunpack.c.l.s8.bf16 %v3625_v46 }
 0x912   : > { %16229 = vmatpush2.bf16.msra.mxu1 %v16228_v59  ;;  %v11723_v59 = vpop.f32.mrf.mxu0 }
 0x913   : > { %16231 = vmatprep.subr.bf16.mxu1 %v16230_v63  ;;  %v16322_v63 = vunpack.c.h.s8.bf16 %v3986_v52 }
 0x914   : > { %16297 = vmatpush2.bf16.msra.mxu0 %v16296_v0  ;;  %v3985_v0 = vld [vmem:[%s18692_s6 + $0x14b0] sm:$0xff]  ;;  %v11863_v6 = vpop.f32.mrf.mxu0 }
 0x915   : > { %16299 = vmatprep.subr.bf16.mxu0 %v16298_v26  ;;  %v16388_v26 = vunpack.c.h.s8.bf16 %v3411_v55  ;;  %v16324_v7 = vunpack.c.h.s8.bf16 %v3985_v0 }
 0x916   : > { %16233 = vmatpush2.bf16.msra.mxu1 %v16232_v60  ;;  %v16390_v60 = vunpack.c.l.s8.bf16 %v3412_v49  ;;  %v11865_v19 = vpop.f32.mrf.mxu0 }
 0x917   : > { %16235 = vmatprep.subr.bf16.mxu1 %v16234_v17  ;;  %v11795_v17 = vadd.f32 %v11794_v62, %v11723_v59  ;;  %v3340_v62 = vld [vmem:[%s18692_s6 + $0x88] sm:$0xff] }
 0x918   : > { %16301 = vmatpush2.bf16.msra.mxu0 %v16300_v1  ;;  %v3388_v1 = vld [vmem:[%s18692_s6 + $0x208] sm:$0xff] }
 0x919   : > { %16303 = vmatprep.subr.bf16.mxu0 %v16302_v8  ;;  %v16326_v8 = vunpack.c.l.s8.bf16 %v3986_v52  ;;  %v11866_v34 = vadd.f32 %v11865_v19, %v11795_v17  ;;  %v16338_v52 = vunpack.c.h.s8.bf16 %v3938_v51 }
 0x91a   : > { %16237 = vmatpush2.bf16.msra.mxu1 %v16236_v11  ;;  %v11864_v11 = vadd.f32 %v11863_v6, %v11793_v38  ;;  %v3914_v38 = vld [vmem:[%s18692_s6 + $0x1278] sm:$0xff]  ;;  %v3339_v6 = vld [vmem:[%s18692_s6 + $0x80] sm:$0xff] }
 0x91b   : > { %16239 = vmatprep.subr.bf16.mxu1 %v16238_v32  ;;  %v16392_v32 = vunpack.c.l.s8.bf16 %v3411_v55  ;;  %v16346_v17 = vunpack.c.h.s8.bf16 %v3914_v38  ;;  %v16350_v19 = vunpack.c.l.s8.bf16 %v3914_v38 }
 0x91c   : > { %16305 = vmatpush2.bf16.msra.mxu0 %v16304_v58  ;;  %v3962_v58 = vld [vmem:[%s18692_s6 + $0x13f8] sm:$0xff] }
 0x91d   : > { %16307 = vmatprep.subr.bf16.mxu0 %v16306_v28 }
 0x91e   : > { %16241 = vmatpush2.bf16.msra.mxu1 %v16240_v18  ;;  %v16394_v18 = vunpack.c.h.s8.bf16 %v3388_v1 }
 0x91f   : > { %16243 = vmatprep.subr.bf16.mxu1 %v16242_v15  ;;  %v3387_v15 = vld [vmem:[%s18692_s6 + $0x200] sm:$0xff] }
 0x920   : > { %16309 = vmatpush2.bf16.msra.mxu0 %v16308_v27  ;;  %v16400_v50 = vunpack.c.l.s8.bf16 %v3387_v15 }
 0x921   : > { %16311 = vmatprep.subr.bf16.mxu0 %v16310_v22  ;;  %v13696_v22 = vrot.slane %v19477_v14, %v18748_v5 }
 0x922   : > { %16245 = vmatpush2.bf16.msra.mxu1 %v16244_v37  ;;  %v16328_v37 = vunpack.c.l.s8.bf16 %v3985_v0 }
 0x923   : > { %16247 = vmatprep.subr.bf16.mxu1 %v16246_v44  ;;  %v16330_v44 = vunpack.c.h.s8.bf16 %v3962_v58 }
 0x924   : > { %16313 = vmatpush2.bf16.msra.mxu0 %v16312_v45  ;;  %v3961_v45 = vld [vmem:[%s18692_s6 + $0x13f0] sm:$0xff] }
 0x925   : > { %16315 = vmatprep.subr.bf16.mxu0 %v16314_v31  ;;  %v16332_v14 = vunpack.c.h.s8.bf16 %v3961_v45 }
 0x926   : > { %16249 = vmatpush2.bf16.msra.mxu1 %v16248_v9  ;;  %v16396_v9 = vunpack.c.h.s8.bf16 %v3387_v15  ;;  %v3507_v15 = vld [vmem:[%s18692_s6 + $0x5c0] sm:$0xff] }
 0x927   : > { %16251 = vmatprep.subr.bf16.mxu1 %v16250_v33  ;;  %v16398_v33 = vunpack.c.l.s8.bf16 %v3388_v1  ;;  %v16412_v1 = vunpack.c.h.s8.bf16 %v3339_v6 }
 0x928   : > { %16317 = vmatpush2.bf16.msra.mxu0 %v16316_v3 }
 0x929   : > { %16319 = vmatprep.subr.bf16.mxu0 %v16318_v48  ;;  %v3364_v48 = vld [vmem:[%s18692_s6 + $0x148] sm:$0xff] }
 0x92a   : > { %16253 = vmatpush2.bf16.msra.mxu1 %v16252_v2  ;;  %v16334_v2 = vunpack.c.l.s8.bf16 %v3962_v58  ;;  %v16402_v35 = vunpack.c.h.s8.bf16 %v3364_v48 }
 0x92b   : > { %16255 = vmatprep.subr.bf16.mxu1 %v16254_v42  ;;  %v3363_v42 = vld [vmem:[%s18692_s6 + $0x140] sm:$0xff] }
 0x92c   : > { %16321 = vmatpush2.bf16.msra.mxu0 %v16320_v47  ;;  %v16336_v47 = vunpack.c.l.s8.bf16 %v3961_v45  ;;  %v16404_v55 = vunpack.c.h.s8.bf16 %v3363_v42  ;;  %v16408_v0 = vunpack.c.l.s8.bf16 %v3363_v42  ;;  %v3484_v45 = vld [vmem:[%s18692_s6 + $0x508] sm:$0xff]  ;;  %v4034_v42 = vld [vmem:[%s18692_s6 + $0x1638] sm:$0xff] }
 0x92d   : > { %16387 = vmatprep.subr.bf16.mxu0 %v16386_v54  ;;  %v3937_v54 = vld [vmem:[%s18692_s6 + $0x1330] sm:$0xff]  ;;  %v16374_v38 = vunpack.c.l.s8.bf16 %v4034_v42 }
 0x92e   : > { %16257 = vmatpush2.bf16.msra.mxu1 %v16256_v57  ;;  %v16406_v57 = vunpack.c.l.s8.bf16 %v3364_v48  ;;  %v16340_v59 = vunpack.c.h.s8.bf16 %v3937_v54 }
 0x92f   : > { %12430 = vmatmul.mubr.f32.vlgmr.msra.gmra.mxu0 %v18964_v21  ;;  %16323 = vmatprep.subr.bf16.mxu1 %v16322_v63  ;;  %v16342_v63 = vunpack.c.l.s8.bf16 %v3938_v51 }
 0x930   : > { %16389 = vmatpush1.bf16.msra.mxu0 %v16388_v26  ;;  %12571 = vmatprep.mubr.f32.mxu0 %v18848_v13  ;;  %v16410_v26 = vunpack.c.h.s8.bf16 %v3340_v62 }
 0x931   : > { %v11934_v28 = vpop.f32.mrf.mxu1  ;;  %12359 = vmatmul.mubr.f32.vlgmr.msra.gmra.mxu1 %v18909_v29  ;;  %16391 = vmatprep.subr.bf16.mxu0 %v16390_v60  ;;  %v16344_v60 = vunpack.c.l.s8.bf16 %v3937_v54 }
 0x932   : > { %v11935_v27 = vadd.f32 %v11934_v28, %v11864_v11  ;;  %16325 = vmatpush1.bf16.msra.mxu1 %v16324_v7  ;;  %12500 = vmatprep.mubr.f32.mxu1 %v19007_v53  ;;  %v3913_v7 = vld [vmem:[%s18692_s6 + $0x1270] sm:$0xff]  ;;  %v16414_v11 = vunpack.c.l.s8.bf16 %v3340_v62  ;;  %v16416_v28 = vunpack.c.l.s8.bf16 %v3339_v6  ;;  %v4010_v6 = vld [vmem:[%s18692_s6 + $0x1578] sm:$0xff] }
 0x933   : > { %v11936_v43 = vpop.f32.mrf.mxu1  ;;  %16327 = vmatprep.subr.bf16.mxu1 %v16326_v8 }
 0x934   : > { %v13779_v25 = vmul.f32 %v13692_v61, %v11935_v27  ;;  %v11937_v31 = vadd.f32 %v11936_v43, %v11866_v34  ;;  %16393 = vmatpush1.bf16.msra.mxu0 %v16392_v32  ;;  %v16348_v61 = vunpack.c.h.s8.bf16 %v3913_v7  ;;  %v3508_v32 = vld [vmem:[%s18692_s6 + $0x5c8] sm:$0xff]  ;;  %v16352_v34 = vunpack.c.l.s8.bf16 %v3913_v7 }
 0x935   : > { %16395 = vmatprep.subr.bf16.mxu0 %v16394_v18  ;;  %v16418_v18 = vunpack.c.h.s8.bf16 %v3508_v32  ;;  %v16422_v43 = vunpack.c.l.s8.bf16 %v3508_v32 }
 0x936   : > { %v13929_v46 = vadd.f32 %v13842_v30, %v13779_v25  ;;  %v13780_v3 = vmul.f32 %v13696_v22, %v11937_v31  ;;  %16329 = vmatpush1.bf16.msra.mxu1 %v16328_v37  ;;  %v4082_v30 = vld [vmem:[%s18692_s6 + $0x17b8] sm:$0xff]  ;;  %v4081_v22 = vld [vmem:[%s18692_s6 + $0x17b0] sm:$0xff]  ;;  %v16420_v37 = vunpack.c.h.s8.bf16 %v3507_v15  ;;  %v16424_v31 = vunpack.c.l.s8.bf16 %v3507_v15  ;;  %v3795_v15 = vld [vmem:[%s18692_s6 + $0xec0] sm:$0xff] }
 0x937   : > { %16331 = vmatprep.subr.bf16.mxu1 %v16330_v44  ;;  %v16354_v27 = vunpack.c.h.s8.bf16 %v4082_v30  ;;  %v16356_v44 = vunpack.c.h.s8.bf16 %v4081_v22  ;;  %v16358_v25 = vunpack.c.l.s8.bf16 %v4082_v30  ;;  %v3604_v30 = vld [vmem:[%s18692_s6 + $0x8c8] sm:$0xff] }
 0x938   : > { %17676 = vtanh.f32 %v13929_v46  ;;  %v13930_v49 = vadd.f32 %v13846_v40, %v13780_v3  ;;  %16397 = vmatpush1.bf16.msra.mxu0 %v16396_v9  ;;  %v4058_v40 = vld [vmem:[%s18692_s6 + $0x16f8] sm:$0xff]  ;;  %v16426_v9 = vunpack.c.h.s8.bf16 %v3484_v45  ;;  %v16360_v46 = vunpack.c.l.s8.bf16 %v4081_v22  ;;  %v3603_v22 = vld [vmem:[%s18692_s6 + $0x8c0] sm:$0xff] }
 0x939   : > { %16399 = vmatprep.subr.bf16.mxu0 %v16398_v33  ;;  %v3483_v33 = vld [vmem:[%s18692_s6 + $0x500] sm:$0xff]  ;;  %v16362_v3 = vunpack.c.h.s8.bf16 %v4058_v40  ;;  %v16366_v51 = vunpack.c.l.s8.bf16 %v4058_v40  ;;  %v3580_v40 = vld [vmem:[%s18692_s6 + $0x808] sm:$0xff] }
 0x93a   : > { %17678 = vtanh.f32 %v13930_v49  ;;  %16333 = vmatpush1.bf16.msra.mxu1 %v16332_v14  ;;  %v4057_v14 = vld [vmem:[%s18692_s6 + $0x16f0] sm:$0xff]  ;;  %v16428_v48 = vunpack.c.h.s8.bf16 %v3483_v33 }
 0x93b   : > { %16335 = vmatprep.subr.bf16.mxu1 %v16334_v2  ;;  %v16430_v2 = vunpack.c.l.s8.bf16 %v3484_v45  ;;  %v16364_v49 = vunpack.c.h.s8.bf16 %v4057_v14  ;;  %v16368_v54 = vunpack.c.l.s8.bf16 %v4057_v14  ;;  %v3772_v45 = vld [vmem:[%s18692_s6 + $0xe08] sm:$0xff]  ;;  %v3579_v14 = vld [vmem:[%s18692_s6 + $0x800] sm:$0xff] }
 0x93c   : > { %16401 = vmatpush1.bf16.msra.mxu0 %v16400_v50  ;;  %v3460_v50 = vld [vmem:[%s18692_s6 + $0x448] sm:$0xff] }
 0x93d   : > { %16403 = vmatprep.subr.bf16.mxu0 %v16402_v35  ;;  %v16432_v35 = vunpack.c.l.s8.bf16 %v3483_v33  ;;  %v16438_v62 = vunpack.c.l.s8.bf16 %v3460_v50  ;;  %v3771_v33 = vld [vmem:[%s18692_s6 + $0xe00] sm:$0xff] }
 0x93e   : > { %16337 = vmatpush1.bf16.msra.mxu1 %v16336_v47  ;;  %v16434_v47 = vunpack.c.h.s8.bf16 %v3460_v50  ;;  %v3748_v50 = vld [vmem:[%s18692_s6 + $0xd48] sm:$0xff] }
 0x93f   : > { %16339 = vmatprep.subr.bf16.mxu1 %v16338_v52  ;;  %v3459_v52 = vld [vmem:[%s18692_s6 + $0x440] sm:$0xff] }
 0x940   : > { %16405 = vmatpush1.bf16.msra.mxu0 %v16404_v55  ;;  %v16370_v55 = vunpack.c.h.s8.bf16 %v4034_v42  ;;  %v3556_v42 = vld [vmem:[%s18692_s6 + $0x748] sm:$0xff] }
 0x941   : > { %16407 = vmatprep.subr.bf16.mxu0 %v16406_v57  ;;  %v4033_v57 = vld [vmem:[%s18692_s6 + $0x1630] sm:$0xff] }
 0x942   : > { %16341 = vmatpush1.bf16.msra.mxu1 %v16340_v59  ;;  %v16436_v59 = vunpack.c.h.s8.bf16 %v3459_v52  ;;  %v16376_v7 = vunpack.c.l.s8.bf16 %v4033_v57 }
 0x943   : > { %16343 = vmatprep.subr.bf16.mxu1 %v16342_v63  ;;  %v16372_v63 = vunpack.c.h.s8.bf16 %v4033_v57  ;;  %v3555_v57 = vld [vmem:[%s18692_s6 + $0x740] sm:$0xff] }
 0x944   : > { %16409 = vmatpush1.bf16.msra.mxu0 %v16408_v0  ;;  %v3436_v0 = vld [vmem:[%s18692_s6 + $0x388] sm:$0xff] }
 0x945   : > { %v17677_v8 = vpop.eup %17676  ;;  %16411 = vmatprep.subr.bf16.mxu0 %v16410_v26  ;;  %v16440_v26 = vunpack.c.l.s8.bf16 %v3459_v52  ;;  %v3747_v52 = vld [vmem:[%s18692_s6 + $0xd40] sm:$0xff] }
 0x946   : > { %13977 = vst [vmem:[%s19163_s5 + $0x50] sm:$0xff] %v17677_v8  ;;  %16345 = vmatpush1.bf16.msra.mxu1 %v16344_v60  ;;  %v16442_v60 = vunpack.c.h.s8.bf16 %v3436_v0  ;;  %v4009_v8 = vld [vmem:[%s18692_s6 + $0x1570] sm:$0xff] }
 0x947   : > { %v17679_v58 = vpop.eup %17678  ;;  %16347 = vmatprep.subr.bf16.mxu1 %v16346_v17  ;;  %v3435_v17 = vld [vmem:[%s18692_s6 + $0x380] sm:$0xff]  ;;  %v16380_v32 = vunpack.c.h.s8.bf16 %v4009_v8 }
 0x948   : > { %13978 = vst [vmem:[%s19163_s5 + $0x58] sm:$0xff] %v17679_v58  ;;  %16413 = vmatpush1.bf16.msra.mxu0 %v16412_v1  ;;  %v16378_v1 = vunpack.c.h.s8.bf16 %v4010_v6  ;;  %v3796_v58 = vld [vmem:[%s18692_s6 + $0xec8] sm:$0xff] }
 0x949   : > { %16415 = vmatprep.subr.bf16.mxu0 %v16414_v11  ;;  %v16444_v11 = vunpack.c.h.s8.bf16 %v3435_v17 }
 0x94a   : > { %16349 = vmatpush1.bf16.msra.mxu1 %v16348_v61  ;;  %v16446_v61 = vunpack.c.l.s8.bf16 %v3436_v0  ;;  %v3724_v0 = vld [vmem:[%s18692_s6 + $0xc88] sm:$0xff] }
 0x94b   : > { %16351 = vmatprep.subr.bf16.mxu1 %v16350_v19  ;;  %v16382_v19 = vunpack.c.l.s8.bf16 %v4010_v6  ;;  %v3532_v6 = vld [vmem:[%s18692_s6 + $0x688] sm:$0xff] }
 0x94c   : > { %16417 = vmatpush1.bf16.msra.mxu0 %v16416_v28  ;;  %v16448_v28 = vunpack.c.l.s8.bf16 %v3435_v17  ;;  %v3723_v17 = vld [vmem:[%s18692_s6 + $0xc80] sm:$0xff] }
 0x94d   : > { %16419 = vmatprep.subr.bf16.mxu0 %v16418_v18  ;;  %v16514_v18 = vunpack.c.h.s8.bf16 %v3796_v58 }
 0x94e   : > { %16353 = vmatpush1.bf16.msra.mxu1 %v16352_v34  ;;  %v16384_v34 = vunpack.c.l.s8.bf16 %v4009_v8  ;;  %v3531_v8 = vld [vmem:[%s18692_s6 + $0x680] sm:$0xff] }
 0x94f   : > { %16355 = vmatprep.subr.bf16.mxu1 %v16354_v27  ;;  %v16450_v27 = vunpack.c.h.s8.bf16 %v3604_v30 }
 0x950   : > { %16421 = vmatpush2.bf16.msra.mxu0 %v16420_v37  ;;  %v16516_v37 = vunpack.c.h.s8.bf16 %v3795_v15 }
 0x951   : > { %16423 = vmatprep.subr.bf16.mxu0 %v16422_v43  ;;  %v16518_v43 = vunpack.c.l.s8.bf16 %v3796_v58  ;;  %v3892_v58 = vld [vmem:[%s18692_s6 + $0x11c8] sm:$0xff] }
 0x952   : > { %16357 = vmatpush2.bf16.msra.mxu1 %v16356_v44  ;;  %v16452_v44 = vunpack.c.h.s8.bf16 %v3603_v22 }
 0x953   : > { %16359 = vmatprep.subr.bf16.mxu1 %v16358_v25  ;;  %v16454_v25 = vunpack.c.l.s8.bf16 %v3604_v30  ;;  %v3700_v30 = vld [vmem:[%s18692_s6 + $0xbc8] sm:$0xff] }
 0x954   : > { %16425 = vmatpush2.bf16.msra.mxu0 %v16424_v31  ;;  %v16520_v31 = vunpack.c.l.s8.bf16 %v3795_v15  ;;  %v3891_v15 = vld [vmem:[%s18692_s6 + $0x11c0] sm:$0xff] }
 0x955   : > { %16427 = vmatprep.subr.bf16.mxu0 %v16426_v9  ;;  %v16522_v9 = vunpack.c.h.s8.bf16 %v3772_v45 }
 0x956   : > { %16361 = vmatpush2.bf16.msra.mxu1 %v16360_v46  ;;  %v16456_v46 = vunpack.c.l.s8.bf16 %v3603_v22  ;;  %v3699_v22 = vld [vmem:[%s18692_s6 + $0xbc0] sm:$0xff] }
 0x957   : > { %16363 = vmatprep.subr.bf16.mxu1 %v16362_v3  ;;  %v16458_v3 = vunpack.c.h.s8.bf16 %v3580_v40 }
 0x958   : > { %16429 = vmatpush2.bf16.msra.mxu0 %v16428_v48  ;;  %v16524_v48 = vunpack.c.h.s8.bf16 %v3771_v33 }
 0x959   : > { %16431 = vmatprep.subr.bf16.mxu0 %v16430_v2  ;;  %v16526_v2 = vunpack.c.l.s8.bf16 %v3772_v45  ;;  %v3868_v45 = vld [vmem:[%s18692_s6 + $0x1108] sm:$0xff] }
 0x95a   : > { %16365 = vmatpush2.bf16.msra.mxu1 %v16364_v49  ;;  %v16460_v49 = vunpack.c.h.s8.bf16 %v3579_v14 }
 0x95b   : > { %16367 = vmatprep.subr.bf16.mxu1 %v16366_v51  ;;  %v16462_v51 = vunpack.c.l.s8.bf16 %v3580_v40  ;;  %v3676_v40 = vld [vmem:[%s18692_s6 + $0xb08] sm:$0xff] }
 0x95c   : > { %16433 = vmatpush2.bf16.msra.mxu0 %v16432_v35  ;;  %v16528_v35 = vunpack.c.l.s8.bf16 %v3771_v33  ;;  %v3867_v33 = vld [vmem:[%s18692_s6 + $0x1100] sm:$0xff] }
 0x95d   : > { %16435 = vmatprep.subr.bf16.mxu0 %v16434_v47  ;;  %v16530_v47 = vunpack.c.h.s8.bf16 %v3748_v50 }
 0x95e   : > { %16369 = vmatpush2.bf16.msra.mxu1 %v16368_v54  ;;  %v16464_v54 = vunpack.c.l.s8.bf16 %v3579_v14  ;;  %v3675_v14 = vld [vmem:[%s18692_s6 + $0xb00] sm:$0xff] }
 0x95f   : > { %16371 = vmatprep.subr.bf16.mxu1 %v16370_v55  ;;  %v16466_v55 = vunpack.c.h.s8.bf16 %v3556_v42 }
 0x960   : > { %16437 = vmatpush2.bf16.msra.mxu0 %v16436_v59  ;;  %v16532_v59 = vunpack.c.h.s8.bf16 %v3747_v52 }
 0x961   : > { %16439 = vmatprep.subr.bf16.mxu0 %v16438_v62  ;;  %v16534_v62 = vunpack.c.l.s8.bf16 %v3748_v50  ;;  %v3844_v50 = vld [vmem:[%s18692_s6 + $0x1048] sm:$0xff] }
 0x962   : > { %16373 = vmatpush2.bf16.msra.mxu1 %v16372_v63  ;;  %v16468_v63 = vunpack.c.h.s8.bf16 %v3555_v57 }
 0x963   : > { %16375 = vmatprep.subr.bf16.mxu1 %v16374_v38  ;;  %v16470_v38 = vunpack.c.l.s8.bf16 %v3556_v42  ;;  %v3652_v42 = vld [vmem:[%s18692_s6 + $0xa48] sm:$0xff] }
 0x964   : > { %16441 = vmatpush2.bf16.msra.mxu0 %v16440_v26  ;;  %v16536_v26 = vunpack.c.l.s8.bf16 %v3747_v52  ;;  %v3843_v52 = vld [vmem:[%s18692_s6 + $0x1040] sm:$0xff] }
 0x965   : > { %16443 = vmatprep.subr.bf16.mxu0 %v16442_v60  ;;  %v16538_v60 = vunpack.c.h.s8.bf16 %v3724_v0 }
 0x966   : > { %16377 = vmatpush2.bf16.msra.mxu1 %v16376_v7  ;;  %v16472_v7 = vunpack.c.l.s8.bf16 %v3555_v57  ;;  %v3651_v57 = vld [vmem:[%s18692_s6 + $0xa40] sm:$0xff] }
 0x967   : > { %16379 = vmatprep.subr.bf16.mxu1 %v16378_v1  ;;  %v16474_v1 = vunpack.c.h.s8.bf16 %v3532_v6 }
 0x968   : > { %16445 = vmatpush2.bf16.msra.mxu0 %v16444_v11  ;;  %v16540_v11 = vunpack.c.h.s8.bf16 %v3723_v17 }
 0x969   : > { %16447 = vmatprep.subr.bf16.mxu0 %v16446_v61  ;;  %v16542_v61 = vunpack.c.l.s8.bf16 %v3724_v0  ;;  %v3820_v0 = vld [vmem:[%s18692_s6 + $0xf88] sm:$0xff] }
 0x96a   : > { %16381 = vmatpush2.bf16.msra.mxu1 %v16380_v32  ;;  %v16476_v32 = vunpack.c.h.s8.bf16 %v3531_v8 }
 0x96b   : > { %16383 = vmatprep.subr.bf16.mxu1 %v16382_v19  ;;  %v16478_v19 = vunpack.c.l.s8.bf16 %v3532_v6  ;;  %v3628_v6 = vld [vmem:[%s18692_s6 + $0x988] sm:$0xff] }
 0x96c   : > { %16449 = vmatpush2.bf16.msra.mxu0 %v16448_v28  ;;  %v16544_v28 = vunpack.c.l.s8.bf16 %v3723_v17  ;;  %v3819_v17 = vld [vmem:[%s18692_s6 + $0xf80] sm:$0xff] }
 0x96d   : > { %16515 = vmatprep.subr.bf16.mxu0 %v16514_v18  ;;  %v16546_v18 = vunpack.c.h.s8.bf16 %v3892_v58 }
 0x96e   : > { %16385 = vmatpush2.bf16.msra.mxu1 %v16384_v34  ;;  %v16480_v34 = vunpack.c.l.s8.bf16 %v3531_v8  ;;  %v3627_v8 = vld [vmem:[%s18692_s6 + $0x980] sm:$0xff] }
 0x96f   : > { %12572 = vmatmul.mubr.f32.vlgmr.msra.gmra.mxu0 %v18861_v36  ;;  %16451 = vmatprep.subr.bf16.mxu1 %v16450_v27  ;;  %v16482_v27 = vunpack.c.h.s8.bf16 %v3700_v30 }
 0x970   : > { %16517 = vmatpush1.bf16.msra.mxu0 %v16516_v37  ;;  %12713 = vmatprep.mubr.f32.mxu0 %v18958_v39  ;;  %v16548_v37 = vunpack.c.h.s8.bf16 %v3891_v15 }
 0x971   : > { %12501 = vmatmul.mubr.f32.vlgmr.msra.gmra.mxu1 %v19011_v56  ;;  %16519 = vmatprep.subr.bf16.mxu0 %v16518_v43  ;;  %v16550_v43 = vunpack.c.l.s8.bf16 %v3892_v58  ;;  %v3414_v58 = vld [vmem:[%s18692_s6 + $0x2d8] sm:$0xff] }
 0x972   : > { %16453 = vmatpush1.bf16.msra.mxu1 %v16452_v44  ;;  %12642 = vmatprep.mubr.f32.mxu1 %v18903_v23  ;;  %v16484_v44 = vunpack.c.h.s8.bf16 %v3699_v22 }
 0x973   : > { %16455 = vmatprep.subr.bf16.mxu1 %v16454_v25  ;;  %v16486_v25 = vunpack.c.l.s8.bf16 %v3700_v30  ;;  %v16510_v30 = vunpack.c.l.s8.bf16 %v3628_v6 }
 0x974   : > { %16521 = vmatpush1.bf16.msra.mxu0 %v16520_v31  ;;  %v16552_v31 = vunpack.c.l.s8.bf16 %v3891_v15  ;;  %v3988_v15 = vld [vmem:[%s18692_s6 + $0x14c8] sm:$0xff] }
 0x975   : > { %16523 = vmatprep.subr.bf16.mxu0 %v16522_v9  ;;  %v16554_v9 = vunpack.c.h.s8.bf16 %v3868_v45 }
 0x976   : > { %16457 = vmatpush1.bf16.msra.mxu1 %v16456_v46  ;;  %v16488_v46 = vunpack.c.l.s8.bf16 %v3699_v22  ;;  %v16512_v22 = vunpack.c.l.s8.bf16 %v3627_v8 }
 0x977   : > { %16459 = vmatprep.subr.bf16.mxu1 %v16458_v3  ;;  %v16490_v3 = vunpack.c.h.s8.bf16 %v3676_v40 }
 0x978   : > { %16525 = vmatpush1.bf16.msra.mxu0 %v16524_v48  ;;  %v16556_v48 = vunpack.c.h.s8.bf16 %v3867_v33 }
 0x979   : > { %16527 = vmatprep.subr.bf16.mxu0 %v16526_v2  ;;  %v16558_v2 = vunpack.c.l.s8.bf16 %v3868_v45  ;;  %v3987_v45 = vld [vmem:[%s18692_s6 + $0x14c0] sm:$0xff] }
 0x97a   : > { %16461 = vmatpush1.bf16.msra.mxu1 %v16460_v49  ;;  %v16492_v49 = vunpack.c.h.s8.bf16 %v3675_v14 }
 0x97b   : > { %16463 = vmatprep.subr.bf16.mxu1 %v16462_v51  ;;  %v16494_v51 = vunpack.c.l.s8.bf16 %v3676_v40 }
 0x97c   : > { %16529 = vmatpush1.bf16.msra.mxu0 %v16528_v35  ;;  %v16560_v35 = vunpack.c.l.s8.bf16 %v3867_v33 }
 0x97d   : > { %16531 = vmatprep.subr.bf16.mxu0 %v16530_v47  ;;  %v16562_v47 = vunpack.c.h.s8.bf16 %v3844_v50 }
 0x97e   : > { %16465 = vmatpush1.bf16.msra.mxu1 %v16464_v54  ;;  %v16496_v54 = vunpack.c.l.s8.bf16 %v3675_v14  ;;  %v16582_v14 = vunpack.c.l.s8.bf16 %v3988_v15 }
 0x97f   : > { %16467 = vmatprep.subr.bf16.mxu1 %v16466_v55  ;;  %v16498_v55 = vunpack.c.h.s8.bf16 %v3652_v42 }
 0x980   : > { %16533 = vmatpush1.bf16.msra.mxu0 %v16532_v59  ;;  %v16564_v59 = vunpack.c.h.s8.bf16 %v3843_v52 }
 0x981   : > { %16535 = vmatprep.subr.bf16.mxu0 %v16534_v62  ;;  %v16566_v62 = vunpack.c.l.s8.bf16 %v3844_v50 }
 0x982   : > { %16469 = vmatpush1.bf16.msra.mxu1 %v16468_v63  ;;  %v16500_v63 = vunpack.c.h.s8.bf16 %v3651_v57 }
 0x983   : > { %16471 = vmatprep.subr.bf16.mxu1 %v16470_v38  ;;  %v16502_v38 = vunpack.c.l.s8.bf16 %v3652_v42 }
 0x984   : > { %16537 = vmatpush1.bf16.msra.mxu0 %v16536_v26  ;;  %v16568_v26 = vunpack.c.l.s8.bf16 %v3843_v52 }
 0x985   : > { %16539 = vmatprep.subr.bf16.mxu0 %v16538_v60  ;;  %v16570_v60 = vunpack.c.h.s8.bf16 %v3820_v0 }
 0x986   : > { %16473 = vmatpush1.bf16.msra.mxu1 %v16472_v7  ;;  %v16504_v7 = vunpack.c.l.s8.bf16 %v3651_v57 }
 0x987   : > { %16475 = vmatprep.subr.bf16.mxu1 %v16474_v1  ;;  %v16506_v1 = vunpack.c.h.s8.bf16 %v3628_v6 }
 0x988   : > { %16541 = vmatpush1.bf16.msra.mxu0 %v16540_v11  ;;  %v16572_v11 = vunpack.c.h.s8.bf16 %v3819_v17 }
 0x989   : > { %16543 = vmatprep.subr.bf16.mxu0 %v16542_v61  ;;  %v16574_v61 = vunpack.c.l.s8.bf16 %v3820_v0 }
 0x98a   : > { %16477 = vmatpush1.bf16.msra.mxu1 %v16476_v32  ;;  %v16508_v32 = vunpack.c.h.s8.bf16 %v3627_v8 }
 0x98b   : > { %16479 = vmatprep.subr.bf16.mxu1 %v16478_v19  ;;  %v12005_v19 = vpop.f32.mrf.mxu0 }
 0x98c   : > { %16545 = vmatpush1.bf16.msra.mxu0 %v16544_v28  ;;  %v12076_v28 = vpop.f32.mrf.mxu1 }
 0x98d   : > { %16547 = vmatprep.subr.bf16.mxu0 %v16546_v18  ;;  %v16576_v18 = vunpack.c.l.s8.bf16 %v3819_v17 }
 0x98e   : > { %16481 = vmatpush1.bf16.msra.mxu1 %v16480_v34  ;;  %v16642_v34 = vunpack.c.h.s8.bf16 %v3414_v58 }
 0x98f   : > { %16483 = vmatprep.subr.bf16.mxu1 %v16482_v27  ;;  %v3413_v27 = vld [vmem:[%s18692_s6 + $0x2d0] sm:$0xff] }
 0x990   : > { %16549 = vmatpush2.bf16.msra.mxu0 %v16548_v37  ;;  %v12007_v37 = vpop.f32.mrf.mxu0  ;;  %v16648_v50 = vunpack.c.l.s8.bf16 %v3413_v27 }
 0x991   : > { %16551 = vmatprep.subr.bf16.mxu0 %v16550_v43  ;;  %v12078_v43 = vpop.f32.mrf.mxu1 }
 0x992   : > { %16485 = vmatpush2.bf16.msra.mxu1 %v16484_v44  ;;  %v16578_v44 = vunpack.c.h.s8.bf16 %v3988_v15  ;;  %v12147_v40 = vpop.f32.mrf.mxu0  ;;  %v12079_v33 = vadd.f32 %v12078_v43, %v12007_v37  ;;  %v3365_v15 = vld [vmem:[%s18692_s6 + $0x150] sm:$0xff] }
 0x993   : > { %16487 = vmatprep.subr.bf16.mxu1 %v16486_v25  ;;  %v12077_v25 = vadd.f32 %v12076_v28, %v12005_v19  ;;  %v16660_v37 = vunpack.c.h.s8.bf16 %v3365_v15 }
 0x994   : > { %16553 = vmatpush2.bf16.msra.mxu0 %v16552_v31  ;;  %v16644_v31 = vunpack.c.h.s8.bf16 %v3413_v27 }
 0x995   : > { %16555 = vmatprep.subr.bf16.mxu0 %v16554_v9  ;;  %v16646_v9 = vunpack.c.l.s8.bf16 %v3414_v58 }
 0x996   : > { %16489 = vmatpush2.bf16.msra.mxu1 %v16488_v46  ;;  %v16580_v46 = vunpack.c.h.s8.bf16 %v3987_v45 }
 0x997   : > { %16491 = vmatprep.subr.bf16.mxu1 %v16490_v3  ;;  %v3390_v3 = vld [vmem:[%s18692_s6 + $0x218] sm:$0xff] }
 0x998   : > { %16557 = vmatpush2.bf16.msra.mxu0 %v16556_v48  ;;  %v12148_v48 = vadd.f32 %v12147_v40, %v12077_v25  ;;  %v3916_v40 = vld [vmem:[%s18692_s6 + $0x1288] sm:$0xff] }
 0x999   : > { %16559 = vmatprep.subr.bf16.mxu0 %v16558_v2  ;;  %v19649_v2 = vld [vmem:[%s18698_s30 + $0x8] sm:$0xff] }
 0x99a   : > { %16493 = vmatpush2.bf16.msra.mxu1 %v16492_v49  ;;  %v13700_v49 = vrot.slane %v19649_v2, %v18898_v16 }
 0x99b   : > { %16495 = vmatprep.subr.bf16.mxu1 %v16494_v51  ;;  %v3964_v51 = vld [vmem:[%s18692_s6 + $0x1408] sm:$0xff] }
 0x99c   : > { %16561 = vmatpush2.bf16.msra.mxu0 %v16560_v35  ;;  %v12149_v35 = vpop.f32.mrf.mxu0  ;;  %v16590_v58 = vunpack.c.l.s8.bf16 %v3964_v51 }
 0x99d   : > { %16563 = vmatprep.subr.bf16.mxu0 %v16562_v47  ;;  %v19656_v47 = vld [vmem:[%s18700_s16 + $0x8] sm:$0xff]  ;;  %v12150_v57 = vadd.f32 %v12149_v35, %v12079_v33 }
 0x99e   : > { %16497 = vmatpush2.bf16.msra.mxu1 %v16496_v54  ;;  %v13850_v52 = vrot.slane %v19656_v47, %v18898_v16  ;;  %v16650_v54 = vunpack.c.h.s8.bf16 %v3390_v3  ;;  %v13854_v17 = vrot.slane %v19656_v47, %v18906_v24  ;;  %v3341_v33 = vld [vmem:[%s18692_s6 + $0x90] sm:$0xff]  ;;  %v3510_v35 = vld [vmem:[%s18692_s6 + $0x5d8] sm:$0xff] }
 0x99f   : > { %16499 = vmatprep.subr.bf16.mxu1 %v16498_v55  ;;  %v3389_v55 = vld [vmem:[%s18692_s6 + $0x210] sm:$0xff] }
 0x9a0   : > { %16565 = vmatpush2.bf16.msra.mxu0 %v16564_v59  ;;  %v16656_v28 = vunpack.c.l.s8.bf16 %v3389_v55 }
 0x9a1   : > { %16567 = vmatprep.subr.bf16.mxu0 %v16566_v62  ;;  %v13704_v62 = vrot.slane %v19649_v2, %v18906_v24 }
 0x9a2   : > { %16501 = vmatpush2.bf16.msra.mxu1 %v16500_v63  ;;  %v16584_v63 = vunpack.c.l.s8.bf16 %v3987_v45  ;;  %v3342_v45 = vld [vmem:[%s18692_s6 + $0x98] sm:$0xff] }
 0x9a3   : > { %16503 = vmatprep.subr.bf16.mxu1 %v16502_v38  ;;  %v16586_v38 = vunpack.c.h.s8.bf16 %v3964_v51 }
 0x9a4   : > { %16569 = vmatpush2.bf16.msra.mxu0 %v16568_v26  ;;  %v3963_v26 = vld [vmem:[%s18692_s6 + $0x1400] sm:$0xff] }
 0x9a5   : > { %16571 = vmatprep.subr.bf16.mxu0 %v16570_v60 }
 0x9a6   : > { %16505 = vmatpush2.bf16.msra.mxu1 %v16504_v7  ;;  %v16652_v7 = vunpack.c.h.s8.bf16 %v3389_v55  ;;  %v4084_v55 = vld [vmem:[%s18692_s6 + $0x17c8] sm:$0xff] }
 0x9a7   : > { %16507 = vmatprep.subr.bf16.mxu1 %v16506_v1  ;;  %v16654_v1 = vunpack.c.l.s8.bf16 %v3390_v3  ;;  %v16602_v3 = vunpack.c.h.s8.bf16 %v3916_v40 }
 0x9a8   : > { %16573 = vmatpush2.bf16.msra.mxu0 %v16572_v11 }
 0x9a9   : > { %16575 = vmatprep.subr.bf16.mxu0 %v16574_v61  ;;  %v16588_v61 = vunpack.c.h.s8.bf16 %v3963_v26 }
 0x9aa   : > { %16509 = vmatpush2.bf16.msra.mxu1 %v16508_v32  ;;  %v3366_v32 = vld [vmem:[%s18692_s6 + $0x158] sm:$0xff] }
 0x9ab   : > { %16511 = vmatprep.subr.bf16.mxu1 %v16510_v30  ;;  %v3940_v30 = vld [vmem:[%s18692_s6 + $0x1348] sm:$0xff]  ;;  %v16662_v43 = vunpack.c.l.s8.bf16 %v3366_v32 }
 0x9ac   : > { %16577 = vmatpush2.bf16.msra.mxu0 %v16576_v18  ;;  %v16658_v18 = vunpack.c.h.s8.bf16 %v3366_v32  ;;  %v16594_v27 = vunpack.c.h.s8.bf16 %v3940_v30  ;;  %v16598_v25 = vunpack.c.l.s8.bf16 %v3940_v30 }
 0x9ad   : > { %16643 = vmatprep.subr.bf16.mxu0 %v16642_v34  ;;  %v16592_v34 = vunpack.c.l.s8.bf16 %v3963_v26  ;;  %v16678_v26 = vunpack.c.l.s8.bf16 %v3510_v35 }
 0x9ae   : > { %16513 = vmatpush2.bf16.msra.mxu1 %v16512_v22  ;;  %v3939_v22 = vld [vmem:[%s18692_s6 + $0x1340] sm:$0xff] }
 0x9af   : > { %12714 = vmatmul.mubr.f32.vlgmr.msra.gmra.mxu0 %v18964_v21  ;;  %16579 = vmatprep.subr.bf16.mxu1 %v16578_v44  ;;  %v16596_v44 = vunpack.c.h.s8.bf16 %v3939_v22 }
 0x9b0   : > { %16645 = vmatpush1.bf16.msra.mxu0 %v16644_v31  ;;  %12855 = vmatprep.mubr.f32.mxu0 %v18848_v13  ;;  %v16664_v31 = vunpack.c.l.s8.bf16 %v3365_v15 }
 0x9b1   : > { %v12218_v42 = vpop.f32.mrf.mxu1  ;;  %12643 = vmatmul.mubr.f32.vlgmr.msra.gmra.mxu1 %v18909_v29  ;;  %16647 = vmatprep.subr.bf16.mxu0 %v16646_v9  ;;  %v16666_v9 = vunpack.c.h.s8.bf16 %v3342_v45 }
 0x9b2   : > { %v12219_v59 = vadd.f32 %v12218_v42, %v12148_v48  ;;  %16581 = vmatpush1.bf16.msra.mxu1 %v16580_v46  ;;  %12784 = vmatprep.mubr.f32.mxu1 %v19007_v53  ;;  %v16600_v46 = vunpack.c.l.s8.bf16 %v3939_v22  ;;  %v16668_v48 = vunpack.c.h.s8.bf16 %v3341_v33 }
 0x9b3   : > { %v12220_v0 = vpop.f32.mrf.mxu1  ;;  %16583 = vmatprep.subr.bf16.mxu1 %v16582_v14  ;;  %v3915_v14 = vld [vmem:[%s18692_s6 + $0x1280] sm:$0xff] }
 0x9b4   : > { %v13781_v6 = vmul.f32 %v13700_v49, %v12219_v59  ;;  %v12221_v60 = vadd.f32 %v12220_v0, %v12150_v57  ;;  %16649 = vmatpush1.bf16.msra.mxu0 %v16648_v50  ;;  %v16670_v50 = vunpack.c.l.s8.bf16 %v3342_v45  ;;  %v16604_v51 = vunpack.c.h.s8.bf16 %v3915_v14  ;;  %v3509_v59 = vld [vmem:[%s18692_s6 + $0x5d0] sm:$0xff]  ;;  %v4083_v0 = vld [vmem:[%s18692_s6 + $0x17c0] sm:$0xff] }
 0x9b5   : > { %16651 = vmatprep.subr.bf16.mxu0 %v16650_v54  ;;  %v16672_v54 = vunpack.c.l.s8.bf16 %v3341_v33  ;;  %v16674_v57 = vunpack.c.h.s8.bf16 %v3510_v35  ;;  %v4035_v45 = vld [vmem:[%s18692_s6 + $0x1640] sm:$0xff] }
 0x9b6   : > { %v13931_v8 = vadd.f32 %v13850_v52, %v13781_v6  ;;  %v13782_v11 = vmul.f32 %v13704_v62, %v12221_v60  ;;  %16585 = vmatpush1.bf16.msra.mxu1 %v16584_v63  ;;  %v16606_v52 = vunpack.c.l.s8.bf16 %v3916_v40  ;;  %v16608_v62 = vunpack.c.l.s8.bf16 %v3915_v14  ;;  %v3486_v60 = vld [vmem:[%s18692_s6 + $0x518] sm:$0xff] }
 0x9b7   : > { %16587 = vmatprep.subr.bf16.mxu1 %v16586_v38  ;;  %v16610_v63 = vunpack.c.h.s8.bf16 %v4084_v55  ;;  %v16676_v38 = vunpack.c.h.s8.bf16 %v3509_v59  ;;  %v16612_v6 = vunpack.c.h.s8.bf16 %v4083_v0  ;;  %v16628_v40 = vunpack.c.h.s8.bf16 %v4035_v45 }
 0x9b8   : > { %17680 = vtanh.f32 %v13931_v8  ;;  %v13932_v19 = vadd.f32 %v13854_v17, %v13782_v11  ;;  %16653 = vmatpush1.bf16.msra.mxu0 %v16652_v7  ;;  %v16614_v17 = vunpack.c.l.s8.bf16 %v4084_v55  ;;  %v16680_v7 = vunpack.c.l.s8.bf16 %v3509_v59  ;;  %v3485_v11 = vld [vmem:[%s18692_s6 + $0x510] sm:$0xff]  ;;  %v3606_v59 = vld [vmem:[%s18692_s6 + $0x8d8] sm:$0xff] }
 0x9b9   : > { %16655 = vmatprep.subr.bf16.mxu0 %v16654_v1  ;;  %v4060_v1 = vld [vmem:[%s18692_s6 + $0x1708] sm:$0xff]  ;;  %v16682_v8 = vunpack.c.h.s8.bf16 %v3486_v60 }
 0x9ba   : > { %17682 = vtanh.f32 %v13932_v19  ;;  %16589 = vmatpush1.bf16.msra.mxu1 %v16588_v61  ;;  %v16616_v61 = vunpack.c.l.s8.bf16 %v4083_v0  ;;  %v16618_v32 = vunpack.c.h.s8.bf16 %v4060_v1  ;;  %v16684_v19 = vunpack.c.h.s8.bf16 %v3485_v11 }
 0x9bb   : > { %16591 = vmatprep.subr.bf16.mxu1 %v16590_v58  ;;  %v4059_v58 = vld [vmem:[%s18692_s6 + $0x1700] sm:$0xff]  ;;  %v16622_v15 = vunpack.c.l.s8.bf16 %v4060_v1  ;;  %v16710_v1 = vunpack.c.l.s8.bf16 %v3606_v59 }
 0x9bc   : > { %16657 = vmatpush1.bf16.msra.mxu0 %v16656_v28  ;;  %v16686_v28 = vunpack.c.l.s8.bf16 %v3486_v60  ;;  %v16620_v30 = vunpack.c.h.s8.bf16 %v4059_v58 }
 0x9bd   : > { %16659 = vmatprep.subr.bf16.mxu0 %v16658_v18  ;;  %v3462_v18 = vld [vmem:[%s18692_s6 + $0x458] sm:$0xff] }
 0x9be   : > { %16593 = vmatpush1.bf16.msra.mxu1 %v16592_v34  ;;  %v16688_v34 = vunpack.c.l.s8.bf16 %v3485_v11  ;;  %v16690_v22 = vunpack.c.h.s8.bf16 %v3462_v18  ;;  %v3582_v11 = vld [vmem:[%s18692_s6 + $0x818] sm:$0xff] }
 0x9bf   : > { %16595 = vmatprep.subr.bf16.mxu1 %v16594_v27  ;;  %v4036_v27 = vld [vmem:[%s18692_s6 + $0x1648] sm:$0xff] }
 0x9c0   : > { %16661 = vmatpush1.bf16.msra.mxu0 %v16660_v37  ;;  %v3461_v37 = vld [vmem:[%s18692_s6 + $0x450] sm:$0xff]  ;;  %v16630_v33 = vunpack.c.l.s8.bf16 %v4036_v27 }
 0x9c1   : > { %16663 = vmatprep.subr.bf16.mxu0 %v16662_v43  ;;  %v16624_v43 = vunpack.c.l.s8.bf16 %v4059_v58 }
 0x9c2   : > { %16597 = vmatpush1.bf16.msra.mxu1 %v16596_v44  ;;  %v16626_v44 = vunpack.c.h.s8.bf16 %v4036_v27  ;;  %v16718_v27 = vunpack.c.l.s8.bf16 %v3582_v11 }
 0x9c3   : > { %16599 = vmatprep.subr.bf16.mxu1 %v16598_v25  ;;  %v16692_v25 = vunpack.c.h.s8.bf16 %v3461_v37 }
 0x9c4   : > { %16665 = vmatpush1.bf16.msra.mxu0 %v16664_v31  ;;  %v16694_v31 = vunpack.c.l.s8.bf16 %v3462_v18 }
 0x9c5   : > { %v17681_v49 = vpop.eup %17680  ;;  %16667 = vmatprep.subr.bf16.mxu0 %v16666_v9  ;;  %v3438_v9 = vld [vmem:[%s18692_s6 + $0x398] sm:$0xff] }
 0x9c6   : > { %13979 = vst [vmem:[%s19163_s5 + $0x60] sm:$0xff] %v17681_v49  ;;  %16601 = vmatpush1.bf16.msra.mxu1 %v16600_v46  ;;  %v16696_v46 = vunpack.c.l.s8.bf16 %v3461_v37  ;;  %v16698_v14 = vunpack.c.h.s8.bf16 %v3438_v9  ;;  %v16632_v49 = vunpack.c.l.s8.bf16 %v4035_v45  ;;  %v3558_v37 = vld [vmem:[%s18692_s6 + $0x758] sm:$0xff] }
 0x9c7   : > { %v17683_v42 = vpop.eup %17682  ;;  %16603 = vmatprep.subr.bf16.mxu1 %v16602_v3  ;;  %v4012_v3 = vld [vmem:[%s18692_s6 + $0x1588] sm:$0xff] }
 0x9c8   : > { %13980 = vst [vmem:[%s19163_s5 + $0x68] sm:$0xff] %v17683_v42  ;;  %16669 = vmatpush1.bf16.msra.mxu0 %v16668_v48  ;;  %v3437_v48 = vld [vmem:[%s18692_s6 + $0x390] sm:$0xff]  ;;  %v16702_v42 = vunpack.c.l.s8.bf16 %v3438_v9  ;;  %v16638_v55 = vunpack.c.l.s8.bf16 %v4012_v3 }
 0x9c9   : > { %16671 = vmatprep.subr.bf16.mxu0 %v16670_v50  ;;  %v16634_v50 = vunpack.c.h.s8.bf16 %v4012_v3  ;;  %v16700_v35 = vunpack.c.h.s8.bf16 %v3437_v48  ;;  %v16726_v3 = vunpack.c.l.s8.bf16 %v3558_v37 }
 0x9ca   : > { %16605 = vmatpush1.bf16.msra.mxu1 %v16604_v51  ;;  %v4011_v51 = vld [vmem:[%s18692_s6 + $0x1580] sm:$0xff] }
 0x9cb   : > { %16607 = vmatprep.subr.bf16.mxu1 %v16606_v52  ;;  %v16636_v52 = vunpack.c.h.s8.bf16 %v4011_v51  ;;  %v16640_v0 = vunpack.c.l.s8.bf16 %v4011_v51 }
 0x9cc   : > { %16673 = vmatpush1.bf16.msra.mxu0 %v16672_v54  ;;  %v3798_v54 = vld [vmem:[%s18692_s6 + $0xed8] sm:$0xff] }
 0x9cd   : > { %16675 = vmatprep.subr.bf16.mxu0 %v16674_v57  ;;  %v16704_v57 = vunpack.c.l.s8.bf16 %v3437_v48  ;;  %v16774_v60 = vunpack.c.l.s8.bf16 %v3798_v54  ;;  %v3534_v48 = vld [vmem:[%s18692_s6 + $0x698] sm:$0xff] }
 0x9ce   : > { %16609 = vmatpush1.bf16.msra.mxu1 %v16608_v62  ;;  %v16770_v62 = vunpack.c.h.s8.bf16 %v3798_v54 }
 0x9cf   : > { %16611 = vmatprep.subr.bf16.mxu1 %v16610_v63  ;;  %v3797_v63 = vld [vmem:[%s18692_s6 + $0xed0] sm:$0xff] }
 0x9d0   : > { %16677 = vmatpush2.bf16.msra.mxu0 %v16676_v38  ;;  %v16706_v38 = vunpack.c.h.s8.bf16 %v3606_v59  ;;  %v16734_v59 = vunpack.c.l.s8.bf16 %v3534_v48 }
 0x9d1   : > { %16679 = vmatprep.subr.bf16.mxu0 %v16678_v26  ;;  %v3605_v26 = vld [vmem:[%s18692_s6 + $0x8d0] sm:$0xff] }
 0x9d2   : > { %16613 = vmatpush2.bf16.msra.mxu1 %v16612_v6  ;;  %v16772_v6 = vunpack.c.h.s8.bf16 %v3797_v63  ;;  %v16712_v58 = vunpack.c.l.s8.bf16 %v3605_v26 }
 0x9d3   : > { %16615 = vmatprep.subr.bf16.mxu1 %v16614_v17  ;;  %v16708_v17 = vunpack.c.h.s8.bf16 %v3605_v26 }
 0x9d4   : > { %16681 = vmatpush2.bf16.msra.mxu0 %v16680_v7  ;;  %v3774_v7 = vld [vmem:[%s18692_s6 + $0xe18] sm:$0xff] }
 0x9d5   : > { %16683 = vmatprep.subr.bf16.mxu0 %v16682_v8  ;;  %v16776_v8 = vunpack.c.l.s8.bf16 %v3797_v63  ;;  %v16782_v18 = vunpack.c.l.s8.bf16 %v3774_v7  ;;  %v3702_v63 = vld [vmem:[%s18692_s6 + $0xbd8] sm:$0xff] }
 0x9d6   : > { %16617 = vmatpush2.bf16.msra.mxu1 %v16616_v61  ;;  %v16778_v61 = vunpack.c.h.s8.bf16 %v3774_v7 }
 0x9d7   : > { %16619 = vmatprep.subr.bf16.mxu1 %v16618_v32  ;;  %v3773_v32 = vld [vmem:[%s18692_s6 + $0xe10] sm:$0xff] }
 0x9d8   : > { %16685 = vmatpush2.bf16.msra.mxu0 %v16684_v19  ;;  %v16714_v19 = vunpack.c.h.s8.bf16 %v3582_v11  ;;  %v16742_v11 = vunpack.c.l.s8.bf16 %v3702_v63 }
 0x9d9   : > { %16687 = vmatprep.subr.bf16.mxu0 %v16686_v28  ;;  %v3581_v28 = vld [vmem:[%s18692_s6 + $0x810] sm:$0xff] }
 0x9da   : > { %16621 = vmatpush2.bf16.msra.mxu1 %v16620_v30  ;;  %v16780_v30 = vunpack.c.h.s8.bf16 %v3773_v32  ;;  %v16720_v45 = vunpack.c.l.s8.bf16 %v3581_v28 }
 0x9db   : > { %16623 = vmatprep.subr.bf16.mxu1 %v16622_v15  ;;  %v16716_v15 = vunpack.c.h.s8.bf16 %v3581_v28 }
 0x9dc   : > { %16689 = vmatpush2.bf16.msra.mxu0 %v16688_v34  ;;  %v3750_v34 = vld [vmem:[%s18692_s6 + $0xd58] sm:$0xff] }
 0x9dd   : > { %16691 = vmatprep.subr.bf16.mxu0 %v16690_v22  ;;  %v16784_v22 = vunpack.c.l.s8.bf16 %v3773_v32  ;;  %v16790_v9 = vunpack.c.l.s8.bf16 %v3750_v34  ;;  %v3678_v32 = vld [vmem:[%s18692_s6 + $0xb18] sm:$0xff] }
 0x9de   : > { %16625 = vmatpush2.bf16.msra.mxu1 %v16624_v43  ;;  %v16786_v43 = vunpack.c.h.s8.bf16 %v3750_v34 }
 0x9df   : > { %16627 = vmatprep.subr.bf16.mxu1 %v16626_v44  ;;  %v3749_v44 = vld [vmem:[%s18692_s6 + $0xd50] sm:$0xff] }
 0x9e0   : > { %16693 = vmatpush2.bf16.msra.mxu0 %v16692_v25  ;;  %v16722_v25 = vunpack.c.h.s8.bf16 %v3558_v37  ;;  %v16750_v37 = vunpack.c.l.s8.bf16 %v3678_v32 }
 0x9e1   : > { %16695 = vmatprep.subr.bf16.mxu0 %v16694_v31  ;;  %v3557_v31 = vld [vmem:[%s18692_s6 + $0x750] sm:$0xff] }
 0x9e2   : > { %16629 = vmatpush2.bf16.msra.mxu1 %v16628_v40  ;;  %v16788_v40 = vunpack.c.h.s8.bf16 %v3749_v44  ;;  %v16728_v51 = vunpack.c.l.s8.bf16 %v3557_v31 }
 0x9e3   : > { %16631 = vmatprep.subr.bf16.mxu1 %v16630_v33  ;;  %v16724_v33 = vunpack.c.h.s8.bf16 %v3557_v31 }
 0x9e4   : > { %16697 = vmatpush2.bf16.msra.mxu0 %v16696_v46  ;;  %v3726_v46 = vld [vmem:[%s18692_s6 + $0xc98] sm:$0xff] }
 0x9e5   : > { %16699 = vmatprep.subr.bf16.mxu0 %v16698_v14  ;;  %v16792_v14 = vunpack.c.l.s8.bf16 %v3749_v44  ;;  %v16798_v54 = vunpack.c.l.s8.bf16 %v3726_v46  ;;  %v3654_v44 = vld [vmem:[%s18692_s6 + $0xa58] sm:$0xff] }
 0x9e6   : > { %16633 = vmatpush2.bf16.msra.mxu1 %v16632_v49  ;;  %v16794_v49 = vunpack.c.h.s8.bf16 %v3726_v46 }
 0x9e7   : > { %16635 = vmatprep.subr.bf16.mxu1 %v16634_v50  ;;  %v3725_v50 = vld [vmem:[%s18692_s6 + $0xc90] sm:$0xff] }
 0x9e8   : > { %16701 = vmatpush2.bf16.msra.mxu0 %v16700_v35  ;;  %v16730_v35 = vunpack.c.h.s8.bf16 %v3534_v48  ;;  %v16758_v48 = vunpack.c.l.s8.bf16 %v3654_v44 }
 0x9e9   : > { %16703 = vmatprep.subr.bf16.mxu0 %v16702_v42  ;;  %v3533_v42 = vld [vmem:[%s18692_s6 + $0x690] sm:$0xff] }
 0x9ea   : > { %16637 = vmatpush2.bf16.msra.mxu1 %v16636_v52  ;;  %v16796_v52 = vunpack.c.h.s8.bf16 %v3725_v50  ;;  %v16736_v26 = vunpack.c.l.s8.bf16 %v3533_v42 }
 0x9eb   : > { %16639 = vmatprep.subr.bf16.mxu1 %v16638_v55  ;;  %v16732_v55 = vunpack.c.h.s8.bf16 %v3533_v42 }
 0x9ec   : > { %16705 = vmatpush2.bf16.msra.mxu0 %v16704_v57  ;;  %v3894_v57 = vld [vmem:[%s18692_s6 + $0x11d8] sm:$0xff] }
 0x9ed   : > { %16771 = vmatprep.subr.bf16.mxu0 %v16770_v62  ;;  %v16800_v62 = vunpack.c.l.s8.bf16 %v3725_v50  ;;  %v16806_v7 = vunpack.c.l.s8.bf16 %v3894_v57  ;;  %v3630_v50 = vld [vmem:[%s18692_s6 + $0x998] sm:$0xff] }
 0x9ee   : > { %16641 = vmatpush2.bf16.msra.mxu1 %v16640_v0  ;;  %v16802_v0 = vunpack.c.h.s8.bf16 %v3894_v57 }
 0x9ef   : > { %12856 = vmatmul.mubr.f32.vlgmr.msra.gmra.mxu0 %v18861_v36  ;;  %16707 = vmatprep.subr.bf16.mxu1 %v16706_v38  ;;  %v3893_v38 = vld [vmem:[%s18692_s6 + $0x11d0] sm:$0xff] }
 0x9f0   : > { %16773 = vmatpush1.bf16.msra.mxu0 %v16772_v6  ;;  %12997 = vmatprep.mubr.f32.mxu0 %v18958_v39  ;;  %v16738_v6 = vunpack.c.h.s8.bf16 %v3702_v63  ;;  %v12289_v63 = vpop.f32.mrf.mxu0 }
 0x9f1   : > { %12785 = vmatmul.mubr.f32.vlgmr.msra.gmra.mxu1 %v19011_v56  ;;  %16775 = vmatprep.subr.bf16.mxu0 %v16774_v60  ;;  %v3701_v60 = vld [vmem:[%s18692_s6 + $0xbd0] sm:$0xff] }
 0x9f2   : > { %16709 = vmatpush1.bf16.msra.mxu1 %v16708_v17  ;;  %12926 = vmatprep.mubr.f32.mxu1 %v18903_v23  ;;  %v16804_v17 = vunpack.c.h.s8.bf16 %v3893_v38  ;;  %v16744_v28 = vunpack.c.l.s8.bf16 %v3701_v60 }
 0x9f3   : > { %16711 = vmatprep.subr.bf16.mxu1 %v16710_v1  ;;  %v16740_v1 = vunpack.c.h.s8.bf16 %v3701_v60 }
 0x9f4   : > { %16777 = vmatpush1.bf16.msra.mxu0 %v16776_v8  ;;  %v3870_v8 = vld [vmem:[%s18692_s6 + $0x1118] sm:$0xff] }
 0x9f5   : > { %16779 = vmatprep.subr.bf16.mxu0 %v16778_v61  ;;  %v16808_v61 = vunpack.c.l.s8.bf16 %v3893_v38  ;;  %v16814_v34 = vunpack.c.l.s8.bf16 %v3870_v8  ;;  %v16766_v38 = vunpack.c.l.s8.bf16 %v3630_v50 }
 0x9f6   : > { %16713 = vmatpush1.bf16.msra.mxu1 %v16712_v58  ;;  %v16810_v58 = vunpack.c.h.s8.bf16 %v3870_v8 }
 0x9f7   : > { %16715 = vmatprep.subr.bf16.mxu1 %v16714_v19  ;;  %v3869_v19 = vld [vmem:[%s18692_s6 + $0x1110] sm:$0xff] }
 0x9f8   : > { %16781 = vmatpush1.bf16.msra.mxu0 %v16780_v30  ;;  %v16746_v30 = vunpack.c.h.s8.bf16 %v3678_v32 }
 0x9f9   : > { %16783 = vmatprep.subr.bf16.mxu0 %v16782_v18  ;;  %v3677_v18 = vld [vmem:[%s18692_s6 + $0xb10] sm:$0xff] }
 0x9fa   : > { %16717 = vmatpush1.bf16.msra.mxu1 %v16716_v15  ;;  %v16812_v15 = vunpack.c.h.s8.bf16 %v3869_v19  ;;  %v16752_v31 = vunpack.c.l.s8.bf16 %v3677_v18 }
 0x9fb   : > { %16719 = vmatprep.subr.bf16.mxu1 %v16718_v27  ;;  %v16748_v27 = vunpack.c.h.s8.bf16 %v3677_v18 }
 0x9fc   : > { %16785 = vmatpush1.bf16.msra.mxu0 %v16784_v22  ;;  %v3846_v22 = vld [vmem:[%s18692_s6 + $0x1058] sm:$0xff] }
 0x9fd   : > { %16787 = vmatprep.subr.bf16.mxu0 %v16786_v43  ;;  %v16816_v43 = vunpack.c.l.s8.bf16 %v3869_v19  ;;  %v16822_v46 = vunpack.c.l.s8.bf16 %v3846_v22 }
 0x9fe   : > { %16721 = vmatpush1.bf16.msra.mxu1 %v16720_v45  ;;  %v16818_v45 = vunpack.c.h.s8.bf16 %v3846_v22  ;;  %v13708_v22 = vrot.slane %v19649_v2, %v18956_v20 }
 0x9ff   : > { %16723 = vmatprep.subr.bf16.mxu1 %v16722_v25  ;;  %v3845_v25 = vld [vmem:[%s18692_s6 + $0x1050] sm:$0xff] }
 0xa00   : > { %16789 = vmatpush1.bf16.msra.mxu0 %v16788_v40  ;;  %v16754_v40 = vunpack.c.h.s8.bf16 %v3654_v44 }
 0xa01   : > { %16791 = vmatprep.subr.bf16.mxu0 %v16790_v9  ;;  %v3653_v9 = vld [vmem:[%s18692_s6 + $0xa50] sm:$0xff] }
 0xa02   : > { %16725 = vmatpush1.bf16.msra.mxu1 %v16724_v33  ;;  %v16820_v33 = vunpack.c.h.s8.bf16 %v3845_v25  ;;  %v16760_v42 = vunpack.c.l.s8.bf16 %v3653_v9 }
 0xa03   : > { %16727 = vmatprep.subr.bf16.mxu1 %v16726_v3  ;;  %v16756_v3 = vunpack.c.h.s8.bf16 %v3653_v9 }
 0xa04   : > { %16793 = vmatpush1.bf16.msra.mxu0 %v16792_v14  ;;  %v3822_v14 = vld [vmem:[%s18692_s6 + $0xf98] sm:$0xff] }
 0xa05   : > { %16795 = vmatprep.subr.bf16.mxu0 %v16794_v49  ;;  %v16824_v49 = vunpack.c.l.s8.bf16 %v3845_v25  ;;  %v16830_v57 = vunpack.c.l.s8.bf16 %v3822_v14  ;;  %v13858_v25 = vrot.slane %v19656_v47, %v18956_v20 }
 0xa06   : > { %16729 = vmatpush1.bf16.msra.mxu1 %v16728_v51  ;;  %v16826_v51 = vunpack.c.h.s8.bf16 %v3822_v14 }
 0xa07   : > { %16731 = vmatprep.subr.bf16.mxu1 %v16730_v35  ;;  %v3821_v35 = vld [vmem:[%s18692_s6 + $0xf90] sm:$0xff] }
 0xa08   : > { %16797 = vmatpush1.bf16.msra.mxu0 %v16796_v52  ;;  %v16762_v52 = vunpack.c.h.s8.bf16 %v3630_v50 }
 0xa09   : > { %16799 = vmatprep.subr.bf16.mxu0 %v16798_v54  ;;  %v3629_v54 = vld [vmem:[%s18692_s6 + $0x990] sm:$0xff] }
 0xa0a   : > { %16733 = vmatpush1.bf16.msra.mxu1 %v16732_v55  ;;  %v16828_v55 = vunpack.c.h.s8.bf16 %v3821_v35 }
 0xa0b   : > { %16735 = vmatprep.subr.bf16.mxu1 %v16734_v59  ;;  %v16764_v59 = vunpack.c.h.s8.bf16 %v3629_v54 }
 0xa0c   : > { %16801 = vmatpush1.bf16.msra.mxu0 %v16800_v62  ;;  %v3416_v62 = vld [vmem:[%s18692_s6 + $0x2e8] sm:$0xff] }
 0xa0d   : > { %16803 = vmatprep.subr.bf16.mxu0 %v16802_v0  ;;  %v12360_v0 = vpop.f32.mrf.mxu1  ;;  %v16898_v60 = vunpack.c.h.s8.bf16 %v3416_v62 }
 0xa0e   : > { %16737 = vmatpush1.bf16.msra.mxu1 %v16736_v26  ;;  %v16832_v26 = vunpack.c.l.s8.bf16 %v3821_v35  ;;  %v12361_v32 = vadd.f32 %v12360_v0, %v12289_v63  ;;  %v13862_v35 = vrot.slane %v19656_v47, %v18961_v41  ;;  %v3942_v0 = vld [vmem:[%s18692_s6 + $0x1358] sm:$0xff] }
 0xa0f   : > { %16739 = vmatprep.subr.bf16.mxu1 %v16738_v6  ;;  %v3990_v6 = vld [vmem:[%s18692_s6 + $0x14d8] sm:$0xff]  ;;  %v12362_v8 = vpop.f32.mrf.mxu1 }
 0xa10   : > { %16805 = vmatpush2.bf16.msra.mxu0 %v16804_v17  ;;  %v3415_v17 = vld [vmem:[%s18692_s6 + $0x2e0] sm:$0xff] }
 0xa11   : > { %16807 = vmatprep.subr.bf16.mxu0 %v16806_v7  ;;  %v16768_v7 = vunpack.c.l.s8.bf16 %v3629_v54 }
 0xa12   : > { %16741 = vmatpush2.bf16.msra.mxu1 %v16740_v1  ;;  %v12291_v1 = vpop.f32.mrf.mxu0 }
 0xa13   : > { %16743 = vmatprep.subr.bf16.mxu1 %v16742_v11  ;;  %v16834_v11 = vunpack.c.h.s8.bf16 %v3990_v6 }
 0xa14   : > { %16809 = vmatpush2.bf16.msra.mxu0 %v16808_v61  ;;  %v3989_v61 = vld [vmem:[%s18692_s6 + $0x14d0] sm:$0xff]  ;;  %v12431_v19 = vpop.f32.mrf.mxu0 }
 0xa15   : > { %16811 = vmatprep.subr.bf16.mxu0 %v16810_v58  ;;  %v16900_v58 = vunpack.c.h.s8.bf16 %v3415_v17  ;;  %v16836_v18 = vunpack.c.h.s8.bf16 %v3989_v61 }
 0xa16   : > { %16745 = vmatpush2.bf16.msra.mxu1 %v16744_v28  ;;  %v16902_v28 = vunpack.c.l.s8.bf16 %v3416_v62  ;;  %v12433_v44 = vpop.f32.mrf.mxu0 }
 0xa17   : > { %16747 = vmatprep.subr.bf16.mxu1 %v16746_v30  ;;  %v12363_v30 = vadd.f32 %v12362_v8, %v12291_v1  ;;  %v3344_v8 = vld [vmem:[%s18692_s6 + $0xa8] sm:$0xff] }
 0xa18   : > { %16813 = vmatpush2.bf16.msra.mxu0 %v16812_v15  ;;  %v3392_v15 = vld [vmem:[%s18692_s6 + $0x228] sm:$0xff] }
 0xa19   : > { %16815 = vmatprep.subr.bf16.mxu0 %v16814_v34  ;;  %v16838_v34 = vunpack.c.l.s8.bf16 %v3990_v6  ;;  %v12434_v9 = vadd.f32 %v12433_v44, %v12363_v30  ;;  %v16850_v6 = vunpack.c.h.s8.bf16 %v3942_v0 }
 0xa1a   : > { %16749 = vmatpush2.bf16.msra.mxu1 %v16748_v27  ;;  %v12432_v27 = vadd.f32 %v12431_v19, %v12361_v32  ;;  %v3918_v32 = vld [vmem:[%s18692_s6 + $0x1298] sm:$0xff]  ;;  %v3343_v19 = vld [vmem:[%s18692_s6 + $0xa0] sm:$0xff] }
 0xa1b   : > { %16751 = vmatprep.subr.bf16.mxu1 %v16750_v37  ;;  %v16904_v37 = vunpack.c.l.s8.bf16 %v3415_v17  ;;  %v16858_v30 = vunpack.c.h.s8.bf16 %v3918_v32  ;;  %v16862_v44 = vunpack.c.l.s8.bf16 %v3918_v32 }
 0xa1c   : > { %16817 = vmatpush2.bf16.msra.mxu0 %v16816_v43  ;;  %v3966_v43 = vld [vmem:[%s18692_s6 + $0x1418] sm:$0xff] }
 0xa1d   : > { %16819 = vmatprep.subr.bf16.mxu0 %v16818_v45 }
 0xa1e   : > { %16753 = vmatpush2.bf16.msra.mxu1 %v16752_v31  ;;  %v16906_v31 = vunpack.c.h.s8.bf16 %v3392_v15 }
 0xa1f   : > { %16755 = vmatprep.subr.bf16.mxu1 %v16754_v40  ;;  %v3391_v40 = vld [vmem:[%s18692_s6 + $0x220] sm:$0xff] }
 0xa20   : > { %16821 = vmatpush2.bf16.msra.mxu0 %v16820_v33  ;;  %v16912_v63 = vunpack.c.l.s8.bf16 %v3391_v40 }
 0xa21   : > { %16823 = vmatprep.subr.bf16.mxu0 %v16822_v46  ;;  %v13712_v46 = vrot.slane %v19649_v2, %v18961_v41 }
 0xa22   : > { %16757 = vmatpush2.bf16.msra.mxu1 %v16756_v3  ;;  %v16840_v3 = vunpack.c.l.s8.bf16 %v3989_v61 }
 0xa23   : > { %16759 = vmatprep.subr.bf16.mxu1 %v16758_v48  ;;  %v16842_v48 = vunpack.c.h.s8.bf16 %v3966_v43 }
 0xa24   : > { %16825 = vmatpush2.bf16.msra.mxu0 %v16824_v49  ;;  %v3965_v49 = vld [vmem:[%s18692_s6 + $0x1410] sm:$0xff] }
 0xa25   : > { %16827 = vmatprep.subr.bf16.mxu0 %v16826_v51  ;;  %v16844_v2 = vunpack.c.h.s8.bf16 %v3965_v49 }
 0xa26   : > { %16761 = vmatpush2.bf16.msra.mxu1 %v16760_v42  ;;  %v16908_v42 = vunpack.c.h.s8.bf16 %v3391_v40  ;;  %v3511_v40 = vld [vmem:[%s18692_s6 + $0x5e0] sm:$0xff] }
 0xa27   : > { %16763 = vmatprep.subr.bf16.mxu1 %v16762_v52  ;;  %v16910_v52 = vunpack.c.l.s8.bf16 %v3392_v15  ;;  %v16924_v15 = vunpack.c.h.s8.bf16 %v3343_v19 }
 0xa28   : > { %16829 = vmatpush2.bf16.msra.mxu0 %v16828_v55 }
 0xa29   : > { %16831 = vmatprep.subr.bf16.mxu0 %v16830_v57  ;;  %v3368_v57 = vld [vmem:[%s18692_s6 + $0x168] sm:$0xff] }
 0xa2a   : > { %16765 = vmatpush2.bf16.msra.mxu1 %v16764_v59  ;;  %v16846_v59 = vunpack.c.l.s8.bf16 %v3966_v43  ;;  %v16914_v47 = vunpack.c.h.s8.bf16 %v3368_v57 }
 0xa2b   : > { %16767 = vmatprep.subr.bf16.mxu1 %v16766_v38  ;;  %v3367_v38 = vld [vmem:[%s18692_s6 + $0x160] sm:$0xff] }
 0xa2c   : > { %16833 = vmatpush2.bf16.msra.mxu0 %v16832_v26  ;;  %v16848_v26 = vunpack.c.l.s8.bf16 %v3965_v49  ;;  %v16916_v17 = vunpack.c.h.s8.bf16 %v3367_v38  ;;  %v16920_v61 = vunpack.c.l.s8.bf16 %v3367_v38  ;;  %v3488_v49 = vld [vmem:[%s18692_s6 + $0x528] sm:$0xff]  ;;  %v4038_v38 = vld [vmem:[%s18692_s6 + $0x1658] sm:$0xff] }
 0xa2d   : > { %16899 = vmatprep.subr.bf16.mxu0 %v16898_v60  ;;  %v3941_v60 = vld [vmem:[%s18692_s6 + $0x1350] sm:$0xff]  ;;  %v16886_v32 = vunpack.c.l.s8.bf16 %v4038_v38 }
 0xa2e   : > { %16769 = vmatpush2.bf16.msra.mxu1 %v16768_v7  ;;  %v16918_v7 = vunpack.c.l.s8.bf16 %v3368_v57  ;;  %v16852_v1 = vunpack.c.h.s8.bf16 %v3941_v60 }
 0xa2f   : > { %12998 = vmatmul.mubr.f32.vlgmr.msra.gmra.mxu0 %v18964_v21  ;;  %16835 = vmatprep.subr.bf16.mxu1 %v16834_v11  ;;  %v16854_v11 = vunpack.c.l.s8.bf16 %v3942_v0 }
 0xa30   : > { %16901 = vmatpush1.bf16.msra.mxu0 %v16900_v58  ;;  %13139 = vmatprep.mubr.f32.mxu0 %v18848_v13  ;;  %v16922_v58 = vunpack.c.h.s8.bf16 %v3344_v8 }
 0xa31   : > { %v12502_v45 = vpop.f32.mrf.mxu1  ;;  %12927 = vmatmul.mubr.f32.vlgmr.msra.gmra.mxu1 %v18909_v29  ;;  %16903 = vmatprep.subr.bf16.mxu0 %v16902_v28  ;;  %v16856_v28 = vunpack.c.l.s8.bf16 %v3941_v60 }
 0xa32   : > { %v12503_v33 = vadd.f32 %v12502_v45, %v12432_v27  ;;  %16837 = vmatpush1.bf16.msra.mxu1 %v16836_v18  ;;  %13068 = vmatprep.mubr.f32.mxu1 %v19007_v53  ;;  %v3917_v18 = vld [vmem:[%s18692_s6 + $0x1290] sm:$0xff]  ;;  %v16926_v27 = vunpack.c.l.s8.bf16 %v3344_v8  ;;  %v16928_v45 = vunpack.c.l.s8.bf16 %v3343_v19  ;;  %v4014_v19 = vld [vmem:[%s18692_s6 + $0x1598] sm:$0xff] }
 0xa33   : > { %v12504_v14 = vpop.f32.mrf.mxu1  ;;  %16839 = vmatprep.subr.bf16.mxu1 %v16838_v34 }
 0xa34   : > { %v13783_v50 = vmul.f32 %v13708_v22, %v12503_v33  ;;  %v12505_v51 = vadd.f32 %v12504_v14, %v12434_v9  ;;  %16905 = vmatpush1.bf16.msra.mxu0 %v16904_v37  ;;  %v16860_v22 = vunpack.c.h.s8.bf16 %v3917_v18  ;;  %v3512_v37 = vld [vmem:[%s18692_s6 + $0x5e8] sm:$0xff]  ;;  %v16864_v9 = vunpack.c.l.s8.bf16 %v3917_v18 }
 0xa35   : > { %16907 = vmatprep.subr.bf16.mxu0 %v16906_v31  ;;  %v16930_v31 = vunpack.c.h.s8.bf16 %v3512_v37  ;;  %v16934_v14 = vunpack.c.l.s8.bf16 %v3512_v37 }
 0xa36   : > { %v13933_v54 = vadd.f32 %v13858_v25, %v13783_v50  ;;  %v13784_v55 = vmul.f32 %v13712_v46, %v12505_v51  ;;  %16841 = vmatpush1.bf16.msra.mxu1 %v16840_v3  ;;  %v4086_v25 = vld [vmem:[%s18692_s6 + $0x17d8] sm:$0xff]  ;;  %v4085_v46 = vld [vmem:[%s18692_s6 + $0x17d0] sm:$0xff]  ;;  %v16932_v3 = vunpack.c.h.s8.bf16 %v3511_v40  ;;  %v16936_v51 = vunpack.c.l.s8.bf16 %v3511_v40  ;;  %v3799_v40 = vld [vmem:[%s18692_s6 + $0xee0] sm:$0xff] }
 0xa37   : > { %16843 = vmatprep.subr.bf16.mxu1 %v16842_v48  ;;  %v16866_v33 = vunpack.c.h.s8.bf16 %v4086_v25  ;;  %v16868_v48 = vunpack.c.h.s8.bf16 %v4085_v46  ;;  %v16870_v50 = vunpack.c.l.s8.bf16 %v4086_v25  ;;  %v3608_v25 = vld [vmem:[%s18692_s6 + $0x8e8] sm:$0xff] }
 0xa38   : > { %17684 = vtanh.f32 %v13933_v54  ;;  %v13934_v62 = vadd.f32 %v13862_v35, %v13784_v55  ;;  %16909 = vmatpush1.bf16.msra.mxu0 %v16908_v42  ;;  %v4062_v35 = vld [vmem:[%s18692_s6 + $0x1718] sm:$0xff]  ;;  %v16938_v42 = vunpack.c.h.s8.bf16 %v3488_v49  ;;  %v16872_v54 = vunpack.c.l.s8.bf16 %v4085_v46  ;;  %v3607_v46 = vld [vmem:[%s18692_s6 + $0x8e0] sm:$0xff] }
 0xa39   : > { %16911 = vmatprep.subr.bf16.mxu0 %v16910_v52  ;;  %v3487_v52 = vld [vmem:[%s18692_s6 + $0x520] sm:$0xff]  ;;  %v16874_v55 = vunpack.c.h.s8.bf16 %v4062_v35  ;;  %v16878_v0 = vunpack.c.l.s8.bf16 %v4062_v35  ;;  %v3584_v35 = vld [vmem:[%s18692_s6 + $0x828] sm:$0xff] }
 0xa3a   : > { %17686 = vtanh.f32 %v13934_v62  ;;  %16845 = vmatpush1.bf16.msra.mxu1 %v16844_v2  ;;  %v4061_v2 = vld [vmem:[%s18692_s6 + $0x1710] sm:$0xff]  ;;  %v16940_v57 = vunpack.c.h.s8.bf16 %v3487_v52 }
 0xa3b   : > { %16847 = vmatprep.subr.bf16.mxu1 %v16846_v59  ;;  %v16942_v59 = vunpack.c.l.s8.bf16 %v3488_v49  ;;  %v16876_v62 = vunpack.c.h.s8.bf16 %v4061_v2  ;;  %v16880_v60 = vunpack.c.l.s8.bf16 %v4061_v2  ;;  %v3776_v49 = vld [vmem:[%s18692_s6 + $0xe28] sm:$0xff]  ;;  %v3583_v2 = vld [vmem:[%s18692_s6 + $0x820] sm:$0xff] }
 0xa3c   : > { %16913 = vmatpush1.bf16.msra.mxu0 %v16912_v63  ;;  %v3464_v63 = vld [vmem:[%s18692_s6 + $0x468] sm:$0xff] }
 0xa3d   : > { %16915 = vmatprep.subr.bf16.mxu0 %v16914_v47  ;;  %v16944_v47 = vunpack.c.l.s8.bf16 %v3487_v52  ;;  %v16950_v8 = vunpack.c.l.s8.bf16 %v3464_v63  ;;  %v3775_v52 = vld [vmem:[%s18692_s6 + $0xe20] sm:$0xff] }
 0xa3e   : > { %16849 = vmatpush1.bf16.msra.mxu1 %v16848_v26  ;;  %v16946_v26 = vunpack.c.h.s8.bf16 %v3464_v63  ;;  %v3752_v63 = vld [vmem:[%s18692_s6 + $0xd68] sm:$0xff] }
 0xa3f   : > { %16851 = vmatprep.subr.bf16.mxu1 %v16850_v6  ;;  %v3463_v6 = vld [vmem:[%s18692_s6 + $0x460] sm:$0xff] }
 0xa40   : > { %16917 = vmatpush1.bf16.msra.mxu0 %v16916_v17  ;;  %v16882_v17 = vunpack.c.h.s8.bf16 %v4038_v38  ;;  %v3560_v38 = vld [vmem:[%s18692_s6 + $0x768] sm:$0xff] }
 0xa41   : > { %16919 = vmatprep.subr.bf16.mxu0 %v16918_v7  ;;  %v4037_v7 = vld [vmem:[%s18692_s6 + $0x1650] sm:$0xff] }
 0xa42   : > { %16853 = vmatpush1.bf16.msra.mxu1 %v16852_v1  ;;  %v16948_v1 = vunpack.c.h.s8.bf16 %v3463_v6  ;;  %v16888_v18 = vunpack.c.l.s8.bf16 %v4037_v7 }
 0xa43   : > { %16855 = vmatprep.subr.bf16.mxu1 %v16854_v11  ;;  %v16884_v11 = vunpack.c.h.s8.bf16 %v4037_v7  ;;  %v3559_v7 = vld [vmem:[%s18692_s6 + $0x760] sm:$0xff] }
 0xa44   : > { %16921 = vmatpush1.bf16.msra.mxu0 %v16920_v61  ;;  %v3440_v61 = vld [vmem:[%s18692_s6 + $0x3a8] sm:$0xff] }
 0xa45   : > { %v17685_v34 = vpop.eup %17684  ;;  %16923 = vmatprep.subr.bf16.mxu0 %v16922_v58  ;;  %v16952_v58 = vunpack.c.l.s8.bf16 %v3463_v6  ;;  %v3751_v6 = vld [vmem:[%s18692_s6 + $0xd60] sm:$0xff] }
 0xa46   : > { %13981 = vst [vmem:[%s19163_s5 + $0x70] sm:$0xff] %v17685_v34  ;;  %16857 = vmatpush1.bf16.msra.mxu1 %v16856_v28  ;;  %v16954_v28 = vunpack.c.h.s8.bf16 %v3440_v61  ;;  %v4013_v34 = vld [vmem:[%s18692_s6 + $0x1590] sm:$0xff] }
 0xa47   : > { %v17687_v43 = vpop.eup %17686  ;;  %16859 = vmatprep.subr.bf16.mxu1 %v16858_v30  ;;  %v3439_v30 = vld [vmem:[%s18692_s6 + $0x3a0] sm:$0xff]  ;;  %v16892_v37 = vunpack.c.h.s8.bf16 %v4013_v34 }
 0xa48   : > { %13982 = vst [vmem:[%s19163_s5 + $0x78] sm:$0xff] %v17687_v43  ;;  %16925 = vmatpush1.bf16.msra.mxu0 %v16924_v15  ;;  %v16890_v15 = vunpack.c.h.s8.bf16 %v4014_v19  ;;  %v3800_v43 = vld [vmem:[%s18692_s6 + $0xee8] sm:$0xff] }
 0xa49   : > { %16927 = vmatprep.subr.bf16.mxu0 %v16926_v27  ;;  %v16956_v27 = vunpack.c.h.s8.bf16 %v3439_v30 }
 0xa4a   : > { %16861 = vmatpush1.bf16.msra.mxu1 %v16860_v22  ;;  %v16958_v22 = vunpack.c.l.s8.bf16 %v3440_v61  ;;  %v3728_v61 = vld [vmem:[%s18692_s6 + $0xca8] sm:$0xff] }
 0xa4b   : > { %16863 = vmatprep.subr.bf16.mxu1 %v16862_v44  ;;  %v16894_v44 = vunpack.c.l.s8.bf16 %v4014_v19  ;;  %v3536_v19 = vld [vmem:[%s18692_s6 + $0x6a8] sm:$0xff] }
 0xa4c   : > { %16929 = vmatpush1.bf16.msra.mxu0 %v16928_v45  ;;  %v16960_v45 = vunpack.c.l.s8.bf16 %v3439_v30  ;;  %v3727_v30 = vld [vmem:[%s18692_s6 + $0xca0] sm:$0xff] }
 0xa4d   : > { %16931 = vmatprep.subr.bf16.mxu0 %v16930_v31  ;;  %v17026_v31 = vunpack.c.h.s8.bf16 %v3800_v43 }
 0xa4e   : > { %16865 = vmatpush1.bf16.msra.mxu1 %v16864_v9  ;;  %v16896_v9 = vunpack.c.l.s8.bf16 %v4013_v34  ;;  %v3535_v34 = vld [vmem:[%s18692_s6 + $0x6a0] sm:$0xff] }
 0xa4f   : > { %16867 = vmatprep.subr.bf16.mxu1 %v16866_v33  ;;  %v16962_v33 = vunpack.c.h.s8.bf16 %v3608_v25 }
 0xa50   : > { %16933 = vmatpush2.bf16.msra.mxu0 %v16932_v3  ;;  %v17028_v3 = vunpack.c.h.s8.bf16 %v3799_v40 }
 0xa51   : > { %16935 = vmatprep.subr.bf16.mxu0 %v16934_v14  ;;  %v17030_v14 = vunpack.c.l.s8.bf16 %v3800_v43  ;;  %v3896_v43 = vld [vmem:[%s18692_s6 + $0x11e8] sm:$0xff] }
 0xa52   : > { %16869 = vmatpush2.bf16.msra.mxu1 %v16868_v48  ;;  %v16964_v48 = vunpack.c.h.s8.bf16 %v3607_v46 }
 0xa53   : > { %16871 = vmatprep.subr.bf16.mxu1 %v16870_v50  ;;  %v16966_v50 = vunpack.c.l.s8.bf16 %v3608_v25  ;;  %v3704_v25 = vld [vmem:[%s18692_s6 + $0xbe8] sm:$0xff] }
 0xa54   : > { %16937 = vmatpush2.bf16.msra.mxu0 %v16936_v51  ;;  %v17032_v51 = vunpack.c.l.s8.bf16 %v3799_v40  ;;  %v3895_v40 = vld [vmem:[%s18692_s6 + $0x11e0] sm:$0xff] }
 0xa55   : > { %16939 = vmatprep.subr.bf16.mxu0 %v16938_v42  ;;  %v17034_v42 = vunpack.c.h.s8.bf16 %v3776_v49 }
 0xa56   : > { %16873 = vmatpush2.bf16.msra.mxu1 %v16872_v54  ;;  %v16968_v54 = vunpack.c.l.s8.bf16 %v3607_v46  ;;  %v3703_v46 = vld [vmem:[%s18692_s6 + $0xbe0] sm:$0xff] }
 0xa57   : > { %16875 = vmatprep.subr.bf16.mxu1 %v16874_v55  ;;  %v16970_v55 = vunpack.c.h.s8.bf16 %v3584_v35 }
 0xa58   : > { %16941 = vmatpush2.bf16.msra.mxu0 %v16940_v57  ;;  %v17036_v57 = vunpack.c.h.s8.bf16 %v3775_v52 }
 0xa59   : > { %16943 = vmatprep.subr.bf16.mxu0 %v16942_v59  ;;  %v17038_v59 = vunpack.c.l.s8.bf16 %v3776_v49  ;;  %v3872_v49 = vld [vmem:[%s18692_s6 + $0x1128] sm:$0xff] }
 0xa5a   : > { %16877 = vmatpush2.bf16.msra.mxu1 %v16876_v62  ;;  %v16972_v62 = vunpack.c.h.s8.bf16 %v3583_v2 }
 0xa5b   : > { %16879 = vmatprep.subr.bf16.mxu1 %v16878_v0  ;;  %v16974_v0 = vunpack.c.l.s8.bf16 %v3584_v35  ;;  %v3680_v35 = vld [vmem:[%s18692_s6 + $0xb28] sm:$0xff] }
 0xa5c   : > { %16945 = vmatpush2.bf16.msra.mxu0 %v16944_v47  ;;  %v17040_v47 = vunpack.c.l.s8.bf16 %v3775_v52  ;;  %v3871_v52 = vld [vmem:[%s18692_s6 + $0x1120] sm:$0xff] }
 0xa5d   : > { %16947 = vmatprep.subr.bf16.mxu0 %v16946_v26  ;;  %v17042_v26 = vunpack.c.h.s8.bf16 %v3752_v63 }
 0xa5e   : > { %16881 = vmatpush2.bf16.msra.mxu1 %v16880_v60  ;;  %v16976_v60 = vunpack.c.l.s8.bf16 %v3583_v2  ;;  %v3679_v2 = vld [vmem:[%s18692_s6 + $0xb20] sm:$0xff] }
 0xa5f   : > { %16883 = vmatprep.subr.bf16.mxu1 %v16882_v17  ;;  %v16978_v17 = vunpack.c.h.s8.bf16 %v3560_v38 }
 0xa60   : > { %16949 = vmatpush2.bf16.msra.mxu0 %v16948_v1  ;;  %v17044_v1 = vunpack.c.h.s8.bf16 %v3751_v6 }
 0xa61   : > { %16951 = vmatprep.subr.bf16.mxu0 %v16950_v8  ;;  %v17046_v8 = vunpack.c.l.s8.bf16 %v3752_v63  ;;  %v3848_v63 = vld [vmem:[%s18692_s6 + $0x1068] sm:$0xff] }
 0xa62   : > { %16885 = vmatpush2.bf16.msra.mxu1 %v16884_v11  ;;  %v16980_v11 = vunpack.c.h.s8.bf16 %v3559_v7 }
 0xa63   : > { %16887 = vmatprep.subr.bf16.mxu1 %v16886_v32  ;;  %v16982_v32 = vunpack.c.l.s8.bf16 %v3560_v38  ;;  %v3656_v38 = vld [vmem:[%s18692_s6 + $0xa68] sm:$0xff] }
 0xa64   : > { %16953 = vmatpush2.bf16.msra.mxu0 %v16952_v58  ;;  %v17048_v58 = vunpack.c.l.s8.bf16 %v3751_v6  ;;  %v3847_v6 = vld [vmem:[%s18692_s6 + $0x1060] sm:$0xff] }
 0xa65   : > { %16955 = vmatprep.subr.bf16.mxu0 %v16954_v28  ;;  %v17050_v28 = vunpack.c.h.s8.bf16 %v3728_v61 }
 0xa66   : > { %16889 = vmatpush2.bf16.msra.mxu1 %v16888_v18  ;;  %v16984_v18 = vunpack.c.l.s8.bf16 %v3559_v7  ;;  %v3655_v7 = vld [vmem:[%s18692_s6 + $0xa60] sm:$0xff] }
 0xa67   : > { %16891 = vmatprep.subr.bf16.mxu1 %v16890_v15  ;;  %v16986_v15 = vunpack.c.h.s8.bf16 %v3536_v19 }
 0xa68   : > { %16957 = vmatpush2.bf16.msra.mxu0 %v16956_v27  ;;  %v17052_v27 = vunpack.c.h.s8.bf16 %v3727_v30 }
 0xa69   : > { %16959 = vmatprep.subr.bf16.mxu0 %v16958_v22  ;;  %v17054_v22 = vunpack.c.l.s8.bf16 %v3728_v61  ;;  %v3824_v61 = vld [vmem:[%s18692_s6 + $0xfa8] sm:$0xff] }
 0xa6a   : > { %16893 = vmatpush2.bf16.msra.mxu1 %v16892_v37  ;;  %v16988_v37 = vunpack.c.h.s8.bf16 %v3535_v34 }
 0xa6b   : > { %16895 = vmatprep.subr.bf16.mxu1 %v16894_v44  ;;  %v16990_v44 = vunpack.c.l.s8.bf16 %v3536_v19  ;;  %v3632_v19 = vld [vmem:[%s18692_s6 + $0x9a8] sm:$0xff] }
 0xa6c   : > { %16961 = vmatpush2.bf16.msra.mxu0 %v16960_v45  ;;  %v17056_v45 = vunpack.c.l.s8.bf16 %v3727_v30  ;;  %v3823_v30 = vld [vmem:[%s18692_s6 + $0xfa0] sm:$0xff] }
 0xa6d   : > { %17027 = vmatprep.subr.bf16.mxu0 %v17026_v31  ;;  %v17058_v31 = vunpack.c.h.s8.bf16 %v3896_v43 }
 0xa6e   : > { %16897 = vmatpush2.bf16.msra.mxu1 %v16896_v9  ;;  %v16992_v9 = vunpack.c.l.s8.bf16 %v3535_v34  ;;  %v3631_v34 = vld [vmem:[%s18692_s6 + $0x9a0] sm:$0xff] }
 0xa6f   : > { %13140 = vmatmul.mubr.f32.vlgmr.msra.gmra.mxu0 %v18861_v36  ;;  %16963 = vmatprep.subr.bf16.mxu1 %v16962_v33  ;;  %v16994_v33 = vunpack.c.h.s8.bf16 %v3704_v25 }
 0xa70   : > { %17029 = vmatpush1.bf16.msra.mxu0 %v17028_v3  ;;  %13281 = vmatprep.mubr.f32.mxu0 %v18958_v39  ;;  %v17060_v3 = vunpack.c.h.s8.bf16 %v3895_v40 }
 0xa71   : > { %13069 = vmatmul.mubr.f32.vlgmr.msra.gmra.mxu1 %v19011_v56  ;;  %17031 = vmatprep.subr.bf16.mxu0 %v17030_v14  ;;  %v17062_v14 = vunpack.c.l.s8.bf16 %v3896_v43  ;;  %v3418_v43 = vld [vmem:[%s18692_s6 + $0x2f8] sm:$0xff] }
 0xa72   : > { %16965 = vmatpush1.bf16.msra.mxu1 %v16964_v48  ;;  %13210 = vmatprep.mubr.f32.mxu1 %v18903_v23  ;;  %v16996_v48 = vunpack.c.h.s8.bf16 %v3703_v46 }
 0xa73   : > { %16967 = vmatprep.subr.bf16.mxu1 %v16966_v50  ;;  %v16998_v50 = vunpack.c.l.s8.bf16 %v3704_v25  ;;  %v17022_v25 = vunpack.c.l.s8.bf16 %v3632_v19 }
 0xa74   : > { %17033 = vmatpush1.bf16.msra.mxu0 %v17032_v51  ;;  %v17064_v51 = vunpack.c.l.s8.bf16 %v3895_v40  ;;  %v3992_v40 = vld [vmem:[%s18692_s6 + $0x14e8] sm:$0xff] }
 0xa75   : > { %17035 = vmatprep.subr.bf16.mxu0 %v17034_v42  ;;  %v17066_v42 = vunpack.c.h.s8.bf16 %v3872_v49 }
 0xa76   : > { %16969 = vmatpush1.bf16.msra.mxu1 %v16968_v54  ;;  %v17000_v54 = vunpack.c.l.s8.bf16 %v3703_v46  ;;  %v17024_v46 = vunpack.c.l.s8.bf16 %v3631_v34 }
 0xa77   : > { %16971 = vmatprep.subr.bf16.mxu1 %v16970_v55  ;;  %v17002_v55 = vunpack.c.h.s8.bf16 %v3680_v35 }
 0xa78   : > { %17037 = vmatpush1.bf16.msra.mxu0 %v17036_v57  ;;  %v17068_v57 = vunpack.c.h.s8.bf16 %v3871_v52 }
 0xa79   : > { %17039 = vmatprep.subr.bf16.mxu0 %v17038_v59  ;;  %v17070_v59 = vunpack.c.l.s8.bf16 %v3872_v49  ;;  %v3991_v49 = vld [vmem:[%s18692_s6 + $0x14e0] sm:$0xff] }
 0xa7a   : > { %16973 = vmatpush1.bf16.msra.mxu1 %v16972_v62  ;;  %v17004_v62 = vunpack.c.h.s8.bf16 %v3679_v2 }
 0xa7b   : > { %16975 = vmatprep.subr.bf16.mxu1 %v16974_v0  ;;  %v17006_v0 = vunpack.c.l.s8.bf16 %v3680_v35 }
 0xa7c   : > { %17041 = vmatpush1.bf16.msra.mxu0 %v17040_v47  ;;  %v17072_v47 = vunpack.c.l.s8.bf16 %v3871_v52  ;;  %v17158_v52 = vunpack.c.l.s8.bf16 %v3418_v43 }
 0xa7d   : > { %17043 = vmatprep.subr.bf16.mxu0 %v17042_v26  ;;  %v17074_v26 = vunpack.c.h.s8.bf16 %v3848_v63 }
 0xa7e   : > { %16977 = vmatpush1.bf16.msra.mxu1 %v16976_v60  ;;  %v17008_v60 = vunpack.c.l.s8.bf16 %v3679_v2  ;;  %v17092_v2 = vunpack.c.h.s8.bf16 %v3991_v49 }
 0xa7f   : > { %16979 = vmatprep.subr.bf16.mxu1 %v16978_v17  ;;  %v17010_v17 = vunpack.c.h.s8.bf16 %v3656_v38 }
 0xa80   : > { %17045 = vmatpush1.bf16.msra.mxu0 %v17044_v1  ;;  %v17076_v1 = vunpack.c.h.s8.bf16 %v3847_v6 }
 0xa81   : > { %17047 = vmatprep.subr.bf16.mxu0 %v17046_v8  ;;  %v17078_v8 = vunpack.c.l.s8.bf16 %v3848_v63 }
 0xa82   : > { %16981 = vmatpush1.bf16.msra.mxu1 %v16980_v11  ;;  %v17012_v11 = vunpack.c.h.s8.bf16 %v3655_v7 }
 0xa83   : > { %16983 = vmatprep.subr.bf16.mxu1 %v16982_v32  ;;  %v17014_v32 = vunpack.c.l.s8.bf16 %v3656_v38 }
 0xa84   : > { %17049 = vmatpush1.bf16.msra.mxu0 %v17048_v58  ;;  %v17080_v58 = vunpack.c.l.s8.bf16 %v3847_v6 }
 0xa85   : > { %17051 = vmatprep.subr.bf16.mxu0 %v17050_v28  ;;  %v17082_v28 = vunpack.c.h.s8.bf16 %v3824_v61 }
 0xa86   : > { %16985 = vmatpush1.bf16.msra.mxu1 %v16984_v18  ;;  %v17016_v18 = vunpack.c.l.s8.bf16 %v3655_v7 }
 0xa87   : > { %16987 = vmatprep.subr.bf16.mxu1 %v16986_v15  ;;  %v17018_v15 = vunpack.c.h.s8.bf16 %v3632_v19 }
 0xa88   : > { %17053 = vmatpush1.bf16.msra.mxu0 %v17052_v27  ;;  %v17084_v27 = vunpack.c.h.s8.bf16 %v3823_v30 }
 0xa89   : > { %17055 = vmatprep.subr.bf16.mxu0 %v17054_v22  ;;  %v17086_v22 = vunpack.c.l.s8.bf16 %v3824_v61 }
 0xa8a   : > { %16989 = vmatpush1.bf16.msra.mxu1 %v16988_v37  ;;  %v17020_v37 = vunpack.c.h.s8.bf16 %v3631_v34 }
 0xa8b   : > { %16991 = vmatprep.subr.bf16.mxu1 %v16990_v44  ;;  %v12573_v44 = vpop.f32.mrf.mxu0 }
 0xa8c   : > { %17057 = vmatpush1.bf16.msra.mxu0 %v17056_v45  ;;  %v12644_v45 = vpop.f32.mrf.mxu1 }
 0xa8d   : > { %17059 = vmatprep.subr.bf16.mxu0 %v17058_v31  ;;  %v17088_v31 = vunpack.c.l.s8.bf16 %v3823_v30 }
 0xa8e   : > { %16993 = vmatpush1.bf16.msra.mxu1 %v16992_v9  ;;  %v17154_v9 = vunpack.c.h.s8.bf16 %v3418_v43 }
 0xa8f   : > { %16995 = vmatprep.subr.bf16.mxu1 %v16994_v33  ;;  %v3417_v33 = vld [vmem:[%s18692_s6 + $0x2f0] sm:$0xff] }
 0xa90   : > { %17061 = vmatpush2.bf16.msra.mxu0 %v17060_v3  ;;  %v12575_v3 = vpop.f32.mrf.mxu0 }
 0xa91   : > { %17063 = vmatprep.subr.bf16.mxu0 %v17062_v14  ;;  %v12646_v14 = vpop.f32.mrf.mxu1 }
 0xa92   : > { %16997 = vmatpush2.bf16.msra.mxu1 %v16996_v48  ;;  %v17090_v48 = vunpack.c.h.s8.bf16 %v3992_v40  ;;  %v12715_v35 = vpop.f32.mrf.mxu0 }
 0xa93   : > { %16999 = vmatprep.subr.bf16.mxu1 %v16998_v50  ;;  %v12645_v50 = vadd.f32 %v12644_v45, %v12573_v44  ;;  %v3944_v44 = vld [vmem:[%s18692_s6 + $0x1368] sm:$0xff]  ;;  %v3369_v45 = vld [vmem:[%s18692_s6 + $0x170] sm:$0xff] }
 0xa94   : > { %17065 = vmatpush2.bf16.msra.mxu0 %v17064_v51  ;;  %v17156_v51 = vunpack.c.h.s8.bf16 %v3417_v33  ;;  %v12717_v38 = vpop.f32.mrf.mxu0 }
 0xa95   : > { %17067 = vmatprep.subr.bf16.mxu0 %v17066_v42  ;;  %v19817_v42 = vld [vmem:[%s18698_s30 + $0x10] sm:$0xff] }
 0xa96   : > { %17001 = vmatpush2.bf16.msra.mxu1 %v17000_v54  ;;  %v12647_v54 = vadd.f32 %v12646_v14, %v12575_v3  ;;  %v13716_v63 = vrot.slane %v19817_v42, %v18725_v10  ;;  %v3346_v3 = vld [vmem:[%s18692_s6 + $0xb8] sm:$0xff]  ;;  %v17110_v14 = vunpack.c.l.s8.bf16 %v3944_v44 }
 0xa97   : > { %17003 = vmatprep.subr.bf16.mxu1 %v17002_v55  ;;  %v19820_v55 = vld [vmem:[%s18700_s16 + $0x10] sm:$0xff] }
 0xa98   : > { %17069 = vmatpush2.bf16.msra.mxu0 %v17068_v57  ;;  %v3394_v57 = vld [vmem:[%s18692_s6 + $0x238] sm:$0xff]  ;;  %v13866_v6 = vrot.slane %v19820_v55, %v18725_v10  ;;  %v12718_v7 = vadd.f32 %v12717_v38, %v12647_v54  ;;  %v13870_v19 = vrot.slane %v19820_v55, %v18728_v12  ;;  %v3919_v54 = vld [vmem:[%s18692_s6 + $0x12a0] sm:$0xff] }
 0xa99   : > { %17071 = vmatprep.subr.bf16.mxu0 %v17070_v59  ;;  %v17094_v59 = vunpack.c.l.s8.bf16 %v3992_v40  ;;  %v17166_v30 = vunpack.c.l.s8.bf16 %v3394_v57  ;;  %v3943_v40 = vld [vmem:[%s18692_s6 + $0x1360] sm:$0xff] }
 0xa9a   : > { %17005 = vmatpush2.bf16.msra.mxu1 %v17004_v62  ;;  %v12716_v62 = vadd.f32 %v12715_v35, %v12645_v50  ;;  %v17178_v50 = vunpack.c.h.s8.bf16 %v3346_v3  ;;  %v17112_v35 = vunpack.c.l.s8.bf16 %v3943_v40 }
 0xa9b   : > { %17007 = vmatprep.subr.bf16.mxu1 %v17006_v0  ;;  %v17160_v0 = vunpack.c.l.s8.bf16 %v3417_v33 }
 0xa9c   : > { %17073 = vmatpush2.bf16.msra.mxu0 %v17072_v47  ;;  %v3968_v47 = vld [vmem:[%s18692_s6 + $0x1428] sm:$0xff] }
 0xa9d   : > { %17075 = vmatprep.subr.bf16.mxu0 %v17074_v26  ;;  %v17098_v61 = vunpack.c.h.s8.bf16 %v3968_v47 }
 0xa9e   : > { %17009 = vmatpush2.bf16.msra.mxu1 %v17008_v60  ;;  %v17162_v60 = vunpack.c.h.s8.bf16 %v3394_v57 }
 0xa9f   : > { %17011 = vmatprep.subr.bf16.mxu1 %v17010_v17  ;;  %v3393_v17 = vld [vmem:[%s18692_s6 + $0x230] sm:$0xff] }
 0xaa0   : > { %17077 = vmatpush2.bf16.msra.mxu0 %v17076_v1  ;;  %v17168_v43 = vunpack.c.l.s8.bf16 %v3393_v17 }
 0xaa1   : > { %17079 = vmatprep.subr.bf16.mxu0 %v17078_v8  ;;  %v17096_v8 = vunpack.c.l.s8.bf16 %v3991_v49  ;;  %v3920_v49 = vld [vmem:[%s18692_s6 + $0x12a8] sm:$0xff] }
 0xaa2   : > { %17013 = vmatpush2.bf16.msra.mxu1 %v17012_v11 }
 0xaa3   : > { %17015 = vmatprep.subr.bf16.mxu1 %v17014_v32  ;;  %v3967_v32 = vld [vmem:[%s18692_s6 + $0x1420] sm:$0xff] }
 0xaa4   : > { %17081 = vmatpush2.bf16.msra.mxu0 %v17080_v58  ;;  %v17100_v34 = vunpack.c.h.s8.bf16 %v3967_v32 }
 0xaa5   : > { %17083 = vmatprep.subr.bf16.mxu0 %v17082_v28  ;;  %v17164_v28 = vunpack.c.h.s8.bf16 %v3393_v17  ;;  %v17120_v17 = vunpack.c.l.s8.bf16 %v3919_v54 }
 0xaa6   : > { %17017 = vmatpush2.bf16.msra.mxu1 %v17016_v18 }
 0xaa7   : > { %17019 = vmatprep.subr.bf16.mxu1 %v17018_v15 }
 0xaa8   : > { %17085 = vmatpush2.bf16.msra.mxu0 %v17084_v27  ;;  %v3370_v27 = vld [vmem:[%s18692_s6 + $0x178] sm:$0xff] }
 0xaa9   : > { %17087 = vmatprep.subr.bf16.mxu0 %v17086_v22  ;;  %v17102_v22 = vunpack.c.l.s8.bf16 %v3968_v47  ;;  %v17174_v33 = vunpack.c.l.s8.bf16 %v3370_v27  ;;  %v17118_v47 = vunpack.c.l.s8.bf16 %v3920_v49 }
 0xaaa   : > { %17021 = vmatpush2.bf16.msra.mxu1 %v17020_v37 }
 0xaab   : > { %17023 = vmatprep.subr.bf16.mxu1 %v17022_v25  ;;  %v17104_v25 = vunpack.c.l.s8.bf16 %v3967_v32 }
 0xaac   : > { %17089 = vmatpush2.bf16.msra.mxu0 %v17088_v31  ;;  %v17106_v31 = vunpack.c.h.s8.bf16 %v3944_v44 }
 0xaad   : > { %17155 = vmatprep.subr.bf16.mxu0 %v17154_v9  ;;  %v17172_v9 = vunpack.c.h.s8.bf16 %v3369_v45 }
 0xaae   : > { %17025 = vmatpush2.bf16.msra.mxu1 %v17024_v46  ;;  %v17108_v46 = vunpack.c.h.s8.bf16 %v3943_v40 }
 0xaaf   : > { %13282 = vmatmul.mubr.f32.vlgmr.msra.gmra.mxu0 %v18964_v21  ;;  %17091 = vmatprep.subr.bf16.mxu1 %v17090_v48  ;;  %v17176_v48 = vunpack.c.l.s8.bf16 %v3369_v45 }
 0xab0   : > { %17157 = vmatpush1.bf16.msra.mxu0 %v17156_v51  ;;  %13423 = vmatprep.mubr.f32.mxu0 %v18848_v13  ;;  %v13720_v13 = vrot.slane %v19817_v42, %v18728_v12  ;;  %v17170_v12 = vunpack.c.h.s8.bf16 %v3370_v27  ;;  %v3345_v51 = vld [vmem:[%s18692_s6 + $0xb0] sm:$0xff] }
 0xab1   : > { %v12786_v26 = vpop.f32.mrf.mxu1  ;;  %13211 = vmatmul.mubr.f32.vlgmr.msra.gmra.mxu1 %v18909_v29  ;;  %17159 = vmatprep.subr.bf16.mxu0 %v17158_v52  ;;  %v17114_v52 = vunpack.c.h.s8.bf16 %v3920_v49  ;;  %v17184_v38 = vunpack.c.l.s8.bf16 %v3345_v51 }
 0xab2   : > { %v12787_v1 = vadd.f32 %v12786_v26, %v12716_v62  ;;  %17093 = vmatpush1.bf16.msra.mxu1 %v17092_v2  ;;  %13352 = vmatprep.mubr.f32.mxu1 %v19007_v53  ;;  %v17180_v2 = vunpack.c.h.s8.bf16 %v3345_v51  ;;  %v17116_v62 = vunpack.c.h.s8.bf16 %v3919_v54  ;;  %v4088_v26 = vld [vmem:[%s18692_s6 + $0x17e8] sm:$0xff] }
 0xab3   : > { %v12788_v11 = vpop.f32.mrf.mxu1  ;;  %17095 = vmatprep.subr.bf16.mxu1 %v17094_v59  ;;  %v17182_v59 = vunpack.c.l.s8.bf16 %v3346_v3  ;;  %v17126_v32 = vunpack.c.l.s8.bf16 %v4088_v26 }
 0xab4   : > { %v13785_v10 = vmul.f32 %v13716_v63, %v12787_v1  ;;  %v12789_v58 = vadd.f32 %v12788_v11, %v12718_v7  ;;  %17161 = vmatpush1.bf16.msra.mxu0 %v17160_v0  ;;  %v3514_v63 = vld [vmem:[%s18692_s6 + $0x5f8] sm:$0xff]  ;;  %v17122_v7 = vunpack.c.h.s8.bf16 %v4088_v26  ;;  %v4087_v1 = vld [vmem:[%s18692_s6 + $0x17e0] sm:$0xff] }
 0xab5   : > { %17163 = vmatprep.subr.bf16.mxu0 %v17162_v60  ;;  %v3513_v60 = vld [vmem:[%s18692_s6 + $0x5f0] sm:$0xff]  ;;  %v17124_v11 = vunpack.c.h.s8.bf16 %v4087_v1 }
 0xab6   : > { %v13935_v18 = vadd.f32 %v13866_v6, %v13785_v10  ;;  %v13786_v15 = vmul.f32 %v13720_v13, %v12789_v58  ;;  %17097 = vmatpush1.bf16.msra.mxu1 %v17096_v8  ;;  %v17186_v6 = vunpack.c.h.s8.bf16 %v3514_v63  ;;  %v17188_v13 = vunpack.c.h.s8.bf16 %v3513_v60  ;;  %v4064_v58 = vld [vmem:[%s18692_s6 + $0x1728] sm:$0xff] }
 0xab7   : > { %17099 = vmatprep.subr.bf16.mxu1 %v17098_v61  ;;  %v17190_v8 = vunpack.c.l.s8.bf16 %v3514_v63  ;;  %v3490_v61 = vld [vmem:[%s18692_s6 + $0x538] sm:$0xff]  ;;  %v17192_v10 = vunpack.c.l.s8.bf16 %v3513_v60 }
 0xab8   : > { %17688 = vtanh.f32 %v13935_v18  ;;  %v13936_v37 = vadd.f32 %v13870_v19, %v13786_v15  ;;  %17165 = vmatpush1.bf16.msra.mxu0 %v17164_v28  ;;  %v17194_v19 = vunpack.c.h.s8.bf16 %v3490_v61  ;;  %v3489_v28 = vld [vmem:[%s18692_s6 + $0x530] sm:$0xff]  ;;  %v17130_v18 = vunpack.c.h.s8.bf16 %v4064_v58  ;;  %v4063_v15 = vld [vmem:[%s18692_s6 + $0x1720] sm:$0xff]  ;;  %v3802_v63 = vld [vmem:[%s18692_s6 + $0xef8] sm:$0xff] }
 0xab9   : > { %17167 = vmatprep.subr.bf16.mxu0 %v17166_v30  ;;  %v17128_v30 = vunpack.c.l.s8.bf16 %v4087_v1  ;;  %v17198_v27 = vunpack.c.l.s8.bf16 %v3490_v61  ;;  %v17200_v44 = vunpack.c.l.s8.bf16 %v3489_v28  ;;  %v17282_v26 = vunpack.c.h.s8.bf16 %v3802_v63 }
 0xaba   : > { %17690 = vtanh.f32 %v13936_v37  ;;  %17101 = vmatpush1.bf16.msra.mxu1 %v17100_v34  ;;  %v17196_v34 = vunpack.c.h.s8.bf16 %v3489_v28  ;;  %v3466_v37 = vld [vmem:[%s18692_s6 + $0x478] sm:$0xff] }
 0xabb   : > { %17103 = vmatprep.subr.bf16.mxu1 %v17102_v22  ;;  %v17132_v22 = vunpack.c.h.s8.bf16 %v4063_v15  ;;  %v17202_v45 = vunpack.c.h.s8.bf16 %v3466_v37 }
 0xabc   : > { %17169 = vmatpush1.bf16.msra.mxu0 %v17168_v43  ;;  %v17134_v43 = vunpack.c.l.s8.bf16 %v4064_v58 }
 0xabd   : > { %17171 = vmatprep.subr.bf16.mxu0 %v17170_v12  ;;  %v4040_v12 = vld [vmem:[%s18692_s6 + $0x1668] sm:$0xff] }
 0xabe   : > { %17105 = vmatpush1.bf16.msra.mxu1 %v17104_v25  ;;  %v3465_v25 = vld [vmem:[%s18692_s6 + $0x470] sm:$0xff]  ;;  %v17138_v40 = vunpack.c.h.s8.bf16 %v4040_v12 }
 0xabf   : > { %17107 = vmatprep.subr.bf16.mxu1 %v17106_v31  ;;  %v17136_v31 = vunpack.c.l.s8.bf16 %v4063_v15  ;;  %v17208_v49 = vunpack.c.l.s8.bf16 %v3465_v25 }
 0xac0   : > { %17173 = vmatpush1.bf16.msra.mxu0 %v17172_v9  ;;  %v4039_v9 = vld [vmem:[%s18692_s6 + $0x1660] sm:$0xff] }
 0xac1   : > { %17175 = vmatprep.subr.bf16.mxu0 %v17174_v33  ;;  %v17204_v33 = vunpack.c.h.s8.bf16 %v3465_v25  ;;  %v17140_v3 = vunpack.c.h.s8.bf16 %v4039_v9 }
 0xac2   : > { %17109 = vmatpush1.bf16.msra.mxu1 %v17108_v46  ;;  %v17206_v46 = vunpack.c.l.s8.bf16 %v3466_v37 }
 0xac3   : > { %17111 = vmatprep.subr.bf16.mxu1 %v17110_v14  ;;  %v3442_v14 = vld [vmem:[%s18692_s6 + $0x3b8] sm:$0xff] }
 0xac4   : > { %17177 = vmatpush1.bf16.msra.mxu0 %v17176_v48  ;;  %v17142_v48 = vunpack.c.l.s8.bf16 %v4040_v12  ;;  %v17210_v51 = vunpack.c.h.s8.bf16 %v3442_v14 }
 0xac5   : > { %v17689_v57 = vpop.eup %17688  ;;  %17179 = vmatprep.subr.bf16.mxu0 %v17178_v50  ;;  %v4016_v50 = vld [vmem:[%s18692_s6 + $0x15a8] sm:$0xff] }
 0xac6   : > { %13983 = vst [vmem:[%s19163_s5 + $0x80] sm:$0xff] %v17689_v57  ;;  %17113 = vmatpush1.bf16.msra.mxu1 %v17112_v35  ;;  %v3441_v35 = vld [vmem:[%s18692_s6 + $0x3b0] sm:$0xff]  ;;  %v17146_v54 = vunpack.c.h.s8.bf16 %v4016_v50 }
 0xac7   : > { %v17691_v0 = vpop.eup %17690  ;;  %17115 = vmatprep.subr.bf16.mxu1 %v17114_v52  ;;  %v17144_v52 = vunpack.c.l.s8.bf16 %v4039_v9  ;;  %v17212_v57 = vunpack.c.h.s8.bf16 %v3441_v35  ;;  %v3730_v9 = vld [vmem:[%s18692_s6 + $0xcb8] sm:$0xff] }
 0xac8   : > { %13984 = vst [vmem:[%s19163_s5 + $0x88] sm:$0xff] %v17691_v0  ;;  %17181 = vmatpush1.bf16.msra.mxu0 %v17180_v2  ;;  %v4015_v2 = vld [vmem:[%s18692_s6 + $0x15a0] sm:$0xff]  ;;  %v17150_v0 = vunpack.c.l.s8.bf16 %v4016_v50 }
 0xac9   : > { %17183 = vmatprep.subr.bf16.mxu0 %v17182_v59  ;;  %v17214_v59 = vunpack.c.l.s8.bf16 %v3442_v14  ;;  %v17152_v60 = vunpack.c.l.s8.bf16 %v4015_v2  ;;  %v17306_v14 = vunpack.c.h.s8.bf16 %v3730_v9 }
 0xaca   : > { %17117 = vmatpush1.bf16.msra.mxu1 %v17116_v62  ;;  %v17148_v62 = vunpack.c.h.s8.bf16 %v4015_v2  ;;  %v3898_v2 = vld [vmem:[%s18692_s6 + $0x11f8] sm:$0xff] }
 0xacb   : > { %17119 = vmatprep.subr.bf16.mxu1 %v17118_v47  ;;  %v17216_v47 = vunpack.c.l.s8.bf16 %v3441_v35 }
 0xacc   : > { %17185 = vmatpush1.bf16.msra.mxu0 %v17184_v38  ;;  %v3610_v38 = vld [vmem:[%s18692_s6 + $0x8f8] sm:$0xff] }
 0xacd   : > { %17187 = vmatprep.subr.bf16.mxu0 %v17186_v6  ;;  %v3801_v6 = vld [vmem:[%s18692_s6 + $0xef0] sm:$0xff]  ;;  %v17222_v61 = vunpack.c.l.s8.bf16 %v3610_v38 }
 0xace   : > { %17121 = vmatpush1.bf16.msra.mxu1 %v17120_v17  ;;  %v17218_v17 = vunpack.c.h.s8.bf16 %v3610_v38  ;;  %v17284_v1 = vunpack.c.h.s8.bf16 %v3801_v6 }
 0xacf   : > { %17123 = vmatprep.subr.bf16.mxu1 %v17122_v7  ;;  %v3609_v7 = vld [vmem:[%s18692_s6 + $0x8f0] sm:$0xff] }
 0xad0   : > { %17189 = vmatpush2.bf16.msra.mxu0 %v17188_v13  ;;  %v17286_v13 = vunpack.c.l.s8.bf16 %v3802_v63  ;;  %v17224_v28 = vunpack.c.l.s8.bf16 %v3609_v7  ;;  %v17314_v63 = vunpack.c.h.s8.bf16 %v3898_v2 }
 0xad1   : > { %17191 = vmatprep.subr.bf16.mxu0 %v17190_v8  ;;  %v17220_v8 = vunpack.c.h.s8.bf16 %v3609_v7  ;;  %v3874_v7 = vld [vmem:[%s18692_s6 + $0x1138] sm:$0xff] }
 0xad2   : > { %17125 = vmatpush2.bf16.msra.mxu1 %v17124_v11  ;;  %v3778_v11 = vld [vmem:[%s18692_s6 + $0xe38] sm:$0xff] }
 0xad3   : > { %17127 = vmatprep.subr.bf16.mxu1 %v17126_v32  ;;  %v17288_v32 = vunpack.c.l.s8.bf16 %v3801_v6  ;;  %v17290_v58 = vunpack.c.h.s8.bf16 %v3778_v11 }
 0xad4   : > { %17193 = vmatpush2.bf16.msra.mxu0 %v17192_v10  ;;  %v3586_v10 = vld [vmem:[%s18692_s6 + $0x838] sm:$0xff] }
 0xad5   : > { %17195 = vmatprep.subr.bf16.mxu0 %v17194_v19  ;;  %v3777_v19 = vld [vmem:[%s18692_s6 + $0xe30] sm:$0xff] }
 0xad6   : > { %17129 = vmatpush2.bf16.msra.mxu1 %v17128_v30  ;;  %v3585_v30 = vld [vmem:[%s18692_s6 + $0x830] sm:$0xff] }
 0xad7   : > { %17131 = vmatprep.subr.bf16.mxu1 %v17130_v18  ;;  %v17292_v18 = vunpack.c.h.s8.bf16 %v3777_v19  ;;  %v17228_v15 = vunpack.c.h.s8.bf16 %v3585_v30 }
 0xad8   : > { %17197 = vmatpush2.bf16.msra.mxu0 %v17196_v34  ;;  %v3754_v34 = vld [vmem:[%s18692_s6 + $0xd78] sm:$0xff] }
 0xad9   : > { %17199 = vmatprep.subr.bf16.mxu0 %v17198_v27  ;;  %v17230_v27 = vunpack.c.l.s8.bf16 %v3586_v10  ;;  %v17298_v37 = vunpack.c.h.s8.bf16 %v3754_v34 }
 0xada   : > { %17133 = vmatpush2.bf16.msra.mxu1 %v17132_v22  ;;  %v17296_v22 = vunpack.c.l.s8.bf16 %v3777_v19 }
 0xadb   : > { %17135 = vmatprep.subr.bf16.mxu1 %v17134_v43  ;;  %v3753_v43 = vld [vmem:[%s18692_s6 + $0xd70] sm:$0xff] }
 0xadc   : > { %17201 = vmatpush2.bf16.msra.mxu0 %v17200_v44  ;;  %v17232_v44 = vunpack.c.l.s8.bf16 %v3585_v30  ;;  %v17300_v25 = vunpack.c.h.s8.bf16 %v3753_v43  ;;  %v3850_v30 = vld [vmem:[%s18692_s6 + $0x1078] sm:$0xff] }
 0xadd   : > { %17203 = vmatprep.subr.bf16.mxu0 %v17202_v45  ;;  %v3561_v45 = vld [vmem:[%s18692_s6 + $0x770] sm:$0xff] }
 0xade   : > { %17137 = vmatpush2.bf16.msra.mxu1 %v17136_v31  ;;  %v17302_v31 = vunpack.c.l.s8.bf16 %v3754_v34  ;;  %v17330_v34 = vunpack.c.h.s8.bf16 %v3850_v30 }
 0xadf   : > { %17139 = vmatprep.subr.bf16.mxu1 %v17138_v40  ;;  %v17236_v40 = vunpack.c.h.s8.bf16 %v3561_v45 }
 0xae0   : > { %17205 = vmatpush2.bf16.msra.mxu0 %v17204_v33 }
 0xae1   : > { %17207 = vmatprep.subr.bf16.mxu0 %v17206_v46  ;;  %v17304_v46 = vunpack.c.l.s8.bf16 %v3753_v43 }
 0xae2   : > { %17141 = vmatpush2.bf16.msra.mxu1 %v17140_v3  ;;  %v3538_v3 = vld [vmem:[%s18692_s6 + $0x6b8] sm:$0xff] }
 0xae3   : > { %17143 = vmatprep.subr.bf16.mxu1 %v17142_v48  ;;  %v3729_v48 = vld [vmem:[%s18692_s6 + $0xcb0] sm:$0xff]  ;;  %v17242_v50 = vunpack.c.h.s8.bf16 %v3538_v3 }
 0xae4   : > { %17209 = vmatpush2.bf16.msra.mxu0 %v17208_v49  ;;  %v17240_v49 = vunpack.c.l.s8.bf16 %v3561_v45  ;;  %v17308_v35 = vunpack.c.h.s8.bf16 %v3729_v48  ;;  %v3826_v45 = vld [vmem:[%s18692_s6 + $0xfb8] sm:$0xff] }
 0xae5   : > { %17211 = vmatprep.subr.bf16.mxu0 %v17210_v51  ;;  %v3537_v51 = vld [vmem:[%s18692_s6 + $0x6b0] sm:$0xff] }
 0xae6   : > { %17145 = vmatpush2.bf16.msra.mxu1 %v17144_v52  ;;  %v17310_v52 = vunpack.c.l.s8.bf16 %v3730_v9  ;;  %v17338_v9 = vunpack.c.h.s8.bf16 %v3826_v45 }
 0xae7   : > { %17147 = vmatprep.subr.bf16.mxu1 %v17146_v54  ;;  %v17244_v54 = vunpack.c.h.s8.bf16 %v3537_v51 }
 0xae8   : > { %17213 = vmatpush2.bf16.msra.mxu0 %v17212_v57  ;;  %v17246_v57 = vunpack.c.l.s8.bf16 %v3538_v3 }
 0xae9   : > { %17215 = vmatprep.subr.bf16.mxu0 %v17214_v59  ;;  %v17312_v59 = vunpack.c.l.s8.bf16 %v3729_v48 }
 0xaea   : > { %17149 = vmatpush2.bf16.msra.mxu1 %v17148_v62  ;;  %v3706_v62 = vld [vmem:[%s18692_s6 + $0xbf8] sm:$0xff] }
 0xaeb   : > { %17151 = vmatprep.subr.bf16.mxu1 %v17150_v0  ;;  %v3897_v0 = vld [vmem:[%s18692_s6 + $0x11f0] sm:$0xff]  ;;  %v17250_v38 = vunpack.c.h.s8.bf16 %v3706_v62 }
 0xaec   : > { %17217 = vmatpush2.bf16.msra.mxu0 %v17216_v47  ;;  %v17248_v47 = vunpack.c.l.s8.bf16 %v3537_v51  ;;  %v17316_v6 = vunpack.c.h.s8.bf16 %v3897_v0  ;;  %v12857_v51 = vpop.f32.mrf.mxu0 }
 0xaed   : > { %17283 = vmatprep.subr.bf16.mxu0 %v17282_v26  ;;  %v3705_v26 = vld [vmem:[%s18692_s6 + $0xbf0] sm:$0xff] }
 0xaee   : > { %17153 = vmatpush2.bf16.msra.mxu1 %v17152_v60  ;;  %v17318_v60 = vunpack.c.l.s8.bf16 %v3898_v2  ;;  %v3994_v2 = vld [vmem:[%s18692_s6 + $0x14f8] sm:$0xff] }
 0xaef   : > { %13424 = vmatmul.mubr.f32.vlgmr.msra.gmra.mxu0 %v18861_v36  ;;  %17219 = vmatprep.subr.bf16.mxu1 %v17218_v17  ;;  %v17226_v36 = vunpack.c.h.s8.bf16 %v3586_v10  ;;  %v17252_v17 = vunpack.c.h.s8.bf16 %v3705_v26 }
 0xaf0   : > { %17285 = vmatpush1.bf16.msra.mxu0 %v17284_v1  ;;  %13565 = vmatprep.mubr.f32.mxu0 %v18958_v39  ;;  %v17294_v39 = vunpack.c.l.s8.bf16 %v3778_v11  ;;  %v17254_v1 = vunpack.c.l.s8.bf16 %v3706_v62  ;;  %v17322_v11 = vunpack.c.h.s8.bf16 %v3874_v7 }
 0xaf1   : > { %13353 = vmatmul.mubr.f32.vlgmr.msra.gmra.mxu1 %v19011_v56  ;;  %17287 = vmatprep.subr.bf16.mxu0 %v17286_v13  ;;  %v17320_v13 = vunpack.c.l.s8.bf16 %v3897_v0  ;;  %v3993_v0 = vld [vmem:[%s18692_s6 + $0x14f0] sm:$0xff] }
 0xaf2   : > { %17221 = vmatpush1.bf16.msra.mxu1 %v17220_v8  ;;  %13494 = vmatprep.mubr.f32.mxu1 %v18903_v23  ;;  %v3562_v23 = vld [vmem:[%s18692_s6 + $0x778] sm:$0xff] }
 0xaf3   : > { %17223 = vmatprep.subr.bf16.mxu1 %v17222_v61  ;;  %v17234_v12 = vunpack.c.h.s8.bf16 %v3562_v23  ;;  %v17238_v33 = vunpack.c.l.s8.bf16 %v3562_v23  ;;  %v3682_v8 = vld [vmem:[%s18692_s6 + $0xb38] sm:$0xff]  ;;  %v3873_v61 = vld [vmem:[%s18692_s6 + $0x1130] sm:$0xff] }
 0xaf4   : > { %17289 = vmatpush1.bf16.msra.mxu0 %v17288_v32  ;;  %v17256_v32 = vunpack.c.l.s8.bf16 %v3705_v26  ;;  %v17258_v10 = vunpack.c.h.s8.bf16 %v3682_v8  ;;  %v17324_v19 = vunpack.c.h.s8.bf16 %v3873_v61 }
 0xaf5   : > { %17291 = vmatprep.subr.bf16.mxu0 %v17290_v58  ;;  %v3681_v58 = vld [vmem:[%s18692_s6 + $0xb30] sm:$0xff] }
 0xaf6   : > { %17225 = vmatpush1.bf16.msra.mxu1 %v17224_v28  ;;  %v17326_v28 = vunpack.c.l.s8.bf16 %v3874_v7  ;;  %v13724_v7 = vrot.slane %v19817_v42, %v18745_v4 }
 0xaf7   : > { %17227 = vmatprep.subr.bf16.mxu1 %v17226_v36  ;;  %v17260_v36 = vunpack.c.h.s8.bf16 %v3681_v58 }
 0xaf8   : > { %17293 = vmatpush1.bf16.msra.mxu0 %v17292_v18  ;;  %v17262_v18 = vunpack.c.l.s8.bf16 %v3682_v8 }
 0xaf9   : > { %17295 = vmatprep.subr.bf16.mxu0 %v17294_v39  ;;  %v17328_v39 = vunpack.c.l.s8.bf16 %v3873_v61 }
 0xafa   : > { %17229 = vmatpush1.bf16.msra.mxu1 %v17228_v15  ;;  %v3658_v15 = vld [vmem:[%s18692_s6 + $0xa78] sm:$0xff] }
 0xafb   : > { %17231 = vmatprep.subr.bf16.mxu1 %v17230_v27  ;;  %v3849_v27 = vld [vmem:[%s18692_s6 + $0x1070] sm:$0xff]  ;;  %v17266_v23 = vunpack.c.h.s8.bf16 %v3658_v15 }
 0xafc   : > { %17297 = vmatpush1.bf16.msra.mxu0 %v17296_v22  ;;  %v17264_v22 = vunpack.c.l.s8.bf16 %v3681_v58  ;;  %v17332_v43 = vunpack.c.h.s8.bf16 %v3849_v27 }
 0xafd   : > { %17299 = vmatprep.subr.bf16.mxu0 %v17298_v37  ;;  %v3657_v37 = vld [vmem:[%s18692_s6 + $0xa70] sm:$0xff] }
 0xafe   : > { %17233 = vmatpush1.bf16.msra.mxu1 %v17232_v44  ;;  %v17334_v44 = vunpack.c.l.s8.bf16 %v3850_v30 }
 0xaff   : > { %17235 = vmatprep.subr.bf16.mxu1 %v17234_v12  ;;  %v17268_v12 = vunpack.c.h.s8.bf16 %v3657_v37 }
 0xb00   : > { %17301 = vmatpush1.bf16.msra.mxu0 %v17300_v25  ;;  %v17270_v25 = vunpack.c.l.s8.bf16 %v3658_v15 }
 0xb01   : > { %17303 = vmatprep.subr.bf16.mxu0 %v17302_v31  ;;  %v17336_v31 = vunpack.c.l.s8.bf16 %v3849_v27 }
 0xb02   : > { %17237 = vmatpush1.bf16.msra.mxu1 %v17236_v40  ;;  %v3634_v40 = vld [vmem:[%s18692_s6 + $0x9b8] sm:$0xff] }
 0xb03   : > { %17239 = vmatprep.subr.bf16.mxu1 %v17238_v33  ;;  %v3825_v33 = vld [vmem:[%s18692_s6 + $0xfb0] sm:$0xff]  ;;  %v17274_v3 = vunpack.c.h.s8.bf16 %v3634_v40 }
 0xb04   : > { %17305 = vmatpush1.bf16.msra.mxu0 %v17304_v46  ;;  %v17272_v46 = vunpack.c.l.s8.bf16 %v3657_v37  ;;  %v17340_v48 = vunpack.c.h.s8.bf16 %v3825_v33 }
 0xb05   : > { %17307 = vmatprep.subr.bf16.mxu0 %v17306_v14  ;;  %v3633_v14 = vld [vmem:[%s18692_s6 + $0x9b0] sm:$0xff] }
 0xb06   : > { %17241 = vmatpush1.bf16.msra.mxu1 %v17240_v49  ;;  %v17342_v49 = vunpack.c.l.s8.bf16 %v3826_v45  ;;  %v3921_v45 = vld [vmem:[%s18692_s6 + $0x12b0] sm:$0xff] }
 0xb07   : > { %17243 = vmatprep.subr.bf16.mxu1 %v17242_v50  ;;  %v17276_v50 = vunpack.c.h.s8.bf16 %v3633_v14 }
 0xb08   : > { %17309 = vmatpush1.bf16.msra.mxu0 %v17308_v35  ;;  %v12928_v35 = vpop.f32.mrf.mxu1 }
 0xb09   : > { %17311 = vmatprep.subr.bf16.mxu0 %v17310_v52  ;;  %v17278_v52 = vunpack.c.l.s8.bf16 %v3634_v40 }
 0xb0a   : > { %17245 = vmatpush1.bf16.msra.mxu1 %v17244_v54  ;;  %v17344_v54 = vunpack.c.l.s8.bf16 %v3825_v33  ;;  %v12930_v62 = vpop.f32.mrf.mxu1  ;;  %v4090_v33 = vld [vmem:[%s18692_s6 + $0x17f8] sm:$0xff] }
 0xb0b   : > { %17247 = vmatprep.subr.bf16.mxu1 %v17246_v57  ;;  %v17280_v57 = vunpack.c.l.s8.bf16 %v3633_v14  ;;  %v4089_v14 = vld [vmem:[%s18692_s6 + $0x17f0] sm:$0xff] }
 0xb0c   : > { %17313 = vmatpush1.bf16.msra.mxu0 %v17312_v59  ;;  %v12859_v59 = vpop.f32.mrf.mxu0 }
 0xb0d   : > { %17315 = vmatprep.subr.bf16.mxu0 %v17314_v63  ;;  %v17346_v63 = vunpack.c.h.s8.bf16 %v3994_v2  ;;  %v12931_v26 = vadd.f32 %v12930_v62, %v12859_v59 }
 0xb0e   : > { %17249 = vmatpush1.bf16.msra.mxu1 %v17248_v47  ;;  %v12929_v47 = vadd.f32 %v12928_v35, %v12857_v51  ;;  %v17384_v51 = vunpack.c.l.s8.bf16 %v4089_v14 }
 0xb0f   : > { %17251 = vmatprep.subr.bf16.mxu1 %v17250_v38  ;;  %v12999_v38 = vpop.f32.mrf.mxu0 }
 0xb10   : > { %17317 = vmatpush2.bf16.msra.mxu0 %v17316_v6  ;;  %v17348_v6 = vunpack.c.h.s8.bf16 %v3993_v0 }
 0xb11   : > { %17319 = vmatprep.subr.bf16.mxu0 %v17318_v60  ;;  %v17350_v60 = vunpack.c.l.s8.bf16 %v3994_v2 }
 0xb12   : > { %17253 = vmatpush2.bf16.msra.mxu1 %v17252_v17  ;;  %v13000_v17 = vadd.f32 %v12999_v38, %v12929_v47  ;;  %v4018_v38 = vld [vmem:[%s18692_s6 + $0x15b8] sm:$0xff] }
 0xb13   : > { %17255 = vmatprep.subr.bf16.mxu1 %v17254_v1  ;;  %v3970_v1 = vld [vmem:[%s18692_s6 + $0x1438] sm:$0xff] }
 0xb14   : > { %17321 = vmatpush2.bf16.msra.mxu0 %v17320_v13  ;;  %v13001_v13 = vpop.f32.mrf.mxu0 }
 0xb15   : > { %17323 = vmatprep.subr.bf16.mxu0 %v17322_v11  ;;  %v13874_v11 = vrot.slane %v19820_v55, %v18745_v4  ;;  %v13002_v61 = vadd.f32 %v13001_v13, %v12931_v26  ;;  %v13878_v4 = vrot.slane %v19820_v55, %v18748_v5 }
 0xb16   : > { %17257 = vmatpush2.bf16.msra.mxu1 %v17256_v32 }
 0xb17   : > { %17259 = vmatprep.subr.bf16.mxu1 %v17258_v10  ;;  %v17352_v10 = vunpack.c.l.s8.bf16 %v3993_v0 }
 0xb18   : > { %17325 = vmatpush2.bf16.msra.mxu0 %v17324_v19  ;;  %v17354_v19 = vunpack.c.h.s8.bf16 %v3970_v1 }
 0xb19   : > { %17327 = vmatprep.subr.bf16.mxu0 %v17326_v28  ;;  %v3969_v28 = vld [vmem:[%s18692_s6 + $0x1430] sm:$0xff] }
 0xb1a   : > { %17261 = vmatpush2.bf16.msra.mxu1 %v17260_v36  ;;  %v17360_v27 = vunpack.c.l.s8.bf16 %v3969_v28 }
 0xb1b   : > { %17263 = vmatprep.subr.bf16.mxu1 %v17262_v18 }
 0xb1c   : > { %17329 = vmatpush2.bf16.msra.mxu0 %v17328_v39  ;;  %v17356_v39 = vunpack.c.h.s8.bf16 %v3969_v28 }
 0xb1d   : > { %17331 = vmatprep.subr.bf16.mxu0 %v17330_v34  ;;  %v3946_v34 = vld [vmem:[%s18692_s6 + $0x1378] sm:$0xff] }
 0xb1e   : > { %17265 = vmatpush2.bf16.msra.mxu1 %v17264_v22  ;;  %v17362_v22 = vunpack.c.h.s8.bf16 %v3946_v34  ;;  %v17366_v37 = vunpack.c.l.s8.bf16 %v3946_v34 }
 0xb1f   : > { %17267 = vmatprep.subr.bf16.mxu1 %v17266_v23  ;;  %v3945_v23 = vld [vmem:[%s18692_s6 + $0x1370] sm:$0xff] }
 0xb20   : > { %17333 = vmatpush2.bf16.msra.mxu0 %v17332_v43  ;;  %v3922_v43 = vld [vmem:[%s18692_s6 + $0x12b8] sm:$0xff] }
 0xb21   : > { %17335 = vmatprep.subr.bf16.mxu0 %v17334_v44  ;;  %v17368_v44 = vunpack.c.l.s8.bf16 %v3945_v23 }
 0xb22   : > { %17269 = vmatpush2.bf16.msra.mxu1 %v17268_v12  ;;  %v17370_v12 = vunpack.c.h.s8.bf16 %v3922_v43 }
 0xb23   : > { %17271 = vmatprep.subr.bf16.mxu1 %v17270_v25 }
 0xb24   : > { %17337 = vmatpush2.bf16.msra.mxu0 %v17336_v31  ;;  %v17372_v31 = vunpack.c.h.s8.bf16 %v3921_v45 }
 0xb25   : > { %17339 = vmatprep.subr.bf16.mxu0 %v17338_v9  ;;  %v17374_v9 = vunpack.c.l.s8.bf16 %v3922_v43 }
 0xb26   : > { %17273 = vmatpush2.bf16.msra.mxu1 %v17272_v46  ;;  %v17376_v46 = vunpack.c.l.s8.bf16 %v3921_v45 }
 0xb27   : > { %17275 = vmatprep.subr.bf16.mxu1 %v17274_v3  ;;  %v17378_v3 = vunpack.c.h.s8.bf16 %v4090_v33 }
 0xb28   : > { %17341 = vmatpush2.bf16.msra.mxu0 %v17340_v48  ;;  %v17380_v48 = vunpack.c.h.s8.bf16 %v4089_v14  ;;  %v13744_v14 = vrot.slane %v19817_v42, %v18961_v41 }
 0xb29   : > { %17343 = vmatprep.subr.bf16.mxu0 %v17342_v49  ;;  %v17382_v49 = vunpack.c.l.s8.bf16 %v4090_v33 }
 0xb2a   : > { %17277 = vmatpush2.bf16.msra.mxu1 %v17276_v50  ;;  %v4066_v50 = vld [vmem:[%s18692_s6 + $0x1738] sm:$0xff] }
 0xb2b   : > { %17279 = vmatprep.subr.bf16.mxu1 %v17278_v52  ;;  %v17386_v35 = vunpack.c.h.s8.bf16 %v4066_v50  ;;  %v4065_v52 = vld [vmem:[%s18692_s6 + $0x1730] sm:$0xff]  ;;  %v17390_v2 = vunpack.c.l.s8.bf16 %v4066_v50 }
 0xb2c   : > { %17345 = vmatpush2.bf16.msra.mxu0 %v17344_v54  ;;  %v17388_v54 = vunpack.c.h.s8.bf16 %v4065_v52  ;;  %v17392_v59 = vunpack.c.l.s8.bf16 %v4065_v52 }
 0xb2e   : > { %17281 = vmatpush2.bf16.msra.mxu1 %v17280_v57  ;;  %v4042_v57 = vld [vmem:[%s18692_s6 + $0x1678] sm:$0xff] }
 0xb2f   : > { %13566 = vmatmul.mubr.f32.vlgmr.msra.gmra.mxu0 %v18964_v21  ;;  %17347 = vmatprep.subr.bf16.mxu1 %v17346_v63  ;;  %v13728_v21 = vrot.slane %v19817_v42, %v18748_v5  ;;  %v17364_v5 = vunpack.c.h.s8.bf16 %v3945_v23  ;;  %v17394_v62 = vunpack.c.h.s8.bf16 %v4042_v57  ;;  %v4041_v63 = vld [vmem:[%s18692_s6 + $0x1670] sm:$0xff]  ;;  %v17398_v47 = vunpack.c.l.s8.bf16 %v4042_v57  ;;  %v13141_v13 = vpop.f32.mrf.mxu0 }
 0xb30   : > { %v17396_v0 = vunpack.c.h.s8.bf16 %v4041_v63  ;;  %v17400_v26 = vunpack.c.l.s8.bf16 %v4041_v63 }
 0xb31   : > { %v13070_v8 = vpop.f32.mrf.mxu1  ;;  %13495 = vmatmul.mubr.f32.vlgmr.msra.gmra.mxu1 %v18909_v29 }
 0xb32   : > { %v13071_v32 = vadd.f32 %v13070_v8, %v13000_v17  ;;  %17349 = vmatpush1.bf16.msra.mxu1 %v17348_v6  ;;  %13636 = vmatprep.mubr.f32.mxu1 %v19007_v53  ;;  %v17358_v53 = vunpack.c.l.s8.bf16 %v3970_v1  ;;  %v17402_v6 = vunpack.c.h.s8.bf16 %v4018_v38 }
 0xb33   : > { %v13072_v58 = vpop.f32.mrf.mxu1  ;;  %17351 = vmatprep.subr.bf16.mxu1 %v17350_v60  ;;  %v4017_v60 = vld [vmem:[%s18692_s6 + $0x15b0] sm:$0xff] }
 0xb34   : > { %v13787_v36 = vmul.f32 %v13724_v7, %v13071_v32  ;;  %v13073_v30 = vadd.f32 %v13072_v58, %v13002_v61  ;;  %v17404_v17 = vunpack.c.h.s8.bf16 %v4017_v60  ;;  %v17406_v7 = vunpack.c.l.s8.bf16 %v4018_v38 }
 0xb35   : > { %v17408_v1 = vunpack.c.l.s8.bf16 %v4017_v60 }
 0xb36   : > { %v13937_v29 = vadd.f32 %v13874_v11, %v13787_v36  ;;  %v13788_v18 = vmul.f32 %v13728_v21, %v13073_v30  ;;  %17353 = vmatpush1.bf16.msra.mxu1 %v17352_v10  ;;  %v13143_v11 = vpop.f32.mrf.mxu0 }
 0xb37   : > { %17355 = vmatprep.subr.bf16.mxu1 %v17354_v19  ;;  %v13732_v19 = vrot.slane %v19817_v42, %v18898_v16 }
 0xb38   : > { %17692 = vtanh.f32 %v13937_v29  ;;  %v13938_v15 = vadd.f32 %v13878_v4, %v13788_v18  ;;  %v13736_v29 = vrot.slane %v19817_v42, %v18906_v24 }
 0xb3a   : > { %17694 = vtanh.f32 %v13938_v15  ;;  %17357 = vmatpush1.bf16.msra.mxu1 %v17356_v39  ;;  %v13886_v15 = vrot.slane %v19820_v55, %v18906_v24  ;;  %v13740_v24 = vrot.slane %v19817_v42, %v18956_v20 }
 0xb3b   : > { %17359 = vmatprep.subr.bf16.mxu1 %v17358_v53 }
 0xb3e   : > { %17361 = vmatpush1.bf16.msra.mxu1 %v17360_v27 }
 0xb3f   : > { %17363 = vmatprep.subr.bf16.mxu1 %v17362_v22 }
 0xb42   : > { %17365 = vmatpush1.bf16.msra.mxu1 %v17364_v5 }
 0xb43   : > { %17367 = vmatprep.subr.bf16.mxu1 %v17366_v37 }
 0xb45   : > { %v17693_v25 = vpop.eup %17692 }
 0xb46   : > { %13985 = vst [vmem:[%s19163_s5 + $0x90] sm:$0xff] %v17693_v25  ;;  %17369 = vmatpush1.bf16.msra.mxu1 %v17368_v44 }
 0xb47   : > { %v17695_v40 = vpop.eup %17694  ;;  %17371 = vmatprep.subr.bf16.mxu1 %v17370_v12 }
 0xb48   : > { %13986 = vst [vmem:[%s19163_s5 + $0x98] sm:$0xff] %v17695_v40 }
 0xb4a   : > { %17373 = vmatpush1.bf16.msra.mxu1 %v17372_v31 }
 0xb4b   : > { %17375 = vmatprep.subr.bf16.mxu1 %v17374_v9 }
 0xb4e   : > { %17377 = vmatpush1.bf16.msra.mxu1 %v17376_v46 }
 0xb4f   : > { %17379 = vmatprep.subr.bf16.mxu1 %v17378_v3  ;;  %v13890_v3 = vrot.slane %v19820_v55, %v18956_v20 }
 0xb52   : > { %17381 = vmatpush2.bf16.msra.mxu1 %v17380_v48 }
 0xb53   : > { %17383 = vmatprep.subr.bf16.mxu1 %v17382_v49 }
 0xb56   : > { %17385 = vmatpush2.bf16.msra.mxu1 %v17384_v51  ;;  %v13894_v51 = vrot.slane %v19820_v55, %v18961_v41 }
 0xb57   : > { %17387 = vmatprep.subr.bf16.mxu1 %v17386_v35 }
 0xb5a   : > { %17389 = vmatpush2.bf16.msra.mxu1 %v17388_v54 }
 0xb5b   : > { %17391 = vmatprep.subr.bf16.mxu1 %v17390_v2 }
 0xb5e   : > { %17393 = vmatpush2.bf16.msra.mxu1 %v17392_v59 }
 0xb5f   : > { %17395 = vmatprep.subr.bf16.mxu1 %v17394_v62 }
 0xb62   : > { %17397 = vmatpush2.bf16.msra.mxu1 %v17396_v0 }
 0xb63   : > { %17399 = vmatprep.subr.bf16.mxu1 %v17398_v47 }
 0xb66   : > { %17401 = vmatpush2.bf16.msra.mxu1 %v17400_v26 }
 0xb67   : > { %17403 = vmatprep.subr.bf16.mxu1 %v17402_v6 }
 0xb6a   : > { %17405 = vmatpush2.bf16.msra.mxu1 %v17404_v17 }
 0xb6b   : > { %17407 = vmatprep.subr.bf16.mxu1 %v17406_v7 }
 0xb6e   : > { %17409 = vmatpush2.bf16.msra.mxu1 %v17408_v1 }
 0xb6f   : > { %v13283_v21 = vpop.f32.mrf.mxu0 }
 0xb71   : > { %13637 = vmatmul.mubr.f32.vlgmr.msra.gmra.mxu1 %v19011_v56  ;;  %v13212_v8 = vpop.f32.mrf.mxu1  ;;  %v13285_v28 = vpop.f32.mrf.mxu0  ;;  %v13882_v56 = vrot.slane %v19820_v55, %v18898_v16 }
 0xb72   : > { %v13213_v32 = vadd.f32 %v13212_v8, %v13141_v13 }
 0xb73   : > { %v13214_v61 = vpop.f32.mrf.mxu1 }
 0xb74   : > { %v13215_v10 = vadd.f32 %v13214_v61, %v13143_v11  ;;  %v13284_v58 = vadd.f32 %v13283_v21, %v13213_v32 }
 0xb76   : > { %v13286_v30 = vadd.f32 %v13285_v28, %v13215_v10 }
 0xbaf   : > { %v13425_v37 = vpop.f32.mrf.mxu0 }
 0xbb1   : > { %v13354_v36 = vpop.f32.mrf.mxu1  ;;  %v13427_v43 = vpop.f32.mrf.mxu0 }
 0xbb2   : > { %v13355_v4 = vadd.f32 %v13354_v36, %v13284_v58 }
 0xbb3   : > { %v13356_v18 = vpop.f32.mrf.mxu1 }
 0xbb4   : > { %v13789_v39 = vmul.f32 %v13732_v19, %v13355_v4  ;;  %v13357_v53 = vadd.f32 %v13356_v18, %v13286_v30 }
 0xbb6   : > { %v13939_v34 = vadd.f32 %v13882_v56, %v13789_v39  ;;  %v13790_v27 = vmul.f32 %v13736_v29, %v13357_v53 }
 0xbb8   : > { %17696 = vtanh.f32 %v13939_v34  ;;  %v13940_v22 = vadd.f32 %v13886_v15, %v13790_v27 }
 0xbba   : > { %17698 = vtanh.f32 %v13940_v22 }
 0xbc5   : > { %v17697_v23 = vpop.eup %17696 }
 0xbc6   : > { %13987 = vst [vmem:[%s19163_s5 + $0xa0] sm:$0xff] %v17697_v23 }
 0xbc7   : > { %v17699_v5 = vpop.eup %17698 }
 0xbc8   : > { %13988 = vst [vmem:[%s19163_s5 + $0xa8] sm:$0xff] %v17699_v5 }
 0xbef   : > { %v13567_v45 = vpop.f32.mrf.mxu0 }
 0xbf1   : > { %v13496_v16 = vpop.f32.mrf.mxu1  ;;  %v13569_v40 = vpop.f32.mrf.mxu0 }
 0xbf2   : > { %v13497_v12 = vadd.f32 %v13496_v16, %v13425_v37 }
 0xbf3   : > { %v13498_v44 = vpop.f32.mrf.mxu1 }
 0xbf4   : > { %v13499_v25 = vadd.f32 %v13498_v44, %v13427_v43  ;;  %v13568_v31 = vadd.f32 %v13567_v45, %v13497_v12 }
 0xbf6   : > { %v13570_v33 = vadd.f32 %v13569_v40, %v13499_v25 }
 0xc31   : > { %v13638_v9 = vpop.f32.mrf.mxu1 }
 0xc32   : > { %v13639_v46 = vadd.f32 %v13638_v9, %v13568_v31 }
 0xc33   : > { %v13640_v48 = vpop.f32.mrf.mxu1 }
 0xc34   : > { %v13791_v49 = vmul.f32 %v13740_v24, %v13639_v46  ;;  %v13641_v50 = vadd.f32 %v13640_v48, %v13570_v33 }
 0xc36   : > { %v13941_v35 = vadd.f32 %v13890_v3, %v13791_v49  ;;  %v13792_v52 = vmul.f32 %v13744_v14, %v13641_v50 }
 0xc38   : > { %17700 = vtanh.f32 %v13941_v35  ;;  %v13942_v54 = vadd.f32 %v13894_v51, %v13792_v52 }
 0xc3a   : > { %17702 = vtanh.f32 %v13942_v54 }
 0xc45   : > { %v17701_v2 = vpop.eup %17700 }
 0xc46   : > { %13989 = vst [vmem:[%s19163_s5 + $0xb0] sm:$0xff] %v17701_v2 }
 0xc47   : > { %v17703_v57 = vpop.eup %17702 }
 0xc48   : > { %13990 = vst [vmem:[%s19163_s5 + $0xb8] sm:$0xff] %v17703_v57 }
 0xc49 PF: > { %p39_p0 = scmp.ge.s32.totalorder %s18484_s0, 6   ;;  %s20057_s27 = smov %s18245_s28 }
 0xc4a   : > { %s20058_s28 = smov %s18249_s29  ;;  %s20059_s29 = smov %s18495_s18 }
 0xc4b   : > { %s20060_s30 = smov %s18484_s0  ;;  %41 = sbr.rel (!%p39_p0) target bundleno = 28 (0x1c), region = 217 }
 0xc50   :  { %14013 = vsyncpa [#allocation3], 1 }
 0xc51   :  { %14015 = vsyncpa [#allocation3 + $0x1], 1 }
 0xc52   :  { %14016 = vsyncpa [#allocation5], 1 }
 0xc53   :  { %14017 = vsyncpa [#allocation8], 1 }
 0xc54   :  { %14018 = vsyncpa [#allocation11], 1 }
 0xc55   :  { %14019 = vsyncpa [#allocation14], 1 }
 0xc56   :  { %14020 = vsyncpa [#allocation17], 1 }
 0xc57   :  { %14021 = vsyncpa [#allocation20], 1 }
 0xc58   :  { %14022 = vsyncpa [#allocation23], 1 }
 0xc59   :  { %14023 = vsyncpa [#allocation26], 1 }
 0xc5a   :  { %14025 = vsyncpa [#allocation26 + $0x1], 1 }
 0xc5b   :  { %14026 = vsyncpa [#allocation29], 1 }
 0xc5c   :  { %14028 = vsyncpa [#allocation29 + $0x1], 1 }

</bundles_post_ra>
